<compile_context>
chip_gen: v5e
topology: v5e:2x2
jax: 0.10.0
libtpu: 0.0.40
codegen_flags: <defaults>
</compile_context>

<pallas_src>
import jax
import jax.numpy as jnp
from jax import lax
from jax.experimental import pallas as pl
from jax.experimental.pallas import tpu as pltpu


def _round_up(x, m):
    return ((x + m - 1) // m) * m


_VMEM_LIMIT = 48 * 1024 * 1024        # <= v7x 64 MiB physical, > v6e 32 MiB default
_X_RESIDENT_BYTES = 8 * 1024 * 1024   # keep X fully VMEM-resident if bf16 X <= this


# ---------------------------------------------------------------------------
# Dense / normalized-dense linear kernels (lane-dense 128-wide outputs)
# ---------------------------------------------------------------------------
def _linear_kernel(x_ref, wT_ref, b_ref, o_ref):
    # y = x @ W^T + b   (W passed pre-transposed as (K, N))
    o_ref[...] = (
        jnp.dot(x_ref[...], wT_ref[...], preferred_element_type=jnp.float32)
        + b_ref[...]
    )


def _norm_linear_kernel(x_ref, wT_ref, b_ref, o_ref):
    # y = F.normalize(x, dim=1) @ W^T + b  (torch eps = 1e-12); f32 math,
    # rsqrt uses the otherwise-idle EUP slot.
    x = x_ref[...]
    ssq = jnp.sum(x * x, axis=1, keepdims=True)
    inv_nrm = lax.rsqrt(jnp.maximum(ssq, 1e-24))   # == 1 / max(||x||, 1e-12)
    o_ref[...] = (
        jnp.dot(x * inv_nrm, wT_ref[...], preferred_element_type=jnp.float32)
        + b_ref[...]
    )


def pallas_linear(x, wT, b, *, normalize_input=False, block_rows=512):
    """x: (M, K) f32, wT: (K, Nout) f32 (pre-transposed, lane-padded), b: (Nout,)."""
    M, K = x.shape
    Nout = wT.shape[1]
    tm = min(block_rows, _round_up(M, 8))
    Mp = _round_up(M, tm)
    if Mp != M:
        x = jnp.pad(x, ((0, Mp - M), (0, 0)))
    kern = _norm_linear_kernel if normalize_input else _linear_kernel
    out = pl.pallas_call(
        kern,
        out_shape=jax.ShapeDtypeStruct((Mp, Nout), jnp.float32),
        grid=(Mp // tm,),
        in_specs=[
            pl.BlockSpec((tm, K), lambda i: (i, 0)),        # x row tile
            pl.BlockSpec((K, Nout), lambda i: (0, 0)),      # weight, VMEM-resident
            pl.BlockSpec((1, Nout), lambda i: (0, 0)),      # bias, VMEM-resident
        ],
        out_specs=pl.BlockSpec((tm, Nout), lambda i: (i, 0)),
        compiler_params=pltpu.CompilerParams(
            dimension_semantics=("parallel",),
            vmem_limit_bytes=_VMEM_LIMIT),
    )(x, wT, b.reshape(1, Nout))
    return out[:M] if Mp != M else out


# ---------------------------------------------------------------------------
# Fused multi-modal LightGCN propagation kernels
# ---------------------------------------------------------------------------
def _make_gcn_kernels(tk, resident_x):
    """Returns (step_kernel, last_kernel) closed over tile / residency choices."""

    def _xk(x_ref):
        if resident_x:
            # X is the full (Np, Dp) bf16 array, VMEM-resident (constant block
            # index) -> slice the current contraction tile out of VMEM.
            k = pl.program_id(1)
            return x_ref[pl.ds(pl.multiple_of(k * tk, tk), tk), :]
        return x_ref[...]

    def step_kernel(a_ref, x_ref, acc_in_ref, y_ref, acc_out_ref):
        # One LightGCN layer fused with the running layer-sum:
        #   acc_out = acc_in + A @ x   (f32 accumulation directly in the
        #                               resident output block, no scratch)
        #   y       = A @ x            (bf16, next layer's X)
        k = pl.program_id(1)

        @pl.when(k == 0)
        def _():
            acc_out_ref[...] = acc_in_ref[...]

        acc_out_ref[...] += jnp.dot(a_ref[...], _xk(x_ref),
                                    preferred_element_type=jnp.float32)

        @pl.when(k == pl.num_programs(1) - 1)
        def _():
            # A @ x == acc_out - acc_in exactly (up to f32 rounding, which is
            # far below the bf16 cast applied right after).
            y_ref[...] = (acc_out_ref[...] - acc_in_ref[...]).astype(y_ref.dtype)

    def last_kernel(a_ref, x_ref, acc_in_ref, wT_ref, b_ref, o_ref, part_ref):
        # Last layer + fused after-GCN linear:
        #   part = acc_in + A @ x              (f32 scratch, = sum_l A^l x0)
        #   out  = part @ W_cat^T + b_cat      (1/(L+1) folded into W_cat)
        k = pl.program_id(1)

        @pl.when(k == 0)
        def _():
            part_ref[...] = acc_in_ref[...]

        part_ref[...] += jnp.dot(a_ref[...], _xk(x_ref),
                                 preferred_element_type=jnp.float32)

        @pl.when(k == pl.num_programs(1) - 1)
        def _():
            o_ref[...] = (
                jnp.dot(part_ref[...], wT_ref[...],
                        preferred_element_type=jnp.float32)
                + b_ref[...]
            )

    return step_kernel, last_kernel


def pallas_lightgcn_fused(adj_bf16, x0_bf16, acc0_f32, after_wT, after_b, n_layers):
    """sum_{l=0..L} A^l x0, with the after-GCN linear fused into the last layer.

    adj_bf16: (Np, Np) bf16 normalized adjacency (zero padded).
    x0_bf16 : (Np, Dp) bf16 stacked [id | visual | text] features.
    acc0_f32: (Np, Dp) f32 layer-0 term (exact x0).
    Returns (Np, n_out_p) f32 fused [user | item] after-GCN outputs.
    """
    Np, Dp = x0_bf16.shape
    n_out_p = after_wT.shape[1]
    assert adj_bf16.shape == (Np, Np) and n_layers >= 1

    # Large square tiles: 512 when Np allows (>= 256 contraction keeps the
    # 2x256x256 MXU of v6e/v7x full); fall back for small / odd-sized graphs.
    tile = 128
    for t in (512, 256, 128):
        if Np % t == 0:
            tile = t
            break
    tm = tk = tile

    # Make X fully VMEM-resident per layer if it is small (fetched once per
    # pallas_call instead of once per row tile); otherwise stream k-tiles.
    resident_x = (Np * Dp * 2) <= _X_RESIDENT_BYTES
    step_kernel, last_kernel = _make_gcn_kernels(tk, resident_x)

    a_spec = pl.BlockSpec((tm, tk), lambda i, k: (i, k))          # bf16 A tile
    if resident_x:
        x_spec = pl.BlockSpec((Np, Dp), lambda i, k: (0, 0))      # resident X
    else:
        x_spec = pl.BlockSpec((tk, Dp), lambda i, k: (k, 0))      # streamed X
    accin_spec = pl.BlockSpec((tm, Dp), lambda i, k: (i, 0))

    grid = (Np // tm, Np // tk)
    cparams = pltpu.CompilerParams(
        dimension_semantics=("parallel", "arbitrary"),
        vmem_limit_bytes=_VMEM_LIMIT)

    step = pl.pallas_call(
        step_kernel,
        out_shape=(jax.ShapeDtypeStruct((Np, Dp), jnp.bfloat16),   # new X (bf16)
                   jax.ShapeDtypeStruct((Np, Dp), jnp.float32)),   # new acc (f32)
        grid=grid,
        in_specs=[a_spec, x_spec, accin_spec],
        out_specs=(pl.BlockSpec((tm, Dp), lambda i, k: (i, 0)),
                   pl.BlockSpec((tm, Dp), lambda i, k: (i, 0))),
        input_output_aliases={2: 1},   # acc_in -> acc_out (same shape/dtype)
        compiler_params=cparams,
    )

    last = pl.pallas_call(
        last_kernel,
        out_shape=jax.ShapeDtypeStruct((Np, n_out_p), jnp.float32),
        grid=grid,
        in_specs=[a_spec, x_spec, accin_spec,
                  pl.BlockSpec((Dp, n_out_p), lambda i, k: (0, 0)),   # W_cat
                  pl.BlockSpec((1, n_out_p), lambda i, k: (0, 0))],   # b_cat
        out_specs=pl.BlockSpec((tm, n_out_p), lambda i, k: (i, 0)),
        scratch_shapes=[pltpu.VMEM((tm, Dp), jnp.float32)],
        compiler_params=cparams,
    )

    x = x0_bf16
    acc = acc0_f32
    for _ in range(n_layers - 1):
        x, acc = step(adj_bf16, x, acc)
    return last(adj_bf16, x, acc, after_wT, after_b.reshape(1, n_out_p))


# ---------------------------------------------------------------------------
# SLMRec forward (matches SLMRec.forward semantics)
# ---------------------------------------------------------------------------
def slmrec_forward(prep, adj_pad_bf16, n_layers):
    users_emb = prep["user_embedding"]          # (U, E)
    items_emb = prep["item_embedding"]          # (I, E)
    U, E = users_emb.shape
    I = items_emb.shape[0]
    N = U + I
    D = 3 * E
    Np = adj_pad_bf16.shape[0]
    Dp = prep["after_wT_cat"].shape[0]

    # Modality dense layers on L2-normalized features; outputs are lane-dense
    # 128-wide (weights padded once in prepare_params), sliced back to E.
    v_dense_emb = pallas_linear(prep["v_feat"], prep["v_dense_wT"],
                                prep["v_dense_b"], normalize_input=True)[:, :E]
    t_dense_emb = pallas_linear(prep["t_feat"], prep["t_dense_wT"],
                                prep["t_dense_b"], normalize_input=True)[:, :E]

    # Fused propagation input: feature columns [id | visual | text].
    x_user = jnp.concatenate([users_emb, users_emb, users_emb], axis=1)      # (U, 3E)
    x_item = jnp.concatenate([items_emb, v_dense_emb, t_dense_emb], axis=1)  # (I, 3E)
    x0 = jnp.concatenate([x_user, x_item], axis=0)                           # (N, 3E)
    x0 = jnp.pad(x0, ((0, Np - N), (0, Dp - D)))                             # (Np, Dp)
    x0_bf16 = x0.astype(jnp.bfloat16)

    if n_layers == 0:
        # Degenerate case: mean over layers is just x0 (scale 1 folded in W).
        out = pallas_linear(x0, prep["after_wT_cat"], prep["after_b_cat"])
    else:
        out = pallas_lightgcn_fused(adj_pad_bf16, x0_bf16, x0,
                                    prep["after_wT_cat"], prep["after_b_cat"],
                                    n_layers)                                # (Np, 128)
    user = out[:U, :E]
    item = out[U:N, E:2 * E]
    return user, item


# ---------------------------------------------------------------------------
# Parameter preparation (done ONCE, outside the forward)
# ---------------------------------------------------------------------------
def prepare_params(params, n_layers, dim_E):
    E = dim_E
    D = 3 * E                          # item_feat_dim
    Dp = _round_up(D, 128)             # lane-dense propagation feature width
    E_pad = _round_up(E, 128)          # lane-dense modality-dense output width
    n_out = 2 * E                      # fused [user | item] output heads
    n_out_p = _round_up(n_out, 128)    # lane-dense output width
    inv_layers = 1.0 / float(n_layers + 1)

    def pad_wT(w, nout_pad):           # torch Linear weight (out, in) -> (in, out_pad)
        wT = w.T
        out = jnp.zeros((wT.shape[0], nout_pad), jnp.float32)
        return out.at[:, :wT.shape[1]].set(wT)

    def pad_b(b, nout_pad):
        out = jnp.zeros((nout_pad,), jnp.float32)
        return out.at[:b.shape[0]].set(b)

    w_cat = jnp.zeros((Dp, n_out_p), jnp.float32)
    w_cat = w_cat.at[:D, :E].set(params["user_after_w"].T * inv_layers)
    w_cat = w_cat.at[:D, E:n_out].set(params["item_after_w"].T * inv_layers)
    b_cat = jnp.zeros((n_out_p,), jnp.float32)
    b_cat = b_cat.at[:E].set(params["user_after_b"])
    b_cat = b_cat.at[E:n_out].set(params["item_after_b"])

    return {
        "user_embedding": params["user_embedding"],
        "item_embedding": params["item_embedding"],
        "v_feat": params["v_feat"],
        "t_feat": params["t_feat"],
        "v_dense_wT": pad_wT(params["v_dense_w"], E_pad),   # (v_dim, 128)
        "v_dense_b": pad_b(params["v_dense_b"], E_pad),
        "t_dense_wT": pad_wT(params["t_dense_w"], E_pad),   # (t_dim, 128)
        "t_dense_b": pad_b(params["t_dense_b"], E_pad),
        "after_wT_cat": w_cat,                              # (Dp, 128), mean folded in
        "after_b_cat": b_cat,                               # (128,)
    }


# ---------------------------------------------------------------------------
# Deterministic setup
# ---------------------------------------------------------------------------
def _xavier_normal(key, shape):
    fan_out, fan_in = shape
    std = (2.0 / (fan_in + fan_out)) ** 0.5
    return std * jax.random.normal(key, shape, dtype=jnp.float32)


def _xavier_uniform(key, shape):
    fan_out, fan_in = shape
    bound = (6.0 / (fan_in + fan_out)) ** 0.5
    return jax.random.uniform(key, shape, jnp.float32, -bound, bound)


def build_params(key, num_user, num_item, dim_E, v_dim, t_dim):
    ks = jax.random.split(key, 12)
    item_feat_dim = dim_E * 3
    return {
        "user_embedding": _xavier_normal(ks[0], (num_user, dim_E)),
        "item_embedding": _xavier_normal(ks[1], (num_item, dim_E)),
        "v_feat": jax.random.normal(ks[2], (num_item, v_dim), jnp.float32),
        "t_feat": jax.random.normal(ks[3], (num_item, t_dim), jnp.float32),
        "v_dense_w": _xavier_uniform(ks[4], (dim_E, v_dim)),
        "v_dense_b": 0.01 * jax.random.normal(ks[5], (dim_E,), jnp.float32),
        "t_dense_w": _xavier_uniform(ks[6], (dim_E, t_dim)),
        "t_dense_b": 0.01 * jax.random.normal(ks[7], (dim_E,), jnp.float32),
        "user_after_w": _xavier_uniform(ks[8], (dim_E, item_feat_dim)),
        "user_after_b": 0.01 * jax.random.normal(ks[9], (dim_E,), jnp.float32),
        "item_after_w": _xavier_uniform(ks[10], (dim_E, item_feat_dim)),
        "item_after_b": 0.01 * jax.random.normal(ks[11], (dim_E,), jnp.float32),
    }


def build_norm_adj(num_user, num_item):
    """Synthetic bipartite graph, normalized exactly like normalize_edge_index
    (deg counts every endpoint of the already-symmetrized edge list, i.e.
    deg = 2 * true degree).  num_item >= 2 so no duplicate (u, item) edges."""
    num_nodes = num_user + num_item
    u = jnp.arange(num_user)
    src = jnp.concatenate([u, u])
    dst = jnp.concatenate(
        [num_user + (u % num_item), num_user + ((u + 1) % num_item)]
    )
    row = jnp.concatenate([src, dst])   # symmetric edge list
    col = jnp.concatenate([dst, src])

    deg = jnp.zeros((num_nodes,), jnp.float32).at[
        jnp.concatenate([row, col])
    ].add(1.0)
    dinv = deg ** -0.5
    norm = dinv[row] * dinv[col]
    adj = jnp.zeros((num_nodes, num_nodes), jnp.float32).at[row, col].add(norm)
    return adj


# ---------------------------------------------------------------------------
# Pure-JAX reference (un-fused, f32) for a relaxed-tolerance sanity check
# ---------------------------------------------------------------------------
def reference_forward(params, adj_f32, num_user, num_item, n_layers):
    def l2norm(x):
        n = jnp.sqrt(jnp.sum(x * x, axis=1, keepdims=True))
        return x / jnp.maximum(n, 1e-12)

    v_dense = l2norm(params["v_feat"]) @ params["v_dense_w"].T + params["v_dense_b"]
    t_dense = l2norm(params["t_feat"]) @ params["t_dense_w"].T + params["t_dense_b"]

    def compute_graph(item_part):
        x = jnp.concatenate([params["user_embedding"], item_part], axis=0)
        acc = x
        for _ in range(n_layers):
            x = adj_f32 @ x
            acc = acc + x
        return acc / (n_layers + 1)

    i_emb = compute_graph(params["item_embedding"])
    v_emb = compute_graph(v_dense)
    t_emb = compute_graph(t_dense)
    U = num_user
    user = (jnp.concatenate([i_emb[:U], v_emb[:U], t_emb[:U]], axis=1)
            @ params["user_after_w"].T + params["user_after_b"])
    item = (jnp.concatenate([i_emb[U:], v_emb[U:], t_emb[U:]], axis=1)
            @ params["item_after_w"].T + params["item_after_b"])
    return user, item


if __name__ == "__main__":
    # N = 1024 -> Np = 1024, 512-wide tiles, grid (2, 2): exercises the k
    # accumulation epilogue, megacore-parallel row axis, and resident X.
    num_user, num_item = 512, 512
    dim_E, n_layers = 32, 2
    v_dim, t_dim = 64, 48

    key = jax.random.PRNGKey(0)
    params = build_params(key, num_user, num_item, dim_E, v_dim, t_dim)

    N = num_user + num_item
    Np = _round_up(N, 128)
    adj = build_norm_adj(num_user, num_item)                      # (N, N) f32
    adj_pad_bf16 = jnp.pad(adj, ((0, Np - N), (0, Np - N))).astype(jnp.bfloat16)

    prep = prepare_params(params, n_layers, dim_E)

    fwd = jax.jit(slmrec_forward, static_argnums=(2,))
    user, item = fwd(prep, adj_pad_bf16, n_layers)
    user = jax.block_until_ready(user)
    item = jax.block_until_ready(item)

    user_ref, item_ref = reference_forward(params, adj, num_user, num_item, n_layers)

    assert user.shape == (num_user, dim_E)
    assert item.shape == (num_item, dim_E)
    assert bool(jnp.all(jnp.isfinite(user))) and bool(jnp.all(jnp.isfinite(item)))
    # relaxed tolerance: adjacency and X feed the MXU in bf16 (f32 accumulation)
    assert bool(jnp.allclose(user, user_ref, rtol=3e-2, atol=3e-2))
    assert bool(jnp.allclose(item, item_ref, rtol=3e-2, atol=3e-2))
    print("KERNEL_OK")
</pallas_src>

<mosaic_0001>
module attributes {stable_mosaic.version = 11 : i64} {
  func.func @_norm_linear_kernel(%arg0: i32, %arg1: memref<512x48xf32, #tpu.memory_space<vmem>>, %arg2: memref<48x128xf32, #tpu.memory_space<vmem>>, %arg3: memref<1x128xf32, #tpu.memory_space<vmem>>, %arg4: memref<512x128xf32, #tpu.memory_space<vmem>>) attributes {dimension_semantics = [#tpu.dimension_semantics<parallel>], iteration_bounds = array<i64: 1>, scalar_prefetch = 0 : i64, scratch_operands = 0 : i64, tpu.core_type = #tpu.core_type<tc>, window_params = [{transform_indices = @transform_0, window_bounds = array<i64: 512, 48>}, {pipeline_mode = #tpu.pipeline_mode<synchronous>, transform_indices = @transform_1, window_bounds = array<i64: 48, 128>}, {pipeline_mode = #tpu.pipeline_mode<synchronous>, transform_indices = @transform_2, window_bounds = array<i64: 1, 128>}, {transform_indices = @transform_3, window_bounds = array<i64: 512, 128>}]} {
    %c0 = arith.constant 0 : index
    %c0_0 = arith.constant 0 : index
    %0 = vector.load %arg1[%c0, %c0_0] : memref<512x48xf32, #tpu.memory_space<vmem>>, vector<512x48xf32>
    %1 = arith.mulf %0, %0 : vector<512x48xf32>
    %cst = arith.constant dense<0.000000e+00> : vector<512xf32>
    %2 = vector.multi_reduction <add>, %1, %cst [1] : vector<512x48xf32> to vector<512xf32>
    %3 = vector.shape_cast %2 : vector<512xf32> to vector<512x1xf32>
    %cst_1 = arith.constant 1.000000e-24 : f32
    %4 = vector.broadcast %cst_1 : f32 to vector<512x1xf32>
    %5 = arith.maximumf %3, %4 : vector<512x1xf32>
    %6 = math.rsqrt %5 : vector<512x1xf32>
    %7 = vector.broadcast %6 : vector<512x1xf32> to vector<512x48xf32>
    %8 = arith.mulf %0, %7 : vector<512x48xf32>
    %c0_2 = arith.constant 0 : index
    %c0_3 = arith.constant 0 : index
    %9 = vector.load %arg2[%c0_2, %c0_3] : memref<48x128xf32, #tpu.memory_space<vmem>>, vector<48x128xf32>
    %cst_4 = arith.constant dense<0.000000e+00> : vector<512x128xf32>
    %10 = tpu.matmul %8, %9, %cst_4 {dimension_numbers = #tpu.dot_dimension_numbers<[1], [0], [0], [1], [0, 0, 1, 1], [], []>} : vector<512x48xf32>, vector<48x128xf32>, vector<512x128xf32> -> vector<512x128xf32>
    %c0_5 = arith.constant 0 : index
    %c0_6 = arith.constant 0 : index
    %11 = vector.load %arg3[%c0_5, %c0_6] : memref<1x128xf32, #tpu.memory_space<vmem>>, vector<1x128xf32>
    %12 = vector.broadcast %11 : vector<1x128xf32> to vector<512x128xf32>
    %13 = arith.addf %10, %12 : vector<512x128xf32>
    %c0_7 = arith.constant 0 : index
    %c0_8 = arith.constant 0 : index
    %14 = vector.load %arg4[%c0_7, %c0_8] : memref<512x128xf32, #tpu.memory_space<vmem>>, vector<512x128xf32>
    tpu.vector_store %arg4[%c0_7, %c0_8], %13 {strides = array<i32>} : memref<512x128xf32, #tpu.memory_space<vmem>>, vector<512x128xf32>,
    return
  }
  func.func @transform_0(%arg0: i32) -> (i32, i32) {
    %c0_i32 = arith.constant 0 : i32
    %c0_i32_0 = arith.constant 0 : i32
    return %arg0, %c0_i32 : i32, i32
  }
  func.func @transform_1(%arg0: i32) -> (i32, i32) {
    %c0_i32 = arith.constant 0 : i32
    %c0_i32_0 = arith.constant 0 : i32
    %c0_i32_1 = arith.constant 0 : i32
    return %c0_i32, %c0_i32_0 : i32, i32
  }
  func.func @transform_2(%arg0: i32) -> (i32, i32) {
    %c0_i32 = arith.constant 0 : i32
    %c0_i32_0 = arith.constant 0 : i32
    %c0_i32_1 = arith.constant 0 : i32
    return %c0_i32, %c0_i32_0 : i32, i32
  }
  func.func @transform_3(%arg0: i32) -> (i32, i32) {
    %c0_i32 = arith.constant 0 : i32
    %c0_i32_0 = arith.constant 0 : i32
    return %arg0, %c0_i32 : i32, i32
  }
}

module attributes {stable_mosaic.version = 11 : i64} {
  func.func @step_kernel(%arg0: i32, %arg1: i32, %arg2: memref<512x512xbf16, #tpu.memory_space<vmem>>, %arg3: memref<1024x128xbf16, #tpu.memory_space<vmem>>, %arg4: memref<512x128xf32, #tpu.memory_space<vmem>>, %arg5: memref<512x128xbf16, #tpu.memory_space<vmem>>, %arg6: memref<512x128xf32, #tpu.memory_space<vmem>>) attributes {dimension_semantics = [#tpu.dimension_semantics<parallel>, #tpu.dimension_semantics<arbitrary>], iteration_bounds = array<i64: 2, 2>, scalar_prefetch = 0 : i64, scratch_operands = 0 : i64, tpu.core_type = #tpu.core_type<tc>, window_params = [{transform_indices = @transform_0, window_bounds = array<i64: 512, 512>}, {pipeline_mode = #tpu.pipeline_mode<synchronous>, transform_indices = @transform_1, window_bounds = array<i64: 1024, 128>}, {transform_indices = @transform_2, window_bounds = array<i64: 512, 128>}, {transform_indices = @transform_3, window_bounds = array<i64: 512, 128>}, {transform_indices = @transform_4, window_bounds = array<i64: 512, 128>}]} {
    %c0_i32 = arith.constant 0 : i32
    %0 = arith.cmpi eq, %arg1, %c0_i32 : i32
    %1 = arith.extui %0 : i1 to i32
    %c0_i32_0 = arith.constant 0 : i32
    %2 = arith.cmpi ne, %1, %c0_i32_0 : i32
    scf.if %2 {
      %c0_8 = arith.constant 0 : index
      %c0_9 = arith.constant 0 : index
      %15 = vector.load %arg4[%c0_8, %c0_9] : memref<512x128xf32, #tpu.memory_space<vmem>>, vector<512x128xf32>
      %c0_10 = arith.constant 0 : index
      %c0_11 = arith.constant 0 : index
      %16 = vector.load %arg6[%c0_10, %c0_11] : memref<512x128xf32, #tpu.memory_space<vmem>>, vector<512x128xf32>
      tpu.vector_store %arg6[%c0_10, %c0_11], %15 {strides = array<i32>} : memref<512x128xf32, #tpu.memory_space<vmem>>, vector<512x128xf32>,
    } else {
    }
    %c0 = arith.constant 0 : index
    %c0_1 = arith.constant 0 : index
    %3 = vector.load %arg6[%c0, %c0_1] : memref<512x128xf32, #tpu.memory_space<vmem>>, vector<512x128xf32>
    %c0_2 = arith.constant 0 : index
    %c0_3 = arith.constant 0 : index
    %4 = vector.load %arg2[%c0_2, %c0_3] : memref<512x512xbf16, #tpu.memory_space<vmem>>, vector<512x512xbf16>
    %c512_i32 = arith.constant 512 : i32
    %5 = arith.muli %arg1, %c512_i32 : i32
    %6 = tpu.assume_multiple %5, 512 : i32
    %7 = arith.index_cast %6 : i32 to index
    %c0_4 = arith.constant 0 : index
    %8 = vector.load %arg3[%7, %c0_4] : memref<1024x128xbf16, #tpu.memory_space<vmem>>, vector<512x128xbf16>
    %cst = arith.constant dense<0.000000e+00> : vector<512x128xf32>
    %9 = tpu.matmul %4, %8, %cst {dimension_numbers = #tpu.dot_dimension_numbers<[1], [0], [0], [1], [0, 0, 1, 1], [], []>} : vector<512x512xbf16>, vector<512x128xbf16>, vector<512x128xf32> -> vector<512x128xf32>
    %10 = arith.addf %3, %9 : vector<512x128xf32>
    %c0_5 = arith.constant 0 : index
    %c0_6 = arith.constant 0 : index
    %11 = vector.load %arg6[%c0_5, %c0_6] : memref<512x128xf32, #tpu.memory_space<vmem>>, vector<512x128xf32>
    tpu.vector_store %arg6[%c0_5, %c0_6], %10 {strides = array<i32>} : memref<512x128xf32, #tpu.memory_space<vmem>>, vector<512x128xf32>,
    %c1_i32 = arith.constant 1 : i32
    %12 = arith.cmpi eq, %arg1, %c1_i32 : i32
    %13 = arith.extui %12 : i1 to i32
    %c0_i32_7 = arith.constant 0 : i32
    %14 = arith.cmpi ne, %13, %c0_i32_7 : i32
    scf.if %14 {
      %c0_8 = arith.constant 0 : index
      %c0_9 = arith.constant 0 : index
      %15 = vector.load %arg6[%c0_8, %c0_9] : memref<512x128xf32, #tpu.memory_space<vmem>>, vector<512x128xf32>
      %c0_10 = arith.constant 0 : index
      %c0_11 = arith.constant 0 : index
      %16 = vector.load %arg4[%c0_10, %c0_11] : memref<512x128xf32, #tpu.memory_space<vmem>>, vector<512x128xf32>
      %17 = arith.subf %15, %16 : vector<512x128xf32>
      %18 = arith.truncf %17 : vector<512x128xf32> to vector<512x128xbf16>
      %c0_12 = arith.constant 0 : index
      %c0_13 = arith.constant 0 : index
      %19 = vector.load %arg5[%c0_12, %c0_13] : memref<512x128xbf16, #tpu.memory_space<vmem>>, vector<512x128xbf16>
      tpu.vector_store %arg5[%c0_12, %c0_13], %18 {strides = array<i32>} : memref<512x128xbf16, #tpu.memory_space<vmem>>, vector<512x128xbf16>,
    } else {
    }
    return
  }
  func.func @transform_0(%arg0: i32, %arg1: i32) -> (i32, i32) {
    %c0_i32 = arith.constant 0 : i32
    return %arg0, %arg1 : i32, i32
  }
  func.func @transform_1(%arg0: i32, %arg1: i32) -> (i32, i32) {
    %c0_i32 = arith.constant 0 : i32
    %c0_i32_0 = arith.constant 0 : i32
    %c0_i32_1 = arith.constant 0 : i32
    return %c0_i32, %c0_i32_0 : i32, i32
  }
  func.func @transform_2(%arg0: i32, %arg1: i32) -> (i32, i32) {
    %c0_i32 = arith.constant 0 : i32
    %c0_i32_0 = arith.constant 0 : i32
    return %arg0, %c0_i32 : i32, i32
  }
  func.func @transform_3(%arg0: i32, %arg1: i32) -> (i32, i32) {
    %c0_i32 = arith.constant 0 : i32
    %c0_i32_0 = arith.constant 0 : i32
    return %arg0, %c0_i32 : i32, i32
  }
  func.func @transform_4(%arg0: i32, %arg1: i32) -> (i32, i32) {
    %c0_i32 = arith.constant 0 : i32
    %c0_i32_0 = arith.constant 0 : i32
    return %arg0, %c0_i32 : i32, i32
  }
}

module attributes {stable_mosaic.version = 11 : i64} {
  func.func @_norm_linear_kernel(%arg0: i32, %arg1: memref<512x64xf32, #tpu.memory_space<vmem>>, %arg2: memref<64x128xf32, #tpu.memory_space<vmem>>, %arg3: memref<1x128xf32, #tpu.memory_space<vmem>>, %arg4: memref<512x128xf32, #tpu.memory_space<vmem>>) attributes {dimension_semantics = [#tpu.dimension_semantics<parallel>], iteration_bounds = array<i64: 1>, scalar_prefetch = 0 : i64, scratch_operands = 0 : i64, tpu.core_type = #tpu.core_type<tc>, window_params = [{transform_indices = @transform_0, window_bounds = array<i64: 512, 64>}, {pipeline_mode = #tpu.pipeline_mode<synchronous>, transform_indices = @transform_1, window_bounds = array<i64: 64, 128>}, {pipeline_mode = #tpu.pipeline_mode<synchronous>, transform_indices = @transform_2, window_bounds = array<i64: 1, 128>}, {transform_indices = @transform_3, window_bounds = array<i64: 512, 128>}]} {
    %c0 = arith.constant 0 : index
    %c0_0 = arith.constant 0 : index
    %0 = vector.load %arg1[%c0, %c0_0] : memref<512x64xf32, #tpu.memory_space<vmem>>, vector<512x64xf32>
    %1 = arith.mulf %0, %0 : vector<512x64xf32>
    %cst = arith.constant dense<0.000000e+00> : vector<512xf32>
    %2 = vector.multi_reduction <add>, %1, %cst [1] : vector<512x64xf32> to vector<512xf32>
    %3 = vector.shape_cast %2 : vector<512xf32> to vector<512x1xf32>
    %cst_1 = arith.constant 1.000000e-24 : f32
    %4 = vector.broadcast %cst_1 : f32 to vector<512x1xf32>
    %5 = arith.maximumf %3, %4 : vector<512x1xf32>
    %6 = math.rsqrt %5 : vector<512x1xf32>
    %7 = vector.broadcast %6 : vector<512x1xf32> to vector<512x64xf32>
    %8 = arith.mulf %0, %7 : vector<512x64xf32>
    %c0_2 = arith.constant 0 : index
    %c0_3 = arith.constant 0 : index
    %9 = vector.load %arg2[%c0_2, %c0_3] : memref<64x128xf32, #tpu.memory_space<vmem>>, vector<64x128xf32>
    %cst_4 = arith.constant dense<0.000000e+00> : vector<512x128xf32>
    %10 = tpu.matmul %8, %9, %cst_4 {dimension_numbers = #tpu.dot_dimension_numbers<[1], [0], [0], [1], [0, 0, 1, 1], [], []>} : vector<512x64xf32>, vector<64x128xf32>, vector<512x128xf32> -> vector<512x128xf32>
    %c0_5 = arith.constant 0 : index
    %c0_6 = arith.constant 0 : index
    %11 = vector.load %arg3[%c0_5, %c0_6] : memref<1x128xf32, #tpu.memory_space<vmem>>, vector<1x128xf32>
    %12 = vector.broadcast %11 : vector<1x128xf32> to vector<512x128xf32>
    %13 = arith.addf %10, %12 : vector<512x128xf32>
    %c0_7 = arith.constant 0 : index
    %c0_8 = arith.constant 0 : index
    %14 = vector.load %arg4[%c0_7, %c0_8] : memref<512x128xf32, #tpu.memory_space<vmem>>, vector<512x128xf32>
    tpu.vector_store %arg4[%c0_7, %c0_8], %13 {strides = array<i32>} : memref<512x128xf32, #tpu.memory_space<vmem>>, vector<512x128xf32>,
    return
  }
  func.func @transform_0(%arg0: i32) -> (i32, i32) {
    %c0_i32 = arith.constant 0 : i32
    %c0_i32_0 = arith.constant 0 : i32
    return %arg0, %c0_i32 : i32, i32
  }
  func.func @transform_1(%arg0: i32) -> (i32, i32) {
    %c0_i32 = arith.constant 0 : i32
    %c0_i32_0 = arith.constant 0 : i32
    %c0_i32_1 = arith.constant 0 : i32
    return %c0_i32, %c0_i32_0 : i32, i32
  }
  func.func @transform_2(%arg0: i32) -> (i32, i32) {
    %c0_i32 = arith.constant 0 : i32
    %c0_i32_0 = arith.constant 0 : i32
    %c0_i32_1 = arith.constant 0 : i32
    return %c0_i32, %c0_i32_0 : i32, i32
  }
  func.func @transform_3(%arg0: i32) -> (i32, i32) {
    %c0_i32 = arith.constant 0 : i32
    %c0_i32_0 = arith.constant 0 : i32
    return %arg0, %c0_i32 : i32, i32
  }
}

module attributes {stable_mosaic.version = 11 : i64} {
  func.func @last_kernel(%arg0: i32, %arg1: i32, %arg2: memref<512x512xbf16, #tpu.memory_space<vmem>>, %arg3: memref<1024x128xbf16, #tpu.memory_space<vmem>>, %arg4: memref<512x128xf32, #tpu.memory_space<vmem>>, %arg5: memref<128x128xf32, #tpu.memory_space<vmem>>, %arg6: memref<1x128xf32, #tpu.memory_space<vmem>>, %arg7: memref<512x128xf32, #tpu.memory_space<vmem>>, %arg8: memref<512x128xf32, #tpu.memory_space<vmem>>) attributes {dimension_semantics = [#tpu.dimension_semantics<parallel>, #tpu.dimension_semantics<arbitrary>], iteration_bounds = array<i64: 2, 2>, scalar_prefetch = 0 : i64, scratch_operands = 1 : i64, tpu.core_type = #tpu.core_type<tc>, window_params = [{transform_indices = @transform_0, window_bounds = array<i64: 512, 512>}, {pipeline_mode = #tpu.pipeline_mode<synchronous>, transform_indices = @transform_1, window_bounds = array<i64: 1024, 128>}, {transform_indices = @transform_2, window_bounds = array<i64: 512, 128>}, {pipeline_mode = #tpu.pipeline_mode<synchronous>, transform_indices = @transform_3, window_bounds = array<i64: 128, 128>}, {pipeline_mode = #tpu.pipeline_mode<synchronous>, transform_indices = @transform_4, window_bounds = array<i64: 1, 128>}, {transform_indices = @transform_5, window_bounds = array<i64: 512, 128>}]} {
    %c0_i32 = arith.constant 0 : i32
    %0 = arith.cmpi eq, %arg1, %c0_i32 : i32
    %1 = arith.extui %0 : i1 to i32
    %c0_i32_0 = arith.constant 0 : i32
    %2 = arith.cmpi ne, %1, %c0_i32_0 : i32
    scf.if %2 {
      %c0_8 = arith.constant 0 : index
      %c0_9 = arith.constant 0 : index
      %15 = vector.load %arg4[%c0_8, %c0_9] : memref<512x128xf32, #tpu.memory_space<vmem>>, vector<512x128xf32>
      %c0_10 = arith.constant 0 : index
      %c0_11 = arith.constant 0 : index
      %16 = vector.load %arg8[%c0_10, %c0_11] : memref<512x128xf32, #tpu.memory_space<vmem>>, vector<512x128xf32>
      tpu.vector_store %arg8[%c0_10, %c0_11], %15 {strides = array<i32>} : memref<512x128xf32, #tpu.memory_space<vmem>>, vector<512x128xf32>,
    } else {
    }
    %c0 = arith.constant 0 : index
    %c0_1 = arith.constant 0 : index
    %3 = vector.load %arg8[%c0, %c0_1] : memref<512x128xf32, #tpu.memory_space<vmem>>, vector<512x128xf32>
    %c0_2 = arith.constant 0 : index
    %c0_3 = arith.constant 0 : index
    %4 = vector.load %arg2[%c0_2, %c0_3] : memref<512x512xbf16, #tpu.memory_space<vmem>>, vector<512x512xbf16>
    %c512_i32 = arith.constant 512 : i32
    %5 = arith.muli %arg1, %c512_i32 : i32
    %6 = tpu.assume_multiple %5, 512 : i32
    %7 = arith.index_cast %6 : i32 to index
    %c0_4 = arith.constant 0 : index
    %8 = vector.load %arg3[%7, %c0_4] : memref<1024x128xbf16, #tpu.memory_space<vmem>>, vector<512x128xbf16>
    %cst = arith.constant dense<0.000000e+00> : vector<512x128xf32>
    %9 = tpu.matmul %4, %8, %cst {dimension_numbers = #tpu.dot_dimension_numbers<[1], [0], [0], [1], [0, 0, 1, 1], [], []>} : vector<512x512xbf16>, vector<512x128xbf16>, vector<512x128xf32> -> vector<512x128xf32>
    %10 = arith.addf %3, %9 : vector<512x128xf32>
    %c0_5 = arith.constant 0 : index
    %c0_6 = arith.constant 0 : index
    %11 = vector.load %arg8[%c0_5, %c0_6] : memref<512x128xf32, #tpu.memory_space<vmem>>, vector<512x128xf32>
    tpu.vector_store %arg8[%c0_5, %c0_6], %10 {strides = array<i32>} : memref<512x128xf32, #tpu.memory_space<vmem>>, vector<512x128xf32>,
    %c1_i32 = arith.constant 1 : i32
    %12 = arith.cmpi eq, %arg1, %c1_i32 : i32
    %13 = arith.extui %12 : i1 to i32
    %c0_i32_7 = arith.constant 0 : i32
    %14 = arith.cmpi ne, %13, %c0_i32_7 : i32
    scf.if %14 {
      %c0_8 = arith.constant 0 : index
      %c0_9 = arith.constant 0 : index
      %15 = vector.load %arg8[%c0_8, %c0_9] : memref<512x128xf32, #tpu.memory_space<vmem>>, vector<512x128xf32>
      %c0_10 = arith.constant 0 : index
      %c0_11 = arith.constant 0 : index
      %16 = vector.load %arg5[%c0_10, %c0_11] : memref<128x128xf32, #tpu.memory_space<vmem>>, vector<128x128xf32>
      %cst_12 = arith.constant dense<0.000000e+00> : vector<512x128xf32>
      %17 = tpu.matmul %15, %16, %cst_12 {dimension_numbers = #tpu.dot_dimension_numbers<[1], [0], [0], [1], [0, 0, 1, 1], [], []>} : vector<512x128xf32>, vector<128x128xf32>, vector<512x128xf32> -> vector<512x128xf32>
      %c0_13 = arith.constant 0 : index
      %c0_14 = arith.constant 0 : index
      %18 = vector.load %arg6[%c0_13, %c0_14] : memref<1x128xf32, #tpu.memory_space<vmem>>, vector<1x128xf32>
      %19 = vector.broadcast %18 : vector<1x128xf32> to vector<512x128xf32>
      %20 = arith.addf %17, %19 : vector<512x128xf32>
      %c0_15 = arith.constant 0 : index
      %c0_16 = arith.constant 0 : index
      %21 = vector.load %arg7[%c0_15, %c0_16] : memref<512x128xf32, #tpu.memory_space<vmem>>, vector<512x128xf32>
      tpu.vector_store %arg7[%c0_15, %c0_16], %20 {strides = array<i32>} : memref<512x128xf32, #tpu.memory_space<vmem>>, vector<512x128xf32>,
    } else {
    }
    return
  }
  func.func @transform_0(%arg0: i32, %arg1: i32) -> (i32, i32) {
    %c0_i32 = arith.constant 0 : i32
    return %arg0, %arg1 : i32, i32
  }
  func.func @transform_1(%arg0: i32, %arg1: i32) -> (i32, i32) {
    %c0_i32 = arith.constant 0 : i32
    %c0_i32_0 = arith.constant 0 : i32
    %c0_i32_1 = arith.constant 0 : i32
    return %c0_i32, %c0_i32_0 : i32, i32
  }
  func.func @transform_2(%arg0: i32, %arg1: i32) -> (i32, i32) {
    %c0_i32 = arith.constant 0 : i32
    %c0_i32_0 = arith.constant 0 : i32
    return %arg0, %c0_i32 : i32, i32
  }
  func.func @transform_3(%arg0: i32, %arg1: i32) -> (i32, i32) {
    %c0_i32 = arith.constant 0 : i32
    %c0_i32_0 = arith.constant 0 : i32
    %c0_i32_1 = arith.constant 0 : i32
    return %c0_i32, %c0_i32_0 : i32, i32
  }
  func.func @transform_4(%arg0: i32, %arg1: i32) -> (i32, i32) {
    %c0_i32 = arith.constant 0 : i32
    %c0_i32_0 = arith.constant 0 : i32
    %c0_i32_1 = arith.constant 0 : i32
    return %c0_i32, %c0_i32_0 : i32, i32
  }
  func.func @transform_5(%arg0: i32, %arg1: i32) -> (i32, i32) {
    %c0_i32 = arith.constant 0 : i32
    %c0_i32_0 = arith.constant 0 : i32
    return %arg0, %c0_i32 : i32, i32
  }
}

</mosaic_0001>

<bundles_post_ra>
// kernel: slmrec_forward.4
= control target key start
LH: loop header
LB: loop body
LE: loop exit
PB: predicated region body
PF: predicated region fallthrough
CT: control target
= control target key end

     0   :  { %8 = vsyncpa [#allocation3], 0  ;;  %s3989_s0 = inlined_call_operand.vmem [shape: f32[512,64], index: 0, kind: input, shape index: {}]   ;;  %s3990_s1 = inlined_call_operand.hbm [shape: f32[64,128], index: 1, kind: input, shape index: {}]   ;;  %s3991_s2 = inlined_call_operand.hbm [shape: f32[1,128], index: 2, kind: input, shape index: {}]   ;;  %s3992_s3 = inlined_call_operand.vmem [shape: f32[512,128], index: 3, kind: output, shape index: {}]  }
   0x1   :  { %s16_s14 = sshll.u32 %s3990_s1, 4  ;;  %s17_s14 = int_to_ptr.hbm [resolvable:$true] %s16_s14 }
   0x2   :  { %9 = vsyncpa [#allocation5], 0  ;;  %s1939_s15 = smov [#allocation2]   ;;  %s30_s19 = sshll.u32 %s3991_s2, 4  ;;  %s31_s19 = int_to_ptr.hbm [resolvable:$true] %s30_s19 }
   0x3   :  { %s18_s16 = sshll.u32 %s1939_s15, 4  ;;  %s1940_s20 = smov 128   ;;  %s19_s16 = int_to_ptr.vmem [resolvable:$true] %s18_s16 }
   0x4   :  { %s1941_s21 = smov 8   ;;  %s1942_s22 = smov [#allocation4]  }
   0x5   :  { %24 = dma.hbm_to_vmem [thread:$0]  %s17_s14, 1024, %s19_s16, [#allocation3], %s1940_s20, %s1940_s20, %s1941_s21  }
   0x6   :  { %s32_s23 = sshll.u32 %s1942_s22, 4  ;;  %s33_s23 = int_to_ptr.vmem [resolvable:$true] %s32_s23 }
   0x7   :  { %35 = dma.hbm_to_vmem [thread:$0]  %s31_s19, 16, %s33_s23, [#allocation5]  }
   0x8   :  { %1935 = dma.done.wait [#allocation3], 1024  }
   0x9   :  { %1936 = vsyncadd [#allocation3], 4294966272 }
   0xa   :  { %1937 = dma.done.wait [#allocation5], 16  }
   0xb   :  { %1938 = vsyncadd [#allocation5], 4294967280  ;;  %v1972_v0 = vld [vmem:[%s3989_s0 + $0x108] sm:$0xff]  ;;  %vm172_vm0 = vcmask 523264   ;;  %v1977_v1 = vld [vmem:[%s3989_s0 + $0x100] sm:$0xff] }
   0xc   :  { %v1982_v2 = vld [vmem:[%s3989_s0] sm:$0xff]  ;;  %v141_v3 = vmul.f32 %v1972_v0, %v1972_v0  ;;  %v140_v4 = vmul.f32 %v1977_v1, %v1977_v1  ;;  %v1993_v6 = vld [vmem:[%s3989_s0 + $0x188] sm:$0xff]  ;;  %v2020_v18 = vld [vmem:[%s3989_s0 + $0x110] sm:$0xff] }
   0xd   :  { %v108_v5 = vmul.f32 %v1982_v2, %v1982_v2  ;;  %v1998_v7 = vld [vmem:[%s3989_s0 + $0x180] sm:$0xff]  ;;  %v157_v12 = vmul.f32 %v1993_v6, %v1993_v6  ;;  %v2025_v19 = vld [vmem:[%s3989_s0 + $0x8] sm:$0xff]  ;;  %v142_v21 = vmul.f32 %v2020_v18, %v2020_v18  ;;  %v2044_v27 = vld [vmem:[%s3989_s0 + $0x90] sm:$0xff] }
   0xe   :  { %v272_v8 = vsel %vm172_vm0, %v141_v3, 0.0  ;;  %v269_v9 = vsel %vm172_vm0, %v140_v4, 0.0  ;;  %v2006_v11 = vld [vmem:[%s3989_s0 + $0x80] sm:$0xff]  ;;  %v156_v13 = vmul.f32 %v1998_v7, %v1998_v7  ;;  %v2030_v20 = vld [vmem:[%s3989_s0 + $0x88] sm:$0xff]  ;;  %v109_v22 = vmul.f32 %v2025_v19, %v2025_v19  ;;  %v2049_v28 = vld [vmem:[%s3989_s0 + $0x190] sm:$0xff] }
   0xf   :  { %v173_v10 = vsel %vm172_vm0, %v108_v5, 0.0  ;;  %273 = vadd.xlane.f32.xlu2 %v272_v8  ;;  %270 = vadd.xlane.f32.xlu0 %v269_v9  ;;  %v124_v14 = vmul.f32 %v2006_v11, %v2006_v11  ;;  %v320_v15 = vsel %vm172_vm0, %v157_v12, 0.0  ;;  %v125_v23 = vmul.f32 %v2030_v20, %v2030_v20  ;;  %v2054_v29 = vld [vmem:[%s3989_s0 + $0x10] sm:$0xff]  ;;  %v2068_v36 = vld [vmem:[%s3989_s0 + $0x18] sm:$0xff]  ;;  %v96_v45 = vld [vmem:[%s3989_s0 + $0x1a0] sm:$0xff] }
  0x10   :  { %174 = vadd.xlane.f32.xlu1 %v173_v10  ;;  %v317_v16 = vsel %vm172_vm0, %v156_v13, 0.0  ;;  %v275_v24 = vsel %vm172_vm0, %v142_v21, 0.0  ;;  %v176_v25 = vsel %vm172_vm0, %v109_v22, 0.0  ;;  %v126_v30 = vmul.f32 %v2044_v27, %v2044_v27  ;;  %v2073_v37 = vld [vmem:[%s3989_s0 + $0x118] sm:$0xff]  ;;  %v80_v47 = vld [vmem:[%s3989_s0 + $0x120] sm:$0xff]  ;;  %v81_v54 = vld [vmem:[%s3989_s0 + $0x128] sm:$0xff] }
  0x11   :  { %v221_v17 = vsel %vm172_vm0, %v124_v14, 0.0  ;;  %v224_v26 = vsel %vm172_vm0, %v125_v23, 0.0  ;;  %v158_v31 = vmul.f32 %v2049_v28, %v2049_v28  ;;  %v110_v32 = vmul.f32 %v2054_v29, %v2054_v29  ;;  %v95_v38 = vld [vmem:[%s3989_s0 + $0x198] sm:$0xff]  ;;  %v48_v55 = vld [vmem:[%s3989_s0 + $0x20] sm:$0xff]  ;;  %v65_v63 = vld [vmem:[%s3989_s0 + $0xa8] sm:$0xff] }
  0x12   :  { %v227_v33 = vsel %vm172_vm0, %v126_v30, 0.0  ;;  %v111_v39 = vmul.f32 %v2068_v36, %v2068_v36  ;;  %v143_v40 = vmul.f32 %v2073_v37, %v2073_v37  ;;  %v159_v41 = vmul.f32 %v95_v38, %v95_v38  ;;  %v63_v46 = vld [vmem:[%s3989_s0 + $0x98] sm:$0xff]  ;;  %v64_v56 = vld [vmem:[%s3989_s0 + $0xa0] sm:$0xff]  ;;  %v97_v3 = vld [vmem:[%s3989_s0 + $0x1a8] sm:$0xff] }
  0x13   :  { %v323_v34 = vsel %vm172_vm0, %v158_v31, 0.0  ;;  %v179_v35 = vsel %vm172_vm0, %v110_v32, 0.0  ;;  %v160_v48 = vmul.f32 %v96_v45, %v96_v45  ;;  %v127_v49 = vmul.f32 %v63_v46, %v63_v46  ;;  %v49_v4 = vld [vmem:[%s3989_s0 + $0x28] sm:$0xff]  ;;  %v50_v14 = vld [vmem:[%s3989_s0 + $0x30] sm:$0xff]  ;;  %v83_v31 = vld [vmem:[%s3989_s0 + $0x138] sm:$0xff] }
  0x14   :  { %v182_v42 = vsel %vm172_vm0, %v111_v39, 0.0  ;;  %v278_v43 = vsel %vm172_vm0, %v143_v40, 0.0  ;;  %v326_v44 = vsel %vm172_vm0, %v159_v41, 0.0  ;;  %v144_v50 = vmul.f32 %v80_v47, %v80_v47  ;;  %v66_v30 = vld [vmem:[%s3989_s0 + $0xb0] sm:$0xff]  ;;  %v84_v40 = vld [vmem:[%s3989_s0 + $0x140] sm:$0xff]  ;;  %v51_v41 = vld [vmem:[%s3989_s0 + $0x38] sm:$0xff] }
  0x15   :  { %v329_v51 = vsel %vm172_vm0, %v160_v48, 0.0  ;;  %v230_v52 = vsel %vm172_vm0, %v127_v49, 0.0  ;;  %v145_v57 = vmul.f32 %v81_v54, %v81_v54  ;;  %v112_v58 = vmul.f32 %v48_v55, %v48_v55  ;;  %v68_v49 = vld [vmem:[%s3989_s0 + $0xc0] sm:$0xff] }
  0x16   :  { %v281_v53 = vsel %vm172_vm0, %v144_v50, 0.0  ;;  %v128_v59 = vmul.f32 %v64_v56, %v64_v56  ;;  %v129_v5 = vmul.f32 %v65_v63, %v65_v63  ;;  %v161_v8 = vmul.f32 %v97_v3, %v97_v3  ;;  %v100_v50 = vld [vmem:[%s3989_s0 + $0x1c0] sm:$0xff]  ;;  %v1140_v3 = vld [vmem:[#allocation2 + $0x38] sm:$0xff] }
  0x17   :  { %321 = vadd.xlane.f32.xlu2 %v320_v15  ;;  %318 = vadd.xlane.f32.xlu0 %v317_v16  ;;  %v284_v60 = vsel %vm172_vm0, %v145_v57, 0.0  ;;  %v185_v61 = vsel %vm172_vm0, %v112_v58, 0.0  ;;  %v113_v9 = vmul.f32 %v49_v4, %v49_v4  ;;  %v82_v15 = vld [vmem:[%s3989_s0 + $0x130] sm:$0xff]  ;;  %v53_v58 = vld [vmem:[%s3989_s0 + $0x48] sm:$0xff] }
  0x18   :  { %222 = vadd.xlane.f32.xlu1 %v221_v17  ;;  %v233_v62 = vsel %vm172_vm0, %v128_v59, 0.0  ;;  %v236_v10 = vsel %vm172_vm0, %v129_v5, 0.0  ;;  %v332_v12 = vsel %vm172_vm0, %v161_v8, 0.0  ;;  %v98_v16 = vld [vmem:[%s3989_s0 + $0x1b0] sm:$0xff]  ;;  %v114_v17 = vmul.f32 %v50_v14, %v50_v14  ;;  %v85_v59 = vld [vmem:[%s3989_s0 + $0x148] sm:$0xff]  ;;  %1345 = vmatpush.msra.mxu0 %v1140_v3 }
  0x19   :  { %v188_v13 = vsel %vm172_vm0, %v113_v9, 0.0  ;;  %v146_v21 = vmul.f32 %v82_v15, %v82_v15  ;;  %v162_v22 = vmul.f32 %v98_v16, %v98_v16  ;;  %1681 = vmatpush.msra.mxu2 %v1140_v3  ;;  %v102_v9 = vld [vmem:[%s3989_s0 + $0x1d0] sm:$0xff]  ;;  %1680 = vmatpush.msra.mxu1 %v1140_v3  ;;  %v1138_v14 = vld [vmem:[#allocation2 + $0x28] sm:$0xff] }
  0x1a   :  { %v191_v23 = vsel %vm172_vm0, %v114_v17, 0.0  ;;  %1682 = vmatpush.msra.mxu3 %v1140_v3  ;;  %v166_v15 = vmul.f32 %v102_v9, %v102_v9  ;;  %v105_v3 = vld [vmem:[%s3989_s0 + $0x1e8] sm:$0xff]  ;;  %v72_v9 = vld [vmem:[%s3989_s0 + $0xe0] sm:$0xff] }
  0x1f   :  { %276 = vadd.xlane.f32.xlu2 %v275_v24  ;;  %177 = vadd.xlane.f32.xlu0 %v176_v25  ;;  %v287_v24 = vsel %vm172_vm0, %v146_v21, 0.0  ;;  %v335_v25 = vsel %vm172_vm0, %v162_v22, 0.0  ;;  %v1137_v21 = vld [vmem:[#allocation2 + $0x20] sm:$0xff]  ;;  %v1136_v22 = vld [vmem:[#allocation2 + $0x18] sm:$0xff] }
  0x20   :  { %225 = vadd.xlane.f32.xlu1 %v224_v26  ;;  %v99_v26 = vld [vmem:[%s3989_s0 + $0x1b8] sm:$0xff] }
  0x21   :  { %v163_v32 = vmul.f32 %v99_v26, %v99_v26  ;;  %v87_v26 = vld [vmem:[%s3989_s0 + $0x158] sm:$0xff] }
  0x27   :  { %228 = vadd.xlane.f32.xlu2 %v227_v33  ;;  %324 = vadd.xlane.f32.xlu0 %v323_v34  ;;  %v130_v33 = vmul.f32 %v66_v30, %v66_v30  ;;  %v147_v34 = vmul.f32 %v83_v31, %v83_v31  ;;  %v54_v30 = vld [vmem:[%s3989_s0 + $0x50] sm:$0xff] }
  0x28   :  { %180 = vadd.xlane.f32.xlu1 %v179_v35  ;;  %v338_v35 = vsel %vm172_vm0, %v163_v32, 0.0  ;;  %v1135_v31 = vld [vmem:[#allocation2 + $0x10] sm:$0xff] }
  0x29   :  { %v239_v38 = vsel %vm172_vm0, %v130_v33, 0.0  ;;  %v290_v39 = vsel %vm172_vm0, %v147_v34, 0.0  ;;  %v70_v32 = vld [vmem:[%s3989_s0 + $0xd0] sm:$0xff]  ;;  %v1134_v33 = vld [vmem:[#allocation2 + $0x8] sm:$0xff]  ;;  %v151_v34 = vmul.f32 %v87_v26, %v87_v26 }
  0x2f   :  { %183 = vadd.xlane.f32.xlu2 %v182_v42  ;;  %279 = vadd.xlane.f32.xlu0 %v278_v43  ;;  %v67_v42 = vld [vmem:[%s3989_s0 + $0xb8] sm:$0xff]  ;;  %v148_v43 = vmul.f32 %v84_v40, %v84_v40  ;;  %v302_v40 = vsel %vm172_vm0, %v151_v34, 0.0 }
  0x30   :  { %327 = vadd.xlane.f32.xlu1 %v326_v44  ;;  %v115_v44 = vmul.f32 %v51_v41, %v51_v41  ;;  %v131_v45 = vmul.f32 %v67_v42, %v67_v42 }
  0x31   :  { %v293_v46 = vsel %vm172_vm0, %v148_v43, 0.0  ;;  %v71_v43 = vld [vmem:[%s3989_s0 + $0xd8] sm:$0xff] }
  0x32   :  { %v194_v47 = vsel %vm172_vm0, %v115_v44, 0.0  ;;  %v242_v48 = vsel %vm172_vm0, %v131_v45, 0.0  ;;  %v103_v44 = vld [vmem:[%s3989_s0 + $0x1d8] sm:$0xff] }
  0x33   :  { %v55_v45 = vld [vmem:[%s3989_s0 + $0x58] sm:$0xff] }
  0x37   :  { %330 = vadd.xlane.f32.xlu2 %v329_v51  ;;  %231 = vadd.xlane.f32.xlu0 %v230_v52  ;;  %v52_v51 = vld [vmem:[%s3989_s0 + $0x40] sm:$0xff]  ;;  %v132_v52 = vmul.f32 %v68_v49, %v68_v49 }
  0x38   :  { %282 = vadd.xlane.f32.xlu1 %v281_v53  ;;  %v164_v53 = vmul.f32 %v100_v50, %v100_v50  ;;  %v116_v54 = vmul.f32 %v52_v51, %v52_v51 }
  0x39   :  { %v245_v55 = vsel %vm172_vm0, %v132_v52, 0.0 }
  0x3a   :  { %v341_v56 = vsel %vm172_vm0, %v164_v53, 0.0  ;;  %v197_v57 = vsel %vm172_vm0, %v116_v54, 0.0  ;;  %v56_v54 = vld [vmem:[%s3989_s0 + $0x60] sm:$0xff] }
  0x3f   :  { %285 = vadd.xlane.f32.xlu2 %v284_v60  ;;  %186 = vadd.xlane.f32.xlu0 %v185_v61  ;;  %v101_v60 = vld [vmem:[%s3989_s0 + $0x1c8] sm:$0xff]  ;;  %v117_v61 = vmul.f32 %v53_v58, %v53_v58  ;;  %v88_v58 = vld [vmem:[%s3989_s0 + $0x160] sm:$0xff] }
  0x40   :  { %234 = vadd.xlane.f32.xlu1 %v233_v62  ;;  %v149_v62 = vmul.f32 %v85_v59, %v85_v59  ;;  %v165_v63 = vmul.f32 %v101_v60, %v101_v60  ;;  %v104_v59 = vld [vmem:[%s3989_s0 + $0x1e0] sm:$0xff] }
  0x41   :  { %v200_v4 = vsel %vm172_vm0, %v117_v61, 0.0  ;;  %v120_v61 = vmul.f32 %v56_v54, %v56_v54 }
  0x42   :  { %v296_v5 = vsel %vm172_vm0, %v149_v62, 0.0  ;;  %v344_v8 = vsel %vm172_vm0, %v165_v63, 0.0  ;;  %v152_v62 = vmul.f32 %v88_v58, %v88_v58  ;;  %v168_v63 = vmul.f32 %v104_v59, %v104_v59 }
  0x47   :  { %237 = vadd.xlane.f32.xlu2 %v236_v10  ;;  %333 = vadd.xlane.f32.xlu0 %v332_v12  ;;  %v69_v10 = vld [vmem:[%s3989_s0 + $0xc8] sm:$0xff]  ;;  %v1139_v12 = vld [vmem:[#allocation2 + $0x30] sm:$0xff] }
  0x48   :  { %189 = vadd.xlane.f32.xlu1 %v188_v13  ;;  %v86_v13 = vld [vmem:[%s3989_s0 + $0x150] sm:$0xff]  ;;  %1346 = vmatpush.msra.mxu0 %v1139_v12  ;;  %v133_v16 = vmul.f32 %v69_v10, %v69_v10  ;;  %v89_v10 = vld [vmem:[%s3989_s0 + $0x168] sm:$0xff] }
  0x49   :  { %1684 = vmatpush.msra.mxu2 %v1139_v12  ;;  %v150_v17 = vmul.f32 %v86_v13, %v86_v13  ;;  %1683 = vmatpush.msra.mxu1 %v1139_v12  ;;  %v153_v34 = vmul.f32 %v89_v10, %v89_v10 }
  0x4a   :  { %1347 = vmatpush.msra.mxu0 %v1138_v14  ;;  %1685 = vmatpush.msra.mxu3 %v1139_v12  ;;  %v90_v12 = vld [vmem:[%s3989_s0 + $0x170] sm:$0xff] }
  0x4b   :  { %1687 = vmatpush.msra.mxu2 %v1138_v14  ;;  %1686 = vmatpush.msra.mxu1 %v1138_v14 }
  0x4c   :  { %1348 = vmatpush.msra.mxu0 %v1137_v21  ;;  %1688 = vmatpush.msra.mxu3 %v1138_v14 }
  0x4d   :  { %1690 = vmatpush.msra.mxu2 %v1137_v21  ;;  %1689 = vmatpush.msra.mxu1 %v1137_v21 }
  0x4e   :  { %1349 = vmatpush.msra.mxu0 %v1136_v22  ;;  %1691 = vmatpush.msra.mxu3 %v1137_v21  ;;  %v57_v21 = vld [vmem:[%s3989_s0 + $0x68] sm:$0xff] }
  0x4f   :  { %192 = vadd.xlane.f32.xlu2 %v191_v23  ;;  %288 = vadd.xlane.f32.xlu0 %v287_v24  ;;  %v347_v23 = vsel %vm172_vm0, %v166_v15, 0.0  ;;  %v248_v24 = vsel %vm172_vm0, %v133_v16, 0.0  ;;  %v305_v16 = vsel %vm172_vm0, %v152_v62, 0.0 }
  0x50   :  { %336 = vadd.xlane.f32.xlu1 %v335_v25  ;;  %v299_v25 = vsel %vm172_vm0, %v150_v17, 0.0  ;;  %1693 = vmatpush.msra.mxu2 %v1136_v22  ;;  %v353_v17 = vsel %vm172_vm0, %v168_v63, 0.0 }
  0x51   :  { %1350 = vmatpush.msra.mxu0 %v1135_v31  ;;  %1692 = vmatpush.msra.mxu1 %v1136_v22 }
  0x52   :  { %1696 = vmatpush.msra.mxu2 %v1135_v31  ;;  %1694 = vmatpush.msra.mxu3 %v1136_v22  ;;  %v73_v22 = vld [vmem:[%s3989_s0 + $0xe8] sm:$0xff] }
  0x53   :  { %1351 = vmatpush.msra.mxu0 %v1134_v33  ;;  %1695 = vmatpush.msra.mxu1 %v1135_v31 }
  0x54   :  { %1699 = vmatpush.msra.mxu2 %v1134_v33  ;;  %1697 = vmatpush.msra.mxu3 %v1135_v31 }
  0x55   :  { %1698 = vmatpush.msra.mxu1 %v1134_v33 }
  0x56   :  { %1700 = vmatpush.msra.mxu3 %v1134_v33  ;;  %v136_v33 = vmul.f32 %v72_v9, %v72_v9 }
  0x57   :  { %339 = vadd.xlane.f32.xlu2 %v338_v35  ;;  %240 = vadd.xlane.f32.xlu0 %v239_v38  ;;  %v118_v35 = vmul.f32 %v54_v30, %v54_v30  ;;  %v134_v38 = vmul.f32 %v70_v32, %v70_v32  ;;  %v169_v30 = vmul.f32 %v105_v3, %v105_v3 }
  0x58   :  { %291 = vadd.xlane.f32.xlu1 %v290_v39  ;;  %v1133_v39 = vld [vmem:[#allocation2] sm:$0xff] }
  0x59   :  { %1352 = vmatpush.msra.mxu0 %v1133_v39  ;;  %v203_v41 = vsel %vm172_vm0, %v118_v35, 0.0  ;;  %1702 = vmatpush.msra.mxu2 %v1133_v39  ;;  %v251_v42 = vsel %vm172_vm0, %v134_v38, 0.0  ;;  %v154_v35 = vmul.f32 %v90_v12, %v90_v12 }
  0x5a   :  { %1701 = vmatpush.msra.mxu1 %v1133_v39  ;;  %1703 = vmatpush.msra.mxu3 %v1133_v39  ;;  %v121_v39 = vmul.f32 %v57_v21, %v57_v21 }
  0x5c   :  { %v2287_v54 = vsel %vm172_vm0, %v121_v39, 0.0 }
  0x5f   :  { %294 = vadd.xlane.f32.xlu2 %v293_v46  ;;  %195 = vadd.xlane.f32.xlu0 %v194_v47  ;;  %v135_v46 = vmul.f32 %v71_v43, %v71_v43  ;;  %v167_v47 = vmul.f32 %v103_v44, %v103_v44 }
  0x60   :  { %243 = vadd.xlane.f32.xlu1 %v242_v48  ;;  %v119_v48 = vmul.f32 %v55_v45, %v55_v45  ;;  %v356_v45 = vsel %vm172_vm0, %v169_v30, 0.0 }
  0x62   :  { %v206_v60 = vsel %vm172_vm0, %v119_v48, 0.0 }
  0x67   :  { %246 = vadd.xlane.f32.xlu2 %v245_v55  ;;  %342 = vadd.xlane.f32.xlu0 %v341_v56  ;;  %v254_v56 = vsel %vm172_vm0, %v135_v46, 0.0  ;;  %v257_v46 = vsel %vm172_vm0, %v136_v33, 0.0 }
  0x68   :  { %198 = vadd.xlane.f32.xlu1 %v197_v57  ;;  %v350_v57 = vsel %vm172_vm0, %v167_v47, 0.0  ;;  %v308_v47 = vsel %vm172_vm0, %v153_v34, 0.0 }
  0x6f   :  { %201 = vadd.xlane.f32.xlu2 %v200_v4  ;;  %297 = vadd.xlane.f32.xlu0 %v296_v5 }
  0x70   :  { %345 = vadd.xlane.f32.xlu1 %v344_v8  ;;  %v209_v8 = vsel %vm172_vm0, %v120_v61, 0.0  ;;  %v74_v61 = vld [vmem:[%s3989_s0 + $0xf0] sm:$0xff] }
  0x71   :  { %v138_v12 = vmul.f32 %v74_v61, %v74_v61 }
  0x77   :  { %348 = vadd.xlane.f32.xlu2 %v347_v23  ;;  %249 = vadd.xlane.f32.xlu0 %v248_v24 }
  0x78   :  { %300 = vadd.xlane.f32.xlu1 %v299_v25 }
  0x7f   :  { %303 = vadd.xlane.f32.xlu2 %v302_v40  ;;  %204 = vadd.xlane.f32.xlu0 %v203_v41  ;;  %v137_v40 = vmul.f32 %v73_v22, %v73_v22 }
  0x80   :  { %252 = vadd.xlane.f32.xlu1 %v251_v42 }
  0x82   :  { %v274_v49 = vpop.xlane.xlu2 %273  ;;  %v271_v50 = vpop.xlane.xlu0 %270 }
  0x83   :  { %v2214_v51 = vmax.f32 %v274_v49, 1e-24  ;;  %v2216_v52 = vmax.f32 %v271_v50, 1e-24  ;;  %v175_v53 = vpop.xlane.xlu1 %174 }
  0x84   :  { %v2221_v55 = vmax.f32 %v175_v53, 1e-24  ;;  %v2284_v53 = vsel %vm172_vm0, %v154_v35, 0.0 }
  0x85   :  { %1709 = vrsqrt.f32 %v2214_v51  ;;  %vm765_vm1 = vweird.f32 %v2214_v51  ;;  %vm755_vm2 = vweird.f32 %v2216_v52 }
  0x86   :  { %1711 = vrsqrt.f32 %v2216_v52  ;;  %vm435_vm4 = vweird.f32 %v2221_v55 }
  0x87   :  { %1713 = vrsqrt.f32 %v2221_v55  ;;  %255 = vadd.xlane.f32.xlu2 %v254_v56  ;;  %351 = vadd.xlane.f32.xlu0 %v350_v57  ;;  %v2290_v56 = vsel %vm172_vm0, %v137_v40, 0.0 }
  0x88   :  { %207 = vadd.xlane.f32.xlu1 %v206_v60 }
  0x8a   :  { %v322_v4 = vpop.xlane.xlu2 %321  ;;  %v319_v5 = vpop.xlane.xlu0 %318 }
  0x8b   :  { %v2248_v13 = vpop.eup %1709  ;;  %v2250_v14 = vmax.f32 %v319_v5, 1e-24  ;;  %v223_v15 = vpop.xlane.xlu1 %222  ;;  %v2264_v25 = vmax.f32 %v322_v4, 1e-24 }
  0x8c   :  { %v2260_v23 = vpop.eup %1711  ;;  %v760_v24 = vmul.f32 %v2248_v13, %v2214_v51  ;;  %v2266_v26 = vmax.f32 %v223_v15, 1e-24  ;;  %v106_v15 = vld [vmem:[%s3989_s0 + $0x1f0] sm:$0xff]  ;;  %vm766_vm6 = vweird.f32 %v2248_v13 }
  0x8d   :  { %v2268_v31 = vpop.eup %1713  ;;  %v750_v32 = vmul.f32 %v2260_v23, %v2216_v52  ;;  %1715 = vrsqrt.f32 %v2250_v14  ;;  %vm756_vm3 = vweird.f32 %v2260_v23  ;;  %vm915_vm10 = vweird.f32 %v2250_v14  ;;  %vm2384_vm12 = vmor %vm765_vm1, %vm766_vm6 }
  0x8e   :  { %v430_v38 = vmul.f32 %v2268_v31, %v2221_v55  ;;  %v761_v41 = vmul.f32 %v2248_v13, %v760_v24  ;;  %1717 = vrsqrt.f32 %v2266_v26  ;;  %vm436_vm5 = vweird.f32 %v2268_v31  ;;  %vm2331_vm7 = vmor %vm755_vm2, %vm756_vm3 }
  0x8f   :  { %v751_v42 = vmul.f32 %v2260_v23, %v750_v32  ;;  %210 = vadd.xlane.f32.xlu2 %v209_v8  ;;  %306 = vadd.xlane.f32.xlu0 %v305_v16  ;;  %1719 = vrsqrt.f32 %v2264_v25  ;;  %v58_v16 = vld [vmem:[%s3989_s0 + $0x70] sm:$0xff]  ;;  %vm595_vm8 = vweird.f32 %v2266_v26  ;;  %vm437_vm9 = vmor %vm435_vm4, %vm436_vm5  ;;  %v170_v34 = vmul.f32 %v106_v15, %v106_v15 }
  0x90   :  { %v431_v43 = vmul.f32 %v2268_v31, %v430_v38  ;;  %354 = vadd.xlane.f32.xlu1 %v353_v17  ;;  %v762_v57 = vmul.f32 0.5, %v761_v41  ;;  %v122_v35 = vmul.f32 %v58_v16, %v58_v16  ;;  %v2351_v55 = vsel %vm172_vm0, %v138_v12, 0.0 }
  0x91   :  { %v752_v44 = vmul.f32 0.5, %v751_v42  ;;  %vm925_vm14 = vweird.f32 %v2264_v25 }
  0x92   :  { %v432_v48 = vmul.f32 0.5, %v431_v43  ;;  %v277_v49 = vpop.xlane.xlu2 %276  ;;  %v178_v50 = vpop.xlane.xlu0 %177  ;;  %v763_v17 = vsub.f32 1.5, %v762_v57 }
  0x93   :  { %v2292_v58 = vmax.f32 %v277_v49, 1e-24  ;;  %v2294_v59 = vmax.f32 %v178_v50, 1e-24  ;;  %v226_v60 = vpop.xlane.xlu1 %225  ;;  %v2299_v62 = vpop.eup %1715  ;;  %v753_v63 = vsub.f32 1.5, %v752_v44 }
  0x94   :  { %v433_v3 = vsub.f32 1.5, %v432_v48  ;;  %v2303_v4 = vmax.f32 %v226_v60, 1e-24  ;;  %v2305_v5 = vpop.eup %1717  ;;  %v910_v8 = vmul.f32 %v2299_v62, %v2250_v14  ;;  %vm916_vm13 = vweird.f32 %v2299_v62 }
  0x95   :  { %1721 = vrsqrt.f32 %v2292_v58  ;;  %v2312_v9 = vpop.eup %1719  ;;  %v590_v10 = vmul.f32 %v2305_v5, %v2266_v26  ;;  %v754_v32 = vmul.f32 %v2260_v23, %v753_v63  ;;  %vm596_vm11 = vweird.f32 %v2305_v5  ;;  %vm2413_vm1 = vmor %vm915_vm10, %vm916_vm13 }
  0x96   :  { %1723 = vrsqrt.f32 %v2294_v59  ;;  %v911_v21 = vmul.f32 %v2299_v62, %v910_v8  ;;  %v434_v30 = vmul.f32 %v2268_v31, %v433_v3  ;;  %v920_v52 = vmul.f32 %v2312_v9, %v2264_v25  ;;  %vm597_vm15 = vmor %vm595_vm8, %vm596_vm11 }
  0x97   :  { %1725 = vrsqrt.f32 %v2303_v4  ;;  %357 = vadd.xlane.f32.xlu2 %v356_v45  ;;  %258 = vadd.xlane.f32.xlu0 %v257_v46  ;;  %v591_v24 = vmul.f32 %v2305_v5, %v590_v10  ;;  %v758_v40 = vsel %vm2331_vm7, %v2260_v23, %v754_v32  ;;  %v359_v3 = vsel %vm172_vm0, %v170_v34, 0.0 }
  0x98   :  { %309 = vadd.xlane.f32.xlu1 %v308_v47  ;;  %v912_v33 = vmul.f32 0.5, %v911_v21  ;;  %v438_v39 = vsel %vm437_vm9, %v2268_v31, %v434_v30  ;;  %v1101_v45 = vmul.f32 %v758_v40, %v1977_v1  ;;  %v764_v31 = vmul.f32 %v2248_v13, %v763_v17 }
  0x99   :  { %v592_v38 = vmul.f32 0.5, %v591_v24  ;;  %v1069_v44 = vmul.f32 %v438_v39, %v1982_v2  ;;  %v921_v2 = vmul.f32 %v2312_v9, %v920_v52  ;;  %vm926_vm3 = vweird.f32 %v2312_v9 }
  0x9a   :  { %v229_v41 = vpop.xlane.xlu2 %228  ;;  %v325_v42 = vpop.xlane.xlu0 %324  ;;  %v913_v49 = vsub.f32 1.5, %v912_v33  ;;  %1648 = vmatmul.msk.f32.vlgmr.msra.gmra.mxu2 %vm172_vm0, %v1101_v45  ;;  %v768_v16 = vsel %vm2384_vm12, %v2248_v13, %v764_v31  ;;  %vm445_vm5 = vweird.f32 %v2294_v59  ;;  %vm605_vm6 = vweird.f32 %v2303_v4  ;;  %vm2481_vm12 = vmor %vm925_vm14, %vm926_vm3 }
  0x9b   :  { %v2353_v43 = vpop.eup %1721  ;;  %v2357_v46 = vmax.f32 %v229_v41, 1e-24  ;;  %v181_v47 = vpop.xlane.xlu1 %180  ;;  %v593_v23 = vsub.f32 1.5, %v592_v38  ;;  %v2364_v57 = vmax.f32 %v325_v42, 1e-24  ;;  %1616 = vmatmul.msk.f32.vlgmr.msra.gmra.mxu0 %vm172_vm0, %v1069_v44  ;;  %v922_v17 = vmul.f32 0.5, %v921_v2 }
  0x9c   :  { %v2360_v48 = vpop.eup %1723  ;;  %v770_v50 = vmul.f32 %v2353_v43, %v2292_v58  ;;  %v2390_v12 = vmax.f32 %v181_v47, 1e-24  ;;  %v1102_v30 = vmul.f32 %v768_v16, %v1972_v0  ;;  %vm775_vm8 = vweird.f32 %v2292_v58 }
  0x9d   :  { %v2366_v60 = vpop.eup %1725  ;;  %v440_v1 = vmul.f32 %v2360_v48, %v2294_v59  ;;  %1727 = vrsqrt.f32 %v2357_v46  ;;  %v594_v15 = vmul.f32 %v2305_v5, %v593_v23  ;;  %vm446_vm2 = vweird.f32 %v2360_v48 }
  0x9e   :  { %v771_v61 = vmul.f32 %v2353_v43, %v770_v50  ;;  %v600_v63 = vmul.f32 %v2366_v60, %v2303_v4  ;;  %1729 = vrsqrt.f32 %v2364_v57  ;;  %vm606_vm4 = vweird.f32 %v2366_v60  ;;  %vm2451_vm7 = vmor %vm445_vm5, %vm446_vm2 }
  0x9f   :  { %v441_v10 = vmul.f32 %v2360_v48, %v440_v1  ;;  %312 = vadd.xlane.f32.xlu2 %v2284_v53  ;;  %213 = vadd.xlane.f32.xlu0 %v2287_v54  ;;  %v914_v53 = vmul.f32 %v2299_v62, %v913_v49  ;;  %v215_v54 = vsel %vm172_vm0, %v122_v35, 0.0  ;;  %1731 = vrsqrt.f32 %v2390_v12  ;;  %vm607_vm9 = vmor %vm605_vm6, %vm606_vm4 }
  0xa0   :  { %v601_v51 = vmul.f32 %v2366_v60, %v600_v63  ;;  %261 = vadd.xlane.f32.xlu1 %v2290_v56  ;;  %v598_v22 = vsel %vm597_vm15, %v2305_v5, %v594_v15  ;;  %v772_v56 = vmul.f32 0.5, %v771_v61  ;;  %v923_v42 = vsub.f32 1.5, %v922_v17 }
  0xa1   :  { %v442_v21 = vmul.f32 0.5, %v441_v10  ;;  %v1085_v24 = vmul.f32 %v598_v22, %v2006_v11  ;;  %v918_v5 = vsel %vm2413_vm1, %v2299_v62, %v914_v53  ;;  %vm776_vm10 = vweird.f32 %v2353_v43 }
  0xa2   :  { %v602_v13 = vmul.f32 0.5, %v601_v51  ;;  %v184_v32 = vpop.xlane.xlu2 %183  ;;  %v280_v52 = vpop.xlane.xlu0 %279  ;;  %v1117_v40 = vmul.f32 %v918_v5, %v1998_v7  ;;  %1649 = vmatmul.msk.f32.gmra.mxu2 %vm172_vm0, %v1102_v30  ;;  %v773_v44 = vsub.f32 1.5, %v772_v56  ;;  %vm615_vm11 = vweird.f32 %v2357_v46  ;;  %vm777_vm15 = vmor %vm775_vm8, %vm776_vm10  ;;  %v91_v30 = vld [vmem:[%s3989_s0 + $0x178] sm:$0xff] }
  0xa3   :  { %v2419_v33 = vpop.eup %1727  ;;  %v443_v34 = vsub.f32 1.5, %v442_v21  ;;  %v2424_v14 = vmax.f32 %v184_v32, 1e-24  ;;  %v2426_v35 = vmax.f32 %v280_v52, 1e-24  ;;  %v328_v38 = vpop.xlane.xlu1 %327  ;;  %1632 = vmatmul.msk.f32.vlgmr.msra.gmra.mxu1 %vm172_vm0, %v1085_v24  ;;  %vm455_vm13 = vweird.f32 %v2390_v12  ;;  %v59_v24 = vld [vmem:[%s3989_s0 + $0x78] sm:$0xff] }
  0xa4   :  { %v2428_v39 = vpop.eup %1729  ;;  %v603_v11 = vsub.f32 1.5, %v602_v13  ;;  %v610_v0 = vmul.f32 %v2419_v33, %v2357_v46  ;;  %1664 = vmatmul.msk.f32.vlgmr.msra.gmra.mxu3 %vm172_vm0, %v1117_v40  ;;  %v2445_v7 = vmax.f32 %v328_v38, 1e-24  ;;  %vm935_vm14 = vweird.f32 %v2364_v57 }
  0xa5   :  { %v930_v62 = vmul.f32 %v2428_v39, %v2364_v57  ;;  %1733 = vrsqrt.f32 %v2424_v14  ;;  %v2447_v41 = vpop.eup %1731  ;;  %v444_v59 = vmul.f32 %v2360_v48, %v443_v34  ;;  %vm616_vm1 = vweird.f32 %v2419_v33 }
  0xa6   :  { %1735 = vrsqrt.f32 %v2426_v35  ;;  %v604_v4 = vmul.f32 %v2366_v60, %v603_v11  ;;  %v611_v47 = vmul.f32 %v2419_v33, %v610_v0  ;;  %v450_v31 = vmul.f32 %v2447_v41, %v2390_v12 }
  0xa7   :  { %264 = vadd.xlane.f32.xlu2 %v2351_v55  ;;  %360 = vadd.xlane.f32.xlu0 %v359_v3  ;;  %1737 = vrsqrt.f32 %v2445_v7  ;;  %v931_v55 = vmul.f32 %v2428_v39, %v930_v62  ;;  %v448_v49 = vsel %vm2451_vm7, %v2360_v48, %v444_v59  ;;  %vm936_vm2 = vweird.f32 %v2428_v39  ;;  %vm2552_vm7 = vmor %vm615_vm11, %vm616_vm1 }
  0xa8   :  { %216 = vadd.xlane.f32.xlu1 %v215_v54  ;;  %v608_v23 = vsel %vm607_vm9, %v2366_v60, %v604_v4  ;;  %v451_v50 = vmul.f32 %v2447_v41, %v450_v31  ;;  %v1070_v2 = vmul.f32 %v448_v49, %v2025_v19  ;;  %v774_v60 = vmul.f32 %v2353_v43, %v773_v44  ;;  %vm937_vm8 = vmor %vm935_vm14, %vm936_vm2 }
  0xa9   :  { %v1086_v1 = vmul.f32 %v608_v23, %v2030_v20  ;;  %v924_v19 = vmul.f32 %v2312_v9, %v923_v42  ;;  %v612_v25 = vmul.f32 0.5, %v611_v47  ;;  %v932_v53 = vmul.f32 0.5, %v931_v55 }
  0xaa   :  { %v331_v61 = vpop.xlane.xlu2 %330  ;;  %v232_v63 = vpop.xlane.xlu0 %231  ;;  %v452_v15 = vmul.f32 0.5, %v451_v50  ;;  %1617 = vmatmul.msk.f32.gmra.mxu0 %vm172_vm0, %v1070_v2  ;;  %v778_v58 = vsel %vm777_vm15, %v2353_v43, %v774_v60  ;;  %vm456_vm3 = vweird.f32 %v2447_v41  ;;  %v123_v5 = vmul.f32 %v59_v24, %v59_v24 }
  0xab   :  { %v2475_v3 = vpop.eup %1733  ;;  %v2488_v8 = vmax.f32 %v331_v61, 1e-24  ;;  %v283_v20 = vpop.xlane.xlu1 %282  ;;  %1633 = vmatmul.msk.f32.gmra.mxu1 %vm172_vm0, %v1086_v1  ;;  %v2500_v16 = vmax.f32 %v232_v63, 1e-24  ;;  %v928_v17 = vsel %vm2481_vm12, %v2312_v9, %v924_v19  ;;  %v1103_v56 = vmul.f32 %v778_v58, %v2020_v18  ;;  %vm457_vm4 = vmor %vm455_vm13, %vm456_vm3 }
  0xac   :  { %v2490_v10 = vpop.eup %1735  ;;  %v460_v51 = vmul.f32 %v2475_v3, %v2424_v14  ;;  %v453_v22 = vsub.f32 1.5, %v452_v15  ;;  %v1118_v13 = vmul.f32 %v928_v17, %v1993_v6  ;;  %v107_v6 = vld [vmem:[%s3989_s0 + $0x1f8] sm:$0xff]  ;;  %v613_v18 = vsub.f32 1.5, %v612_v25 }
  0xad   :  { %v780_v54 = vmul.f32 %v2490_v10, %v2426_v35  ;;  %v2509_v21 = vpop.eup %1737  ;;  %1739 = vrsqrt.f32 %v2488_v8  ;;  %1650 = vmatmul.msk.f32.gmra.mxu2 %vm172_vm0, %v1103_v56  ;;  %v933_v32 = vsub.f32 1.5, %v932_v53  ;;  %v2533_v34 = vmax.f32 %v283_v20, 1e-24  ;;  %v75_v25 = vld [vmem:[%s3989_s0 + $0xf8] sm:$0xff] }
  0xae   :  { %v461_v26 = vmul.f32 %v2475_v3, %v460_v51  ;;  %v940_v9 = vmul.f32 %v2509_v21, %v2445_v7  ;;  %1665 = vmatmul.msk.f32.gmra.mxu3 %vm172_vm0, %v1118_v13  ;;  %1741 = vrsqrt.f32 %v2500_v16  ;;  %v155_v11 = vmul.f32 %v91_v30, %v91_v30 }
  0xaf   :  { %v781_v43 = vmul.f32 %v2490_v10, %v780_v54  ;;  %v171_v0 = vmul.f32 %v107_v6, %v107_v6  ;;  %v454_v40 = vmul.f32 %v2447_v41, %v453_v22  ;;  %vm465_vm5 = vweird.f32 %v2424_v14 }
  0xb0   :  { %v462_v52 = vmul.f32 0.5, %v461_v26  ;;  %v941_v38 = vmul.f32 %v2509_v21, %v940_v9  ;;  %vm785_vm6 = vweird.f32 %v2426_v35  ;;  %1743 = vrsqrt.f32 %v2533_v34 }
  0xb1   :  { %v782_v44 = vmul.f32 0.5, %v781_v43  ;;  %v218_v59 = vsel %vm172_vm0, %v123_v5, 0.0  ;;  %v314_v4 = vsel %vm172_vm0, %v155_v11, 0.0  ;;  %v362_v47 = vsel %vm172_vm0, %v171_v0, 0.0 }
  0xb2   :  { %v286_v62 = vpop.xlane.xlu2 %285  ;;  %v187_v42 = vpop.xlane.xlu0 %186  ;;  %v458_v31 = vsel %vm457_vm4, %v2447_v41, %v454_v40  ;;  %v463_v49 = vsub.f32 1.5, %v462_v52  ;;  %219 = vadd.xlane.f32.xlu2 %v218_v59  ;;  %315 = vadd.xlane.f32.xlu0 %v314_v4  ;;  %v614_v50 = vmul.f32 %v2419_v33, %v613_v18  ;;  %v934_v2 = vmul.f32 %v2428_v39, %v933_v32 }
  0xb3   :  { %v235_v45 = vpop.xlane.xlu1 %234  ;;  %v2546_v55 = vpop.eup %1739  ;;  %v1071_v23 = vmul.f32 %v458_v31, %v2054_v29  ;;  %v942_v46 = vmul.f32 0.5, %v941_v38  ;;  %vm945_vm9 = vweird.f32 %v2445_v7  ;;  %363 = vadd.xlane.f32.xlu1 %v362_v47  ;;  %v2568_v61 = vmax.f32 %v286_v62, 1e-24  ;;  %v1837_v62 = vld [vmem:[%s3989_s0 + $0x198] sm:$0xff] }
  0xb4   :  { %v2559_v41 = vpop.eup %1741  ;;  %v950_v1 = vmul.f32 %v2546_v55, %v2488_v8  ;;  %v2570_v29 = vmax.f32 %v187_v42, 1e-24  ;;  %v783_v63 = vsub.f32 1.5, %v782_v44  ;;  %v618_v57 = vsel %vm2552_vm7, %v2419_v33, %v614_v50 }
  0xb5   :  { %v620_v48 = vmul.f32 %v2559_v41, %v2500_v16  ;;  %1618 = vmatmul.msk.f32.gmra.mxu0 %vm172_vm0, %v1071_v23  ;;  %v938_v60 = vsel %vm937_vm8, %v2428_v39, %v934_v2  ;;  %vm466_vm10 = vweird.f32 %v2475_v3  ;;  %v1087_v19 = vmul.f32 %v618_v57, %v2044_v27 }
  0xb6   :  { %v1119_v20 = vmul.f32 %v938_v60, %v2049_v28  ;;  %1745 = vrsqrt.f32 %v2568_v61  ;;  %v2586_v15 = vpop.eup %1743  ;;  %vm786_vm11 = vweird.f32 %v2490_v10  ;;  %v951_v33 = vmul.f32 %v2546_v55, %v950_v1  ;;  %vm2603_vm13 = vmor %vm465_vm5, %vm466_vm10 }
  0xb7   :  { %v621_v39 = vmul.f32 %v2559_v41, %v620_v48  ;;  %1747 = vrsqrt.f32 %v2570_v29  ;;  %v943_v51 = vsub.f32 1.5, %v942_v46  ;;  %vm946_vm12 = vweird.f32 %v2509_v21  ;;  %1634 = vmatmul.msk.f32.gmra.mxu1 %vm172_vm0, %v1087_v19  ;;  %vm787_vm15 = vmor %vm785_vm6, %vm786_vm11 }
  0xb8   :  { %v790_v27 = vmul.f32 %v2586_v15, %v2533_v34  ;;  %1666 = vmatmul.msk.f32.gmra.mxu3 %vm172_vm0, %v1119_v20  ;;  %v2597_v28 = vmax.f32 %v235_v45, 1e-24  ;;  %v139_v22 = vmul.f32 %v75_v25, %v75_v25  ;;  %v464_v26 = vmul.f32 %v2475_v3, %v463_v49  ;;  %vm947_vm2 = vmor %vm945_vm9, %vm946_vm12 }
  0xb9   :  { %v622_v17 = vmul.f32 0.5, %v621_v39  ;;  %v784_v56 = vmul.f32 %v2490_v10, %v783_v63  ;;  %vm955_vm14 = vweird.f32 %v2488_v8  ;;  %vm625_vm1 = vweird.f32 %v2500_v16  ;;  %v1838_v63 = vld [vmem:[%s3989_s0 + $0x98] sm:$0xff]  ;;  %v1839_v8 = vld [vmem:[%s3989_s0 + $0x120] sm:$0xff] }
  0xba   :  { %v238_v53 = vpop.xlane.xlu2 %237  ;;  %v334_v54 = vpop.xlane.xlu0 %333  ;;  %v791_v14 = vmul.f32 %v2586_v15, %v790_v27  ;;  %1749 = vrsqrt.f32 %v2597_v28  ;;  %v952_v24 = vmul.f32 0.5, %v951_v33  ;;  %v266_v43 = vsel %vm172_vm0, %v139_v22, 0.0 }
  0xbb   :  { %v190_v13 = vpop.xlane.xlu1 %189  ;;  %v468_v9 = vsel %vm2603_vm13, %v2475_v3, %v464_v26  ;;  %v788_v30 = vsel %vm787_vm15, %v2490_v10, %v784_v56  ;;  %267 = vadd.xlane.f32.xlu0 %v266_v43  ;;  %v944_v52 = vmul.f32 %v2509_v21, %v943_v51  ;;  %v623_v3 = vsub.f32 1.5, %v622_v17  ;;  %v1840_v51 = vld [vmem:[%s3989_s0 + $0x1a0] sm:$0xff] }
  0xbc   :  { %v2622_v6 = vpop.eup %1745  ;;  %v792_v35 = vmul.f32 0.5, %v791_v14  ;;  %v1072_v18 = vmul.f32 %v468_v9, %v2068_v36  ;;  %v1104_v32 = vmul.f32 %v788_v30, %v2073_v37  ;;  %v2635_v38 = vmax.f32 %v238_v53, 1e-24 }
  0xbd   :  { %v2627_v5 = vpop.eup %1747  ;;  %v800_v10 = vmul.f32 %v2622_v6, %v2568_v61  ;;  %v2637_v11 = vmax.f32 %v334_v54, 1e-24  ;;  %vm626_vm3 = vweird.f32 %v2559_v41  ;;  %v948_v7 = vsel %vm947_vm2, %v2509_v21, %v944_v52 }
  0xbe   :  { %v793_v36 = vsub.f32 1.5, %v792_v35  ;;  %v470_v37 = vmul.f32 %v2627_v5, %v2570_v29  ;;  %1619 = vmatmul.msk.f32.gmra.mxu0 %vm172_vm0, %v1072_v18  ;;  %1651 = vmatmul.msk.f32.gmra.mxu2 %vm172_vm0, %v1104_v32  ;;  %v953_v0 = vsub.f32 1.5, %v952_v24  ;;  %v1120_v42 = vmul.f32 %v1837_v62, %v948_v7  ;;  %vm627_vm7 = vmor %vm625_vm1, %vm626_vm3 }
  0xbf   :  { %v801_v40 = vmul.f32 %v2622_v6, %v800_v10  ;;  %1751 = vrsqrt.f32 %v2635_v38  ;;  %vm796_vm4 = vweird.f32 %v2586_v15  ;;  %v2655_v59 = vmax.f32 %v190_v13, 1e-24 }
  0xc0   :  { %v2650_v44 = vpop.eup %1749  ;;  %v471_v45 = vmul.f32 %v2627_v5, %v470_v37  ;;  %1753 = vrsqrt.f32 %v2637_v11  ;;  %vm956_vm5 = vweird.f32 %v2546_v55  ;;  %vm795_vm6 = vweird.f32 %v2533_v34  ;;  %1667 = vmatmul.msk.f32.gmra.mxu3 %vm172_vm0, %v1120_v42 }
  0xc1   :  { %v630_v47 = vmul.f32 %v2650_v44, %v2597_v28  ;;  %v624_v31 = vmul.f32 %v2559_v41, %v623_v3  ;;  %vm805_vm8 = vweird.f32 %v2568_v61  ;;  %vm475_vm9 = vweird.f32 %v2570_v29  ;;  %vm797_vm10 = vmor %vm795_vm6, %vm796_vm4  ;;  %v1842_v61 = vld [vmem:[%s3989_s0 + $0xa0] sm:$0xff] }
  0xc2   :  { %v193_v21 = vpop.xlane.xlu2 %192  ;;  %v289_v4 = vpop.xlane.xlu0 %288  ;;  %v472_v49 = vmul.f32 0.5, %v471_v45  ;;  %1755 = vrsqrt.f32 %v2655_v59  ;;  %v794_v34 = vmul.f32 %v2586_v15, %v793_v36  ;;  %v802_v23 = vmul.f32 0.5, %v801_v40  ;;  %vm2680_vm11 = vmor %vm955_vm14, %vm956_vm5 }
  0xc3   :  { %v337_v12 = vpop.xlane.xlu1 %336  ;;  %v631_v50 = vmul.f32 %v2650_v44, %v630_v47  ;;  %v628_v2 = vsel %vm627_vm7, %v2559_v41, %v624_v31  ;;  %v954_v16 = vmul.f32 %v2546_v55, %v953_v0  ;;  %v2688_v60 = vmax.f32 %v193_v21, 1e-24 }
  0xc4   :  { %v473_v1 = vsub.f32 1.5, %v472_v49  ;;  %v1088_v48 = vmul.f32 %v1838_v63, %v628_v2  ;;  %v798_v57 = vsel %vm797_vm10, %v2586_v15, %v794_v34  ;;  %v2698_v33 = vmax.f32 %v289_v4, 1e-24 }
  0xc5   :  { %v2690_v41 = vpop.eup %1751  ;;  %v632_v19 = vmul.f32 0.5, %v631_v50  ;;  %v1105_v20 = vmul.f32 %v1839_v8, %v798_v57  ;;  %v958_v25 = vsel %vm2680_vm11, %v2546_v55, %v954_v16  ;;  %vm635_vm12 = vweird.f32 %v2597_v28  ;;  %v1841_v28 = vld [vmem:[%s3989_s0 + $0x20] sm:$0xff] }
  0xc6   :  { %v2700_v39 = vpop.eup %1753  ;;  %v640_v15 = vmul.f32 %v2690_v41, %v2635_v38  ;;  %1635 = vmatmul.msk.f32.gmra.mxu1 %vm172_vm0, %v1088_v48  ;;  %v1121_v27 = vmul.f32 %v1840_v51, %v958_v25  ;;  %1757 = vrsqrt.f32 %v2688_v60  ;;  %v803_v53 = vsub.f32 1.5, %v802_v23 }
  0xc7   :  { %vm476_vm13 = vweird.f32 %v2627_v5  ;;  %v633_v55 = vsub.f32 1.5, %v632_v19  ;;  %v960_v54 = vmul.f32 %v2700_v39, %v2637_v11  ;;  %1652 = vmatmul.msk.f32.gmra.mxu2 %vm172_vm0, %v1105_v20  ;;  %vm636_vm15 = vweird.f32 %v2650_v44 }
  0xc8   :  { %v2714_v58 = vpop.eup %1755  ;;  %v641_v17 = vmul.f32 %v2690_v41, %v640_v15  ;;  %1759 = vrsqrt.f32 %v2698_v33  ;;  %v2719_v22 = vmax.f32 %v337_v12, 1e-24  ;;  %vm806_vm14 = vweird.f32 %v2622_v6  ;;  %1668 = vmatmul.msk.f32.gmra.mxu3 %vm172_vm0, %v1121_v27  ;;  %vm477_vm1 = vmor %vm475_vm9, %vm476_vm13  ;;  %v1843_v12 = vld [vmem:[%s3989_s0 + $0x128] sm:$0xff] }
  0xc9   :  { %v961_v13 = vmul.f32 %v2700_v39, %v960_v54  ;;  %v480_v14 = vmul.f32 %v2714_v58, %v2655_v59  ;;  %v474_v24 = vmul.f32 %v2627_v5, %v473_v1  ;;  %vm645_vm2 = vweird.f32 %v2635_v38  ;;  %vm2738_vm3 = vmor %vm635_vm12, %vm636_vm15 }
  0xca   :  { %v340_v26 = vpop.xlane.xlu2 %339  ;;  %v241_v56 = vpop.xlane.xlu0 %240  ;;  %v642_v9 = vmul.f32 0.5, %v641_v17  ;;  %1761 = vrsqrt.f32 %v2719_v22  ;;  %v634_v30 = vmul.f32 %v2650_v44, %v633_v55  ;;  %v804_v52 = vmul.f32 %v2622_v6, %v803_v53  ;;  %vm2760_vm5 = vmor %vm805_vm8, %vm806_vm14  ;;  %v1845_v17 = vld [vmem:[%s3989_s0 + $0xa8] sm:$0xff] }
  0xcb   :  { %v292_v43 = vpop.xlane.xlu1 %291  ;;  %v962_v18 = vmul.f32 0.5, %v961_v13  ;;  %v481_v32 = vmul.f32 %v2714_v58, %v480_v14  ;;  %v478_v29 = vsel %vm477_vm1, %v2627_v5, %v474_v24  ;;  %vm965_vm4 = vweird.f32 %v2637_v11  ;;  %v1846_v14 = vld [vmem:[%s3989_s0 + $0x1a8] sm:$0xff] }
  0xcc   :  { %v2745_v3 = vpop.eup %1757  ;;  %v643_v10 = vsub.f32 1.5, %v642_v9  ;;  %v1073_v36 = vmul.f32 %v1841_v28, %v478_v29  ;;  %v638_v37 = vsel %vm2738_vm3, %v2650_v44, %v634_v30  ;;  %v2754_v7 = vmax.f32 %v340_v26, 1e-24 }
  0xcd   :  { %vm646_vm6 = vweird.f32 %v2690_v41  ;;  %v482_v0 = vmul.f32 0.5, %v481_v32  ;;  %vm485_vm7 = vweird.f32 %v2655_v59  ;;  %v490_v40 = vmul.f32 %v2745_v3, %v2688_v60 }
  0xce   :  { %v2768_v62 = vpop.eup %1759  ;;  %vm486_vm9 = vweird.f32 %v2714_v58  ;;  %1620 = vmatmul.msk.f32.gmra.mxu0 %vm172_vm0, %v1073_v36  ;;  %v1089_v42 = vmul.f32 %v1842_v61, %v638_v37  ;;  %v808_v44 = vsel %vm2760_vm5, %v2622_v6, %v804_v52  ;;  %1763 = vrsqrt.f32 %v2754_v7  ;;  %vm2801_vm10 = vmor %vm645_vm2, %vm646_vm6  ;;  %v1852_v52 = vld [vmem:[%s3989_s0 + $0x138] sm:$0xff] }
  0xcf   :  { %v963_v45 = vsub.f32 1.5, %v962_v18  ;;  %v483_v21 = vsub.f32 1.5, %v482_v0  ;;  %v491_v4 = vmul.f32 %v2745_v3, %v490_v40  ;;  %v810_v47 = vmul.f32 %v2768_v62, %v2698_v33  ;;  %vm2814_vm13 = vmor %vm485_vm7, %vm486_vm9 }
  0xd0   :  { %v2782_v31 = vpop.eup %1761  ;;  %1636 = vmatmul.msk.f32.gmra.mxu1 %vm172_vm0, %v1089_v42  ;;  %v1106_v49 = vmul.f32 %v1843_v12, %v808_v44  ;;  %v2788_v34 = vmax.f32 %v241_v56, 1e-24  ;;  %v2790_v6 = vmax.f32 %v292_v43, 1e-24  ;;  %v644_v23 = vmul.f32 %v2690_v41, %v643_v10 }
  0xd1   :  { %vm966_vm8 = vweird.f32 %v2700_v39  ;;  %v492_v16 = vmul.f32 0.5, %v491_v4  ;;  %v811_v46 = vmul.f32 %v2768_v62, %v810_v47  ;;  %v970_v1 = vmul.f32 %v2782_v31, %v2719_v22  ;;  %v1847_v47 = vld [vmem:[%s3989_s0 + $0x30] sm:$0xff] }
  0xd2   :  { %v295_v50 = vpop.xlane.xlu2 %294  ;;  %v196_v2 = vpop.xlane.xlu0 %195  ;;  %vm495_vm11 = vweird.f32 %v2688_v60  ;;  %vm496_vm12 = vweird.f32 %v2745_v3  ;;  %1653 = vmatmul.msk.f32.gmra.mxu2 %vm172_vm0, %v1106_v49  ;;  %1765 = vrsqrt.f32 %v2788_v34  ;;  %v484_v57 = vmul.f32 %v2714_v58, %v483_v21  ;;  %vm967_vm15 = vmor %vm965_vm4, %vm966_vm8 }
  0xd3   :  { %v244_v63 = vpop.xlane.xlu1 %243  ;;  %v493_v19 = vsub.f32 1.5, %v492_v16  ;;  %v812_v8 = vmul.f32 0.5, %v811_v46  ;;  %v971_v20 = vmul.f32 %v2782_v31, %v970_v1  ;;  %1767 = vrsqrt.f32 %v2790_v6  ;;  %vm2867_vm2 = vmor %vm495_vm11, %vm496_vm12 }
  0xd4   :  { %v2820_v25 = vpop.eup %1763  ;;  %v488_v15 = vsel %vm2814_vm13, %v2714_v58, %v484_v57  ;;  %v648_v59 = vsel %vm2801_vm10, %v2690_v41, %v644_v23  ;;  %v964_v51 = vmul.f32 %v2700_v39, %v963_v45  ;;  %v2829_v27 = vmax.f32 %v295_v50, 1e-24  ;;  %v1844_v41 = vld [vmem:[%s3989_s0 + $0x28] sm:$0xff] }
  0xd5   :  { %v813_v53 = vsub.f32 1.5, %v812_v8  ;;  %vm816_vm14 = vweird.f32 %v2768_v62  ;;  %v972_v55 = vmul.f32 0.5, %v971_v20  ;;  %v980_v54 = vmul.f32 %v2820_v25, %v2754_v7 }
  0xd6   :  { %v1074_v58 = vmul.f32 %v1844_v41, %v488_v15  ;;  %v1090_v26 = vmul.f32 %v1845_v17, %v648_v59  ;;  %v968_v11 = vsel %vm967_vm15, %v2700_v39, %v964_v51  ;;  %1769 = vrsqrt.f32 %v2829_v27 }
  0xd7   :  { %v973_v56 = vsub.f32 1.5, %v972_v55  ;;  %vm976_vm1 = vweird.f32 %v2782_v31  ;;  %v981_v13 = vmul.f32 %v2820_v25, %v980_v54  ;;  %v1122_v24 = vmul.f32 %v1846_v14, %v968_v11 }
  0xd8   :  { %v2851_v43 = vpop.eup %1765  ;;  %1621 = vmatmul.msk.f32.gmra.mxu0 %vm172_vm0, %v1074_v58  ;;  %1637 = vmatmul.msk.f32.gmra.mxu1 %vm172_vm0, %v1090_v26  ;;  %v2855_v9 = vmax.f32 %v196_v2, 1e-24  ;;  %v2857_v39 = vmax.f32 %v244_v63, 1e-24  ;;  %v494_v30 = vmul.f32 %v2745_v3, %v493_v19  ;;  %v814_v35 = vmul.f32 %v2768_v62, %v813_v53 }
  0xd9   :  { %v2861_v29 = vpop.eup %1767  ;;  %vm815_vm3 = vweird.f32 %v2698_v33  ;;  %v982_v10 = vmul.f32 0.5, %v981_v13  ;;  %v650_v28 = vmul.f32 %v2851_v43, %v2788_v34  ;;  %1669 = vmatmul.msk.f32.gmra.mxu3 %vm172_vm0, %v1122_v24  ;;  %v974_v36 = vmul.f32 %v2782_v31, %v973_v56 }
  0xda   :  { %v247_v18 = vpop.xlane.xlu2 %246  ;;  %v343_v32 = vpop.xlane.xlu0 %342  ;;  %vm2878_vm4 = vmor %vm815_vm3, %vm816_vm14  ;;  %vm975_vm5 = vweird.f32 %v2719_v22  ;;  %v820_v60 = vmul.f32 %v2861_v29, %v2790_v6  ;;  %1771 = vrsqrt.f32 %v2855_v9  ;;  %vm985_vm7 = vweird.f32 %v2754_v7 }
  0xdb   :  { %v199_v37 = vpop.xlane.xlu1 %198  ;;  %vm2888_vm6 = vmor %vm975_vm5, %vm976_vm1  ;;  %v983_v0 = vsub.f32 1.5, %v982_v10  ;;  %v651_v40 = vmul.f32 %v2851_v43, %v650_v28  ;;  %1773 = vrsqrt.f32 %v2857_v39  ;;  %v498_v42 = vsel %vm2867_vm2, %v2745_v3, %v494_v30 }
  0xdc   :  { %v2895_v61 = vpop.eup %1769  ;;  %v821_v22 = vmul.f32 %v2861_v29, %v820_v60  ;;  %v818_v44 = vsel %vm2878_vm4, %v2768_v62, %v814_v35  ;;  %v978_v45 = vsel %vm2888_vm6, %v2782_v31, %v974_v36  ;;  %vm655_vm9 = vweird.f32 %v2788_v34  ;;  %v1848_v62 = vld [vmem:[%s3989_s0 + $0x130] sm:$0xff]  ;;  %v1850_v34 = vld [vmem:[%s3989_s0 + $0x1b8] sm:$0xff] }
  0xdd   :  { %v652_v21 = vmul.f32 0.5, %v651_v40  ;;  %v830_v4 = vmul.f32 %v2895_v61, %v2829_v27  ;;  %v1075_v12 = vmul.f32 %v1847_v47, %v498_v42  ;;  %v1107_v49 = vmul.f32 %v1848_v62, %v818_v44  ;;  %v1849_v31 = vld [vmem:[%s3989_s0 + $0x1b0] sm:$0xff] }
  0xde   :  { %v822_v3 = vmul.f32 0.5, %v821_v22  ;;  %v1123_v23 = vmul.f32 %v1849_v31, %v978_v45  ;;  %v2919_v50 = vmax.f32 %v247_v18, 1e-24  ;;  %v2922_v46 = vmax.f32 %v343_v32, 1e-24 }
  0xdf   :  { %v653_v2 = vsub.f32 1.5, %v652_v21  ;;  %v831_v16 = vmul.f32 %v2895_v61, %v830_v4  ;;  %v2924_v1 = vmax.f32 %v199_v37, 1e-24  ;;  %vm986_vm8 = vweird.f32 %v2820_v25  ;;  %1654 = vmatmul.msk.f32.gmra.mxu2 %vm172_vm0, %v1107_v49 }
  0xe0   :  { %v2926_v63 = vpop.eup %1771  ;;  %v823_v48 = vsub.f32 1.5, %v822_v3  ;;  %1622 = vmatmul.msk.f32.gmra.mxu0 %vm172_vm0, %v1075_v12  ;;  %1775 = vrsqrt.f32 %v2919_v50  ;;  %v984_v57 = vmul.f32 %v2820_v25, %v983_v0  ;;  %vm656_vm10 = vweird.f32 %v2851_v43  ;;  %vm987_vm15 = vmor %vm985_vm7, %vm986_vm8 }
  0xe1   :  { %v2933_v8 = vpop.eup %1773  ;;  %vm825_vm11 = vweird.f32 %v2790_v6  ;;  %v500_v20 = vmul.f32 %v2926_v63, %v2855_v9  ;;  %1670 = vmatmul.msk.f32.gmra.mxu3 %vm172_vm0, %v1123_v23  ;;  %1777 = vrsqrt.f32 %v2922_v46  ;;  %vm826_vm12 = vweird.f32 %v2861_v29  ;;  %vm657_vm1 = vmor %vm655_vm9, %vm656_vm10  ;;  %v1851_v6 = vld [vmem:[%s3989_s0 + $0xb0] sm:$0xff]  ;;  %v1853_v23 = vld [vmem:[%s3989_s0 + $0x38] sm:$0xff] }
  0xe2   :  { %v202_v38 = vpop.xlane.xlu2 %201  ;;  %v298_v19 = vpop.xlane.xlu0 %297  ;;  %vm835_vm13 = vweird.f32 %v2829_v27  ;;  %v660_v59 = vmul.f32 %v2933_v8, %v2857_v39  ;;  %1779 = vrsqrt.f32 %v2924_v1  ;;  %v832_v51 = vmul.f32 0.5, %v831_v16  ;;  %vm2964_vm2 = vmor %vm825_vm11, %vm826_vm12 }
  0xe3   :  { %v346_v15 = vpop.xlane.xlu1 %345  ;;  %v501_v53 = vmul.f32 %v2926_v63, %v500_v20  ;;  %vm505_vm14 = vweird.f32 %v2855_v9  ;;  %v654_v55 = vmul.f32 %v2851_v43, %v653_v2  ;;  %v824_v41 = vmul.f32 %v2861_v29, %v823_v48  ;;  %v1855_v20 = vld [vmem:[%s3989_s0 + $0x140] sm:$0xff] }
  0xe4   :  { %v661_v54 = vmul.f32 %v2933_v8, %v660_v59  ;;  %v988_v58 = vsel %vm987_vm15, %v2820_v25, %v984_v57  ;;  %v2960_v7 = vmax.f32 %v202_v38, 1e-24  ;;  %v2972_v13 = vmax.f32 %v298_v19, 1e-24  ;;  %v1854_v38 = vld [vmem:[%s3989_s0 + $0xb8] sm:$0xff] }
  0xe5   :  { %v502_v26 = vmul.f32 0.5, %v501_v53  ;;  %v658_v11 = vsel %vm657_vm1, %v2851_v43, %v654_v55  ;;  %v1124_v56 = vmul.f32 %v1850_v34, %v988_v58  ;;  %v828_v30 = vsel %vm2964_vm2, %v2861_v29, %v824_v41 }
  0xe6   :  { %v2974_v14 = vpop.eup %1775  ;;  %v662_v25 = vmul.f32 0.5, %v661_v54  ;;  %v1091_v24 = vmul.f32 %v1851_v6, %v658_v11  ;;  %1781 = vrsqrt.f32 %v2960_v7  ;;  %v833_v35 = vsub.f32 1.5, %v832_v51 }
  0xe7   :  { %v2983_v43 = vpop.eup %1777  ;;  %v503_v18 = vsub.f32 1.5, %v502_v26  ;;  %v670_v32 = vmul.f32 %v2974_v14, %v2919_v50  ;;  %v1108_v10 = vmul.f32 %v1852_v52, %v828_v30  ;;  %vm506_vm3 = vweird.f32 %v2926_v63  ;;  %v1856_v30 = vld [vmem:[%s3989_s0 + $0x40] sm:$0xff] }
  0xe8   :  { %v2990_v28 = vpop.eup %1779  ;;  %v663_v36 = vsub.f32 1.5, %v662_v25  ;;  %vm665_vm4 = vweird.f32 %v2857_v39  ;;  %v990_v29 = vmul.f32 %v2983_v43, %v2922_v46  ;;  %1638 = vmatmul.msk.f32.gmra.mxu1 %vm172_vm0, %v1091_v24  ;;  %vm836_vm5 = vweird.f32 %v2895_v61  ;;  %vm3013_vm7 = vmor %vm505_vm14, %vm506_vm3 }
  0xe9   :  { %v671_v60 = vmul.f32 %v2974_v14, %v670_v32  ;;  %v510_v33 = vmul.f32 %v2990_v28, %v2924_v1  ;;  %1655 = vmatmul.msk.f32.gmra.mxu2 %vm172_vm0, %v1108_v10  ;;  %1671 = vmatmul.msk.f32.gmra.mxu3 %vm172_vm0, %v1124_v56  ;;  %1783 = vrsqrt.f32 %v2972_v13  ;;  %vm666_vm6 = vweird.f32 %v2933_v8  ;;  %vm3026_vm9 = vmor %vm835_vm13, %vm836_vm5 }
  0xea   :  { %v349_v37 = vpop.xlane.xlu2 %348  ;;  %v250_v5 = vpop.xlane.xlu0 %249  ;;  %v991_v40 = vmul.f32 %v2983_v43, %v990_v29  ;;  %v3006_v22 = vmax.f32 %v346_v15, 1e-24  ;;  %v504_v42 = vmul.f32 %v2926_v63, %v503_v18  ;;  %v664_v4 = vmul.f32 %v2933_v8, %v663_v36  ;;  %vm667_vm10 = vmor %vm665_vm4, %vm666_vm6 }
  0xeb   :  { %v301_v0 = vpop.xlane.xlu1 %300  ;;  %v672_v45 = vmul.f32 0.5, %v671_v60  ;;  %v511_v21 = vmul.f32 %v2990_v28, %v510_v33  ;;  %v834_v47 = vmul.f32 %v2895_v61, %v833_v35  ;;  %vm675_vm8 = vweird.f32 %v2919_v50  ;;  %v1857_v50 = vld [vmem:[%s3989_s0 + $0xc0] sm:$0xff] }
  0xec   :  { %v3020_v12 = vpop.eup %1781  ;;  %v992_v9 = vmul.f32 0.5, %v991_v40  ;;  %1785 = vrsqrt.f32 %v3006_v22  ;;  %v508_v62 = vsel %vm3013_vm7, %v2926_v63, %v504_v42  ;;  %vm676_vm11 = vweird.f32 %v2974_v14  ;;  %v1858_v60 = vld [vmem:[%s3989_s0 + $0x1c0] sm:$0xff] }
  0xed   :  { %v673_v49 = vsub.f32 1.5, %v672_v45  ;;  %v512_v27 = vmul.f32 0.5, %v511_v21  ;;  %v520_v31 = vmul.f32 %v3020_v12, %v2960_v7  ;;  %vm516_vm12 = vweird.f32 %v2990_v28  ;;  %vm677_vm2 = vmor %vm675_vm8, %vm676_vm11 }
  0xee   :  { %v1076_v2 = vmul.f32 %v1853_v23, %v508_v62  ;;  %v668_v16 = vsel %vm667_vm10, %v2933_v8, %v664_v4  ;;  %v838_v39 = vsel %vm3026_vm9, %v2895_v61, %v834_v47  ;;  %v993_v8 = vsub.f32 1.5, %v992_v9  ;;  %v1859_v62 = vld [vmem:[%s3989_s0 + $0x48] sm:$0xff] }
  0xef   :  { %v3050_v63 = vpop.eup %1783  ;;  %v513_v48 = vsub.f32 1.5, %v512_v27  ;;  %v521_v57 = vmul.f32 %v3020_v12, %v520_v31  ;;  %v1092_v19 = vmul.f32 %v1854_v38, %v668_v16  ;;  %v1109_v15 = vmul.f32 %v1855_v20, %v838_v39 }
  0xf0   :  { %v840_v59 = vmul.f32 %v3050_v63, %v2972_v13  ;;  %1623 = vmatmul.msk.f32.gmra.mxu0 %vm172_vm0, %v1076_v2  ;;  %v3062_v61 = vmax.f32 %v349_v37, 1e-24  ;;  %v3064_v51 = vmax.f32 %v250_v5, 1e-24  ;;  %v3068_v41 = vmax.f32 %v301_v0, 1e-24 }
  0xf1   :  { %v522_v54 = vmul.f32 0.5, %v521_v57  ;;  %1639 = vmatmul.msk.f32.gmra.mxu1 %vm172_vm0, %v1092_v19  ;;  %1656 = vmatmul.msk.f32.gmra.mxu2 %vm172_vm0, %v1109_v15  ;;  %v514_v58 = vmul.f32 %v2990_v28, %v513_v48  ;;  %v674_v17 = vmul.f32 %v2974_v14, %v673_v49  ;;  %vm995_vm13 = vweird.f32 %v2922_v46 }
  0xf2   :  { %v304_v53 = vpop.xlane.xlu2 %303  ;;  %v205_v55 = vpop.xlane.xlu0 %204  ;;  %vm515_vm15 = vweird.f32 %v2924_v1  ;;  %v841_v34 = vmul.f32 %v3050_v63, %v840_v59  ;;  %1787 = vrsqrt.f32 %v3062_v61  ;;  %vm996_vm14 = vweird.f32 %v2983_v43 }
  0xf3   :  { %v253_v26 = vpop.xlane.xlu1 %252  ;;  %v3072_v11 = vpop.eup %1785  ;;  %vm517_vm1 = vmor %vm515_vm15, %vm516_vm12  ;;  %v523_v56 = vsub.f32 1.5, %v522_v54  ;;  %1789 = vrsqrt.f32 %v3064_v51  ;;  %vm525_vm3 = vweird.f32 %v2960_v7  ;;  %v678_v18 = vsel %vm677_vm2, %v2974_v14, %v674_v17 }
  0xf4   :  { %v1000_v25 = vmul.f32 %v3072_v11, %v3006_v22  ;;  %v842_v1 = vmul.f32 0.5, %v841_v34  ;;  %1791 = vrsqrt.f32 %v3068_v41  ;;  %v518_v6 = vsel %vm517_vm1, %v2990_v28, %v514_v58  ;;  %vm997_vm4 = vmor %vm995_vm13, %vm996_vm14 }
  0xf5   :  { %v1077_v35 = vmul.f32 %v1856_v30, %v518_v6  ;;  %v994_v32 = vmul.f32 %v2983_v43, %v993_v8  ;;  %vm526_vm5 = vweird.f32 %v3020_v12  ;;  %v1093_v52 = vmul.f32 %v1857_v50, %v678_v18  ;;  %v1861_v6 = vld [vmem:[%s3989_s0 + $0x1c8] sm:$0xff] }
  0xf6   :  { %v1001_v24 = vmul.f32 %v3072_v11, %v1000_v25  ;;  %v3105_v10 = vmax.f32 %v304_v53, 1e-24  ;;  %v3107_v28 = vmax.f32 %v205_v55, 1e-24  ;;  %v3110_v29 = vmax.f32 %v253_v26, 1e-24  ;;  %vm527_vm7 = vmor %vm525_vm3, %vm526_vm5 }
  0xf7   :  { %v998_v14 = vsel %vm997_vm4, %v2983_v43, %v994_v32  ;;  %v524_v37 = vmul.f32 %v3020_v12, %v523_v56  ;;  %v843_v5 = vsub.f32 1.5, %v842_v1  ;;  %vm845_vm6 = vweird.f32 %v2972_v13  ;;  %v1860_v53 = vld [vmem:[%s3989_s0 + $0x148] sm:$0xff] }
  0xf8   :  { %v1002_v36 = vmul.f32 0.5, %v1001_v24  ;;  %v3113_v46 = vpop.eup %1787  ;;  %1624 = vmatmul.msk.f32.gmra.mxu0 %vm172_vm0, %v1077_v35  ;;  %v1125_v33 = vmul.f32 %v1858_v60, %v998_v14  ;;  %1793 = vrsqrt.f32 %v3105_v10  ;;  %vm846_vm9 = vweird.f32 %v3050_v63 }
  0xf9   :  { %v3120_v42 = vpop.eup %1789  ;;  %v1010_v44 = vmul.f32 %v3113_v46, %v3062_v61  ;;  %1640 = vmatmul.msk.f32.gmra.mxu1 %vm172_vm0, %v1093_v52  ;;  %1795 = vrsqrt.f32 %v3107_v28  ;;  %vm1005_vm8 = vweird.f32 %v3006_v22  ;;  %vm1006_vm10 = vweird.f32 %v3072_v11  ;;  %vm3152_vm11 = vmor %vm845_vm6, %vm846_vm9 }
  0xfa   :  { %v256_v0 = vpop.xlane.xlu2 %255  ;;  %v352_v40 = vpop.xlane.xlu0 %351  ;;  %v1003_v43 = vsub.f32 1.5, %v1002_v36  ;;  %v680_v4 = vmul.f32 %v3120_v42, %v3064_v51  ;;  %1672 = vmatmul.msk.f32.gmra.mxu3 %vm172_vm0, %v1125_v33  ;;  %1797 = vrsqrt.f32 %v3110_v29  ;;  %v528_v7 = vsel %vm527_vm7, %v3020_v12, %v524_v37  ;;  %vm3165_vm15 = vmor %vm1005_vm8, %vm1006_vm10 }
  0xfb   :  { %v208_v45 = vpop.xlane.xlu1 %207  ;;  %v3127_v21 = vpop.eup %1791  ;;  %v1011_v47 = vmul.f32 %v3113_v46, %v1010_v44  ;;  %v1078_v49 = vmul.f32 %v1859_v62, %v528_v7  ;;  %v844_v27 = vmul.f32 %v3050_v63, %v843_v5  ;;  %vm1015_vm12 = vweird.f32 %v3062_v61 }
  0xfc   :  { %v850_v3 = vmul.f32 %v3127_v21, %v3068_v41  ;;  %v681_v9 = vmul.f32 %v3120_v42, %v680_v4  ;;  %v1004_v31 = vmul.f32 %v3072_v11, %v1003_v43  ;;  %vm685_vm13 = vweird.f32 %v3064_v51  ;;  %v1862_v51 = vld [vmem:[%s3989_s0 + $0xc8] sm:$0xff] }
  0xfd   :  { %v1012_v2 = vmul.f32 0.5, %v1011_v47  ;;  %vm1016_vm14 = vweird.f32 %v3113_v46  ;;  %v848_v48 = vsel %vm3152_vm11, %v3050_v63, %v844_v27  ;;  %v3173_v57 = vmax.f32 %v256_v0, 1e-24 }
  0xfe   :  { %v851_v12 = vmul.f32 %v3127_v21, %v850_v3  ;;  %v3159_v16 = vpop.eup %1793  ;;  %v682_v13 = vmul.f32 0.5, %v681_v9  ;;  %v1008_v22 = vsel %vm3165_vm15, %v3072_v11, %v1004_v31  ;;  %v3182_v15 = vmax.f32 %v352_v40, 1e-24  ;;  %vm3212_vm4 = vmor %vm1015_vm12, %vm1016_vm14 }
  0xff   :  { %v3175_v38 = vpop.eup %1795  ;;  %v860_v20 = vmul.f32 %v3159_v16, %v3105_v10  ;;  %v1110_v55 = vmul.f32 %v1860_v53, %v848_v48  ;;  %v3192_v54 = vmax.f32 %v208_v45, 1e-24  ;;  %v1013_v26 = vsub.f32 1.5, %v1012_v2  ;;  %v1864_v45 = vld [vmem:[%s3989_s0 + $0x1d0] sm:$0xff] }
 0x100   :  { %v852_v19 = vmul.f32 0.5, %v851_v12  ;;  %v3184_v8 = vpop.eup %1797  ;;  %v683_v59 = vsub.f32 1.5, %v682_v13  ;;  %v530_v63 = vmul.f32 %v3175_v38, %v3107_v28  ;;  %1625 = vmatmul.msk.f32.gmra.mxu0 %vm172_vm0, %v1078_v49  ;;  %vm686_vm1 = vweird.f32 %v3120_v42  ;;  %v1865_v48 = vld [vmem:[%s3989_s0 + $0x50] sm:$0xff] }
 0x101   :  { %v861_v34 = vmul.f32 %v3159_v16, %v860_v20  ;;  %v690_v56 = vmul.f32 %v3184_v8, %v3110_v29  ;;  %1657 = vmatmul.msk.f32.gmra.mxu2 %vm172_vm0, %v1110_v55  ;;  %v1126_v24 = vmul.f32 %v1861_v6, %v1008_v22  ;;  %1799 = vrsqrt.f32 %v3173_v57  ;;  %vm687_vm6 = vmor %vm685_vm13, %vm686_vm1 }
 0x102   :  { %v211_v58 = vpop.xlane.xlu2 %210  ;;  %v307_v17 = vpop.xlane.xlu0 %306  ;;  %v853_v11 = vsub.f32 1.5, %v852_v19  ;;  %v531_v1 = vmul.f32 %v3175_v38, %v530_v63  ;;  %vm855_vm2 = vweird.f32 %v3068_v41  ;;  %vm856_vm3 = vweird.f32 %v3127_v21  ;;  %v1866_v63 = vld [vmem:[%s3989_s0 + $0xd0] sm:$0xff] }
 0x103   :  { %v355_v25 = vpop.xlane.xlu1 %354  ;;  %v691_v30 = vmul.f32 %v3184_v8, %v690_v56  ;;  %1801 = vrsqrt.f32 %v3182_v15  ;;  %vm865_vm5 = vweird.f32 %v3105_v10  ;;  %1673 = vmatmul.msk.f32.gmra.mxu3 %vm172_vm0, %v1126_v24  ;;  %v684_v32 = vmul.f32 %v3120_v42, %v683_v59  ;;  %vm857_vm7 = vmor %vm855_vm2, %vm856_vm3 }
 0x104   :  { %v532_v18 = vmul.f32 0.5, %v531_v1  ;;  %1803 = vrsqrt.f32 %v3192_v54  ;;  %v862_v50 = vmul.f32 0.5, %v861_v34  ;;  %v854_v52 = vmul.f32 %v3127_v21, %v853_v11 }
 0x105   :  { %v692_v61 = vmul.f32 0.5, %v691_v30  ;;  %v1014_v36 = vmul.f32 %v3113_v46, %v1013_v26  ;;  %v688_v37 = vsel %vm687_vm6, %v3120_v42, %v684_v32  ;;  %v3229_v5 = vmax.f32 %v211_v58, 1e-24  ;;  %v1863_v42 = vld [vmem:[%s3989_s0 + $0x150] sm:$0xff] }
 0x106   :  { %v533_v14 = vsub.f32 1.5, %v532_v18  ;;  %v3231_v60 = vmax.f32 %v307_v17, 1e-24  ;;  %v1094_v0 = vmul.f32 %v1862_v51, %v688_v37  ;;  %v858_v40 = vsel %vm857_vm7, %v3127_v21, %v854_v52 }
 0x107   :  { %v693_v33 = vsub.f32 1.5, %v692_v61  ;;  %v1018_v41 = vsel %vm3212_vm4, %v3113_v46, %v1014_v36  ;;  %v3240_v43 = vpop.eup %1799  ;;  %vm536_vm9 = vweird.f32 %v3175_v38  ;;  %v1111_v44 = vmul.f32 %v1863_v42, %v858_v40 }
 0x108   :  { %v1127_v4 = vmul.f32 %v1864_v45, %v1018_v41  ;;  %1805 = vrsqrt.f32 %v3229_v5  ;;  %vm535_vm8 = vweird.f32 %v3107_v28  ;;  %vm696_vm10 = vweird.f32 %v3184_v8  ;;  %1641 = vmatmul.msk.f32.gmra.mxu1 %vm172_vm0, %v1094_v0  ;;  %v1868_v0 = vld [vmem:[%s3989_s0 + $0x58] sm:$0xff] }
 0x109   :  { %v3250_v3 = vpop.eup %1801  ;;  %v700_v46 = vmul.f32 %v3240_v43, %v3173_v57  ;;  %1807 = vrsqrt.f32 %v3231_v60  ;;  %v863_v62 = vsub.f32 1.5, %v862_v50  ;;  %1658 = vmatmul.msk.f32.gmra.mxu2 %vm172_vm0, %v1111_v44  ;;  %v3263_v27 = vmax.f32 %v355_v25, 1e-24  ;;  %vm537_vm11 = vmor %vm535_vm8, %vm536_vm9  ;;  %v1867_v25 = vld [vmem:[%s3989_s0 + $0x158] sm:$0xff]  ;;  %v3350_v44 = vld [vmem:[#allocation4] ss:$0 sm:$0xff] }
 0x10a   :  { %v358_v21 = vpop.xlane.xlu2 %357  ;;  %v259_v47 = vpop.xlane.xlu0 %258  ;;  %v1020_v49 = vmul.f32 %v3250_v3, %v3182_v15  ;;  %v534_v28 = vmul.f32 %v3175_v38, %v533_v14  ;;  %vm695_vm12 = vweird.f32 %v3110_v29  ;;  %v694_v2 = vmul.f32 %v3184_v8, %v693_v33 }
 0x10b   :  { %v310_v7 = vpop.xlane.xlu1 %309  ;;  %v3258_v9 = vpop.eup %1803  ;;  %v701_v31 = vmul.f32 %v3240_v43, %v700_v46  ;;  %vm866_vm13 = vweird.f32 %v3159_v16  ;;  %vm697_vm15 = vmor %vm695_vm12, %vm696_vm10  ;;  %1674 = vmatmul.msk.f32.gmra.mxu3 %vm172_vm0, %v1127_v4  ;;  %1809 = vrsqrt.f32 %v3263_v27  ;;  %v3291_v55 = vmax.f32 %v358_v21, 1e-24 }
 0x10c   :  { %v540_v23 = vmul.f32 %v3258_v9, %v3192_v54  ;;  %v1021_v12 = vmul.f32 %v3250_v3, %v1020_v49  ;;  %v538_v29 = vsel %vm537_vm11, %v3175_v38, %v534_v28  ;;  %v698_v20 = vsel %vm697_vm15, %v3184_v8, %v694_v2  ;;  %vm867_vm14 = vmor %vm865_vm5, %vm866_vm13  ;;  %v1870_v28 = vld [vmem:[%s3989_s0 + $0x1d8] sm:$0xff] }
 0x10d   :  { %v702_v39 = vmul.f32 0.5, %v701_v31  ;;  %v1079_v19 = vmul.f32 %v1865_v48, %v538_v29  ;;  %v1095_v53 = vmul.f32 %v1866_v63, %v698_v20  ;;  %v864_v38 = vmul.f32 %v3159_v16, %v863_v62  ;;  %v1869_v62 = vld [vmem:[%s3989_s0 + $0xd8] sm:$0xff] }
 0x10e   :  { %v541_v13 = vmul.f32 %v3258_v9, %v540_v23  ;;  %v3285_v22 = vpop.eup %1805  ;;  %v1022_v59 = vmul.f32 0.5, %v1021_v12  ;;  %vm705_vm1 = vweird.f32 %v3173_v57  ;;  %vm545_vm2 = vweird.f32 %v3192_v54 }
 0x10f   :  { %v3293_v58 = vpop.eup %1807  ;;  %v550_v17 = vmul.f32 %v3285_v22, %v3229_v5  ;;  %1626 = vmatmul.msk.f32.gmra.mxu0 %vm172_vm0, %v1079_v19  ;;  %v703_v26 = vsub.f32 1.5, %v702_v39  ;;  %vm546_vm3 = vweird.f32 %v3258_v9  ;;  %v868_v34 = vsel %vm867_vm14, %v3159_v16, %v864_v38  ;;  %v1871_v38 = vld [vmem:[%s3989_s0 + $0x60] sm:$0xff] }
 0x110   :  { %v542_v8 = vmul.f32 0.5, %v541_v13  ;;  %v870_v11 = vmul.f32 %v3293_v58, %v3231_v60  ;;  %1642 = vmatmul.msk.f32.gmra.mxu1 %vm172_vm0, %v1095_v53  ;;  %v1112_v1 = vmul.f32 %v1867_v25, %v868_v34  ;;  %1811 = vrsqrt.f32 %v3291_v55  ;;  %vm547_vm7 = vmor %vm545_vm2, %vm546_vm3 }
 0x111   :  { %v551_v56 = vmul.f32 %v3285_v22, %v550_v17  ;;  %v3314_v6 = vpop.eup %1809  ;;  %v1023_v24 = vsub.f32 1.5, %v1022_v59  ;;  %v3317_v35 = vmax.f32 %v259_v47, 1e-24  ;;  %v3319_v16 = vmax.f32 %v310_v7, 1e-24 }
 0x112   :  { %v543_v10 = vsub.f32 1.5, %v542_v8  ;;  %v871_v30 = vmul.f32 %v3293_v58, %v870_v11  ;;  %v313_v18 = vpop.xlane.xlu2 %312  ;;  %v214_v32 = vpop.xlane.xlu0 %213  ;;  %vm706_vm4 = vweird.f32 %v3240_v43  ;;  %v1030_v61 = vmul.f32 %v3314_v6, %v3263_v27  ;;  %1659 = vmatmul.msk.f32.gmra.mxu2 %vm172_vm0, %v1112_v1 }
 0x113   :  { %v552_v50 = vmul.f32 0.5, %v551_v56  ;;  %v262_v36 = vpop.xlane.xlu1 %261  ;;  %vm1025_vm5 = vweird.f32 %v3182_v15  ;;  %vm1026_vm6 = vweird.f32 %v3250_v3  ;;  %vm555_vm9 = vweird.f32 %v3229_v5  ;;  %vm3341_vm8 = vmor %vm705_vm1, %vm706_vm4 }
 0x114   :  { %v544_v52 = vmul.f32 %v3258_v9, %v543_v10  ;;  %1813 = vrsqrt.f32 %v3317_v35  ;;  %v1031_v37 = vmul.f32 %v3314_v6, %v1030_v61  ;;  %v872_v54 = vmul.f32 0.5, %v871_v30  ;;  %vm1027_vm10 = vmor %vm1025_vm5, %vm1026_vm6 }
 0x115   :  { %v553_v14 = vsub.f32 1.5, %v552_v50  ;;  %1815 = vrsqrt.f32 %v3319_v16  ;;  %v704_v41 = vmul.f32 %v3240_v43, %v703_v26  ;;  %v1024_v42 = vmul.f32 %v3250_v3, %v1023_v24 }
 0x116   :  { %v548_v33 = vsel %vm547_vm7, %v3258_v9, %v544_v52  ;;  %v3352_v45 = vpop.eup %1811  ;;  %vm556_vm11 = vweird.f32 %v3285_v22  ;;  %v1032_v57 = vmul.f32 0.5, %v1031_v37  ;;  %v3359_v4 = vmax.f32 %v313_v18, 1e-24  ;;  %v1872_v37 = vld [vmem:[%s3989_s0 + $0x160] sm:$0xff] }
 0x117   :  { %v1080_v40 = vmul.f32 %v1868_v0, %v548_v33  ;;  %v3361_v21 = vmax.f32 %v214_v32, 1e-24  ;;  %v1040_v47 = vmul.f32 %v3352_v45, %v3291_v55  ;;  %v708_v46 = vsel %vm3341_vm8, %v3240_v43, %v704_v41  ;;  %vm3389_vm13 = vmor %vm555_vm9, %vm556_vm11  ;;  %v1873_v41 = vld [vmem:[%s3989_s0 + $0x1e0] sm:$0xff] }
 0x118   :  { %v1028_v7 = vsel %vm1027_vm10, %v3250_v3, %v1024_v42  ;;  %v1354_v15 = vpop.f32.mrf.mxu0  ;;  %v554_v9 = vmul.f32 %v3285_v22, %v553_v14  ;;  %vm875_vm12 = vweird.f32 %v3231_v60  ;;  %v1096_v49 = vmul.f32 %v1869_v62, %v708_v46 }
 0x119   :  { %1627 = vmatmul.msk.f32.gmra.mxu0 %vm172_vm0, %v1080_v40  ;;  %v1128_v31 = vmul.f32 %v1870_v28, %v1028_v7  ;;  %1817 = vrsqrt.f32 %v3359_v4  ;;  %v873_v3 = vsub.f32 1.5, %v872_v54  ;;  %v1033_v23 = vsub.f32 1.5, %v1032_v57 }
 0x11a   :  { %v3379_v43 = vpop.eup %1813  ;;  %v1041_v2 = vmul.f32 %v3352_v45, %v1040_v47  ;;  %1819 = vrsqrt.f32 %v3361_v21  ;;  %vm1035_vm15 = vweird.f32 %v3263_v27  ;;  %1643 = vmatmul.msk.f32.gmra.mxu1 %vm172_vm0, %v1096_v49  ;;  %v3398_v13 = vmax.f32 %v262_v36, 1e-24  ;;  %v265_v20 = vpop.xlane.xlu2 %264 }
 0x11b   :  { %v3383_v12 = vpop.eup %1815  ;;  %v710_v39 = vmul.f32 %v3379_v43, %v3317_v35  ;;  %1675 = vmatmul.msk.f32.gmra.mxu3 %vm172_vm0, %v1128_v31  ;;  %v1355_v48 = vadd.f32 %v3350_v44, %v1354_v15  ;;  %vm876_vm14 = vweird.f32 %v3293_v58  ;;  %vm1045_vm1 = vweird.f32 %v3291_v55  ;;  %v361_v59 = vpop.xlane.xlu0 %360  ;;  %v1877_v15 = vld [vmem:[%s3989_s0 + $0x68] sm:$0xff] }
 0x11c   :  { %v880_v5 = vmul.f32 %v3383_v12, %v3319_v16  ;;  %v558_v19 = vsel %vm3389_vm13, %v3285_v22, %v554_v9  ;;  %v1042_v63 = vmul.f32 0.5, %v1041_v2  ;;  %1821 = vrsqrt.f32 %v3398_v13  ;;  %v217_v17 = vpop.xlane.xlu1 %216  ;;  %vm3426_vm3 = vmor %vm875_vm12, %vm876_vm14 }
 0x11d   :  { %v711_v53 = vmul.f32 %v3379_v43, %v710_v39  ;;  %1546 = vst [vmem:[%s3992_s3] sm:$0xff] %v1355_v48  ;;  %v1081_v8 = vmul.f32 %v1871_v38, %v558_v19  ;;  %vm1036_vm2 = vweird.f32 %v3314_v6  ;;  %v874_v26 = vmul.f32 %v3293_v58, %v873_v3  ;;  %v1450_v34 = vpop.f32.mrf.mxu2  ;;  %v1874_v48 = vld [vmem:[%s3989_s0 + $0xe0] sm:$0xff]  ;;  %v1875_v38 = vld [vmem:[%s3989_s0 + $0x168] sm:$0xff] }
 0x11e   :  { %v881_v22 = vmul.f32 %v3383_v12, %v880_v5  ;;  %v1034_v11 = vmul.f32 %v3314_v6, %v1033_v23  ;;  %v3430_v1 = vmax.f32 %v265_v20, 1e-24  ;;  %v3432_v24 = vmax.f32 %v361_v59, 1e-24  ;;  %vm3448_vm5 = vmor %vm1035_vm15, %vm1036_vm2  ;;  %v1878_v3 = vld [vmem:[%s3989_s0 + $0xe8] sm:$0xff] }
 0x11f   :  { %v3420_v10 = vpop.eup %1817  ;;  %v712_v25 = vmul.f32 0.5, %v711_v53  ;;  %v1451_v30 = vadd.f32 %v3350_v44, %v1450_v34  ;;  %vm1046_vm4 = vweird.f32 %v3352_v45  ;;  %v878_v60 = vsel %vm3426_vm3, %v3293_v58, %v874_v26 }
 0x120   :  { %v3435_v18 = vpop.eup %1819  ;;  %v882_v32 = vmul.f32 0.5, %v881_v22  ;;  %v890_v50 = vmul.f32 %v3420_v10, %v3359_v4  ;;  %v1043_v52 = vsub.f32 1.5, %v1042_v63  ;;  %v1113_v33 = vmul.f32 %v1872_v37, %v878_v60  ;;  %v1402_v58 = vpop.f32.mrf.mxu1  ;;  %vm3483_vm10 = vmor %vm1045_vm1, %vm1046_vm4  ;;  %v1881_v37 = vld [vmem:[%s3989_s0 + $0x70] sm:$0xff] }
 0x121   :  { %1628 = vmatmul.msk.f32.gmra.mxu0 %vm172_vm0, %v1081_v8  ;;  %v713_v36 = vsub.f32 1.5, %v712_v25  ;;  %v560_v14 = vmul.f32 %v3435_v18, %v3361_v21  ;;  %1578 = vst [vmem:[%s3992_s3 + $0x100] sm:$0xff] %v1451_v30  ;;  %v1038_v54 = vsel %vm3448_vm5, %v3314_v6, %v1034_v11  ;;  %1823 = vrsqrt.f32 %v3430_v1 }
 0x122   :  { %v883_v27 = vsub.f32 1.5, %v882_v32  ;;  %v891_v51 = vmul.f32 %v3420_v10, %v890_v50  ;;  %v3465_v0 = vpop.eup %1821  ;;  %vm716_vm6 = vweird.f32 %v3379_v43  ;;  %1660 = vmatmul.msk.f32.gmra.mxu2 %vm172_vm0, %v1113_v33  ;;  %v1129_v42 = vmul.f32 %v1873_v41, %v1038_v54 }
 0x123   :  { %v561_v40 = vmul.f32 %v3435_v18, %v560_v14  ;;  %1825 = vrsqrt.f32 %v3432_v24  ;;  %vm715_vm7 = vweird.f32 %v3317_v35  ;;  %vm885_vm9 = vweird.f32 %v3319_v16 }
 0x124   :  { %vm886_vm8 = vweird.f32 %v3383_v12  ;;  %v720_v6 = vmul.f32 %v3465_v0, %v3398_v13  ;;  %v3487_v47 = vmul.f32 0.5, %v891_v51  ;;  %1676 = vmatmul.msk.f32.gmra.mxu3 %vm172_vm0, %v1129_v42  ;;  %v3490_v35 = vmax.f32 %v217_v17, 1e-24  ;;  %vm3496_vm11 = vmor %vm715_vm7, %vm716_vm6 }
 0x125   :  { %v1403_v46 = vadd.f32 %v3350_v44, %v1402_v58  ;;  %v714_v7 = vmul.f32 %v3379_v43, %v713_v36  ;;  %v3500_v55 = vmul.f32 0.5, %v561_v40  ;;  %v884_v62 = vmul.f32 %v3383_v12, %v883_v27  ;;  %v220_v28 = vpop.xlane.xlu2 %219  ;;  %v316_v31 = vpop.xlane.xlu0 %315  ;;  %vm3509_vm12 = vmor %vm885_vm9, %vm886_vm8 }
 0x126   :  { %v721_v9 = vmul.f32 %v3465_v0, %v720_v6  ;;  %v1044_v49 = vmul.f32 %v3352_v45, %v1043_v52  ;;  %vm895_vm13 = vweird.f32 %v3359_v4  ;;  %vm565_vm15 = vweird.f32 %v3361_v21  ;;  %v364_v2 = vpop.xlane.xlu1 %363  ;;  %v1453_v16 = vpop.f32.mrf.mxu2 }
 0x127   :  { %1827 = vrsqrt.f32 %v3490_v35  ;;  %1562 = vst [vmem:[%s3992_s3 + $0x80] sm:$0xff] %v1403_v46  ;;  %v718_v23 = vsel %vm3496_vm11, %v3379_v43, %v714_v7  ;;  %v3522_v29 = vpop.eup %1823  ;;  %vm725_vm14 = vweird.f32 %v3398_v13  ;;  %v888_v19 = vsel %vm3509_vm12, %v3383_v12, %v884_v62  ;;  %v1498_v20 = vpop.f32.mrf.mxu3  ;;  %v1876_v12 = vld [vmem:[%s3989_s0 + $0x1e8] sm:$0xff] }
 0x128   :  { %v722_v39 = vmul.f32 0.5, %v721_v9  ;;  %v1097_v5 = vmul.f32 %v1874_v48, %v718_v23  ;;  %v1048_v43 = vsel %vm3483_vm10, %v3352_v45, %v1044_v49  ;;  %v1357_v59 = vpop.f32.mrf.mxu0  ;;  %vm896_vm1 = vweird.f32 %v3420_v10  ;;  %v1405_v32 = vpop.f32.mrf.mxu1 }
 0x129   :  { %v3534_v63 = vpop.eup %1825  ;;  %v730_v53 = vmul.f32 %v3522_v29, %v3430_v1  ;;  %v1114_v8 = vmul.f32 %v1875_v38, %v888_v19  ;;  %v1130_v17 = vmul.f32 %v1876_v12, %v1048_v43  ;;  %v893_v45 = vsub.f32 1.5, %v3487_v47  ;;  %vm3583_vm6 = vmor %vm895_vm13, %vm896_vm1 }
 0x12a   :  { %v563_v22 = vsub.f32 1.5, %v3500_v55  ;;  %v1050_v26 = vmul.f32 %v3534_v63, %v3432_v24  ;;  %1644 = vmatmul.msk.f32.gmra.mxu1 %vm172_vm0, %v1097_v5  ;;  %v3550_v11 = vmax.f32 %v220_v28, 1e-24  ;;  %v3554_v56 = vmax.f32 %v316_v31, 1e-24 }
 0x12b   :  { %v731_v34 = vmul.f32 %v3522_v29, %v730_v53  ;;  %1661 = vmatmul.msk.f32.gmra.mxu2 %vm172_vm0, %v1114_v8  ;;  %v3556_v25 = vmax.f32 %v364_v2, 1e-24  ;;  %v1454_v30 = vadd.f32 %v3350_v44, %v1453_v16  ;;  %v723_v50 = vsub.f32 1.5, %v722_v39 }
 0x12c   :  { %v1051_v60 = vmul.f32 %v3534_v63, %v1050_v26  ;;  %1829 = vrsqrt.f32 %v3550_v11  ;;  %v1499_v61 = vadd.f32 %v3350_v44, %v1498_v20  ;;  %vm566_vm2 = vweird.f32 %v3435_v18  ;;  %1677 = vmatmul.msk.f32.gmra.mxu3 %vm172_vm0, %v1130_v17 }
 0x12d   :  { %v3562_v52 = vpop.eup %1827  ;;  %v732_v36 = vmul.f32 0.5, %v731_v34  ;;  %vm735_vm3 = vweird.f32 %v3430_v1  ;;  %1831 = vrsqrt.f32 %v3554_v56  ;;  %1579 = vst [vmem:[%s3992_s3 + $0x108] sm:$0xff] %v1454_v30  ;;  %vm726_vm4 = vweird.f32 %v3465_v0  ;;  %vm3597_vm9 = vmor %vm565_vm15, %vm566_vm2 }
 0x12e   :  { %vm736_vm5 = vweird.f32 %v3522_v29  ;;  %v570_v14 = vmul.f32 %v3562_v52, %v3490_v35  ;;  %1833 = vrsqrt.f32 %v3556_v25  ;;  %1594 = vst [vmem:[%s3992_s3 + $0x180] sm:$0xff] %v1499_v61  ;;  %v3587_v33 = vmul.f32 0.5, %v1051_v60  ;;  %v268_v54 = vpop.xlane.xlu0 %267  ;;  %vm3609_vm10 = vmor %vm725_vm14, %vm726_vm4  ;;  %v1880_v61 = vld [vmem:[%s3989_s0 + $0xf0] sm:$0xff] }
 0x12f   :  { %vm575_vm7 = vweird.f32 %v3490_v35  ;;  %v1358_v58 = vadd.f32 %v3350_v44, %v1357_v59  ;;  %v1406_v27 = vadd.f32 %v3350_v44, %v1405_v32  ;;  %v564_v51 = vmul.f32 %v3435_v18, %v563_v22  ;;  %vm3670_vm14 = vmor %vm735_vm3, %vm736_vm5 }
 0x130   :  { %v733_v40 = vsub.f32 1.5, %v732_v36  ;;  %vm1055_vm8 = vweird.f32 %v3432_v24  ;;  %v571_v41 = vmul.f32 %v3562_v52, %v570_v14  ;;  %v724_v42 = vmul.f32 %v3465_v0, %v723_v50  ;;  %v1456_v16 = vpop.f32.mrf.mxu2 }
 0x131   :  { %v894_v6 = vmul.f32 %v3420_v10, %v893_v45  ;;  %vm1056_vm11 = vweird.f32 %v3534_v63  ;;  %vm585_vm12 = vweird.f32 %v3550_v11  ;;  %1547 = vst [vmem:[%s3992_s3 + $0x8] sm:$0xff] %v1358_v58  ;;  %v568_v21 = vsel %vm3597_vm9, %v3435_v18, %v564_v51  ;;  %v1501_v46 = vpop.f32.mrf.mxu3 }
 0x132   :  { %v3621_v47 = vmax.f32 %v268_v54, 1e-24  ;;  %v3623_v13 = vpop.eup %1829  ;;  %v572_v7 = vmul.f32 0.5, %v571_v41  ;;  %1563 = vst [vmem:[%s3992_s3 + $0x88] sm:$0xff] %v1406_v27  ;;  %v1082_v55 = vmul.f32 %v1877_v15, %v568_v21  ;;  %v728_v9 = vsel %vm3609_vm10, %v3465_v0, %v724_v42  ;;  %v1360_v62 = vpop.f32.mrf.mxu0  ;;  %v1879_v0 = vld [vmem:[%s3989_s0 + $0x170] sm:$0xff]  ;;  %vm3697_vm3 = vmor %vm1055_vm8, %vm1056_vm11 }
 0x133   :  { %v898_v18 = vsel %vm3583_vm6, %v3420_v10, %v894_v6  ;;  %v3637_v49 = vpop.eup %1831  ;;  %v1053_v28 = vsub.f32 1.5, %v3587_v33  ;;  %v580_v31 = vmul.f32 %v3623_v13, %v3550_v11  ;;  %v1098_v23 = vmul.f32 %v1878_v3, %v728_v9  ;;  %v1884_v9 = vld [vmem:[%s3989_s0 + $0x78] sm:$0xff] }
 0x134   :  { %v1115_v2 = vmul.f32 %v1879_v0, %v898_v18  ;;  %v3648_v10 = vpop.eup %1833  ;;  %v573_v39 = vsub.f32 1.5, %v572_v7  ;;  %v900_v48 = vmul.f32 %v3637_v49, %v3554_v56  ;;  %1629 = vmatmul.msk.f32.gmra.mxu0 %vm172_vm0, %v1082_v55  ;;  %1835 = vrsqrt.f32 %v3621_v47  ;;  %v1408_v20 = vpop.f32.mrf.mxu1 }
 0x135   :  { %v734_v5 = vmul.f32 %v3522_v29, %v733_v40  ;;  %vm576_vm13 = vweird.f32 %v3562_v52  ;;  %v581_v19 = vmul.f32 %v3623_v13, %v580_v31  ;;  %vm905_vm15 = vweird.f32 %v3554_v56  ;;  %1645 = vmatmul.msk.f32.gmra.mxu1 %vm172_vm0, %v1098_v23 }
 0x136   :  { %v1060_v43 = vmul.f32 %v3648_v10, %v3556_v25  ;;  %1662 = vmatmul.msk.f32.gmra.mxu2 %vm172_vm0, %v1115_v2  ;;  %v901_v59 = vmul.f32 %v3637_v49, %v900_v48  ;;  %v1457_v53 = vadd.f32 %v3350_v44, %v1456_v16  ;;  %v1502_v38 = vadd.f32 %v3350_v44, %v1501_v46  ;;  %vm3681_vm1 = vmor %vm575_vm7, %vm576_vm13 }
 0x137   :  { %v1361_v8 = vadd.f32 %v3350_v44, %v1360_v62  ;;  %v582_v17 = vmul.f32 0.5, %v581_v19  ;;  %v1409_v22 = vadd.f32 %v3350_v44, %v1408_v20  ;;  %v574_v26 = vmul.f32 %v3562_v52, %v573_v39 }
 0x138   :  { %v1061_v45 = vmul.f32 %v3648_v10, %v1060_v43  ;;  %vm586_vm2 = vweird.f32 %v3623_v13  ;;  %v902_v1 = vmul.f32 0.5, %v901_v59  ;;  %1580 = vst [vmem:[%s3992_s3 + $0x110] sm:$0xff] %v1457_v53  ;;  %v738_v30 = vsel %vm3670_vm14, %v3522_v29, %v734_v5 }
 0x139   :  { %v1054_v32 = vmul.f32 %v3534_v63, %v1053_v28  ;;  %v583_v50 = vsub.f32 1.5, %v582_v17  ;;  %1595 = vst [vmem:[%s3992_s3 + $0x188] sm:$0xff] %v1502_v38  ;;  %v578_v29 = vsel %vm3681_vm1, %v3562_v52, %v574_v26  ;;  %v1099_v36 = vmul.f32 %v1880_v61, %v738_v30  ;;  %vm3730_vm6 = vmor %vm585_vm12, %vm586_vm2  ;;  %v1885_v28 = vld [vmem:[%s3989_s0 + $0x1f8] sm:$0xff] }
 0x13a   :  { %v1062_v60 = vmul.f32 0.5, %v1061_v45  ;;  %v1836_v24 = vpop.eup %1835  ;;  %v903_v14 = vsub.f32 1.5, %v902_v1  ;;  %vm906_vm4 = vweird.f32 %v3637_v49  ;;  %1548 = vst [vmem:[%s3992_s3 + $0x10] sm:$0xff] %v1361_v8  ;;  %v1083_v33 = vmul.f32 %v1881_v37, %v578_v29 }
 0x13b   :  { %v1058_v52 = vsel %vm3697_vm3, %v3534_v63, %v1054_v32  ;;  %v584_v58 = vmul.f32 %v3623_v13, %v583_v50  ;;  %vm1066_vm5 = vweird.f32 %v3648_v10  ;;  %v740_v51 = vmul.f32 %v1836_v24, %v3621_v47  ;;  %1564 = vst [vmem:[%s3992_s3 + $0x90] sm:$0xff] %v1409_v22  ;;  %v1504_v54 = vpop.f32.mrf.mxu3  ;;  %v1363_v4 = vpop.f32.mrf.mxu0  ;;  %v1882_v63 = vld [vmem:[%s3989_s0 + $0x1f0] sm:$0xff]  ;;  %vm907_vm7 = vmor %vm905_vm15, %vm906_vm4 }
 0x13c   :  { %v1063_v27 = vsub.f32 1.5, %v1062_v60  ;;  %1630 = vmatmul.msk.f32.gmra.mxu0 %vm172_vm0, %v1083_v33  ;;  %v1131_v41 = vmul.f32 %v1882_v63, %v1058_v52  ;;  %v1505_v42 = vadd.f32 %v3350_v44, %v1504_v54  ;;  %v1364_v6 = vadd.f32 %v3350_v44, %v1363_v4 }
 0x13d   :  { %v904_v57 = vmul.f32 %v3637_v49, %v903_v14  ;;  %vm1065_vm9 = vweird.f32 %v3556_v25  ;;  %v741_v21 = vmul.f32 %v1836_v24, %v740_v51  ;;  %1646 = vmatmul.msk.f32.gmra.mxu1 %vm172_vm0, %v1099_v36  ;;  %v588_v46 = vsel %vm3730_vm6, %v3623_v13, %v584_v58  ;;  %v1883_v13 = vld [vmem:[%s3989_s0 + $0x178] sm:$0xff] }
 0x13e   :  { %v1064_v11 = vmul.f32 %v3648_v10, %v1063_v27  ;;  %vm3753_vm8 = vmor %vm1065_vm9, %vm1066_vm5  ;;  %1678 = vmatmul.msk.f32.gmra.mxu3 %vm172_vm0, %v1131_v41  ;;  %1596 = vst [vmem:[%s3992_s3 + $0x190] sm:$0xff] %v1505_v42  ;;  %v1084_v18 = vmul.f32 %v1884_v9, %v588_v46  ;;  %vm746_vm10 = vweird.f32 %v1836_v24  ;;  %vm745_vm11 = vweird.f32 %v3621_v47  ;;  %v1886_v47 = vld [vmem:[%s3989_s0 + $0xf8] sm:$0xff] }
 0x13f   :  { %v908_v56 = vsel %vm907_vm7, %v3637_v49, %v904_v57  ;;  %v742_v25 = vmul.f32 0.5, %v741_v21  ;;  %1549 = vst [vmem:[%s3992_s3 + $0x18] sm:$0xff] %v1364_v6  ;;  %vm747_vm12 = vmor %vm745_vm11, %vm746_vm10 }
 0x140   :  { %v1116_v15 = vmul.f32 %v1883_v13, %v908_v56  ;;  %v1068_v55 = vsel %vm3753_vm8, %v3648_v10, %v1064_v11 }
 0x141   :  { %v743_v62 = vsub.f32 1.5, %v742_v25  ;;  %v1459_v49 = vpop.f32.mrf.mxu2  ;;  %v1132_v31 = vmul.f32 %v1885_v28, %v1068_v55 }
 0x142   :  { %1663 = vmatmul.msk.f32.gmra.mxu2 %vm172_vm0, %v1116_v15  ;;  %v1460_v3 = vadd.f32 %v3350_v44, %v1459_v49 }
 0x143   :  { %v744_v23 = vmul.f32 %v1836_v24, %v743_v62  ;;  %v1411_v0 = vpop.f32.mrf.mxu1  ;;  %v1507_v2 = vpop.f32.mrf.mxu3 }
 0x144   :  { %1631 = vmatmul.msk.f32.gmra.mxu0 %vm172_vm0, %v1084_v18  ;;  %1581 = vst [vmem:[%s3992_s3 + $0x118] sm:$0xff] %v1460_v3  ;;  %v1412_v16 = vadd.f32 %v3350_v44, %v1411_v0  ;;  %v1508_v10 = vadd.f32 %v3350_v44, %v1507_v2 }
 0x145   :  { %v748_v39 = vsel %vm747_vm12, %v1836_v24, %v744_v23 }
 0x146   :  { %1679 = vmatmul.msk.f32.gmra.mxu3 %vm172_vm0, %v1132_v31  ;;  %1565 = vst [vmem:[%s3992_s3 + $0x98] sm:$0xff] %v1412_v16  ;;  %v1100_v48 = vmul.f32 %v1886_v47, %v748_v39 }
 0x147   :  { %1597 = vst [vmem:[%s3992_s3 + $0x198] sm:$0xff] %v1508_v10 }
 0x148   :  { %1647 = vmatmul.msk.f32.gmra.mxu1 %vm172_vm0, %v1100_v48 }
 0x14a   :  { %v1462_v5 = vpop.f32.mrf.mxu2 }
 0x14b   :  { %v1463_v19 = vadd.f32 %v3350_v44, %v1462_v5  ;;  %v1366_v43 = vpop.f32.mrf.mxu0  ;;  %v1510_v20 = vpop.f32.mrf.mxu3 }
 0x14c   :  { %v1367_v59 = vadd.f32 %v3350_v44, %v1366_v43  ;;  %v1511_v53 = vadd.f32 %v3350_v44, %v1510_v20 }
 0x14d   :  { %1582 = vst [vmem:[%s3992_s3 + $0x120] sm:$0xff] %v1463_v19  ;;  %v1414_v38 = vpop.f32.mrf.mxu1 }
 0x14e   :  { %1550 = vst [vmem:[%s3992_s3 + $0x20] sm:$0xff] %v1367_v59  ;;  %v1415_v8 = vadd.f32 %v3350_v44, %v1414_v38 }
 0x14f   :  { %1598 = vst [vmem:[%s3992_s3 + $0x1a0] sm:$0xff] %v1511_v53 }
 0x150   :  { %1566 = vst [vmem:[%s3992_s3 + $0xa0] sm:$0xff] %v1415_v8 }
 0x155   :  { %v1465_v12 = vpop.f32.mrf.mxu2  ;;  %v1369_v17 = vpop.f32.mrf.mxu0 }
 0x156   :  { %v1466_v45 = vadd.f32 %v3350_v44, %v1465_v12  ;;  %v1370_v22 = vadd.f32 %v3350_v44, %v1369_v17  ;;  %v1417_v26 = vpop.f32.mrf.mxu1 }
 0x157   :  { %v1418_v34 = vadd.f32 %v3350_v44, %v1417_v26 }
 0x158   :  { %1583 = vst [vmem:[%s3992_s3 + $0x128] sm:$0xff] %v1466_v45 }
 0x159   :  { %1551 = vst [vmem:[%s3992_s3 + $0x28] sm:$0xff] %v1370_v22 }
 0x15a   :  { %1567 = vst [vmem:[%s3992_s3 + $0xa8] sm:$0xff] %v1418_v34 }
 0x15c   :  { %v1513_v1 = vpop.f32.mrf.mxu3 }
 0x15d   :  { %v1514_v30 = vadd.f32 %v3350_v44, %v1513_v1  ;;  %v1372_v32 = vpop.f32.mrf.mxu0 }
 0x15e   :  { %v1373_v35 = vadd.f32 %v3350_v44, %v1372_v32 }
 0x15f   :  { %1599 = vst [vmem:[%s3992_s3 + $0x1a8] sm:$0xff] %v1514_v30 }
 0x160   :  { %1552 = vst [vmem:[%s3992_s3 + $0x30] sm:$0xff] %v1373_v35 }
 0x162   :  { %v1468_v50 = vpop.f32.mrf.mxu2 }
 0x163   :  { %v1469_v60 = vadd.f32 %v3350_v44, %v1468_v50 }
 0x164   :  { %v1516_v29 = vpop.f32.mrf.mxu3 }
 0x165   :  { %v1517_v61 = vadd.f32 %v3350_v44, %v1516_v29  ;;  %v1420_v36 = vpop.f32.mrf.mxu1  ;;  %1584 = vst [vmem:[%s3992_s3 + $0x130] sm:$0xff] %v1469_v60 }
 0x166   :  { %v1421_v24 = vadd.f32 %v3350_v44, %v1420_v36 }
 0x167   :  { %1600 = vst [vmem:[%s3992_s3 + $0x1b0] sm:$0xff] %v1517_v61 }
 0x168   :  { %1568 = vst [vmem:[%s3992_s3 + $0xb0] sm:$0xff] %v1421_v24 }
 0x16c   :  { %v1471_v14 = vpop.f32.mrf.mxu2  ;;  %v1519_v37 = vpop.f32.mrf.mxu3 }
 0x16d   :  { %v1472_v33 = vadd.f32 %v3350_v44, %v1471_v14  ;;  %v1520_v52 = vadd.f32 %v3350_v44, %v1519_v37  ;;  %v1375_v58 = vpop.f32.mrf.mxu0 }
 0x16e   :  { %v1376_v27 = vadd.f32 %v3350_v44, %v1375_v58  ;;  %v1423_v51 = vpop.f32.mrf.mxu1 }
 0x16f   :  { %1585 = vst [vmem:[%s3992_s3 + $0x138] sm:$0xff] %v1472_v33  ;;  %v1424_v54 = vadd.f32 %v3350_v44, %v1423_v51 }
 0x170   :  { %1601 = vst [vmem:[%s3992_s3 + $0x1b8] sm:$0xff] %v1520_v52 }
 0x171   :  { %1553 = vst [vmem:[%s3992_s3 + $0x38] sm:$0xff] %v1376_v27 }
 0x172   :  { %1569 = vst [vmem:[%s3992_s3 + $0xb8] sm:$0xff] %v1424_v54 }
 0x174   :  { %v1474_v4 = vpop.f32.mrf.mxu2 }
 0x175   :  { %v1475_v40 = vadd.f32 %v3350_v44, %v1474_v4  ;;  %v1378_v63 = vpop.f32.mrf.mxu0 }
 0x176   :  { %v1379_v41 = vadd.f32 %v3350_v44, %v1378_v63  ;;  %v1426_v42 = vpop.f32.mrf.mxu1 }
 0x177   :  { %1586 = vst [vmem:[%s3992_s3 + $0x140] sm:$0xff] %v1475_v40  ;;  %v1427_v6 = vadd.f32 %v3350_v44, %v1426_v42 }
 0x178   :  { %1554 = vst [vmem:[%s3992_s3 + $0x40] sm:$0xff] %v1379_v41 }
 0x179   :  { %1570 = vst [vmem:[%s3992_s3 + $0xc0] sm:$0xff] %v1427_v6 }
 0x17d   :  { %v1522_v57 = vpop.f32.mrf.mxu3  ;;  %v1381_v11 = vpop.f32.mrf.mxu0 }
 0x17e   :  { %v1523_v21 = vadd.f32 %v3350_v44, %v1522_v57  ;;  %v1382_v46 = vadd.f32 %v3350_v44, %v1381_v11 }
 0x180   :  { %1602 = vst [vmem:[%s3992_s3 + $0x1c0] sm:$0xff] %v1523_v21 }
 0x181   :  { %1555 = vst [vmem:[%s3992_s3 + $0x48] sm:$0xff] %v1382_v46 }
 0x184   :  { %v1477_v7 = vpop.f32.mrf.mxu2 }
 0x185   :  { %v1478_v56 = vadd.f32 %v3350_v44, %v1477_v7  ;;  %v1429_v25 = vpop.f32.mrf.mxu1 }
 0x186   :  { %v1525_v13 = vpop.f32.mrf.mxu3  ;;  %v1430_v15 = vadd.f32 %v3350_v44, %v1429_v25 }
 0x187   :  { %1587 = vst [vmem:[%s3992_s3 + $0x148] sm:$0xff] %v1478_v56  ;;  %v1526_v55 = vadd.f32 %v3350_v44, %v1525_v13 }
 0x188   :  { %1571 = vst [vmem:[%s3992_s3 + $0xc8] sm:$0xff] %v1430_v15 }
 0x189   :  { %1603 = vst [vmem:[%s3992_s3 + $0x1c8] sm:$0xff] %v1526_v55 }
 0x18c   :  { %v1384_v9 = vpop.f32.mrf.mxu0  ;;  %v1480_v18 = vpop.f32.mrf.mxu2 }
 0x18d   :  { %v1385_v62 = vadd.f32 %v3350_v44, %v1384_v9  ;;  %v1481_v49 = vadd.f32 %v3350_v44, %v1480_v18  ;;  %v1432_v28 = vpop.f32.mrf.mxu1 }
 0x18e   :  { %v1528_v31 = vpop.f32.mrf.mxu3  ;;  %v1433_v3 = vadd.f32 %v3350_v44, %v1432_v28 }
 0x18f   :  { %1556 = vst [vmem:[%s3992_s3 + $0x50] sm:$0xff] %v1385_v62  ;;  %v1529_v23 = vadd.f32 %v3350_v44, %v1528_v31 }
 0x190   :  { %1588 = vst [vmem:[%s3992_s3 + $0x150] sm:$0xff] %v1481_v49 }
 0x191   :  { %1572 = vst [vmem:[%s3992_s3 + $0xd0] sm:$0xff] %v1433_v3 }
 0x192   :  { %1604 = vst [vmem:[%s3992_s3 + $0x1d0] sm:$0xff] %v1529_v23 }
 0x195   :  { %v1483_v2 = vpop.f32.mrf.mxu2 }
 0x196   :  { %v1387_v0 = vpop.f32.mrf.mxu0  ;;  %v1484_v10 = vadd.f32 %v3350_v44, %v1483_v2 }
 0x197   :  { %v1388_v16 = vadd.f32 %v3350_v44, %v1387_v0  ;;  %v1435_v39 = vpop.f32.mrf.mxu1 }
 0x198   :  { %1589 = vst [vmem:[%s3992_s3 + $0x158] sm:$0xff] %v1484_v10  ;;  %v1436_v47 = vadd.f32 %v3350_v44, %v1435_v39 }
 0x199   :  { %1557 = vst [vmem:[%s3992_s3 + $0x58] sm:$0xff] %v1388_v16 }
 0x19a   :  { %1573 = vst [vmem:[%s3992_s3 + $0xd8] sm:$0xff] %v1436_v47 }
 0x19e   :  { %v1390_v48 = vpop.f32.mrf.mxu0  ;;  %v1531_v5 = vpop.f32.mrf.mxu3 }
 0x19f   :  { %v1391_v19 = vadd.f32 %v3350_v44, %v1390_v48  ;;  %v1532_v43 = vadd.f32 %v3350_v44, %v1531_v5 }
 0x1a1   :  { %1558 = vst [vmem:[%s3992_s3 + $0x60] sm:$0xff] %v1391_v19 }
 0x1a2   :  { %1605 = vst [vmem:[%s3992_s3 + $0x1d8] sm:$0xff] %v1532_v43 }
 0x1a5   :  { %v1486_v20 = vpop.f32.mrf.mxu2 }
 0x1a6   :  { %v1487_v59 = vadd.f32 %v3350_v44, %v1486_v20 }
 0x1a7   :  { %v1438_v53 = vpop.f32.mrf.mxu1  ;;  %v1534_v38 = vpop.f32.mrf.mxu3 }
 0x1a8   :  { %v1439_v8 = vadd.f32 %v3350_v44, %v1438_v53  ;;  %1590 = vst [vmem:[%s3992_s3 + $0x160] sm:$0xff] %v1487_v59  ;;  %v1535_v12 = vadd.f32 %v3350_v44, %v1534_v38 }
 0x1aa   :  { %1574 = vst [vmem:[%s3992_s3 + $0xe0] sm:$0xff] %v1439_v8 }
 0x1ab   :  { %1606 = vst [vmem:[%s3992_s3 + $0x1e0] sm:$0xff] %v1535_v12 }
 0x1ae   :  { %v1489_v17 = vpop.f32.mrf.mxu2 }
 0x1af   :  { %v1490_v45 = vadd.f32 %v3350_v44, %v1489_v17  ;;  %v1537_v22 = vpop.f32.mrf.mxu3 }
 0x1b0   :  { %v1538_v26 = vadd.f32 %v3350_v44, %v1537_v22 }
 0x1b1   :  { %1591 = vst [vmem:[%s3992_s3 + $0x168] sm:$0xff] %v1490_v45  ;;  %v1393_v34 = vpop.f32.mrf.mxu0 }
 0x1b2   :  { %v1394_v1 = vadd.f32 %v3350_v44, %v1393_v34  ;;  %v1441_v30 = vpop.f32.mrf.mxu1  ;;  %1607 = vst [vmem:[%s3992_s3 + $0x1e8] sm:$0xff] %v1538_v26 }
 0x1b3   :  { %v1442_v32 = vadd.f32 %v3350_v44, %v1441_v30 }
 0x1b4   :  { %1559 = vst [vmem:[%s3992_s3 + $0x68] sm:$0xff] %v1394_v1 }
 0x1b5   :  { %1575 = vst [vmem:[%s3992_s3 + $0xe8] sm:$0xff] %v1442_v32 }
 0x1b9   :  { %v1492_v35 = vpop.f32.mrf.mxu2  ;;  %v1396_v60 = vpop.f32.mrf.mxu0 }
 0x1ba   :  { %v1493_v50 = vadd.f32 %v3350_v44, %v1492_v35  ;;  %v1397_v29 = vadd.f32 %v3350_v44, %v1396_v60  ;;  %v1444_v61 = vpop.f32.mrf.mxu1 }
 0x1bb   :  { %v1445_v36 = vadd.f32 %v3350_v44, %v1444_v61 }
 0x1bc   :  { %1592 = vst [vmem:[%s3992_s3 + $0x170] sm:$0xff] %v1493_v50 }
 0x1bd   :  { %1560 = vst [vmem:[%s3992_s3 + $0x70] sm:$0xff] %v1397_v29 }
 0x1be   :  { %1576 = vst [vmem:[%s3992_s3 + $0xf0] sm:$0xff] %v1445_v36 }
 0x1c1   :  { %v1540_v24 = vpop.f32.mrf.mxu3  ;;  %v1399_v14 = vpop.f32.mrf.mxu0 }
 0x1c2   :  { %v1541_v37 = vadd.f32 %v3350_v44, %v1540_v24  ;;  %v1400_v33 = vadd.f32 %v3350_v44, %v1399_v14 }
 0x1c4   :  { %1608 = vst [vmem:[%s3992_s3 + $0x1f0] sm:$0xff] %v1541_v37 }
 0x1c5   :  { %v1495_v52 = vpop.f32.mrf.mxu2  ;;  %1561 = vst [vmem:[%s3992_s3 + $0x78] sm:$0xff] %v1400_v33  ;;  %v1447_v27 = vpop.f32.mrf.mxu1 }
 0x1c6   :  { %v1496_v58 = vadd.f32 %v3350_v44, %v1495_v52  ;;  %v1448_v51 = vadd.f32 %v3350_v44, %v1447_v27 }
 0x1c8   :  { %1593 = vst [vmem:[%s3992_s3 + $0x178] sm:$0xff] %v1496_v58 }
 0x1c9   :  { %1577 = vst [vmem:[%s3992_s3 + $0xf8] sm:$0xff] %v1448_v51  ;;  %v1543_v54 = vpop.f32.mrf.mxu3 }
 0x1ca   :  { %v1544_v4 = vadd.f32 %v3350_v44, %v1543_v54 }
 0x1cc   :  { %1609 = vst [vmem:[%s3992_s3 + $0x1f8] sm:$0xff] %v1544_v4 }
 0x1cd   :  { %1614 = vsyncpa [#allocation3], 1 }
 0x1ce   :  { %1615 = vsyncpa [#allocation5], 1 }

// kernel: slmrec_forward.5
= control target key start
LH: loop header
LB: loop body
LE: loop exit
PB: predicated region body
PF: predicated region fallthrough
CT: control target
= control target key end

     0   :  { %8 = vsyncpa [#allocation3], 0  ;;  %s3982_s0 = inlined_call_operand.vmem [shape: f32[512,48], index: 0, kind: input, shape index: {}]   ;;  %s3983_s1 = inlined_call_operand.hbm [shape: f32[48,128], index: 1, kind: input, shape index: {}]   ;;  %s3984_s2 = inlined_call_operand.hbm [shape: f32[1,128], index: 2, kind: input, shape index: {}]   ;;  %s3985_s3 = inlined_call_operand.vmem [shape: f32[512,128], index: 3, kind: output, shape index: {}]  }
   0x1   :  { %s16_s14 = sshll.u32 %s3983_s1, 4  ;;  %s17_s14 = int_to_ptr.hbm [resolvable:$true] %s16_s14 }
   0x2   :  { %9 = vsyncpa [#allocation5], 0  ;;  %s1930_s15 = smov [#allocation2]   ;;  %s30_s19 = sshll.u32 %s3984_s2, 4  ;;  %s31_s19 = int_to_ptr.hbm [resolvable:$true] %s30_s19 }
   0x3   :  { %s18_s16 = sshll.u32 %s1930_s15, 4  ;;  %s1931_s20 = smov 128   ;;  %s19_s16 = int_to_ptr.vmem [resolvable:$true] %s18_s16 }
   0x4   :  { %s1932_s21 = smov 8   ;;  %s1933_s22 = smov [#allocation4]  }
   0x5   :  { %24 = dma.hbm_to_vmem [thread:$0]  %s17_s14, 768, %s19_s16, [#allocation3], %s1931_s20, %s1931_s20, %s1932_s21  }
   0x6   :  { %s32_s23 = sshll.u32 %s1933_s22, 4  ;;  %s33_s23 = int_to_ptr.vmem [resolvable:$true] %s32_s23 }
   0x7   :  { %35 = dma.hbm_to_vmem [thread:$0]  %s31_s19, 16, %s33_s23, [#allocation5]  }
   0x8   :  { %1926 = dma.done.wait [#allocation3], 768  }
   0x9   :  { %1927 = vsyncadd [#allocation3], 4294966528 }
   0xa   :  { %1928 = dma.done.wait [#allocation5], 16  }
   0xb   :  { %1929 = vsyncadd [#allocation5], 4294967280  ;;  %v1963_v0 = vld [vmem:[%s3982_s0 + $0x108] sm:$0xff]  ;;  %vm172_vm0 = vcmask 392192   ;;  %v1968_v1 = vld [vmem:[%s3982_s0 + $0x100] sm:$0xff] }
   0xc   :  { %v1973_v2 = vld [vmem:[%s3982_s0] sm:$0xff]  ;;  %v141_v3 = vmul.f32 %v1963_v0, %v1963_v0  ;;  %v140_v4 = vmul.f32 %v1968_v1, %v1968_v1  ;;  %v1984_v6 = vld [vmem:[%s3982_s0 + $0x188] sm:$0xff]  ;;  %v2011_v18 = vld [vmem:[%s3982_s0 + $0x110] sm:$0xff] }
   0xd   :  { %v108_v5 = vmul.f32 %v1973_v2, %v1973_v2  ;;  %v1989_v7 = vld [vmem:[%s3982_s0 + $0x180] sm:$0xff]  ;;  %v157_v12 = vmul.f32 %v1984_v6, %v1984_v6  ;;  %v2016_v19 = vld [vmem:[%s3982_s0 + $0x8] sm:$0xff]  ;;  %v142_v21 = vmul.f32 %v2011_v18, %v2011_v18  ;;  %v2035_v27 = vld [vmem:[%s3982_s0 + $0x90] sm:$0xff] }
   0xe   :  { %v272_v8 = vsel %vm172_vm0, %v141_v3, 0.0  ;;  %v269_v9 = vsel %vm172_vm0, %v140_v4, 0.0  ;;  %v1997_v11 = vld [vmem:[%s3982_s0 + $0x80] sm:$0xff]  ;;  %v156_v13 = vmul.f32 %v1989_v7, %v1989_v7  ;;  %v2021_v20 = vld [vmem:[%s3982_s0 + $0x88] sm:$0xff]  ;;  %v109_v22 = vmul.f32 %v2016_v19, %v2016_v19  ;;  %v2040_v28 = vld [vmem:[%s3982_s0 + $0x190] sm:$0xff] }
   0xf   :  { %v173_v10 = vsel %vm172_vm0, %v108_v5, 0.0  ;;  %273 = vadd.xlane.f32.xlu2 %v272_v8  ;;  %270 = vadd.xlane.f32.xlu0 %v269_v9  ;;  %v124_v14 = vmul.f32 %v1997_v11, %v1997_v11  ;;  %v320_v15 = vsel %vm172_vm0, %v157_v12, 0.0  ;;  %v125_v23 = vmul.f32 %v2021_v20, %v2021_v20  ;;  %v2045_v29 = vld [vmem:[%s3982_s0 + $0x10] sm:$0xff]  ;;  %v2059_v36 = vld [vmem:[%s3982_s0 + $0x18] sm:$0xff]  ;;  %v96_v45 = vld [vmem:[%s3982_s0 + $0x1a0] sm:$0xff] }
  0x10   :  { %174 = vadd.xlane.f32.xlu1 %v173_v10  ;;  %v317_v16 = vsel %vm172_vm0, %v156_v13, 0.0  ;;  %v275_v24 = vsel %vm172_vm0, %v142_v21, 0.0  ;;  %v176_v25 = vsel %vm172_vm0, %v109_v22, 0.0  ;;  %v126_v30 = vmul.f32 %v2035_v27, %v2035_v27  ;;  %v2064_v37 = vld [vmem:[%s3982_s0 + $0x118] sm:$0xff]  ;;  %v80_v47 = vld [vmem:[%s3982_s0 + $0x120] sm:$0xff]  ;;  %v81_v54 = vld [vmem:[%s3982_s0 + $0x128] sm:$0xff] }
  0x11   :  { %v221_v17 = vsel %vm172_vm0, %v124_v14, 0.0  ;;  %v224_v26 = vsel %vm172_vm0, %v125_v23, 0.0  ;;  %v158_v31 = vmul.f32 %v2040_v28, %v2040_v28  ;;  %v110_v32 = vmul.f32 %v2045_v29, %v2045_v29  ;;  %v2069_v38 = vld [vmem:[%s3982_s0 + $0x198] sm:$0xff]  ;;  %v48_v55 = vld [vmem:[%s3982_s0 + $0x20] sm:$0xff]  ;;  %v65_v63 = vld [vmem:[%s3982_s0 + $0xa8] sm:$0xff] }
  0x12   :  { %v227_v33 = vsel %vm172_vm0, %v126_v30, 0.0  ;;  %v111_v39 = vmul.f32 %v2059_v36, %v2059_v36  ;;  %v143_v40 = vmul.f32 %v2064_v37, %v2064_v37  ;;  %v159_v41 = vmul.f32 %v2069_v38, %v2069_v38  ;;  %v63_v46 = vld [vmem:[%s3982_s0 + $0x98] sm:$0xff]  ;;  %v64_v56 = vld [vmem:[%s3982_s0 + $0xa0] sm:$0xff]  ;;  %v97_v3 = vld [vmem:[%s3982_s0 + $0x1a8] sm:$0xff] }
  0x13   :  { %v323_v34 = vsel %vm172_vm0, %v158_v31, 0.0  ;;  %v179_v35 = vsel %vm172_vm0, %v110_v32, 0.0  ;;  %v160_v48 = vmul.f32 %v96_v45, %v96_v45  ;;  %v127_v49 = vmul.f32 %v63_v46, %v63_v46  ;;  %v49_v4 = vld [vmem:[%s3982_s0 + $0x28] sm:$0xff]  ;;  %v50_v14 = vld [vmem:[%s3982_s0 + $0x30] sm:$0xff]  ;;  %v83_v31 = vld [vmem:[%s3982_s0 + $0x138] sm:$0xff] }
  0x14   :  { %v182_v42 = vsel %vm172_vm0, %v111_v39, 0.0  ;;  %v278_v43 = vsel %vm172_vm0, %v143_v40, 0.0  ;;  %v326_v44 = vsel %vm172_vm0, %v159_v41, 0.0  ;;  %v144_v50 = vmul.f32 %v80_v47, %v80_v47  ;;  %v66_v30 = vld [vmem:[%s3982_s0 + $0xb0] sm:$0xff]  ;;  %v84_v41 = vld [vmem:[%s3982_s0 + $0x140] sm:$0xff] }
  0x15   :  { %v329_v51 = vsel %vm172_vm0, %v160_v48, 0.0  ;;  %v230_v52 = vsel %vm172_vm0, %v127_v49, 0.0  ;;  %v145_v57 = vmul.f32 %v81_v54, %v81_v54  ;;  %v112_v58 = vmul.f32 %v48_v55, %v48_v55 }
  0x16   :  { %v281_v53 = vsel %vm172_vm0, %v144_v50, 0.0  ;;  %v128_v59 = vmul.f32 %v64_v56, %v64_v56  ;;  %v129_v5 = vmul.f32 %v65_v63, %v65_v63  ;;  %v161_v8 = vmul.f32 %v97_v3, %v97_v3  ;;  %v68_v50 = vld [vmem:[%s3982_s0 + $0xc0] sm:$0xff] }
  0x17   :  { %321 = vadd.xlane.f32.xlu2 %v320_v15  ;;  %318 = vadd.xlane.f32.xlu0 %v317_v16  ;;  %v284_v60 = vsel %vm172_vm0, %v145_v57, 0.0  ;;  %v185_v61 = vsel %vm172_vm0, %v112_v58, 0.0  ;;  %v113_v9 = vmul.f32 %v49_v4, %v49_v4  ;;  %v82_v15 = vld [vmem:[%s3982_s0 + $0x130] sm:$0xff] }
  0x18   :  { %222 = vadd.xlane.f32.xlu1 %v221_v17  ;;  %v233_v62 = vsel %vm172_vm0, %v128_v59, 0.0  ;;  %v236_v10 = vsel %vm172_vm0, %v129_v5, 0.0  ;;  %v332_v12 = vsel %vm172_vm0, %v161_v8, 0.0  ;;  %v98_v16 = vld [vmem:[%s3982_s0 + $0x1b0] sm:$0xff]  ;;  %v114_v17 = vmul.f32 %v50_v14, %v50_v14  ;;  %v53_v59 = vld [vmem:[%s3982_s0 + $0x48] sm:$0xff] }
  0x19   :  { %v188_v13 = vsel %vm172_vm0, %v113_v9, 0.0  ;;  %v146_v21 = vmul.f32 %v82_v15, %v82_v15  ;;  %v162_v22 = vmul.f32 %v98_v16, %v98_v16  ;;  %v102_v9 = vld [vmem:[%s3982_s0 + $0x1d0] sm:$0xff] }
  0x1a   :  { %v191_v23 = vsel %vm172_vm0, %v114_v17, 0.0  ;;  %v166_v14 = vmul.f32 %v102_v9, %v102_v9  ;;  %v1137_v17 = vld [vmem:[#allocation2 + $0x20] sm:$0xff] }
  0x1b   :  { %v72_v9 = vld [vmem:[%s3982_s0 + $0xe0] sm:$0xff] }
  0x1f   :  { %276 = vadd.xlane.f32.xlu2 %v275_v24  ;;  %177 = vadd.xlane.f32.xlu0 %v176_v25  ;;  %v287_v24 = vsel %vm172_vm0, %v146_v21, 0.0  ;;  %v335_v25 = vsel %vm172_vm0, %v162_v22, 0.0  ;;  %v1136_v21 = vld [vmem:[#allocation2 + $0x18] sm:$0xff]  ;;  %v347_v22 = vsel %vm172_vm0, %v166_v14, 0.0 }
  0x20   :  { %225 = vadd.xlane.f32.xlu1 %v224_v26  ;;  %v99_v26 = vld [vmem:[%s3982_s0 + $0x1b8] sm:$0xff] }
  0x21   :  { %v163_v32 = vmul.f32 %v99_v26, %v99_v26  ;;  %v54_v26 = vld [vmem:[%s3982_s0 + $0x50] sm:$0xff] }
  0x27   :  { %228 = vadd.xlane.f32.xlu2 %v227_v33  ;;  %324 = vadd.xlane.f32.xlu0 %v323_v34  ;;  %v130_v33 = vmul.f32 %v66_v30, %v66_v30  ;;  %v147_v34 = vmul.f32 %v83_v31, %v83_v31  ;;  %v1135_v30 = vld [vmem:[#allocation2 + $0x10] sm:$0xff] }
  0x28   :  { %180 = vadd.xlane.f32.xlu1 %v179_v35  ;;  %v338_v35 = vsel %vm172_vm0, %v163_v32, 0.0  ;;  %v70_v31 = vld [vmem:[%s3982_s0 + $0xd0] sm:$0xff]  ;;  %v1134_v32 = vld [vmem:[#allocation2 + $0x8] sm:$0xff] }
  0x29   :  { %v239_v39 = vsel %vm172_vm0, %v130_v33, 0.0  ;;  %v290_v40 = vsel %vm172_vm0, %v147_v34, 0.0  ;;  %v118_v34 = vmul.f32 %v54_v26, %v54_v26 }
  0x2f   :  { %183 = vadd.xlane.f32.xlu2 %v182_v42  ;;  %279 = vadd.xlane.f32.xlu0 %v278_v43  ;;  %v51_v42 = vld [vmem:[%s3982_s0 + $0x38] sm:$0xff] }
  0x30   :  { %327 = vadd.xlane.f32.xlu1 %v326_v44  ;;  %v67_v43 = vld [vmem:[%s3982_s0 + $0xb8] sm:$0xff]  ;;  %v148_v44 = vmul.f32 %v84_v41, %v84_v41  ;;  %v115_v45 = vmul.f32 %v51_v42, %v51_v42  ;;  %v203_v41 = vsel %vm172_vm0, %v118_v34, 0.0 }
  0x31   :  { %v131_v46 = vmul.f32 %v67_v43, %v67_v43  ;;  %v71_v43 = vld [vmem:[%s3982_s0 + $0xd8] sm:$0xff] }
  0x32   :  { %v293_v47 = vsel %vm172_vm0, %v148_v44, 0.0  ;;  %v194_v48 = vsel %vm172_vm0, %v115_v45, 0.0  ;;  %v103_v44 = vld [vmem:[%s3982_s0 + $0x1d8] sm:$0xff] }
  0x33   :  { %v242_v49 = vsel %vm172_vm0, %v131_v46, 0.0  ;;  %v55_v45 = vld [vmem:[%s3982_s0 + $0x58] sm:$0xff]  ;;  %v135_v46 = vmul.f32 %v71_v43, %v71_v43 }
  0x37   :  { %330 = vadd.xlane.f32.xlu2 %v329_v51  ;;  %231 = vadd.xlane.f32.xlu0 %v230_v52  ;;  %v100_v51 = vld [vmem:[%s3982_s0 + $0x1c0] sm:$0xff] }
  0x38   :  { %282 = vadd.xlane.f32.xlu1 %v281_v53  ;;  %v52_v52 = vld [vmem:[%s3982_s0 + $0x40] sm:$0xff]  ;;  %v132_v53 = vmul.f32 %v68_v50, %v68_v50  ;;  %v164_v54 = vmul.f32 %v100_v51, %v100_v51 }
  0x39   :  { %v116_v55 = vmul.f32 %v52_v52, %v52_v52 }
  0x3a   :  { %v245_v56 = vsel %vm172_vm0, %v132_v53, 0.0  ;;  %v341_v57 = vsel %vm172_vm0, %v164_v54, 0.0  ;;  %v56_v54 = vld [vmem:[%s3982_s0 + $0x60] sm:$0xff] }
  0x3b   :  { %v197_v58 = vsel %vm172_vm0, %v116_v55, 0.0 }
  0x3f   :  { %285 = vadd.xlane.f32.xlu2 %v284_v60  ;;  %186 = vadd.xlane.f32.xlu0 %v185_v61  ;;  %v85_v60 = vld [vmem:[%s3982_s0 + $0x148] sm:$0xff] }
  0x40   :  { %234 = vadd.xlane.f32.xlu1 %v233_v62  ;;  %v101_v61 = vld [vmem:[%s3982_s0 + $0x1c8] sm:$0xff]  ;;  %v117_v62 = vmul.f32 %v53_v59, %v53_v59  ;;  %v149_v63 = vmul.f32 %v85_v60, %v85_v60  ;;  %v104_v59 = vld [vmem:[%s3982_s0 + $0x1e0] sm:$0xff] }
  0x41   :  { %v165_v3 = vmul.f32 %v101_v61, %v101_v61  ;;  %v120_v61 = vmul.f32 %v56_v54, %v56_v54 }
  0x42   :  { %v200_v4 = vsel %vm172_vm0, %v117_v62, 0.0  ;;  %v296_v5 = vsel %vm172_vm0, %v149_v63, 0.0  ;;  %v168_v63 = vmul.f32 %v104_v59, %v104_v59 }
  0x43   :  { %v344_v8 = vsel %vm172_vm0, %v165_v3, 0.0  ;;  %v105_v3 = vld [vmem:[%s3982_s0 + $0x1e8] sm:$0xff] }
  0x47   :  { %237 = vadd.xlane.f32.xlu2 %v236_v10  ;;  %333 = vadd.xlane.f32.xlu0 %v332_v12  ;;  %v69_v10 = vld [vmem:[%s3982_s0 + $0xc8] sm:$0xff]  ;;  %v86_v12 = vld [vmem:[%s3982_s0 + $0x150] sm:$0xff] }
  0x48   :  { %189 = vadd.xlane.f32.xlu1 %v188_v13  ;;  %v1138_v13 = vld [vmem:[#allocation2 + $0x28] sm:$0xff]  ;;  %v133_v15 = vmul.f32 %v69_v10, %v69_v10  ;;  %v150_v16 = vmul.f32 %v86_v12, %v86_v12  ;;  %v90_v12 = vld [vmem:[%s3982_s0 + $0x170] sm:$0xff] }
  0x49   :  { %1345 = vmatpush.msra.mxu0 %v1138_v13  ;;  %1679 = vmatpush.msra.mxu2 %v1138_v13  ;;  %v89_v10 = vld [vmem:[%s3982_s0 + $0x168] sm:$0xff] }
  0x4a   :  { %1678 = vmatpush.msra.mxu1 %v1138_v13  ;;  %1680 = vmatpush.msra.mxu3 %v1138_v13  ;;  %v153_v34 = vmul.f32 %v89_v10, %v89_v10 }
  0x4b   :  { %1346 = vmatpush.msra.mxu0 %v1137_v17  ;;  %1682 = vmatpush.msra.mxu2 %v1137_v17 }
  0x4c   :  { %1681 = vmatpush.msra.mxu1 %v1137_v17  ;;  %1683 = vmatpush.msra.mxu3 %v1137_v17  ;;  %v353_v17 = vsel %vm172_vm0, %v168_v63, 0.0 }
  0x4d   :  { %1347 = vmatpush.msra.mxu0 %v1136_v21  ;;  %1685 = vmatpush.msra.mxu2 %v1136_v21 }
  0x4e   :  { %1684 = vmatpush.msra.mxu1 %v1136_v21  ;;  %1686 = vmatpush.msra.mxu3 %v1136_v21  ;;  %v57_v21 = vld [vmem:[%s3982_s0 + $0x68] sm:$0xff] }
  0x4f   :  { %192 = vadd.xlane.f32.xlu2 %v191_v23  ;;  %288 = vadd.xlane.f32.xlu0 %v287_v24  ;;  %v248_v23 = vsel %vm172_vm0, %v133_v15, 0.0  ;;  %v299_v24 = vsel %vm172_vm0, %v150_v16, 0.0 }
  0x50   :  { %336 = vadd.xlane.f32.xlu1 %v335_v25  ;;  %v87_v25 = vld [vmem:[%s3982_s0 + $0x158] sm:$0xff]  ;;  %1348 = vmatpush.msra.mxu0 %v1135_v30 }
  0x51   :  { %v151_v33 = vmul.f32 %v87_v25, %v87_v25  ;;  %1688 = vmatpush.msra.mxu2 %v1135_v30  ;;  %1687 = vmatpush.msra.mxu1 %v1135_v30 }
  0x52   :  { %1349 = vmatpush.msra.mxu0 %v1134_v32  ;;  %1689 = vmatpush.msra.mxu3 %v1135_v30  ;;  %v169_v30 = vmul.f32 %v105_v3, %v105_v3 }
  0x53   :  { %1691 = vmatpush.msra.mxu2 %v1134_v32  ;;  %1690 = vmatpush.msra.mxu1 %v1134_v32 }
  0x54   :  { %1692 = vmatpush.msra.mxu3 %v1134_v32 }
  0x57   :  { %339 = vadd.xlane.f32.xlu2 %v338_v35  ;;  %240 = vadd.xlane.f32.xlu0 %v239_v39  ;;  %v134_v35 = vmul.f32 %v70_v31, %v70_v31  ;;  %v1133_v39 = vld [vmem:[#allocation2] sm:$0xff] }
  0x58   :  { %291 = vadd.xlane.f32.xlu1 %v290_v40  ;;  %1350 = vmatpush.msra.mxu0 %v1133_v39  ;;  %v302_v40 = vsel %vm172_vm0, %v151_v33, 0.0  ;;  %v136_v33 = vmul.f32 %v72_v9, %v72_v9 }
  0x59   :  { %1694 = vmatpush.msra.mxu2 %v1133_v39  ;;  %v251_v42 = vsel %vm172_vm0, %v134_v35, 0.0  ;;  %1693 = vmatpush.msra.mxu1 %v1133_v39  ;;  %v154_v35 = vmul.f32 %v90_v12, %v90_v12 }
  0x5a   :  { %1695 = vmatpush.msra.mxu3 %v1133_v39 }
  0x5b   :  { %v2279_v54 = vsel %vm172_vm0, %v154_v35, 0.0 }
  0x5f   :  { %294 = vadd.xlane.f32.xlu2 %v293_v47  ;;  %195 = vadd.xlane.f32.xlu0 %v194_v48  ;;  %v167_v47 = vmul.f32 %v103_v44, %v103_v44  ;;  %v119_v48 = vmul.f32 %v55_v45, %v55_v45 }
  0x60   :  { %243 = vadd.xlane.f32.xlu1 %v242_v49 }
  0x61   :  { %v206_v60 = vsel %vm172_vm0, %v119_v48, 0.0  ;;  %v308_v48 = vsel %vm172_vm0, %v153_v34, 0.0 }
  0x67   :  { %246 = vadd.xlane.f32.xlu2 %v245_v56  ;;  %342 = vadd.xlane.f32.xlu0 %v341_v57  ;;  %v254_v56 = vsel %vm172_vm0, %v135_v46, 0.0  ;;  %v350_v57 = vsel %vm172_vm0, %v167_v47, 0.0  ;;  %v356_v46 = vsel %vm172_vm0, %v169_v30, 0.0  ;;  %v257_v47 = vsel %vm172_vm0, %v136_v33, 0.0 }
  0x68   :  { %198 = vadd.xlane.f32.xlu1 %v197_v58  ;;  %v88_v58 = vld [vmem:[%s3982_s0 + $0x160] sm:$0xff] }
  0x69   :  { %v152_v62 = vmul.f32 %v88_v58, %v88_v58 }
  0x6b   :  { %v305_v16 = vsel %vm172_vm0, %v152_v62, 0.0  ;;  %v74_v62 = vld [vmem:[%s3982_s0 + $0xf0] sm:$0xff] }
  0x6f   :  { %201 = vadd.xlane.f32.xlu2 %v200_v4  ;;  %297 = vadd.xlane.f32.xlu0 %v296_v5 }
  0x70   :  { %345 = vadd.xlane.f32.xlu1 %v344_v8  ;;  %v209_v8 = vsel %vm172_vm0, %v120_v61, 0.0 }
  0x77   :  { %348 = vadd.xlane.f32.xlu2 %v347_v22  ;;  %249 = vadd.xlane.f32.xlu0 %v248_v23  ;;  %v73_v22 = vld [vmem:[%s3982_s0 + $0xe8] sm:$0xff] }
  0x78   :  { %300 = vadd.xlane.f32.xlu1 %v299_v24 }
  0x7f   :  { %303 = vadd.xlane.f32.xlu2 %v302_v40  ;;  %204 = vadd.xlane.f32.xlu0 %v203_v41  ;;  %v121_v40 = vmul.f32 %v57_v21, %v57_v21  ;;  %v137_v41 = vmul.f32 %v73_v22, %v73_v22 }
  0x80   :  { %252 = vadd.xlane.f32.xlu1 %v251_v42 }
  0x82   :  { %v274_v49 = vpop.xlane.xlu2 %273  ;;  %v271_v50 = vpop.xlane.xlu0 %270 }
  0x83   :  { %v2209_v51 = vmax.f32 %v274_v49, 1e-24  ;;  %v2211_v52 = vmax.f32 %v271_v50, 1e-24  ;;  %v175_v53 = vpop.xlane.xlu1 %174 }
  0x84   :  { %v2216_v55 = vmax.f32 %v175_v53, 1e-24 }
  0x85   :  { %1701 = vrsqrt.f32 %v2209_v51  ;;  %vm765_vm1 = vweird.f32 %v2209_v51  ;;  %vm755_vm2 = vweird.f32 %v2211_v52 }
  0x86   :  { %1703 = vrsqrt.f32 %v2211_v52  ;;  %vm435_vm4 = vweird.f32 %v2216_v55 }
  0x87   :  { %1705 = vrsqrt.f32 %v2216_v55  ;;  %255 = vadd.xlane.f32.xlu2 %v254_v56  ;;  %351 = vadd.xlane.f32.xlu0 %v350_v57  ;;  %v2282_v56 = vsel %vm172_vm0, %v121_v40, 0.0  ;;  %v2285_v57 = vsel %vm172_vm0, %v137_v41, 0.0 }
  0x88   :  { %207 = vadd.xlane.f32.xlu1 %v206_v60 }
  0x8a   :  { %v322_v4 = vpop.xlane.xlu2 %321  ;;  %v319_v5 = vpop.xlane.xlu0 %318 }
  0x8b   :  { %v2243_v13 = vpop.eup %1701  ;;  %v2245_v14 = vmax.f32 %v319_v5, 1e-24  ;;  %v223_v15 = vpop.xlane.xlu1 %222  ;;  %v2259_v25 = vmax.f32 %v322_v4, 1e-24 }
  0x8c   :  { %v2255_v23 = vpop.eup %1703  ;;  %v760_v24 = vmul.f32 %v2243_v13, %v2209_v51  ;;  %v2261_v26 = vmax.f32 %v223_v15, 1e-24  ;;  %v138_v15 = vmul.f32 %v74_v62, %v74_v62  ;;  %vm766_vm6 = vweird.f32 %v2243_v13 }
  0x8d   :  { %v2263_v31 = vpop.eup %1705  ;;  %v750_v32 = vmul.f32 %v2255_v23, %v2211_v52  ;;  %1707 = vrsqrt.f32 %v2245_v14  ;;  %vm756_vm3 = vweird.f32 %v2255_v23  ;;  %vm915_vm10 = vweird.f32 %v2245_v14  ;;  %vm2379_vm12 = vmor %vm765_vm1, %vm766_vm6 }
  0x8e   :  { %v430_v39 = vmul.f32 %v2263_v31, %v2216_v55  ;;  %v761_v42 = vmul.f32 %v2243_v13, %v760_v24  ;;  %1709 = vrsqrt.f32 %v2261_v26  ;;  %vm436_vm5 = vweird.f32 %v2263_v31  ;;  %vm2326_vm7 = vmor %vm755_vm2, %vm756_vm3 }
  0x8f   :  { %v751_v43 = vmul.f32 %v2255_v23, %v750_v32  ;;  %210 = vadd.xlane.f32.xlu2 %v209_v8  ;;  %306 = vadd.xlane.f32.xlu0 %v305_v16  ;;  %1711 = vrsqrt.f32 %v2259_v25  ;;  %v106_v16 = vld [vmem:[%s3982_s0 + $0x1f0] sm:$0xff]  ;;  %vm595_vm8 = vweird.f32 %v2261_v26  ;;  %vm437_vm9 = vmor %vm435_vm4, %vm436_vm5  ;;  %v2346_v55 = vsel %vm172_vm0, %v138_v15, 0.0 }
  0x90   :  { %v431_v44 = vmul.f32 %v2263_v31, %v430_v39  ;;  %354 = vadd.xlane.f32.xlu1 %v353_v17  ;;  %v762_v58 = vmul.f32 0.5, %v761_v42  ;;  %v58_v17 = vld [vmem:[%s3982_s0 + $0x70] sm:$0xff]  ;;  %v170_v35 = vmul.f32 %v106_v16, %v106_v16  ;;  %vm925_vm14 = vweird.f32 %v2259_v25 }
  0x91   :  { %v752_v45 = vmul.f32 0.5, %v751_v43  ;;  %v122_v39 = vmul.f32 %v58_v17, %v58_v17 }
  0x92   :  { %v432_v49 = vmul.f32 0.5, %v431_v44  ;;  %v277_v50 = vpop.xlane.xlu2 %276  ;;  %v178_v53 = vpop.xlane.xlu0 %177  ;;  %v763_v21 = vsub.f32 1.5, %v762_v58 }
  0x93   :  { %v2287_v59 = vmax.f32 %v277_v50, 1e-24  ;;  %v2289_v60 = vmax.f32 %v178_v53, 1e-24  ;;  %v226_v61 = vpop.xlane.xlu1 %225  ;;  %v2294_v63 = vpop.eup %1707  ;;  %v753_v3 = vsub.f32 1.5, %v752_v45 }
  0x94   :  { %v433_v4 = vsub.f32 1.5, %v432_v49  ;;  %v2298_v5 = vmax.f32 %v226_v61, 1e-24  ;;  %v2300_v8 = vpop.eup %1709  ;;  %v910_v9 = vmul.f32 %v2294_v63, %v2245_v14  ;;  %vm916_vm13 = vweird.f32 %v2294_v63 }
  0x95   :  { %1713 = vrsqrt.f32 %v2287_v59  ;;  %v2307_v10 = vpop.eup %1711  ;;  %v590_v12 = vmul.f32 %v2300_v8, %v2261_v26  ;;  %v754_v33 = vmul.f32 %v2255_v23, %v753_v3  ;;  %vm596_vm11 = vweird.f32 %v2300_v8  ;;  %vm2408_vm1 = vmor %vm915_vm10, %vm916_vm13 }
  0x96   :  { %1715 = vrsqrt.f32 %v2289_v60  ;;  %v911_v22 = vmul.f32 %v2294_v63, %v910_v9  ;;  %v434_v32 = vmul.f32 %v2263_v31, %v433_v4  ;;  %v920_v52 = vmul.f32 %v2307_v10, %v2259_v25  ;;  %vm597_vm15 = vmor %vm595_vm8, %vm596_vm11 }
  0x97   :  { %1717 = vrsqrt.f32 %v2298_v5  ;;  %357 = vadd.xlane.f32.xlu2 %v356_v46  ;;  %258 = vadd.xlane.f32.xlu0 %v257_v47  ;;  %v591_v30 = vmul.f32 %v2300_v8, %v590_v12  ;;  %v758_v42 = vsel %vm2326_vm7, %v2255_v23, %v754_v33  ;;  %v359_v9 = vsel %vm172_vm0, %v170_v35, 0.0 }
  0x98   :  { %309 = vadd.xlane.f32.xlu1 %v308_v48  ;;  %v912_v34 = vmul.f32 0.5, %v911_v22  ;;  %v438_v41 = vsel %vm437_vm9, %v2263_v31, %v434_v32  ;;  %v1101_v47 = vmul.f32 %v758_v42, %v1968_v1  ;;  %v764_v31 = vmul.f32 %v2243_v13, %v763_v21 }
  0x99   :  { %v592_v40 = vmul.f32 0.5, %v591_v30  ;;  %v1069_v46 = vmul.f32 %v438_v41, %v1973_v2  ;;  %v921_v2 = vmul.f32 %v2307_v10, %v920_v52  ;;  %vm926_vm3 = vweird.f32 %v2307_v10 }
  0x9a   :  { %v229_v43 = vpop.xlane.xlu2 %228  ;;  %v325_v44 = vpop.xlane.xlu0 %324  ;;  %v913_v53 = vsub.f32 1.5, %v912_v34  ;;  %1646 = vmatmul.msk.f32.vlgmr.msra.gmra.mxu2 %vm172_vm0, %v1101_v47  ;;  %v768_v21 = vsel %vm2379_vm12, %v2243_v13, %v764_v31  ;;  %vm445_vm5 = vweird.f32 %v2289_v60  ;;  %vm605_vm6 = vweird.f32 %v2298_v5  ;;  %vm2476_vm12 = vmor %vm925_vm14, %vm926_vm3 }
  0x9b   :  { %v2348_v45 = vpop.eup %1713  ;;  %v2352_v48 = vmax.f32 %v229_v43, 1e-24  ;;  %v181_v49 = vpop.xlane.xlu1 %180  ;;  %v593_v23 = vsub.f32 1.5, %v592_v40  ;;  %v2359_v61 = vmax.f32 %v325_v44, 1e-24  ;;  %1614 = vmatmul.msk.f32.vlgmr.msra.gmra.mxu0 %vm172_vm0, %v1069_v46  ;;  %v922_v22 = vmul.f32 0.5, %v921_v2 }
  0x9c   :  { %v2355_v50 = vpop.eup %1715  ;;  %v770_v58 = vmul.f32 %v2348_v45, %v2287_v59  ;;  %v2385_v16 = vmax.f32 %v181_v49, 1e-24  ;;  %v1102_v33 = vmul.f32 %v768_v21, %v1963_v0  ;;  %vm775_vm8 = vweird.f32 %v2287_v59 }
  0x9d   :  { %v2361_v62 = vpop.eup %1717  ;;  %v440_v1 = vmul.f32 %v2355_v50, %v2289_v60  ;;  %1719 = vrsqrt.f32 %v2352_v48  ;;  %v594_v17 = vmul.f32 %v2300_v8, %v593_v23  ;;  %vm446_vm2 = vweird.f32 %v2355_v50 }
  0x9e   :  { %v771_v3 = vmul.f32 %v2348_v45, %v770_v58  ;;  %v600_v4 = vmul.f32 %v2361_v62, %v2298_v5  ;;  %1721 = vrsqrt.f32 %v2359_v61  ;;  %vm606_vm4 = vweird.f32 %v2361_v62  ;;  %vm2446_vm7 = vmor %vm445_vm5, %vm446_vm2 }
  0x9f   :  { %v441_v15 = vmul.f32 %v2355_v50, %v440_v1  ;;  %312 = vadd.xlane.f32.xlu2 %v2279_v54  ;;  %213 = vadd.xlane.f32.xlu0 %v2282_v56  ;;  %v914_v54 = vmul.f32 %v2294_v63, %v913_v53  ;;  %v215_v56 = vsel %vm172_vm0, %v122_v39, 0.0  ;;  %1723 = vrsqrt.f32 %v2385_v16  ;;  %vm607_vm9 = vmor %vm605_vm6, %vm606_vm4 }
  0xa0   :  { %v601_v51 = vmul.f32 %v2361_v62, %v600_v4  ;;  %261 = vadd.xlane.f32.xlu1 %v2285_v57  ;;  %v598_v30 = vsel %vm597_vm15, %v2300_v8, %v594_v17  ;;  %v772_v57 = vmul.f32 0.5, %v771_v3  ;;  %v923_v46 = vsub.f32 1.5, %v922_v22 }
  0xa1   :  { %v442_v24 = vmul.f32 0.5, %v441_v15  ;;  %v1085_v32 = vmul.f32 %v598_v30, %v1997_v11  ;;  %v918_v8 = vsel %vm2408_vm1, %v2294_v63, %v914_v54  ;;  %vm776_vm10 = vweird.f32 %v2348_v45 }
  0xa2   :  { %v602_v13 = vmul.f32 0.5, %v601_v51  ;;  %v184_v52 = vpop.xlane.xlu2 %183  ;;  %v280_v34 = vpop.xlane.xlu0 %279  ;;  %v1117_v43 = vmul.f32 %v918_v8, %v1989_v7  ;;  %1647 = vmatmul.msk.f32.gmra.mxu2 %vm172_vm0, %v1102_v33  ;;  %v773_v47 = vsub.f32 1.5, %v772_v57  ;;  %vm615_vm11 = vweird.f32 %v2352_v48  ;;  %vm777_vm15 = vmor %vm775_vm8, %vm776_vm10  ;;  %v59_v33 = vld [vmem:[%s3982_s0 + $0x78] sm:$0xff] }
  0xa3   :  { %v2414_v35 = vpop.eup %1719  ;;  %v443_v39 = vsub.f32 1.5, %v442_v24  ;;  %v2419_v14 = vmax.f32 %v184_v52, 1e-24  ;;  %v2421_v40 = vmax.f32 %v280_v34, 1e-24  ;;  %v328_v41 = vpop.xlane.xlu1 %327  ;;  %1630 = vmatmul.msk.f32.vlgmr.msra.gmra.mxu1 %vm172_vm0, %v1085_v32  ;;  %vm455_vm13 = vweird.f32 %v2385_v16  ;;  %v91_v52 = vld [vmem:[%s3982_s0 + $0x178] sm:$0xff] }
  0xa4   :  { %v2423_v42 = vpop.eup %1721  ;;  %v603_v11 = vsub.f32 1.5, %v602_v13  ;;  %v610_v0 = vmul.f32 %v2414_v35, %v2352_v48  ;;  %1662 = vmatmul.msk.f32.vlgmr.msra.gmra.mxu3 %vm172_vm0, %v1117_v43  ;;  %v2440_v7 = vmax.f32 %v328_v41, 1e-24  ;;  %vm935_vm14 = vweird.f32 %v2359_v61 }
  0xa5   :  { %v930_v63 = vmul.f32 %v2423_v42, %v2359_v61  ;;  %1725 = vrsqrt.f32 %v2419_v14  ;;  %v2442_v44 = vpop.eup %1723  ;;  %v444_v60 = vmul.f32 %v2355_v50, %v443_v39  ;;  %vm616_vm1 = vweird.f32 %v2414_v35 }
  0xa6   :  { %1727 = vrsqrt.f32 %v2421_v40  ;;  %v604_v5 = vmul.f32 %v2361_v62, %v603_v11  ;;  %v611_v31 = vmul.f32 %v2414_v35, %v610_v0  ;;  %v450_v53 = vmul.f32 %v2442_v44, %v2385_v16 }
  0xa7   :  { %264 = vadd.xlane.f32.xlu2 %v2346_v55  ;;  %360 = vadd.xlane.f32.xlu0 %v359_v9  ;;  %1729 = vrsqrt.f32 %v2440_v7  ;;  %v931_v55 = vmul.f32 %v2423_v42, %v930_v63  ;;  %v448_v23 = vsel %vm2446_vm7, %v2355_v50, %v444_v60  ;;  %vm936_vm2 = vweird.f32 %v2423_v42  ;;  %vm2547_vm7 = vmor %vm615_vm11, %vm616_vm1 }
  0xa8   :  { %216 = vadd.xlane.f32.xlu1 %v215_v56  ;;  %v608_v58 = vsel %vm607_vm9, %v2361_v62, %v604_v5  ;;  %v451_v2 = vmul.f32 %v2442_v44, %v450_v53  ;;  %v1070_v1 = vmul.f32 %v448_v23, %v2016_v19  ;;  %v774_v62 = vmul.f32 %v2348_v45, %v773_v47  ;;  %vm937_vm8 = vmor %vm935_vm14, %vm936_vm2 }
  0xa9   :  { %v1086_v3 = vmul.f32 %v608_v58, %v2021_v20  ;;  %v924_v19 = vmul.f32 %v2307_v10, %v923_v46  ;;  %v612_v25 = vmul.f32 0.5, %v611_v31  ;;  %v932_v56 = vmul.f32 0.5, %v931_v55 }
  0xaa   :  { %v331_v4 = vpop.xlane.xlu2 %330  ;;  %v232_v9 = vpop.xlane.xlu0 %231  ;;  %v452_v51 = vmul.f32 0.5, %v451_v2  ;;  %1615 = vmatmul.msk.f32.gmra.mxu0 %vm172_vm0, %v1070_v1  ;;  %v778_v59 = vsel %vm777_vm15, %v2348_v45, %v774_v62  ;;  %vm456_vm3 = vweird.f32 %v2442_v44  ;;  %v123_v41 = vmul.f32 %v59_v33, %v59_v33 }
  0xab   :  { %v2470_v12 = vpop.eup %1725  ;;  %v2483_v15 = vmax.f32 %v331_v4, 1e-24  ;;  %v283_v20 = vpop.xlane.xlu1 %282  ;;  %1631 = vmatmul.msk.f32.gmra.mxu1 %vm172_vm0, %v1086_v3  ;;  %v2495_v54 = vmax.f32 %v232_v9, 1e-24  ;;  %v928_v24 = vsel %vm2476_vm12, %v2307_v10, %v924_v19  ;;  %v1103_v13 = vmul.f32 %v778_v59, %v2011_v18  ;;  %vm457_vm4 = vmor %vm455_vm13, %vm456_vm3 }
  0xac   :  { %v2485_v17 = vpop.eup %1727  ;;  %v460_v21 = vmul.f32 %v2470_v12, %v2419_v14  ;;  %v453_v26 = vsub.f32 1.5, %v452_v51  ;;  %v1118_v32 = vmul.f32 %v928_v24, %v1984_v6  ;;  %v107_v6 = vld [vmem:[%s3982_s0 + $0x1f8] sm:$0xff]  ;;  %v613_v18 = vsub.f32 1.5, %v612_v25 }
  0xad   :  { %v780_v22 = vmul.f32 %v2485_v17, %v2421_v40  ;;  %v2504_v30 = vpop.eup %1729  ;;  %1731 = vrsqrt.f32 %v2483_v15  ;;  %1648 = vmatmul.msk.f32.gmra.mxu2 %vm172_vm0, %v1103_v13  ;;  %v933_v34 = vsub.f32 1.5, %v932_v56  ;;  %v2528_v8 = vmax.f32 %v283_v20, 1e-24  ;;  %v75_v51 = vld [vmem:[%s3982_s0 + $0xf8] sm:$0xff] }
  0xae   :  { %v461_v57 = vmul.f32 %v2470_v12, %v460_v21  ;;  %v940_v10 = vmul.f32 %v2504_v30, %v2440_v7  ;;  %1663 = vmatmul.msk.f32.gmra.mxu3 %vm172_vm0, %v1118_v32  ;;  %1733 = vrsqrt.f32 %v2495_v54  ;;  %v155_v0 = vmul.f32 %v91_v52, %v91_v52 }
  0xaf   :  { %v781_v45 = vmul.f32 %v2485_v17, %v780_v22  ;;  %v171_v43 = vmul.f32 %v107_v6, %v107_v6  ;;  %v454_v63 = vmul.f32 %v2442_v44, %v453_v26  ;;  %vm465_vm5 = vweird.f32 %v2419_v14 }
  0xb0   :  { %v462_v39 = vmul.f32 0.5, %v461_v57  ;;  %v941_v11 = vmul.f32 %v2504_v30, %v940_v10  ;;  %vm785_vm6 = vweird.f32 %v2421_v40  ;;  %1735 = vrsqrt.f32 %v2528_v8 }
  0xb1   :  { %v782_v49 = vmul.f32 0.5, %v781_v45  ;;  %v218_v5 = vsel %vm172_vm0, %v123_v41, 0.0  ;;  %v314_v31 = vsel %vm172_vm0, %v155_v0, 0.0  ;;  %v362_v53 = vsel %vm172_vm0, %v171_v43, 0.0 }
  0xb2   :  { %v286_v46 = vpop.xlane.xlu2 %285  ;;  %v187_v47 = vpop.xlane.xlu0 %186  ;;  %v458_v55 = vsel %vm457_vm4, %v2442_v44, %v454_v63  ;;  %v463_v58 = vsub.f32 1.5, %v462_v39  ;;  %219 = vadd.xlane.f32.xlu2 %v218_v5  ;;  %315 = vadd.xlane.f32.xlu0 %v314_v31  ;;  %v614_v1 = vmul.f32 %v2414_v35, %v613_v18  ;;  %v934_v3 = vmul.f32 %v2423_v42, %v933_v34 }
  0xb3   :  { %v235_v60 = vpop.xlane.xlu1 %234  ;;  %v2541_v23 = vpop.eup %1731  ;;  %v1071_v2 = vmul.f32 %v458_v55, %v2045_v29  ;;  %v942_v48 = vmul.f32 0.5, %v941_v11  ;;  %vm945_vm9 = vweird.f32 %v2440_v7  ;;  %363 = vadd.xlane.f32.xlu1 %v362_v53  ;;  %v2563_v9 = vmax.f32 %v286_v46, 1e-24 }
  0xb4   :  { %v2554_v44 = vpop.eup %1733  ;;  %v950_v4 = vmul.f32 %v2541_v23, %v2483_v15  ;;  %v2565_v29 = vmax.f32 %v187_v47, 1e-24  ;;  %v783_v50 = vsub.f32 1.5, %v782_v49  ;;  %v618_v61 = vsel %vm2547_vm7, %v2414_v35, %v614_v1 }
  0xb5   :  { %v620_v62 = vmul.f32 %v2554_v44, %v2495_v54  ;;  %1616 = vmatmul.msk.f32.gmra.mxu0 %vm172_vm0, %v1071_v2  ;;  %v938_v19 = vsel %vm937_vm8, %v2423_v42, %v934_v3  ;;  %vm466_vm10 = vweird.f32 %v2470_v12  ;;  %v1087_v20 = vmul.f32 %v618_v61, %v2035_v27 }
  0xb6   :  { %v1119_v25 = vmul.f32 %v938_v19, %v2040_v28  ;;  %1737 = vrsqrt.f32 %v2563_v9  ;;  %v2581_v21 = vpop.eup %1735  ;;  %vm786_vm11 = vweird.f32 %v2485_v17  ;;  %v951_v35 = vmul.f32 %v2541_v23, %v950_v4  ;;  %vm2598_vm13 = vmor %vm465_vm5, %vm466_vm10  ;;  %v1829_v4 = vld [vmem:[%s3982_s0 + $0x98] sm:$0xff] }
  0xb7   :  { %v621_v42 = vmul.f32 %v2554_v44, %v620_v62  ;;  %1739 = vrsqrt.f32 %v2565_v29  ;;  %v943_v56 = vsub.f32 1.5, %v942_v48  ;;  %vm946_vm12 = vweird.f32 %v2504_v30  ;;  %1632 = vmatmul.msk.f32.gmra.mxu1 %vm172_vm0, %v1087_v20  ;;  %vm787_vm15 = vmor %vm785_vm6, %vm786_vm11 }
  0xb8   :  { %v790_v27 = vmul.f32 %v2581_v21, %v2528_v8  ;;  %1664 = vmatmul.msk.f32.gmra.mxu3 %vm172_vm0, %v1119_v25  ;;  %v2592_v28 = vmax.f32 %v235_v60, 1e-24  ;;  %v139_v57 = vmul.f32 %v75_v51, %v75_v51  ;;  %v464_v13 = vmul.f32 %v2470_v12, %v463_v58  ;;  %vm947_vm2 = vmor %vm945_vm9, %vm946_vm12 }
  0xb9   :  { %v622_v26 = vmul.f32 0.5, %v621_v42  ;;  %v784_v32 = vmul.f32 %v2485_v17, %v783_v50  ;;  %vm955_vm14 = vweird.f32 %v2483_v15  ;;  %vm625_vm1 = vweird.f32 %v2495_v54  ;;  %v1830_v15 = vld [vmem:[%s3982_s0 + $0x120] sm:$0xff] }
  0xba   :  { %v238_v22 = vpop.xlane.xlu2 %237  ;;  %v334_v59 = vpop.xlane.xlu0 %333  ;;  %v791_v14 = vmul.f32 %v2581_v21, %v790_v27  ;;  %1741 = vrsqrt.f32 %v2592_v28  ;;  %v952_v45 = vmul.f32 0.5, %v951_v35  ;;  %v266_v10 = vsel %vm172_vm0, %v139_v57, 0.0  ;;  %v1831_v42 = vld [vmem:[%s3982_s0 + $0x1a0] sm:$0xff] }
  0xbb   :  { %v190_v33 = vpop.xlane.xlu1 %189  ;;  %v468_v52 = vsel %vm2598_vm13, %v2470_v12, %v464_v13  ;;  %v788_v6 = vsel %vm787_vm15, %v2485_v17, %v784_v32  ;;  %267 = vadd.xlane.f32.xlu0 %v266_v10  ;;  %v944_v41 = vmul.f32 %v2504_v30, %v943_v56  ;;  %v623_v12 = vsub.f32 1.5, %v622_v26 }
  0xbc   :  { %v2617_v18 = vpop.eup %1737  ;;  %v792_v40 = vmul.f32 0.5, %v791_v14  ;;  %v1072_v34 = vmul.f32 %v468_v52, %v2059_v36  ;;  %v1104_v39 = vmul.f32 %v788_v6, %v2064_v37  ;;  %v2630_v0 = vmax.f32 %v238_v22, 1e-24 }
  0xbd   :  { %v2622_v11 = vpop.eup %1739  ;;  %v800_v17 = vmul.f32 %v2617_v18, %v2563_v9  ;;  %v2632_v43 = vmax.f32 %v334_v59, 1e-24  ;;  %vm626_vm3 = vweird.f32 %v2554_v44  ;;  %v948_v7 = vsel %vm947_vm2, %v2504_v30, %v944_v41 }
  0xbe   :  { %v793_v36 = vsub.f32 1.5, %v792_v40  ;;  %v470_v37 = vmul.f32 %v2622_v11, %v2565_v29  ;;  %1617 = vmatmul.msk.f32.gmra.mxu0 %vm172_vm0, %v1072_v34  ;;  %1649 = vmatmul.msk.f32.gmra.mxu2 %vm172_vm0, %v1104_v39  ;;  %v953_v63 = vsub.f32 1.5, %v952_v45  ;;  %v1120_v47 = vmul.f32 %v948_v7, %v2069_v38  ;;  %vm627_vm7 = vmor %vm625_vm1, %vm626_vm3 }
  0xbf   :  { %v801_v46 = vmul.f32 %v2617_v18, %v800_v17  ;;  %1743 = vrsqrt.f32 %v2630_v0  ;;  %vm796_vm4 = vweird.f32 %v2581_v21  ;;  %v2648_v5 = vmax.f32 %v190_v33, 1e-24 }
  0xc0   :  { %v2643_v49 = vpop.eup %1741  ;;  %v471_v60 = vmul.f32 %v2622_v11, %v470_v37  ;;  %1745 = vrsqrt.f32 %v2632_v43  ;;  %vm956_vm5 = vweird.f32 %v2541_v23  ;;  %vm795_vm6 = vweird.f32 %v2528_v8  ;;  %1665 = vmatmul.msk.f32.gmra.mxu3 %vm172_vm0, %v1120_v47 }
  0xc1   :  { %v630_v38 = vmul.f32 %v2643_v49, %v2592_v28  ;;  %v624_v30 = vmul.f32 %v2554_v44, %v623_v12  ;;  %vm805_vm8 = vweird.f32 %v2563_v9  ;;  %vm475_vm9 = vweird.f32 %v2565_v29  ;;  %vm797_vm10 = vmor %vm795_vm6, %vm796_vm4  ;;  %v1833_v9 = vld [vmem:[%s3982_s0 + $0xa0] sm:$0xff] }
  0xc2   :  { %v193_v31 = vpop.xlane.xlu2 %192  ;;  %v289_v53 = vpop.xlane.xlu0 %288  ;;  %v472_v16 = vmul.f32 0.5, %v471_v60  ;;  %1747 = vrsqrt.f32 %v2648_v5  ;;  %v794_v8 = vmul.f32 %v2581_v21, %v793_v36  ;;  %v802_v58 = vmul.f32 0.5, %v801_v46  ;;  %vm2673_vm11 = vmor %vm955_vm14, %vm956_vm5 }
  0xc3   :  { %v337_v55 = vpop.xlane.xlu1 %336  ;;  %v631_v2 = vmul.f32 %v2643_v49, %v630_v38  ;;  %v628_v1 = vsel %vm627_vm7, %v2554_v44, %v624_v30  ;;  %v954_v54 = vmul.f32 %v2541_v23, %v953_v63  ;;  %v2681_v61 = vmax.f32 %v193_v31, 1e-24 }
  0xc4   :  { %v473_v48 = vsub.f32 1.5, %v472_v16  ;;  %v1088_v50 = vmul.f32 %v1829_v4, %v628_v1  ;;  %v798_v62 = vsel %vm797_vm10, %v2581_v21, %v794_v8  ;;  %v2691_v51 = vmax.f32 %v289_v53, 1e-24 }
  0xc5   :  { %v2683_v44 = vpop.eup %1743  ;;  %v632_v19 = vmul.f32 0.5, %v631_v2  ;;  %v1105_v20 = vmul.f32 %v1830_v15, %v798_v62  ;;  %v958_v25 = vsel %vm2673_vm11, %v2541_v23, %v954_v54  ;;  %vm635_vm12 = vweird.f32 %v2592_v28  ;;  %v1832_v28 = vld [vmem:[%s3982_s0 + $0x20] sm:$0xff] }
  0xc6   :  { %v2693_v35 = vpop.eup %1745  ;;  %v640_v21 = vmul.f32 %v2683_v44, %v2630_v0  ;;  %1633 = vmatmul.msk.f32.gmra.mxu1 %vm172_vm0, %v1088_v50  ;;  %v1121_v56 = vmul.f32 %v1831_v42, %v958_v25  ;;  %1749 = vrsqrt.f32 %v2681_v61  ;;  %v803_v27 = vsub.f32 1.5, %v802_v58 }
  0xc7   :  { %vm476_vm13 = vweird.f32 %v2622_v11  ;;  %v633_v23 = vsub.f32 1.5, %v632_v19  ;;  %v960_v22 = vmul.f32 %v2693_v35, %v2632_v43  ;;  %1650 = vmatmul.msk.f32.gmra.mxu2 %vm172_vm0, %v1105_v20  ;;  %vm636_vm15 = vweird.f32 %v2643_v49 }
  0xc8   :  { %v2707_v59 = vpop.eup %1747  ;;  %v641_v24 = vmul.f32 %v2683_v44, %v640_v21  ;;  %1751 = vrsqrt.f32 %v2691_v51  ;;  %v2712_v26 = vmax.f32 %v337_v55, 1e-24  ;;  %vm806_vm14 = vweird.f32 %v2617_v18  ;;  %1666 = vmatmul.msk.f32.gmra.mxu3 %vm172_vm0, %v1121_v56  ;;  %vm477_vm1 = vmor %vm475_vm9, %vm476_vm13  ;;  %v1834_v55 = vld [vmem:[%s3982_s0 + $0x128] sm:$0xff] }
  0xc9   :  { %v961_v32 = vmul.f32 %v2693_v35, %v960_v22  ;;  %v480_v33 = vmul.f32 %v2707_v59, %v2648_v5  ;;  %v474_v14 = vmul.f32 %v2622_v11, %v473_v48  ;;  %vm645_vm2 = vweird.f32 %v2630_v0  ;;  %vm2731_vm3 = vmor %vm635_vm12, %vm636_vm15 }
  0xca   :  { %v340_v57 = vpop.xlane.xlu2 %339  ;;  %v241_v13 = vpop.xlane.xlu0 %240  ;;  %v642_v10 = vmul.f32 0.5, %v641_v24  ;;  %1753 = vrsqrt.f32 %v2712_v26  ;;  %v634_v52 = vmul.f32 %v2643_v49, %v633_v23  ;;  %v804_v39 = vmul.f32 %v2617_v18, %v803_v27  ;;  %vm2753_vm5 = vmor %vm805_vm8, %vm806_vm14  ;;  %v1836_v24 = vld [vmem:[%s3982_s0 + $0xa8] sm:$0xff] }
  0xcb   :  { %v292_v45 = vpop.xlane.xlu1 %291  ;;  %v962_v40 = vmul.f32 0.5, %v961_v32  ;;  %v481_v34 = vmul.f32 %v2707_v59, %v480_v33  ;;  %v478_v29 = vsel %vm477_vm1, %v2622_v11, %v474_v14  ;;  %vm965_vm4 = vweird.f32 %v2632_v43  ;;  %v1837_v33 = vld [vmem:[%s3982_s0 + $0x1a8] sm:$0xff] }
  0xcc   :  { %v2738_v41 = vpop.eup %1749  ;;  %v643_v12 = vsub.f32 1.5, %v642_v10  ;;  %v1073_v17 = vmul.f32 %v1832_v28, %v478_v29  ;;  %v638_v36 = vsel %vm2731_vm3, %v2643_v49, %v634_v52  ;;  %v2747_v37 = vmax.f32 %v340_v57, 1e-24 }
  0xcd   :  { %vm646_vm6 = vweird.f32 %v2683_v44  ;;  %v482_v7 = vmul.f32 0.5, %v481_v34  ;;  %vm485_vm7 = vweird.f32 %v2648_v5  ;;  %v490_v63 = vmul.f32 %v2738_v41, %v2681_v61 }
  0xce   :  { %v2761_v46 = vpop.eup %1751  ;;  %vm486_vm9 = vweird.f32 %v2707_v59  ;;  %1618 = vmatmul.msk.f32.gmra.mxu0 %vm172_vm0, %v1073_v17  ;;  %v1089_v47 = vmul.f32 %v1833_v9, %v638_v36  ;;  %v808_v49 = vsel %vm2753_vm5, %v2617_v18, %v804_v39  ;;  %1755 = vrsqrt.f32 %v2747_v37  ;;  %vm2794_vm10 = vmor %vm645_vm2, %vm646_vm6  ;;  %v1843_v39 = vld [vmem:[%s3982_s0 + $0x138] sm:$0xff] }
  0xcf   :  { %v963_v60 = vsub.f32 1.5, %v962_v40  ;;  %v483_v31 = vsub.f32 1.5, %v482_v7  ;;  %v491_v53 = vmul.f32 %v2738_v41, %v490_v63  ;;  %v810_v38 = vmul.f32 %v2761_v46, %v2691_v51  ;;  %vm2807_vm13 = vmor %vm485_vm7, %vm486_vm9 }
  0xd0   :  { %v2775_v30 = vpop.eup %1753  ;;  %1634 = vmatmul.msk.f32.gmra.mxu1 %vm172_vm0, %v1089_v47  ;;  %v1106_v16 = vmul.f32 %v1834_v55, %v808_v49  ;;  %v2781_v8 = vmax.f32 %v241_v13, 1e-24  ;;  %v2783_v18 = vmax.f32 %v292_v45, 1e-24  ;;  %v644_v58 = vmul.f32 %v2683_v44, %v643_v12 }
  0xd1   :  { %vm966_vm8 = vweird.f32 %v2693_v35  ;;  %v492_v54 = vmul.f32 0.5, %v491_v53  ;;  %v811_v3 = vmul.f32 %v2761_v46, %v810_v38  ;;  %v970_v48 = vmul.f32 %v2775_v30, %v2712_v26  ;;  %v1838_v38 = vld [vmem:[%s3982_s0 + $0x30] sm:$0xff] }
  0xd2   :  { %v295_v2 = vpop.xlane.xlu2 %294  ;;  %v196_v1 = vpop.xlane.xlu0 %195  ;;  %vm495_vm11 = vweird.f32 %v2681_v61  ;;  %vm496_vm12 = vweird.f32 %v2738_v41  ;;  %1651 = vmatmul.msk.f32.gmra.mxu2 %vm172_vm0, %v1106_v16  ;;  %1757 = vrsqrt.f32 %v2781_v8  ;;  %v484_v62 = vmul.f32 %v2707_v59, %v483_v31  ;;  %vm967_vm15 = vmor %vm965_vm4, %vm966_vm8 }
  0xd3   :  { %v244_v4 = vpop.xlane.xlu1 %243  ;;  %v493_v19 = vsub.f32 1.5, %v492_v54  ;;  %v812_v15 = vmul.f32 0.5, %v811_v3  ;;  %v971_v20 = vmul.f32 %v2775_v30, %v970_v48  ;;  %1759 = vrsqrt.f32 %v2783_v18  ;;  %vm2860_vm2 = vmor %vm495_vm11, %vm496_vm12 }
  0xd4   :  { %v2813_v25 = vpop.eup %1755  ;;  %v488_v21 = vsel %vm2807_vm13, %v2707_v59, %v484_v62  ;;  %v648_v5 = vsel %vm2794_vm10, %v2683_v44, %v644_v58  ;;  %v964_v42 = vmul.f32 %v2693_v35, %v963_v60  ;;  %v2822_v56 = vmax.f32 %v295_v2, 1e-24  ;;  %v1835_v44 = vld [vmem:[%s3982_s0 + $0x28] sm:$0xff] }
  0xd5   :  { %v813_v27 = vsub.f32 1.5, %v812_v15  ;;  %vm816_vm14 = vweird.f32 %v2761_v46  ;;  %v972_v23 = vmul.f32 0.5, %v971_v20  ;;  %v980_v22 = vmul.f32 %v2813_v25, %v2747_v37 }
  0xd6   :  { %v1074_v59 = vmul.f32 %v1835_v44, %v488_v21  ;;  %v1090_v57 = vmul.f32 %v1836_v24, %v648_v5  ;;  %v968_v43 = vsel %vm967_vm15, %v2693_v35, %v964_v42  ;;  %1761 = vrsqrt.f32 %v2822_v56 }
  0xd7   :  { %v973_v13 = vsub.f32 1.5, %v972_v23  ;;  %vm976_vm1 = vweird.f32 %v2775_v30  ;;  %v981_v32 = vmul.f32 %v2813_v25, %v980_v22  ;;  %v1122_v14 = vmul.f32 %v1837_v33, %v968_v43 }
  0xd8   :  { %v2844_v45 = vpop.eup %1757  ;;  %1619 = vmatmul.msk.f32.gmra.mxu0 %vm172_vm0, %v1074_v59  ;;  %1635 = vmatmul.msk.f32.gmra.mxu1 %vm172_vm0, %v1090_v57  ;;  %v2848_v10 = vmax.f32 %v196_v1, 1e-24  ;;  %v2850_v35 = vmax.f32 %v244_v4, 1e-24  ;;  %v494_v52 = vmul.f32 %v2738_v41, %v493_v19  ;;  %v814_v6 = vmul.f32 %v2761_v46, %v813_v27 }
  0xd9   :  { %v2854_v29 = vpop.eup %1759  ;;  %vm815_vm3 = vweird.f32 %v2691_v51  ;;  %v982_v12 = vmul.f32 0.5, %v981_v32  ;;  %v650_v28 = vmul.f32 %v2844_v45, %v2781_v8  ;;  %1667 = vmatmul.msk.f32.gmra.mxu3 %vm172_vm0, %v1122_v14  ;;  %v974_v17 = vmul.f32 %v2775_v30, %v973_v13 }
  0xda   :  { %v247_v40 = vpop.xlane.xlu2 %246  ;;  %v343_v34 = vpop.xlane.xlu0 %342  ;;  %vm2871_vm4 = vmor %vm815_vm3, %vm816_vm14  ;;  %vm975_vm5 = vweird.f32 %v2712_v26  ;;  %v820_v61 = vmul.f32 %v2854_v29, %v2783_v18  ;;  %1763 = vrsqrt.f32 %v2848_v10  ;;  %vm985_vm7 = vweird.f32 %v2747_v37 }
  0xdb   :  { %v199_v36 = vpop.xlane.xlu1 %198  ;;  %vm2881_vm6 = vmor %vm975_vm5, %vm976_vm1  ;;  %v983_v7 = vsub.f32 1.5, %v982_v12  ;;  %v651_v63 = vmul.f32 %v2844_v45, %v650_v28  ;;  %1765 = vrsqrt.f32 %v2850_v35  ;;  %v498_v47 = vsel %vm2860_vm2, %v2738_v41, %v494_v52 }
  0xdc   :  { %v2888_v9 = vpop.eup %1761  ;;  %v821_v26 = vmul.f32 %v2854_v29, %v820_v61  ;;  %v818_v49 = vsel %vm2871_vm4, %v2761_v46, %v814_v6  ;;  %v978_v60 = vsel %vm2881_vm6, %v2775_v30, %v974_v17  ;;  %vm655_vm9 = vweird.f32 %v2781_v8  ;;  %v1839_v46 = vld [vmem:[%s3982_s0 + $0x130] sm:$0xff]  ;;  %v1841_v8 = vld [vmem:[%s3982_s0 + $0x1b8] sm:$0xff] }
  0xdd   :  { %v652_v31 = vmul.f32 0.5, %v651_v63  ;;  %v830_v53 = vmul.f32 %v2888_v9, %v2822_v56  ;;  %v1075_v55 = vmul.f32 %v1838_v38, %v498_v47  ;;  %v1107_v16 = vmul.f32 %v1839_v46, %v818_v49  ;;  %v1840_v30 = vld [vmem:[%s3982_s0 + $0x1b0] sm:$0xff] }
  0xde   :  { %v822_v41 = vmul.f32 0.5, %v821_v26  ;;  %v1123_v58 = vmul.f32 %v1840_v30, %v978_v60  ;;  %v2912_v2 = vmax.f32 %v247_v40, 1e-24  ;;  %v2915_v3 = vmax.f32 %v343_v34, 1e-24 }
  0xdf   :  { %v653_v1 = vsub.f32 1.5, %v652_v31  ;;  %v831_v54 = vmul.f32 %v2888_v9, %v830_v53  ;;  %v2917_v48 = vmax.f32 %v199_v36, 1e-24  ;;  %vm986_vm8 = vweird.f32 %v2813_v25  ;;  %1652 = vmatmul.msk.f32.gmra.mxu2 %vm172_vm0, %v1107_v16 }
  0xe0   :  { %v2919_v4 = vpop.eup %1763  ;;  %v823_v50 = vsub.f32 1.5, %v822_v41  ;;  %1620 = vmatmul.msk.f32.gmra.mxu0 %vm172_vm0, %v1075_v55  ;;  %1767 = vrsqrt.f32 %v2912_v2  ;;  %v984_v62 = vmul.f32 %v2813_v25, %v983_v7  ;;  %vm656_vm10 = vweird.f32 %v2844_v45  ;;  %vm987_vm15 = vmor %vm985_vm7, %vm986_vm8 }
  0xe1   :  { %v2926_v15 = vpop.eup %1765  ;;  %vm825_vm11 = vweird.f32 %v2783_v18  ;;  %v500_v20 = vmul.f32 %v2919_v4, %v2848_v10  ;;  %1668 = vmatmul.msk.f32.gmra.mxu3 %vm172_vm0, %v1123_v58  ;;  %1769 = vrsqrt.f32 %v2915_v3  ;;  %vm826_vm12 = vweird.f32 %v2854_v29  ;;  %vm657_vm1 = vmor %vm655_vm9, %vm656_vm10  ;;  %v1842_v18 = vld [vmem:[%s3982_s0 + $0xb0] sm:$0xff]  ;;  %v1844_v58 = vld [vmem:[%s3982_s0 + $0x38] sm:$0xff] }
  0xe2   :  { %v202_v0 = vpop.xlane.xlu2 %201  ;;  %v298_v19 = vpop.xlane.xlu0 %297  ;;  %vm835_vm13 = vweird.f32 %v2822_v56  ;;  %v660_v5 = vmul.f32 %v2926_v15, %v2850_v35  ;;  %1771 = vrsqrt.f32 %v2917_v48  ;;  %v832_v42 = vmul.f32 0.5, %v831_v54  ;;  %vm2957_vm2 = vmor %vm825_vm11, %vm826_vm12 }
  0xe3   :  { %v346_v21 = vpop.xlane.xlu1 %345  ;;  %v501_v27 = vmul.f32 %v2919_v4, %v500_v20  ;;  %vm505_vm14 = vweird.f32 %v2848_v10  ;;  %v654_v23 = vmul.f32 %v2844_v45, %v653_v1  ;;  %v824_v44 = vmul.f32 %v2854_v29, %v823_v50  ;;  %v1846_v20 = vld [vmem:[%s3982_s0 + $0x140] sm:$0xff] }
  0xe4   :  { %v661_v22 = vmul.f32 %v2926_v15, %v660_v5  ;;  %v988_v59 = vsel %vm987_vm15, %v2813_v25, %v984_v62  ;;  %v2953_v37 = vmax.f32 %v202_v0, 1e-24  ;;  %v2965_v32 = vmax.f32 %v298_v19, 1e-24  ;;  %v1845_v0 = vld [vmem:[%s3982_s0 + $0xb8] sm:$0xff] }
  0xe5   :  { %v502_v57 = vmul.f32 0.5, %v501_v27  ;;  %v658_v43 = vsel %vm657_vm1, %v2844_v45, %v654_v23  ;;  %v1124_v13 = vmul.f32 %v1841_v8, %v988_v59  ;;  %v828_v52 = vsel %vm2957_vm2, %v2854_v29, %v824_v44 }
  0xe6   :  { %v2967_v33 = vpop.eup %1767  ;;  %v662_v25 = vmul.f32 0.5, %v661_v22  ;;  %v1091_v14 = vmul.f32 %v1842_v18, %v658_v43  ;;  %1773 = vrsqrt.f32 %v2953_v37  ;;  %v833_v6 = vsub.f32 1.5, %v832_v42 }
  0xe7   :  { %v2976_v45 = vpop.eup %1769  ;;  %v503_v40 = vsub.f32 1.5, %v502_v57  ;;  %v670_v34 = vmul.f32 %v2967_v33, %v2912_v2  ;;  %v1108_v12 = vmul.f32 %v1843_v39, %v828_v52  ;;  %vm506_vm3 = vweird.f32 %v2919_v4  ;;  %v1847_v52 = vld [vmem:[%s3982_s0 + $0x40] sm:$0xff] }
  0xe8   :  { %v2983_v28 = vpop.eup %1771  ;;  %v663_v17 = vsub.f32 1.5, %v662_v25  ;;  %vm665_vm4 = vweird.f32 %v2850_v35  ;;  %v990_v29 = vmul.f32 %v2976_v45, %v2915_v3  ;;  %1636 = vmatmul.msk.f32.gmra.mxu1 %vm172_vm0, %v1091_v14  ;;  %vm836_vm5 = vweird.f32 %v2888_v9  ;;  %vm3006_vm7 = vmor %vm505_vm14, %vm506_vm3 }
  0xe9   :  { %v671_v61 = vmul.f32 %v2967_v33, %v670_v34  ;;  %v510_v51 = vmul.f32 %v2983_v28, %v2917_v48  ;;  %1653 = vmatmul.msk.f32.gmra.mxu2 %vm172_vm0, %v1108_v12  ;;  %1669 = vmatmul.msk.f32.gmra.mxu3 %vm172_vm0, %v1124_v13  ;;  %1775 = vrsqrt.f32 %v2965_v32  ;;  %vm666_vm6 = vweird.f32 %v2926_v15  ;;  %vm3019_vm9 = vmor %vm835_vm13, %vm836_vm5 }
  0xea   :  { %v349_v36 = vpop.xlane.xlu2 %348  ;;  %v250_v11 = vpop.xlane.xlu0 %249  ;;  %v991_v63 = vmul.f32 %v2976_v45, %v990_v29  ;;  %v2999_v26 = vmax.f32 %v346_v21, 1e-24  ;;  %v504_v47 = vmul.f32 %v2919_v4, %v503_v40  ;;  %v664_v53 = vmul.f32 %v2926_v15, %v663_v17  ;;  %vm667_vm10 = vmor %vm665_vm4, %vm666_vm6 }
  0xeb   :  { %v301_v7 = vpop.xlane.xlu1 %300  ;;  %v672_v60 = vmul.f32 0.5, %v671_v61  ;;  %v511_v31 = vmul.f32 %v2983_v28, %v510_v51  ;;  %v834_v38 = vmul.f32 %v2888_v9, %v833_v6  ;;  %vm675_vm8 = vweird.f32 %v2912_v2  ;;  %v1848_v2 = vld [vmem:[%s3982_s0 + $0xc0] sm:$0xff] }
  0xec   :  { %v3013_v55 = vpop.eup %1773  ;;  %v992_v10 = vmul.f32 0.5, %v991_v63  ;;  %1777 = vrsqrt.f32 %v2999_v26  ;;  %v508_v46 = vsel %vm3006_vm7, %v2919_v4, %v504_v47  ;;  %vm676_vm11 = vweird.f32 %v2967_v33  ;;  %v1849_v61 = vld [vmem:[%s3982_s0 + $0x1c0] sm:$0xff] }
  0xed   :  { %v673_v16 = vsub.f32 1.5, %v672_v60  ;;  %v512_v56 = vmul.f32 0.5, %v511_v31  ;;  %v520_v30 = vmul.f32 %v3013_v55, %v2953_v37  ;;  %vm516_vm12 = vweird.f32 %v2983_v28  ;;  %vm677_vm2 = vmor %vm675_vm8, %vm676_vm11 }
  0xee   :  { %v1076_v1 = vmul.f32 %v1844_v58, %v508_v46  ;;  %v668_v54 = vsel %vm667_vm10, %v2926_v15, %v664_v53  ;;  %v838_v35 = vsel %vm3019_vm9, %v2888_v9, %v834_v38  ;;  %v993_v15 = vsub.f32 1.5, %v992_v10  ;;  %v1850_v46 = vld [vmem:[%s3982_s0 + $0x48] sm:$0xff] }
  0xef   :  { %v3043_v4 = vpop.eup %1775  ;;  %v513_v50 = vsub.f32 1.5, %v512_v56  ;;  %v521_v62 = vmul.f32 %v3013_v55, %v520_v30  ;;  %v1092_v19 = vmul.f32 %v1845_v0, %v668_v54  ;;  %v1109_v21 = vmul.f32 %v1846_v20, %v838_v35 }
  0xf0   :  { %v840_v5 = vmul.f32 %v3043_v4, %v2965_v32  ;;  %1621 = vmatmul.msk.f32.gmra.mxu0 %vm172_vm0, %v1076_v1  ;;  %v3055_v9 = vmax.f32 %v349_v36, 1e-24  ;;  %v3057_v42 = vmax.f32 %v250_v11, 1e-24  ;;  %v3061_v44 = vmax.f32 %v301_v7, 1e-24 }
  0xf1   :  { %v522_v22 = vmul.f32 0.5, %v521_v62  ;;  %1637 = vmatmul.msk.f32.gmra.mxu1 %vm172_vm0, %v1092_v19  ;;  %1654 = vmatmul.msk.f32.gmra.mxu2 %vm172_vm0, %v1109_v21  ;;  %v514_v59 = vmul.f32 %v2983_v28, %v513_v50  ;;  %v674_v24 = vmul.f32 %v2967_v33, %v673_v16  ;;  %vm995_vm13 = vweird.f32 %v2915_v3 }
  0xf2   :  { %v304_v27 = vpop.xlane.xlu2 %303  ;;  %v205_v23 = vpop.xlane.xlu0 %204  ;;  %vm515_vm15 = vweird.f32 %v2917_v48  ;;  %v841_v8 = vmul.f32 %v3043_v4, %v840_v5  ;;  %1779 = vrsqrt.f32 %v3055_v9  ;;  %vm996_vm14 = vweird.f32 %v2976_v45 }
  0xf3   :  { %v253_v57 = vpop.xlane.xlu1 %252  ;;  %v3065_v43 = vpop.eup %1777  ;;  %vm517_vm1 = vmor %vm515_vm15, %vm516_vm12  ;;  %v523_v13 = vsub.f32 1.5, %v522_v22  ;;  %1781 = vrsqrt.f32 %v3057_v42  ;;  %vm525_vm3 = vweird.f32 %v2953_v37  ;;  %v678_v40 = vsel %vm677_vm2, %v2967_v33, %v674_v24 }
  0xf4   :  { %v1000_v25 = vmul.f32 %v3065_v43, %v2999_v26  ;;  %v842_v48 = vmul.f32 0.5, %v841_v8  ;;  %1783 = vrsqrt.f32 %v3061_v44  ;;  %v518_v18 = vsel %vm517_vm1, %v2983_v28, %v514_v59  ;;  %vm997_vm4 = vmor %vm995_vm13, %vm996_vm14 }
  0xf5   :  { %v1077_v6 = vmul.f32 %v1847_v52, %v518_v18  ;;  %v994_v34 = vmul.f32 %v2976_v45, %v993_v15  ;;  %vm526_vm5 = vweird.f32 %v3013_v55  ;;  %v1093_v39 = vmul.f32 %v1848_v2, %v678_v40  ;;  %v1852_v18 = vld [vmem:[%s3982_s0 + $0x1c8] sm:$0xff] }
  0xf6   :  { %v1001_v14 = vmul.f32 %v3065_v43, %v1000_v25  ;;  %v3098_v12 = vmax.f32 %v304_v27, 1e-24  ;;  %v3100_v28 = vmax.f32 %v205_v23, 1e-24  ;;  %v3103_v29 = vmax.f32 %v253_v57, 1e-24  ;;  %vm527_vm7 = vmor %vm525_vm3, %vm526_vm5 }
  0xf7   :  { %v998_v33 = vsel %vm997_vm4, %v2976_v45, %v994_v34  ;;  %v524_v36 = vmul.f32 %v3013_v55, %v523_v13  ;;  %v843_v11 = vsub.f32 1.5, %v842_v48  ;;  %vm845_vm6 = vweird.f32 %v2965_v32  ;;  %v1851_v27 = vld [vmem:[%s3982_s0 + $0x148] sm:$0xff] }
  0xf8   :  { %v1002_v17 = vmul.f32 0.5, %v1001_v14  ;;  %v3106_v3 = vpop.eup %1779  ;;  %1622 = vmatmul.msk.f32.gmra.mxu0 %vm172_vm0, %v1077_v6  ;;  %v1125_v51 = vmul.f32 %v1849_v61, %v998_v33  ;;  %1785 = vrsqrt.f32 %v3098_v12  ;;  %vm846_vm9 = vweird.f32 %v3043_v4 }
  0xf9   :  { %v3113_v47 = vpop.eup %1781  ;;  %v1010_v49 = vmul.f32 %v3106_v3, %v3055_v9  ;;  %1638 = vmatmul.msk.f32.gmra.mxu1 %vm172_vm0, %v1093_v39  ;;  %1787 = vrsqrt.f32 %v3100_v28  ;;  %vm1005_vm8 = vweird.f32 %v2999_v26  ;;  %vm1006_vm10 = vweird.f32 %v3065_v43  ;;  %vm3145_vm11 = vmor %vm845_vm6, %vm846_vm9 }
  0xfa   :  { %v256_v7 = vpop.xlane.xlu2 %255  ;;  %v352_v63 = vpop.xlane.xlu0 %351  ;;  %v1003_v45 = vsub.f32 1.5, %v1002_v17  ;;  %v680_v53 = vmul.f32 %v3113_v47, %v3057_v42  ;;  %1670 = vmatmul.msk.f32.gmra.mxu3 %vm172_vm0, %v1125_v51  ;;  %1789 = vrsqrt.f32 %v3103_v29  ;;  %v528_v37 = vsel %vm527_vm7, %v3013_v55, %v524_v36  ;;  %vm3158_vm15 = vmor %vm1005_vm8, %vm1006_vm10 }
  0xfb   :  { %v208_v60 = vpop.xlane.xlu1 %207  ;;  %v3120_v31 = vpop.eup %1783  ;;  %v1011_v38 = vmul.f32 %v3106_v3, %v1010_v49  ;;  %v1078_v16 = vmul.f32 %v1850_v46, %v528_v37  ;;  %v844_v56 = vmul.f32 %v3043_v4, %v843_v11  ;;  %vm1015_vm12 = vweird.f32 %v3055_v9 }
  0xfc   :  { %v850_v41 = vmul.f32 %v3120_v31, %v3061_v44  ;;  %v681_v10 = vmul.f32 %v3113_v47, %v680_v53  ;;  %v1004_v30 = vmul.f32 %v3065_v43, %v1003_v45  ;;  %vm685_vm13 = vweird.f32 %v3057_v42  ;;  %v1853_v42 = vld [vmem:[%s3982_s0 + $0xc8] sm:$0xff] }
  0xfd   :  { %v1012_v1 = vmul.f32 0.5, %v1011_v38  ;;  %vm1016_vm14 = vweird.f32 %v3106_v3  ;;  %v848_v50 = vsel %vm3145_vm11, %v3043_v4, %v844_v56  ;;  %v3166_v62 = vmax.f32 %v256_v7, 1e-24 }
  0xfe   :  { %v851_v55 = vmul.f32 %v3120_v31, %v850_v41  ;;  %v3152_v54 = vpop.eup %1785  ;;  %v682_v32 = vmul.f32 0.5, %v681_v10  ;;  %v1008_v26 = vsel %vm3158_vm15, %v3065_v43, %v1004_v30  ;;  %v3175_v21 = vmax.f32 %v352_v63, 1e-24  ;;  %vm3205_vm4 = vmor %vm1015_vm12, %vm1016_vm14 }
  0xff   :  { %v3168_v0 = vpop.eup %1787  ;;  %v860_v20 = vmul.f32 %v3152_v54, %v3098_v12  ;;  %v1110_v23 = vmul.f32 %v1851_v27, %v848_v50  ;;  %v3185_v22 = vmax.f32 %v208_v60, 1e-24  ;;  %v1013_v57 = vsub.f32 1.5, %v1012_v1  ;;  %v1855_v60 = vld [vmem:[%s3982_s0 + $0x1d0] sm:$0xff] }
 0x100   :  { %v852_v19 = vmul.f32 0.5, %v851_v55  ;;  %v3177_v15 = vpop.eup %1789  ;;  %v683_v5 = vsub.f32 1.5, %v682_v32  ;;  %v530_v4 = vmul.f32 %v3168_v0, %v3100_v28  ;;  %1623 = vmatmul.msk.f32.gmra.mxu0 %vm172_vm0, %v1078_v16  ;;  %vm686_vm1 = vweird.f32 %v3113_v47  ;;  %v1856_v50 = vld [vmem:[%s3982_s0 + $0x50] sm:$0xff] }
 0x101   :  { %v861_v8 = vmul.f32 %v3152_v54, %v860_v20  ;;  %v690_v13 = vmul.f32 %v3177_v15, %v3103_v29  ;;  %1655 = vmatmul.msk.f32.gmra.mxu2 %vm172_vm0, %v1110_v23  ;;  %v1126_v14 = vmul.f32 %v1852_v18, %v1008_v26  ;;  %1791 = vrsqrt.f32 %v3166_v62  ;;  %vm687_vm6 = vmor %vm685_vm13, %vm686_vm1 }
 0x102   :  { %v211_v59 = vpop.xlane.xlu2 %210  ;;  %v307_v24 = vpop.xlane.xlu0 %306  ;;  %v853_v43 = vsub.f32 1.5, %v852_v19  ;;  %v531_v48 = vmul.f32 %v3168_v0, %v530_v4  ;;  %vm855_vm2 = vweird.f32 %v3061_v44  ;;  %vm856_vm3 = vweird.f32 %v3120_v31  ;;  %v1857_v4 = vld [vmem:[%s3982_s0 + $0xd0] sm:$0xff] }
 0x103   :  { %v355_v25 = vpop.xlane.xlu1 %354  ;;  %v691_v52 = vmul.f32 %v3177_v15, %v690_v13  ;;  %1793 = vrsqrt.f32 %v3175_v21  ;;  %vm865_vm5 = vweird.f32 %v3098_v12  ;;  %1671 = vmatmul.msk.f32.gmra.mxu3 %vm172_vm0, %v1126_v14  ;;  %v684_v34 = vmul.f32 %v3113_v47, %v683_v5  ;;  %vm857_vm7 = vmor %vm855_vm2, %vm856_vm3 }
 0x104   :  { %v532_v40 = vmul.f32 0.5, %v531_v48  ;;  %1795 = vrsqrt.f32 %v3185_v22  ;;  %v862_v2 = vmul.f32 0.5, %v861_v8  ;;  %v854_v39 = vmul.f32 %v3120_v31, %v853_v43 }
 0x105   :  { %v692_v9 = vmul.f32 0.5, %v691_v52  ;;  %v1014_v17 = vmul.f32 %v3106_v3, %v1013_v57  ;;  %v688_v36 = vsel %vm687_vm6, %v3113_v47, %v684_v34  ;;  %v3222_v11 = vmax.f32 %v211_v59, 1e-24  ;;  %v1854_v47 = vld [vmem:[%s3982_s0 + $0x150] sm:$0xff] }
 0x106   :  { %v533_v33 = vsub.f32 1.5, %v532_v40  ;;  %v3224_v61 = vmax.f32 %v307_v24, 1e-24  ;;  %v1094_v7 = vmul.f32 %v1853_v42, %v688_v36  ;;  %v858_v63 = vsel %vm857_vm7, %v3120_v31, %v854_v39 }
 0x107   :  { %v693_v51 = vsub.f32 1.5, %v692_v9  ;;  %v1018_v44 = vsel %vm3205_vm4, %v3106_v3, %v1014_v17  ;;  %v3233_v45 = vpop.eup %1791  ;;  %vm536_vm9 = vweird.f32 %v3168_v0  ;;  %v1111_v49 = vmul.f32 %v1854_v47, %v858_v63 }
 0x108   :  { %v1127_v53 = vmul.f32 %v1855_v60, %v1018_v44  ;;  %1797 = vrsqrt.f32 %v3222_v11  ;;  %vm535_vm8 = vweird.f32 %v3100_v28  ;;  %vm696_vm10 = vweird.f32 %v3177_v15  ;;  %1639 = vmatmul.msk.f32.gmra.mxu1 %vm172_vm0, %v1094_v7  ;;  %v1859_v7 = vld [vmem:[%s3982_s0 + $0x58] sm:$0xff] }
 0x109   :  { %v3243_v41 = vpop.eup %1793  ;;  %v700_v3 = vmul.f32 %v3233_v45, %v3166_v62  ;;  %1799 = vrsqrt.f32 %v3224_v61  ;;  %v863_v46 = vsub.f32 1.5, %v862_v2  ;;  %1656 = vmatmul.msk.f32.gmra.mxu2 %vm172_vm0, %v1111_v49  ;;  %v3256_v56 = vmax.f32 %v355_v25, 1e-24  ;;  %vm537_vm11 = vmor %vm535_vm8, %vm536_vm9  ;;  %v1858_v25 = vld [vmem:[%s3982_s0 + $0x158] sm:$0xff]  ;;  %v3343_v49 = vld [vmem:[#allocation4] ss:$0 sm:$0xff] }
 0x10a   :  { %v358_v31 = vpop.xlane.xlu2 %357  ;;  %v259_v38 = vpop.xlane.xlu0 %258  ;;  %v1020_v16 = vmul.f32 %v3243_v41, %v3175_v21  ;;  %v534_v28 = vmul.f32 %v3168_v0, %v533_v33  ;;  %vm695_vm12 = vweird.f32 %v3103_v29  ;;  %v694_v1 = vmul.f32 %v3177_v15, %v693_v51 }
 0x10b   :  { %v310_v37 = vpop.xlane.xlu1 %309  ;;  %v3251_v10 = vpop.eup %1795  ;;  %v701_v30 = vmul.f32 %v3233_v45, %v700_v3  ;;  %vm866_vm13 = vweird.f32 %v3152_v54  ;;  %vm697_vm15 = vmor %vm695_vm12, %vm696_vm10  ;;  %1672 = vmatmul.msk.f32.gmra.mxu3 %vm172_vm0, %v1127_v53  ;;  %1801 = vrsqrt.f32 %v3256_v56  ;;  %v3284_v23 = vmax.f32 %v358_v31, 1e-24 }
 0x10c   :  { %v540_v58 = vmul.f32 %v3251_v10, %v3185_v22  ;;  %v1021_v55 = vmul.f32 %v3243_v41, %v1020_v16  ;;  %v538_v29 = vsel %vm537_vm11, %v3168_v0, %v534_v28  ;;  %v698_v20 = vsel %vm697_vm15, %v3177_v15, %v694_v1  ;;  %vm867_vm14 = vmor %vm865_vm5, %vm866_vm13  ;;  %v1861_v28 = vld [vmem:[%s3982_s0 + $0x1d8] sm:$0xff] }
 0x10d   :  { %v702_v35 = vmul.f32 0.5, %v701_v30  ;;  %v1079_v19 = vmul.f32 %v1856_v50, %v538_v29  ;;  %v1095_v27 = vmul.f32 %v1857_v4, %v698_v20  ;;  %v864_v0 = vmul.f32 %v3152_v54, %v863_v46  ;;  %v1860_v46 = vld [vmem:[%s3982_s0 + $0xd8] sm:$0xff] }
 0x10e   :  { %v541_v32 = vmul.f32 %v3251_v10, %v540_v58  ;;  %v3278_v26 = vpop.eup %1797  ;;  %v1022_v5 = vmul.f32 0.5, %v1021_v55  ;;  %vm705_vm1 = vweird.f32 %v3166_v62  ;;  %vm545_vm2 = vweird.f32 %v3185_v22 }
 0x10f   :  { %v3286_v59 = vpop.eup %1799  ;;  %v550_v24 = vmul.f32 %v3278_v26, %v3222_v11  ;;  %1624 = vmatmul.msk.f32.gmra.mxu0 %vm172_vm0, %v1079_v19  ;;  %v703_v57 = vsub.f32 1.5, %v702_v35  ;;  %vm546_vm3 = vweird.f32 %v3251_v10  ;;  %v868_v8 = vsel %vm867_vm14, %v3152_v54, %v864_v0  ;;  %v1862_v0 = vld [vmem:[%s3982_s0 + $0x60] sm:$0xff] }
 0x110   :  { %v542_v15 = vmul.f32 0.5, %v541_v32  ;;  %v870_v43 = vmul.f32 %v3286_v59, %v3224_v61  ;;  %1640 = vmatmul.msk.f32.gmra.mxu1 %vm172_vm0, %v1095_v27  ;;  %v1112_v48 = vmul.f32 %v1858_v25, %v868_v8  ;;  %1803 = vrsqrt.f32 %v3284_v23  ;;  %vm547_vm7 = vmor %vm545_vm2, %vm546_vm3 }
 0x111   :  { %v551_v13 = vmul.f32 %v3278_v26, %v550_v24  ;;  %v3307_v18 = vpop.eup %1801  ;;  %v1023_v14 = vsub.f32 1.5, %v1022_v5  ;;  %v3310_v6 = vmax.f32 %v259_v38, 1e-24  ;;  %v3312_v54 = vmax.f32 %v310_v37, 1e-24 }
 0x112   :  { %v543_v12 = vsub.f32 1.5, %v542_v15  ;;  %v871_v52 = vmul.f32 %v3286_v59, %v870_v43  ;;  %v313_v40 = vpop.xlane.xlu2 %312  ;;  %v214_v34 = vpop.xlane.xlu0 %213  ;;  %vm706_vm4 = vweird.f32 %v3233_v45  ;;  %v1030_v9 = vmul.f32 %v3307_v18, %v3256_v56  ;;  %1657 = vmatmul.msk.f32.gmra.mxu2 %vm172_vm0, %v1112_v48 }
 0x113   :  { %v552_v2 = vmul.f32 0.5, %v551_v13  ;;  %v262_v17 = vpop.xlane.xlu1 %261  ;;  %vm1025_vm5 = vweird.f32 %v3175_v21  ;;  %vm1026_vm6 = vweird.f32 %v3243_v41  ;;  %vm555_vm9 = vweird.f32 %v3222_v11  ;;  %vm3334_vm8 = vmor %vm705_vm1, %vm706_vm4 }
 0x114   :  { %v544_v39 = vmul.f32 %v3251_v10, %v543_v12  ;;  %1805 = vrsqrt.f32 %v3310_v6  ;;  %v1031_v36 = vmul.f32 %v3307_v18, %v1030_v9  ;;  %v872_v22 = vmul.f32 0.5, %v871_v52  ;;  %vm1027_vm10 = vmor %vm1025_vm5, %vm1026_vm6 }
 0x115   :  { %v553_v33 = vsub.f32 1.5, %v552_v2  ;;  %1807 = vrsqrt.f32 %v3312_v54  ;;  %v704_v44 = vmul.f32 %v3233_v45, %v703_v57  ;;  %v1024_v47 = vmul.f32 %v3243_v41, %v1023_v14 }
 0x116   :  { %v548_v51 = vsel %vm547_vm7, %v3251_v10, %v544_v39  ;;  %v3345_v60 = vpop.eup %1803  ;;  %vm556_vm11 = vweird.f32 %v3278_v26  ;;  %v1032_v62 = vmul.f32 0.5, %v1031_v36  ;;  %v3352_v53 = vmax.f32 %v313_v40, 1e-24  ;;  %v1863_v36 = vld [vmem:[%s3982_s0 + $0x160] sm:$0xff] }
 0x117   :  { %v1080_v63 = vmul.f32 %v1859_v7, %v548_v51  ;;  %v3354_v31 = vmax.f32 %v214_v34, 1e-24  ;;  %v1040_v38 = vmul.f32 %v3345_v60, %v3284_v23  ;;  %v708_v3 = vsel %vm3334_vm8, %v3233_v45, %v704_v44  ;;  %vm3382_vm13 = vmor %vm555_vm9, %vm556_vm11  ;;  %v1864_v44 = vld [vmem:[%s3982_s0 + $0x1e0] sm:$0xff] }
 0x118   :  { %v1028_v37 = vsel %vm1027_vm10, %v3243_v41, %v1024_v47  ;;  %v1352_v21 = vpop.f32.mrf.mxu0  ;;  %v554_v10 = vmul.f32 %v3278_v26, %v553_v33  ;;  %vm875_vm12 = vweird.f32 %v3224_v61  ;;  %v1096_v16 = vmul.f32 %v1860_v46, %v708_v3 }
 0x119   :  { %1625 = vmatmul.msk.f32.gmra.mxu0 %vm172_vm0, %v1080_v63  ;;  %v1128_v30 = vmul.f32 %v1861_v28, %v1028_v37  ;;  %1809 = vrsqrt.f32 %v3352_v53  ;;  %v873_v41 = vsub.f32 1.5, %v872_v22  ;;  %v1033_v58 = vsub.f32 1.5, %v1032_v62 }
 0x11a   :  { %v3372_v45 = vpop.eup %1805  ;;  %v1041_v1 = vmul.f32 %v3345_v60, %v1040_v38  ;;  %1811 = vrsqrt.f32 %v3354_v31  ;;  %vm1035_vm15 = vweird.f32 %v3256_v56  ;;  %1641 = vmatmul.msk.f32.gmra.mxu1 %vm172_vm0, %v1096_v16  ;;  %v3391_v32 = vmax.f32 %v262_v17, 1e-24  ;;  %v265_v20 = vpop.xlane.xlu2 %264 }
 0x11b   :  { %v3376_v55 = vpop.eup %1807  ;;  %v710_v35 = vmul.f32 %v3372_v45, %v3310_v6  ;;  %1673 = vmatmul.msk.f32.gmra.mxu3 %vm172_vm0, %v1128_v30  ;;  %v1353_v50 = vadd.f32 %v3343_v49, %v1352_v21  ;;  %vm876_vm14 = vweird.f32 %v3286_v59  ;;  %vm1045_vm1 = vweird.f32 %v3284_v23  ;;  %v361_v5 = vpop.xlane.xlu0 %360  ;;  %v1868_v21 = vld [vmem:[%s3982_s0 + $0x68] sm:$0xff] }
 0x11c   :  { %v880_v11 = vmul.f32 %v3376_v55, %v3312_v54  ;;  %v558_v19 = vsel %vm3382_vm13, %v3278_v26, %v554_v10  ;;  %v1042_v4 = vmul.f32 0.5, %v1041_v1  ;;  %1813 = vrsqrt.f32 %v3391_v32  ;;  %v217_v24 = vpop.xlane.xlu1 %216  ;;  %vm3419_vm3 = vmor %vm875_vm12, %vm876_vm14 }
 0x11d   :  { %v711_v27 = vmul.f32 %v3372_v45, %v710_v35  ;;  %1544 = vst [vmem:[%s3985_s3] sm:$0xff] %v1353_v50  ;;  %v1081_v15 = vmul.f32 %v1862_v0, %v558_v19  ;;  %vm1036_vm2 = vweird.f32 %v3307_v18  ;;  %v874_v57 = vmul.f32 %v3286_v59, %v873_v41  ;;  %v1448_v8 = vpop.f32.mrf.mxu2  ;;  %v1865_v50 = vld [vmem:[%s3982_s0 + $0xe0] sm:$0xff]  ;;  %v1866_v0 = vld [vmem:[%s3982_s0 + $0x168] sm:$0xff] }
 0x11e   :  { %v881_v26 = vmul.f32 %v3376_v55, %v880_v11  ;;  %v1034_v43 = vmul.f32 %v3307_v18, %v1033_v58  ;;  %v3423_v48 = vmax.f32 %v265_v20, 1e-24  ;;  %v3425_v14 = vmax.f32 %v361_v5, 1e-24  ;;  %vm3441_vm5 = vmor %vm1035_vm15, %vm1036_vm2  ;;  %v1869_v41 = vld [vmem:[%s3982_s0 + $0xe8] sm:$0xff] }
 0x11f   :  { %v3413_v12 = vpop.eup %1809  ;;  %v712_v25 = vmul.f32 0.5, %v711_v27  ;;  %v1449_v52 = vadd.f32 %v3343_v49, %v1448_v8  ;;  %vm1046_vm4 = vweird.f32 %v3345_v60  ;;  %v878_v61 = vsel %vm3419_vm3, %v3286_v59, %v874_v57 }
 0x120   :  { %v3428_v40 = vpop.eup %1811  ;;  %v882_v34 = vmul.f32 0.5, %v881_v26  ;;  %v890_v2 = vmul.f32 %v3413_v12, %v3352_v53  ;;  %v1043_v39 = vsub.f32 1.5, %v1042_v4  ;;  %v1113_v51 = vmul.f32 %v1863_v36, %v878_v61  ;;  %v1400_v59 = vpop.f32.mrf.mxu1  ;;  %vm3476_vm10 = vmor %vm1045_vm1, %vm1046_vm4  ;;  %v1872_v36 = vld [vmem:[%s3982_s0 + $0x70] sm:$0xff] }
 0x121   :  { %1626 = vmatmul.msk.f32.gmra.mxu0 %vm172_vm0, %v1081_v15  ;;  %v713_v17 = vsub.f32 1.5, %v712_v25  ;;  %v560_v33 = vmul.f32 %v3428_v40, %v3354_v31  ;;  %1576 = vst [vmem:[%s3985_s3 + $0x100] sm:$0xff] %v1449_v52  ;;  %v1038_v22 = vsel %vm3441_vm5, %v3307_v18, %v1034_v43  ;;  %1815 = vrsqrt.f32 %v3423_v48 }
 0x122   :  { %v883_v56 = vsub.f32 1.5, %v882_v34  ;;  %v891_v42 = vmul.f32 %v3413_v12, %v890_v2  ;;  %v3458_v7 = vpop.eup %1813  ;;  %vm716_vm6 = vweird.f32 %v3372_v45  ;;  %1658 = vmatmul.msk.f32.gmra.mxu2 %vm172_vm0, %v1113_v51  ;;  %v1129_v47 = vmul.f32 %v1864_v44, %v1038_v22 }
 0x123   :  { %v561_v63 = vmul.f32 %v3428_v40, %v560_v33  ;;  %1817 = vrsqrt.f32 %v3425_v14  ;;  %vm715_vm7 = vweird.f32 %v3310_v6  ;;  %vm885_vm9 = vweird.f32 %v3312_v54 }
 0x124   :  { %vm886_vm8 = vweird.f32 %v3376_v55  ;;  %v720_v18 = vmul.f32 %v3458_v7, %v3391_v32  ;;  %v3480_v38 = vmul.f32 0.5, %v891_v42  ;;  %1674 = vmatmul.msk.f32.gmra.mxu3 %vm172_vm0, %v1129_v47  ;;  %v3483_v6 = vmax.f32 %v217_v24, 1e-24  ;;  %vm3489_vm11 = vmor %vm715_vm7, %vm716_vm6 }
 0x125   :  { %v1401_v3 = vadd.f32 %v3343_v49, %v1400_v59  ;;  %v714_v37 = vmul.f32 %v3372_v45, %v713_v17  ;;  %v3493_v23 = vmul.f32 0.5, %v561_v63  ;;  %v884_v46 = vmul.f32 %v3376_v55, %v883_v56  ;;  %v220_v28 = vpop.xlane.xlu2 %219  ;;  %v316_v30 = vpop.xlane.xlu0 %315  ;;  %vm3502_vm12 = vmor %vm885_vm9, %vm886_vm8 }
 0x126   :  { %v721_v10 = vmul.f32 %v3458_v7, %v720_v18  ;;  %v1044_v16 = vmul.f32 %v3345_v60, %v1043_v39  ;;  %vm895_vm13 = vweird.f32 %v3352_v53  ;;  %vm565_vm15 = vweird.f32 %v3354_v31  ;;  %v364_v1 = vpop.xlane.xlu1 %363  ;;  %v1451_v54 = vpop.f32.mrf.mxu2 }
 0x127   :  { %1819 = vrsqrt.f32 %v3483_v6  ;;  %1560 = vst [vmem:[%s3985_s3 + $0x80] sm:$0xff] %v1401_v3  ;;  %v718_v58 = vsel %vm3489_vm11, %v3372_v45, %v714_v37  ;;  %v3515_v29 = vpop.eup %1815  ;;  %vm725_vm14 = vweird.f32 %v3391_v32  ;;  %v888_v19 = vsel %vm3502_vm12, %v3376_v55, %v884_v46  ;;  %v1496_v20 = vpop.f32.mrf.mxu3  ;;  %v1867_v55 = vld [vmem:[%s3982_s0 + $0x1e8] sm:$0xff] }
 0x128   :  { %v722_v35 = vmul.f32 0.5, %v721_v10  ;;  %v1097_v11 = vmul.f32 %v1865_v50, %v718_v58  ;;  %v1048_v45 = vsel %vm3476_vm10, %v3345_v60, %v1044_v16  ;;  %v1355_v5 = vpop.f32.mrf.mxu0  ;;  %vm896_vm1 = vweird.f32 %v3413_v12  ;;  %v1403_v34 = vpop.f32.mrf.mxu1 }
 0x129   :  { %v3527_v4 = vpop.eup %1817  ;;  %v730_v27 = vmul.f32 %v3515_v29, %v3423_v48  ;;  %v1114_v15 = vmul.f32 %v1866_v0, %v888_v19  ;;  %v1130_v24 = vmul.f32 %v1867_v55, %v1048_v45  ;;  %v893_v60 = vsub.f32 1.5, %v3480_v38  ;;  %vm3576_vm6 = vmor %vm895_vm13, %vm896_vm1 }
 0x12a   :  { %v563_v26 = vsub.f32 1.5, %v3493_v23  ;;  %v1050_v57 = vmul.f32 %v3527_v4, %v3425_v14  ;;  %1642 = vmatmul.msk.f32.gmra.mxu1 %vm172_vm0, %v1097_v11  ;;  %v3543_v43 = vmax.f32 %v220_v28, 1e-24  ;;  %v3547_v13 = vmax.f32 %v316_v30, 1e-24 }
 0x12b   :  { %v731_v8 = vmul.f32 %v3515_v29, %v730_v27  ;;  %1659 = vmatmul.msk.f32.gmra.mxu2 %vm172_vm0, %v1114_v15  ;;  %v3549_v25 = vmax.f32 %v364_v1, 1e-24  ;;  %v1452_v52 = vadd.f32 %v3343_v49, %v1451_v54  ;;  %v723_v2 = vsub.f32 1.5, %v722_v35 }
 0x12c   :  { %v1051_v61 = vmul.f32 %v3527_v4, %v1050_v57  ;;  %1821 = vrsqrt.f32 %v3543_v43  ;;  %v1497_v9 = vadd.f32 %v3343_v49, %v1496_v20  ;;  %vm566_vm2 = vweird.f32 %v3428_v40  ;;  %1675 = vmatmul.msk.f32.gmra.mxu3 %vm172_vm0, %v1130_v24 }
 0x12d   :  { %v3555_v39 = vpop.eup %1819  ;;  %v732_v17 = vmul.f32 0.5, %v731_v8  ;;  %vm735_vm3 = vweird.f32 %v3423_v48  ;;  %1823 = vrsqrt.f32 %v3547_v13  ;;  %1577 = vst [vmem:[%s3985_s3 + $0x108] sm:$0xff] %v1452_v52  ;;  %vm726_vm4 = vweird.f32 %v3458_v7  ;;  %vm3590_vm9 = vmor %vm565_vm15, %vm566_vm2 }
 0x12e   :  { %vm736_vm5 = vweird.f32 %v3515_v29  ;;  %v570_v33 = vmul.f32 %v3555_v39, %v3483_v6  ;;  %1825 = vrsqrt.f32 %v3549_v25  ;;  %1592 = vst [vmem:[%s3985_s3 + $0x180] sm:$0xff] %v1497_v9  ;;  %v3580_v51 = vmul.f32 0.5, %v1051_v61  ;;  %v268_v22 = vpop.xlane.xlu0 %267  ;;  %vm3602_vm10 = vmor %vm725_vm14, %vm726_vm4  ;;  %v1871_v9 = vld [vmem:[%s3982_s0 + $0xf0] sm:$0xff] }
 0x12f   :  { %vm575_vm7 = vweird.f32 %v3483_v6  ;;  %v1356_v59 = vadd.f32 %v3343_v49, %v1355_v5  ;;  %v1404_v56 = vadd.f32 %v3343_v49, %v1403_v34  ;;  %v564_v42 = vmul.f32 %v3428_v40, %v563_v26  ;;  %vm3663_vm14 = vmor %vm735_vm3, %vm736_vm5 }
 0x130   :  { %v733_v63 = vsub.f32 1.5, %v732_v17  ;;  %vm1055_vm8 = vweird.f32 %v3425_v14  ;;  %v571_v44 = vmul.f32 %v3555_v39, %v570_v33  ;;  %v724_v47 = vmul.f32 %v3458_v7, %v723_v2  ;;  %v1454_v54 = vpop.f32.mrf.mxu2 }
 0x131   :  { %v894_v18 = vmul.f32 %v3413_v12, %v893_v60  ;;  %vm1056_vm11 = vweird.f32 %v3527_v4  ;;  %vm585_vm12 = vweird.f32 %v3543_v43  ;;  %1545 = vst [vmem:[%s3985_s3 + $0x8] sm:$0xff] %v1356_v59  ;;  %v568_v31 = vsel %vm3590_vm9, %v3428_v40, %v564_v42  ;;  %v1499_v3 = vpop.f32.mrf.mxu3 }
 0x132   :  { %v3614_v38 = vmax.f32 %v268_v22, 1e-24  ;;  %v3616_v32 = vpop.eup %1821  ;;  %v572_v37 = vmul.f32 0.5, %v571_v44  ;;  %1561 = vst [vmem:[%s3985_s3 + $0x88] sm:$0xff] %v1404_v56  ;;  %v1082_v23 = vmul.f32 %v1868_v21, %v568_v31  ;;  %v728_v10 = vsel %vm3602_vm10, %v3458_v7, %v724_v47  ;;  %v1358_v46 = vpop.f32.mrf.mxu0  ;;  %v1870_v7 = vld [vmem:[%s3982_s0 + $0x170] sm:$0xff]  ;;  %vm3690_vm3 = vmor %vm1055_vm8, %vm1056_vm11 }
 0x133   :  { %v898_v40 = vsel %vm3576_vm6, %v3413_v12, %v894_v18  ;;  %v3630_v16 = vpop.eup %1823  ;;  %v1053_v28 = vsub.f32 1.5, %v3580_v51  ;;  %v580_v30 = vmul.f32 %v3616_v32, %v3543_v43  ;;  %v1098_v58 = vmul.f32 %v1869_v41, %v728_v10  ;;  %v1875_v10 = vld [vmem:[%s3982_s0 + $0x78] sm:$0xff] }
 0x134   :  { %v1115_v1 = vmul.f32 %v1870_v7, %v898_v40  ;;  %v3641_v12 = vpop.eup %1825  ;;  %v573_v35 = vsub.f32 1.5, %v572_v37  ;;  %v900_v50 = vmul.f32 %v3630_v16, %v3547_v13  ;;  %1627 = vmatmul.msk.f32.gmra.mxu0 %vm172_vm0, %v1082_v23  ;;  %1827 = vrsqrt.f32 %v3614_v38  ;;  %v1406_v20 = vpop.f32.mrf.mxu1 }
 0x135   :  { %v734_v11 = vmul.f32 %v3515_v29, %v733_v63  ;;  %vm576_vm13 = vweird.f32 %v3555_v39  ;;  %v581_v19 = vmul.f32 %v3616_v32, %v580_v30  ;;  %vm905_vm15 = vweird.f32 %v3547_v13  ;;  %1643 = vmatmul.msk.f32.gmra.mxu1 %vm172_vm0, %v1098_v58 }
 0x136   :  { %v1060_v45 = vmul.f32 %v3641_v12, %v3549_v25  ;;  %1660 = vmatmul.msk.f32.gmra.mxu2 %vm172_vm0, %v1115_v1  ;;  %v901_v5 = vmul.f32 %v3630_v16, %v900_v50  ;;  %v1455_v27 = vadd.f32 %v3343_v49, %v1454_v54  ;;  %v1500_v0 = vadd.f32 %v3343_v49, %v1499_v3  ;;  %vm3674_vm1 = vmor %vm575_vm7, %vm576_vm13 }
 0x137   :  { %v1359_v15 = vadd.f32 %v3343_v49, %v1358_v46  ;;  %v582_v24 = vmul.f32 0.5, %v581_v19  ;;  %v1407_v26 = vadd.f32 %v3343_v49, %v1406_v20  ;;  %v574_v57 = vmul.f32 %v3555_v39, %v573_v35 }
 0x138   :  { %v1061_v60 = vmul.f32 %v3641_v12, %v1060_v45  ;;  %vm586_vm2 = vweird.f32 %v3616_v32  ;;  %v902_v48 = vmul.f32 0.5, %v901_v5  ;;  %1578 = vst [vmem:[%s3985_s3 + $0x110] sm:$0xff] %v1455_v27  ;;  %v738_v52 = vsel %vm3663_vm14, %v3515_v29, %v734_v11 }
 0x139   :  { %v1054_v34 = vmul.f32 %v3527_v4, %v1053_v28  ;;  %v583_v2 = vsub.f32 1.5, %v582_v24  ;;  %1593 = vst [vmem:[%s3985_s3 + $0x188] sm:$0xff] %v1500_v0  ;;  %v578_v29 = vsel %vm3674_vm1, %v3555_v39, %v574_v57  ;;  %v1099_v17 = vmul.f32 %v1871_v9, %v738_v52  ;;  %vm3723_vm6 = vmor %vm585_vm12, %vm586_vm2  ;;  %v1876_v28 = vld [vmem:[%s3982_s0 + $0x1f8] sm:$0xff] }
 0x13a   :  { %v1062_v61 = vmul.f32 0.5, %v1061_v60  ;;  %v1828_v14 = vpop.eup %1827  ;;  %v903_v33 = vsub.f32 1.5, %v902_v48  ;;  %vm906_vm4 = vweird.f32 %v3630_v16  ;;  %1546 = vst [vmem:[%s3985_s3 + $0x10] sm:$0xff] %v1359_v15  ;;  %v1083_v51 = vmul.f32 %v1872_v36, %v578_v29 }
 0x13b   :  { %v1058_v39 = vsel %vm3690_vm3, %v3527_v4, %v1054_v34  ;;  %v584_v59 = vmul.f32 %v3616_v32, %v583_v2  ;;  %vm1066_vm5 = vweird.f32 %v3641_v12  ;;  %v740_v42 = vmul.f32 %v1828_v14, %v3614_v38  ;;  %1562 = vst [vmem:[%s3985_s3 + $0x90] sm:$0xff] %v1407_v26  ;;  %v1502_v22 = vpop.f32.mrf.mxu3  ;;  %v1361_v53 = vpop.f32.mrf.mxu0  ;;  %v1873_v4 = vld [vmem:[%s3982_s0 + $0x1f0] sm:$0xff]  ;;  %vm907_vm7 = vmor %vm905_vm15, %vm906_vm4 }
 0x13c   :  { %v1063_v56 = vsub.f32 1.5, %v1062_v61  ;;  %1628 = vmatmul.msk.f32.gmra.mxu0 %vm172_vm0, %v1083_v51  ;;  %v1131_v44 = vmul.f32 %v1873_v4, %v1058_v39  ;;  %v1503_v47 = vadd.f32 %v3343_v49, %v1502_v22  ;;  %v1362_v18 = vadd.f32 %v3343_v49, %v1361_v53 }
 0x13d   :  { %v904_v62 = vmul.f32 %v3630_v16, %v903_v33  ;;  %vm1065_vm9 = vweird.f32 %v3549_v25  ;;  %v741_v31 = vmul.f32 %v1828_v14, %v740_v42  ;;  %1644 = vmatmul.msk.f32.gmra.mxu1 %vm172_vm0, %v1099_v17  ;;  %v588_v3 = vsel %vm3723_vm6, %v3616_v32, %v584_v59  ;;  %v1874_v32 = vld [vmem:[%s3982_s0 + $0x178] sm:$0xff] }
 0x13e   :  { %v1064_v43 = vmul.f32 %v3641_v12, %v1063_v56  ;;  %vm3746_vm8 = vmor %vm1065_vm9, %vm1066_vm5  ;;  %1676 = vmatmul.msk.f32.gmra.mxu3 %vm172_vm0, %v1131_v44  ;;  %1594 = vst [vmem:[%s3985_s3 + $0x190] sm:$0xff] %v1503_v47  ;;  %v1084_v40 = vmul.f32 %v1875_v10, %v588_v3  ;;  %vm746_vm10 = vweird.f32 %v1828_v14  ;;  %vm745_vm11 = vweird.f32 %v3614_v38  ;;  %v1877_v38 = vld [vmem:[%s3982_s0 + $0xf8] sm:$0xff] }
 0x13f   :  { %v908_v13 = vsel %vm907_vm7, %v3630_v16, %v904_v62  ;;  %v742_v25 = vmul.f32 0.5, %v741_v31  ;;  %1547 = vst [vmem:[%s3985_s3 + $0x18] sm:$0xff] %v1362_v18  ;;  %vm747_vm12 = vmor %vm745_vm11, %vm746_vm10 }
 0x140   :  { %v1116_v21 = vmul.f32 %v1874_v32, %v908_v13  ;;  %v1068_v23 = vsel %vm3746_vm8, %v3641_v12, %v1064_v43 }
 0x141   :  { %v743_v46 = vsub.f32 1.5, %v742_v25  ;;  %v1457_v16 = vpop.f32.mrf.mxu2  ;;  %v1132_v30 = vmul.f32 %v1876_v28, %v1068_v23 }
 0x142   :  { %1661 = vmatmul.msk.f32.gmra.mxu2 %vm172_vm0, %v1116_v21  ;;  %v1458_v41 = vadd.f32 %v3343_v49, %v1457_v16 }
 0x143   :  { %v744_v58 = vmul.f32 %v1828_v14, %v743_v46  ;;  %v1409_v7 = vpop.f32.mrf.mxu1  ;;  %v1505_v1 = vpop.f32.mrf.mxu3 }
 0x144   :  { %1629 = vmatmul.msk.f32.gmra.mxu0 %vm172_vm0, %v1084_v40  ;;  %1579 = vst [vmem:[%s3985_s3 + $0x118] sm:$0xff] %v1458_v41  ;;  %v1410_v54 = vadd.f32 %v3343_v49, %v1409_v7  ;;  %v1506_v12 = vadd.f32 %v3343_v49, %v1505_v1 }
 0x145   :  { %v748_v35 = vsel %vm747_vm12, %v1828_v14, %v744_v58 }
 0x146   :  { %1677 = vmatmul.msk.f32.gmra.mxu3 %vm172_vm0, %v1132_v30  ;;  %1563 = vst [vmem:[%s3985_s3 + $0x98] sm:$0xff] %v1410_v54  ;;  %v1100_v50 = vmul.f32 %v1877_v38, %v748_v35 }
 0x147   :  { %1595 = vst [vmem:[%s3985_s3 + $0x198] sm:$0xff] %v1506_v12 }
 0x148   :  { %1645 = vmatmul.msk.f32.gmra.mxu1 %vm172_vm0, %v1100_v50 }
 0x14a   :  { %v1460_v11 = vpop.f32.mrf.mxu2 }
 0x14b   :  { %v1461_v19 = vadd.f32 %v3343_v49, %v1460_v11  ;;  %v1364_v45 = vpop.f32.mrf.mxu0  ;;  %v1508_v20 = vpop.f32.mrf.mxu3 }
 0x14c   :  { %v1365_v5 = vadd.f32 %v3343_v49, %v1364_v45  ;;  %v1509_v27 = vadd.f32 %v3343_v49, %v1508_v20 }
 0x14d   :  { %1580 = vst [vmem:[%s3985_s3 + $0x120] sm:$0xff] %v1461_v19  ;;  %v1412_v0 = vpop.f32.mrf.mxu1 }
 0x14e   :  { %1548 = vst [vmem:[%s3985_s3 + $0x20] sm:$0xff] %v1365_v5  ;;  %v1413_v15 = vadd.f32 %v3343_v49, %v1412_v0 }
 0x14f   :  { %1596 = vst [vmem:[%s3985_s3 + $0x1a0] sm:$0xff] %v1509_v27 }
 0x150   :  { %1564 = vst [vmem:[%s3985_s3 + $0xa0] sm:$0xff] %v1413_v15 }
 0x155   :  { %v1463_v55 = vpop.f32.mrf.mxu2  ;;  %v1367_v24 = vpop.f32.mrf.mxu0 }
 0x156   :  { %v1464_v60 = vadd.f32 %v3343_v49, %v1463_v55  ;;  %v1368_v26 = vadd.f32 %v3343_v49, %v1367_v24  ;;  %v1415_v57 = vpop.f32.mrf.mxu1 }
 0x157   :  { %v1416_v8 = vadd.f32 %v3343_v49, %v1415_v57 }
 0x158   :  { %1581 = vst [vmem:[%s3985_s3 + $0x128] sm:$0xff] %v1464_v60 }
 0x159   :  { %1549 = vst [vmem:[%s3985_s3 + $0x28] sm:$0xff] %v1368_v26 }
 0x15a   :  { %1565 = vst [vmem:[%s3985_s3 + $0xa8] sm:$0xff] %v1416_v8 }
 0x15c   :  { %v1511_v48 = vpop.f32.mrf.mxu3 }
 0x15d   :  { %v1512_v52 = vadd.f32 %v3343_v49, %v1511_v48  ;;  %v1370_v34 = vpop.f32.mrf.mxu0 }
 0x15e   :  { %v1371_v6 = vadd.f32 %v3343_v49, %v1370_v34 }
 0x15f   :  { %1597 = vst [vmem:[%s3985_s3 + $0x1a8] sm:$0xff] %v1512_v52 }
 0x160   :  { %1550 = vst [vmem:[%s3985_s3 + $0x30] sm:$0xff] %v1371_v6 }
 0x162   :  { %v1466_v2 = vpop.f32.mrf.mxu2 }
 0x163   :  { %v1467_v61 = vadd.f32 %v3343_v49, %v1466_v2 }
 0x164   :  { %v1514_v29 = vpop.f32.mrf.mxu3 }
 0x165   :  { %v1515_v9 = vadd.f32 %v3343_v49, %v1514_v29  ;;  %v1418_v17 = vpop.f32.mrf.mxu1  ;;  %1582 = vst [vmem:[%s3985_s3 + $0x130] sm:$0xff] %v1467_v61 }
 0x166   :  { %v1419_v14 = vadd.f32 %v3343_v49, %v1418_v17 }
 0x167   :  { %1598 = vst [vmem:[%s3985_s3 + $0x1b0] sm:$0xff] %v1515_v9 }
 0x168   :  { %1566 = vst [vmem:[%s3985_s3 + $0xb0] sm:$0xff] %v1419_v14 }
 0x16c   :  { %v1469_v33 = vpop.f32.mrf.mxu2  ;;  %v1517_v36 = vpop.f32.mrf.mxu3 }
 0x16d   :  { %v1470_v51 = vadd.f32 %v3343_v49, %v1469_v33  ;;  %v1518_v39 = vadd.f32 %v3343_v49, %v1517_v36  ;;  %v1373_v59 = vpop.f32.mrf.mxu0 }
 0x16e   :  { %v1374_v56 = vadd.f32 %v3343_v49, %v1373_v59  ;;  %v1421_v42 = vpop.f32.mrf.mxu1 }
 0x16f   :  { %1583 = vst [vmem:[%s3985_s3 + $0x138] sm:$0xff] %v1470_v51  ;;  %v1422_v22 = vadd.f32 %v3343_v49, %v1421_v42 }
 0x170   :  { %1599 = vst [vmem:[%s3985_s3 + $0x1b8] sm:$0xff] %v1518_v39 }
 0x171   :  { %1551 = vst [vmem:[%s3985_s3 + $0x38] sm:$0xff] %v1374_v56 }
 0x172   :  { %1567 = vst [vmem:[%s3985_s3 + $0xb8] sm:$0xff] %v1422_v22 }
 0x174   :  { %v1472_v53 = vpop.f32.mrf.mxu2 }
 0x175   :  { %v1473_v63 = vadd.f32 %v3343_v49, %v1472_v53  ;;  %v1376_v4 = vpop.f32.mrf.mxu0 }
 0x176   :  { %v1377_v44 = vadd.f32 %v3343_v49, %v1376_v4  ;;  %v1424_v47 = vpop.f32.mrf.mxu1 }
 0x177   :  { %1584 = vst [vmem:[%s3985_s3 + $0x140] sm:$0xff] %v1473_v63  ;;  %v1425_v18 = vadd.f32 %v3343_v49, %v1424_v47 }
 0x178   :  { %1552 = vst [vmem:[%s3985_s3 + $0x40] sm:$0xff] %v1377_v44 }
 0x179   :  { %1568 = vst [vmem:[%s3985_s3 + $0xc0] sm:$0xff] %v1425_v18 }
 0x17d   :  { %v1520_v62 = vpop.f32.mrf.mxu3  ;;  %v1379_v43 = vpop.f32.mrf.mxu0 }
 0x17e   :  { %v1521_v31 = vadd.f32 %v3343_v49, %v1520_v62  ;;  %v1380_v3 = vadd.f32 %v3343_v49, %v1379_v43 }
 0x180   :  { %1600 = vst [vmem:[%s3985_s3 + $0x1c0] sm:$0xff] %v1521_v31 }
 0x181   :  { %1553 = vst [vmem:[%s3985_s3 + $0x48] sm:$0xff] %v1380_v3 }
 0x184   :  { %v1475_v37 = vpop.f32.mrf.mxu2 }
 0x185   :  { %v1476_v13 = vadd.f32 %v3343_v49, %v1475_v37  ;;  %v1427_v25 = vpop.f32.mrf.mxu1 }
 0x186   :  { %v1523_v32 = vpop.f32.mrf.mxu3  ;;  %v1428_v21 = vadd.f32 %v3343_v49, %v1427_v25 }
 0x187   :  { %1585 = vst [vmem:[%s3985_s3 + $0x148] sm:$0xff] %v1476_v13  ;;  %v1524_v23 = vadd.f32 %v3343_v49, %v1523_v32 }
 0x188   :  { %1569 = vst [vmem:[%s3985_s3 + $0xc8] sm:$0xff] %v1428_v21 }
 0x189   :  { %1601 = vst [vmem:[%s3985_s3 + $0x1c8] sm:$0xff] %v1524_v23 }
 0x18c   :  { %v1382_v10 = vpop.f32.mrf.mxu0  ;;  %v1478_v40 = vpop.f32.mrf.mxu2 }
 0x18d   :  { %v1383_v46 = vadd.f32 %v3343_v49, %v1382_v10  ;;  %v1479_v16 = vadd.f32 %v3343_v49, %v1478_v40  ;;  %v1430_v28 = vpop.f32.mrf.mxu1 }
 0x18e   :  { %v1526_v30 = vpop.f32.mrf.mxu3  ;;  %v1431_v41 = vadd.f32 %v3343_v49, %v1430_v28 }
 0x18f   :  { %1554 = vst [vmem:[%s3985_s3 + $0x50] sm:$0xff] %v1383_v46  ;;  %v1527_v58 = vadd.f32 %v3343_v49, %v1526_v30 }
 0x190   :  { %1586 = vst [vmem:[%s3985_s3 + $0x150] sm:$0xff] %v1479_v16 }
 0x191   :  { %1570 = vst [vmem:[%s3985_s3 + $0xd0] sm:$0xff] %v1431_v41 }
 0x192   :  { %1602 = vst [vmem:[%s3985_s3 + $0x1d0] sm:$0xff] %v1527_v58 }
 0x195   :  { %v1481_v1 = vpop.f32.mrf.mxu2 }
 0x196   :  { %v1385_v7 = vpop.f32.mrf.mxu0  ;;  %v1482_v12 = vadd.f32 %v3343_v49, %v1481_v1 }
 0x197   :  { %v1386_v54 = vadd.f32 %v3343_v49, %v1385_v7  ;;  %v1433_v35 = vpop.f32.mrf.mxu1 }
 0x198   :  { %1587 = vst [vmem:[%s3985_s3 + $0x158] sm:$0xff] %v1482_v12  ;;  %v1434_v38 = vadd.f32 %v3343_v49, %v1433_v35 }
 0x199   :  { %1555 = vst [vmem:[%s3985_s3 + $0x58] sm:$0xff] %v1386_v54 }
 0x19a   :  { %1571 = vst [vmem:[%s3985_s3 + $0xd8] sm:$0xff] %v1434_v38 }
 0x19e   :  { %v1388_v50 = vpop.f32.mrf.mxu0  ;;  %v1529_v11 = vpop.f32.mrf.mxu3 }
 0x19f   :  { %v1389_v19 = vadd.f32 %v3343_v49, %v1388_v50  ;;  %v1530_v45 = vadd.f32 %v3343_v49, %v1529_v11 }
 0x1a1   :  { %1556 = vst [vmem:[%s3985_s3 + $0x60] sm:$0xff] %v1389_v19 }
 0x1a2   :  { %1603 = vst [vmem:[%s3985_s3 + $0x1d8] sm:$0xff] %v1530_v45 }
 0x1a5   :  { %v1484_v20 = vpop.f32.mrf.mxu2 }
 0x1a6   :  { %v1485_v5 = vadd.f32 %v3343_v49, %v1484_v20 }
 0x1a7   :  { %v1436_v27 = vpop.f32.mrf.mxu1  ;;  %v1532_v0 = vpop.f32.mrf.mxu3 }
 0x1a8   :  { %v1437_v15 = vadd.f32 %v3343_v49, %v1436_v27  ;;  %1588 = vst [vmem:[%s3985_s3 + $0x160] sm:$0xff] %v1485_v5  ;;  %v1533_v55 = vadd.f32 %v3343_v49, %v1532_v0 }
 0x1aa   :  { %1572 = vst [vmem:[%s3985_s3 + $0xe0] sm:$0xff] %v1437_v15 }
 0x1ab   :  { %1604 = vst [vmem:[%s3985_s3 + $0x1e0] sm:$0xff] %v1533_v55 }
 0x1ae   :  { %v1487_v24 = vpop.f32.mrf.mxu2 }
 0x1af   :  { %v1488_v60 = vadd.f32 %v3343_v49, %v1487_v24  ;;  %v1535_v26 = vpop.f32.mrf.mxu3 }
 0x1b0   :  { %v1536_v57 = vadd.f32 %v3343_v49, %v1535_v26 }
 0x1b1   :  { %1589 = vst [vmem:[%s3985_s3 + $0x168] sm:$0xff] %v1488_v60  ;;  %v1391_v8 = vpop.f32.mrf.mxu0 }
 0x1b2   :  { %v1392_v48 = vadd.f32 %v3343_v49, %v1391_v8  ;;  %v1439_v52 = vpop.f32.mrf.mxu1  ;;  %1605 = vst [vmem:[%s3985_s3 + $0x1e8] sm:$0xff] %v1536_v57 }
 0x1b3   :  { %v1440_v34 = vadd.f32 %v3343_v49, %v1439_v52 }
 0x1b4   :  { %1557 = vst [vmem:[%s3985_s3 + $0x68] sm:$0xff] %v1392_v48 }
 0x1b5   :  { %1573 = vst [vmem:[%s3985_s3 + $0xe8] sm:$0xff] %v1440_v34 }
 0x1b9   :  { %v1490_v6 = vpop.f32.mrf.mxu2  ;;  %v1394_v61 = vpop.f32.mrf.mxu0 }
 0x1ba   :  { %v1491_v2 = vadd.f32 %v3343_v49, %v1490_v6  ;;  %v1395_v29 = vadd.f32 %v3343_v49, %v1394_v61  ;;  %v1442_v9 = vpop.f32.mrf.mxu1 }
 0x1bb   :  { %v1443_v17 = vadd.f32 %v3343_v49, %v1442_v9 }
 0x1bc   :  { %1590 = vst [vmem:[%s3985_s3 + $0x170] sm:$0xff] %v1491_v2 }
 0x1bd   :  { %1558 = vst [vmem:[%s3985_s3 + $0x70] sm:$0xff] %v1395_v29 }
 0x1be   :  { %1574 = vst [vmem:[%s3985_s3 + $0xf0] sm:$0xff] %v1443_v17 }
 0x1c1   :  { %v1538_v14 = vpop.f32.mrf.mxu3  ;;  %v1397_v33 = vpop.f32.mrf.mxu0 }
 0x1c2   :  { %v1539_v36 = vadd.f32 %v3343_v49, %v1538_v14  ;;  %v1398_v51 = vadd.f32 %v3343_v49, %v1397_v33 }
 0x1c4   :  { %1606 = vst [vmem:[%s3985_s3 + $0x1f0] sm:$0xff] %v1539_v36 }
 0x1c5   :  { %v1493_v39 = vpop.f32.mrf.mxu2  ;;  %1559 = vst [vmem:[%s3985_s3 + $0x78] sm:$0xff] %v1398_v51  ;;  %v1445_v56 = vpop.f32.mrf.mxu1 }
 0x1c6   :  { %v1494_v59 = vadd.f32 %v3343_v49, %v1493_v39  ;;  %v1446_v42 = vadd.f32 %v3343_v49, %v1445_v56 }
 0x1c8   :  { %1591 = vst [vmem:[%s3985_s3 + $0x178] sm:$0xff] %v1494_v59 }
 0x1c9   :  { %1575 = vst [vmem:[%s3985_s3 + $0xf8] sm:$0xff] %v1446_v42  ;;  %v1541_v22 = vpop.f32.mrf.mxu3 }
 0x1ca   :  { %v1542_v53 = vadd.f32 %v3343_v49, %v1541_v22 }
 0x1cc   :  { %1607 = vst [vmem:[%s3985_s3 + $0x1f8] sm:$0xff] %v1542_v53 }
 0x1cd   :  { %1612 = vsyncpa [#allocation3], 1 }
 0x1ce   :  { %1613 = vsyncpa [#allocation5], 1 }

// kernel: slmrec_forward.6
= control target key start
LH: loop header
LB: loop body
LE: loop exit
PB: predicated region body
PF: predicated region fallthrough
CT: control target
= control target key end

     0   :  { %s4158_s15 = smov 0   ;;  %s4160_s16 = smov 0   ;;  %s5424_s0 = inlined_call_operand.vmem [shape: bf16[1024,1024], index: 0, kind: input, shape index: {}]   ;;  %s5425_s1 = inlined_call_operand.vmem [shape: bf16[1024,128], index: 1, kind: input, shape index: {}]   ;;  %s5426_s2 = inlined_call_operand.vmem [shape: f32[1024,128], index: 2, kind: input, shape index: {}, may-alias: {2,4}]   ;;  %s5427_s3 = inlined_call_operand.vmem [shape: bf16[1024,128], index: 3, kind: output, shape index: {0}]   ;;  %s5428_s4 = inlined_call_operand.vmem [shape: f32[1024,128], index: 4, kind: output, shape index: {1}, may-alias: {2,4}]  }
   0x1   :  { %s4162_s17 = smov 0   ;;  %s4164_s18 = smov 0  }
   0x2   :  { %s4166_s19 = smov 0   ;;  %s4168_s20 = smov 0  }
   0x3   :  { %s4170_s21 = smov 0  }
   0x4 LB: > { %s24_s22 = sadd.s32 1, %s4123_s19  ;;  %s27_s23 = sadd.s32 1, %s4127_s20  ;;  %s4131_s21 = sphi %s4170_s21, %s15_s21   ;;  %s4127_s20 = sphi %s4168_s20, %s5434_s20   ;;  %s4123_s19 = sphi %s4166_s19, %s5433_s19   ;;  %s4119_s18 = sphi %s4164_s18, %s5432_s18   ;;  %s4115_s17 = sphi %s4162_s17, %s5431_s17   ;;  %s4111_s16 = sphi %s4160_s16, %s5430_s16   ;;  %s4107_s15 = sphi %s4158_s15, %s5429_s15  }
   0x5   : > { %p25_p0 = scmp.ge.s32.totalorder %s24_s22, 2  ;;  %p43_p1 = scmp.ne.s32.totalorder %s4111_s16, %s4107_s15 }
   0x6   : > { %p44_p2 = scmp.eq.s32.totalorder %s4131_s21, 0  ;;  %s36_s27 = sadd.s32 1, %s4111_s16 }
   0x7   : > { %s5436_s22 = smov (%p25_p0, %s24_s22), 0  ;;  %s5438_s23 = smov (!%p25_p0, %s27_s23), %s4127_s20 }
   0x8   : > { %p45_p3 = por %p44_p2, %p43_p1  ;;  %p29_p4 = scmp.ge.s32.totalorder %s5438_s23, 2 }
   0x9   : > { %s32_s24 = ssub.s32 %s4123_s19, %s5436_s22  ;;  %p3009_p6 = scmp.ge.s32.totalorder %s4131_s21, 4 }
   0xa   : > { %s5440_s23 = smov (%p29_p4, %s5438_s23), 0 }
   0xb   : > { %s31_s25 = ssub.s32 %s4127_s20, %s5440_s23  ;;  %171 = sbr.rel (%p3009_p6) target bundleno = 151 (0x97), region = 20 }
   0xc   : > { %s33_s26 = sor.u32 %s32_s24, %s31_s25 }
   0xd   : > { %p34_p5 = scmp.eq.s32.totalorder %s33_s26, 0 }
   0xf   : > { %s4209_s28 = scalar_select %p34_p5, %s4111_s16, %s36_s27  }
  0x10   : > { %174 = sbr.rel (!%p45_p3) target bundleno = 151 (0x97), region = 24  ;;  %s176_s29 = sand.u32 (%p45_p3), 1, %s4111_s16  }
  0x11   : > { %s3012_s30 = sshll.u32 (%p45_p3), %s4123_s19, 2  ;;  %s3010_s5 = sshll.u32 (%p45_p3), %s176_s29, 10 }
  0x12   : > { %s3669_s6 = sshll.u32 (%p45_p3), %s4127_s20, 9  ;;  %s4223_s12 = scalar_lea.vmem (%p45_p3), [#allocation2], %s3010_s5 }
  0x13   : > { %s182_s7 = sadd.s32 (%p45_p3), %s3669_s6, %s3012_s30 }
  0x14   : > { %s3014_s8 = sshll.u32 (%p45_p3), %s182_s7, 2 }
  0x15   : > { %s4218_s11 = scalar_lea.vmem %s5424_s0, %s3014_s8 }
  0x16   : > { %v197_v0 = vld [vmem:[%s4218_s11] sm:$0xff]  ;;  %v199_v1 = vld [vmem:[%s4218_s11 + $0x8] sm:$0xff] }
  0x17   : > { %v201_v2 = vld [vmem:[%s4218_s11 + $0x20] sm:$0xff]  ;;  %198 = vst [vmem:[%s4223_s12] sm:$0xff] %v197_v0  ;;  %v203_v3 = vld [vmem:[%s4218_s11 + $0x28] sm:$0xff] }
  0x18   : > { %200 = vst [vmem:[%s4223_s12 + $0x8] sm:$0xff] %v199_v1  ;;  %v205_v4 = vld [vmem:[%s4218_s11 + $0x40] sm:$0xff]  ;;  %v207_v5 = vld [vmem:[%s4218_s11 + $0x48] sm:$0xff] }
  0x19   : > { %202 = vst [vmem:[%s4223_s12 + $0x10] sm:$0xff] %v201_v2  ;;  %v209_v6 = vld [vmem:[%s4218_s11 + $0x60] sm:$0xff]  ;;  %v211_v7 = vld [vmem:[%s4218_s11 + $0x68] sm:$0xff] }
  0x1a   : > { %204 = vst [vmem:[%s4223_s12 + $0x18] sm:$0xff] %v203_v3  ;;  %v213_v8 = vld [vmem:[%s4218_s11 + $0x80] sm:$0xff]  ;;  %v215_v9 = vld [vmem:[%s4218_s11 + $0x88] sm:$0xff] }
  0x1b   : > { %206 = vst [vmem:[%s4223_s12 + $0x20] sm:$0xff] %v205_v4  ;;  %v217_v10 = vld [vmem:[%s4218_s11 + $0xa0] sm:$0xff]  ;;  %v219_v11 = vld [vmem:[%s4218_s11 + $0xa8] sm:$0xff] }
  0x1c   : > { %208 = vst [vmem:[%s4223_s12 + $0x28] sm:$0xff] %v207_v5  ;;  %v221_v12 = vld [vmem:[%s4218_s11 + $0xc0] sm:$0xff]  ;;  %v223_v13 = vld [vmem:[%s4218_s11 + $0xc8] sm:$0xff] }
  0x1d   : > { %210 = vst [vmem:[%s4223_s12 + $0x30] sm:$0xff] %v209_v6  ;;  %v225_v14 = vld [vmem:[%s4218_s11 + $0xe0] sm:$0xff]  ;;  %v227_v15 = vld [vmem:[%s4218_s11 + $0xe8] sm:$0xff] }
  0x1e   : > { %212 = vst [vmem:[%s4223_s12 + $0x38] sm:$0xff] %v211_v7  ;;  %v229_v16 = vld [vmem:[%s4218_s11 + $0x100] sm:$0xff]  ;;  %v231_v17 = vld [vmem:[%s4218_s11 + $0x108] sm:$0xff] }
  0x1f   : > { %214 = vst [vmem:[%s4223_s12 + $0x40] sm:$0xff] %v213_v8  ;;  %v233_v18 = vld [vmem:[%s4218_s11 + $0x120] sm:$0xff]  ;;  %v235_v19 = vld [vmem:[%s4218_s11 + $0x128] sm:$0xff] }
  0x20   : > { %216 = vst [vmem:[%s4223_s12 + $0x48] sm:$0xff] %v215_v9  ;;  %v237_v20 = vld [vmem:[%s4218_s11 + $0x140] sm:$0xff]  ;;  %v239_v21 = vld [vmem:[%s4218_s11 + $0x148] sm:$0xff] }
  0x21   : > { %218 = vst [vmem:[%s4223_s12 + $0x50] sm:$0xff] %v217_v10  ;;  %v241_v22 = vld [vmem:[%s4218_s11 + $0x160] sm:$0xff]  ;;  %v243_v23 = vld [vmem:[%s4218_s11 + $0x168] sm:$0xff] }
  0x22   : > { %220 = vst [vmem:[%s4223_s12 + $0x58] sm:$0xff] %v219_v11  ;;  %v245_v24 = vld [vmem:[%s4218_s11 + $0x180] sm:$0xff]  ;;  %v247_v25 = vld [vmem:[%s4218_s11 + $0x188] sm:$0xff] }
  0x23   : > { %222 = vst [vmem:[%s4223_s12 + $0x60] sm:$0xff] %v221_v12  ;;  %v249_v26 = vld [vmem:[%s4218_s11 + $0x1a0] sm:$0xff]  ;;  %v251_v27 = vld [vmem:[%s4218_s11 + $0x1a8] sm:$0xff] }
  0x24   : > { %224 = vst [vmem:[%s4223_s12 + $0x68] sm:$0xff] %v223_v13  ;;  %v253_v28 = vld [vmem:[%s4218_s11 + $0x1c0] sm:$0xff]  ;;  %v255_v29 = vld [vmem:[%s4218_s11 + $0x1c8] sm:$0xff] }
  0x25   : > { %226 = vst [vmem:[%s4223_s12 + $0x70] sm:$0xff] %v225_v14  ;;  %v257_v30 = vld [vmem:[%s4218_s11 + $0x1e0] sm:$0xff]  ;;  %v259_v31 = vld [vmem:[%s4218_s11 + $0x1e8] sm:$0xff] }
  0x26   : > { %228 = vst [vmem:[%s4223_s12 + $0x78] sm:$0xff] %v227_v15  ;;  %v261_v32 = vld [vmem:[%s4218_s11 + $0x200] sm:$0xff]  ;;  %v263_v33 = vld [vmem:[%s4218_s11 + $0x208] sm:$0xff] }
  0x27   : > { %230 = vst [vmem:[%s4223_s12 + $0x80] sm:$0xff] %v229_v16  ;;  %v265_v34 = vld [vmem:[%s4218_s11 + $0x220] sm:$0xff]  ;;  %v267_v35 = vld [vmem:[%s4218_s11 + $0x228] sm:$0xff] }
  0x28   : > { %232 = vst [vmem:[%s4223_s12 + $0x88] sm:$0xff] %v231_v17  ;;  %v269_v36 = vld [vmem:[%s4218_s11 + $0x240] sm:$0xff]  ;;  %v271_v37 = vld [vmem:[%s4218_s11 + $0x248] sm:$0xff] }
  0x29   : > { %234 = vst [vmem:[%s4223_s12 + $0x90] sm:$0xff] %v233_v18  ;;  %v273_v38 = vld [vmem:[%s4218_s11 + $0x260] sm:$0xff]  ;;  %v275_v39 = vld [vmem:[%s4218_s11 + $0x268] sm:$0xff] }
  0x2a   : > { %236 = vst [vmem:[%s4223_s12 + $0x98] sm:$0xff] %v235_v19  ;;  %v277_v40 = vld [vmem:[%s4218_s11 + $0x280] sm:$0xff]  ;;  %v279_v41 = vld [vmem:[%s4218_s11 + $0x288] sm:$0xff] }
  0x2b   : > { %238 = vst [vmem:[%s4223_s12 + $0xa0] sm:$0xff] %v237_v20  ;;  %v281_v42 = vld [vmem:[%s4218_s11 + $0x2a0] sm:$0xff]  ;;  %v283_v43 = vld [vmem:[%s4218_s11 + $0x2a8] sm:$0xff] }
  0x2c   : > { %240 = vst [vmem:[%s4223_s12 + $0xa8] sm:$0xff] %v239_v21  ;;  %v285_v44 = vld [vmem:[%s4218_s11 + $0x2c0] sm:$0xff]  ;;  %v287_v45 = vld [vmem:[%s4218_s11 + $0x2c8] sm:$0xff] }
  0x2d   : > { %242 = vst [vmem:[%s4223_s12 + $0xb0] sm:$0xff] %v241_v22  ;;  %v289_v46 = vld [vmem:[%s4218_s11 + $0x2e0] sm:$0xff]  ;;  %v291_v47 = vld [vmem:[%s4218_s11 + $0x2e8] sm:$0xff] }
  0x2e   : > { %244 = vst [vmem:[%s4223_s12 + $0xb8] sm:$0xff] %v243_v23  ;;  %v293_v48 = vld [vmem:[%s4218_s11 + $0x300] sm:$0xff]  ;;  %v295_v49 = vld [vmem:[%s4218_s11 + $0x308] sm:$0xff] }
  0x2f   : > { %246 = vst [vmem:[%s4223_s12 + $0xc0] sm:$0xff] %v245_v24  ;;  %v297_v50 = vld [vmem:[%s4218_s11 + $0x320] sm:$0xff]  ;;  %v299_v51 = vld [vmem:[%s4218_s11 + $0x328] sm:$0xff] }
  0x30   : > { %248 = vst [vmem:[%s4223_s12 + $0xc8] sm:$0xff] %v247_v25  ;;  %v301_v52 = vld [vmem:[%s4218_s11 + $0x340] sm:$0xff]  ;;  %v303_v53 = vld [vmem:[%s4218_s11 + $0x348] sm:$0xff] }
  0x31   : > { %250 = vst [vmem:[%s4223_s12 + $0xd0] sm:$0xff] %v249_v26  ;;  %v305_v54 = vld [vmem:[%s4218_s11 + $0x360] sm:$0xff]  ;;  %v307_v55 = vld [vmem:[%s4218_s11 + $0x368] sm:$0xff] }
  0x32   : > { %252 = vst [vmem:[%s4223_s12 + $0xd8] sm:$0xff] %v251_v27  ;;  %v309_v56 = vld [vmem:[%s4218_s11 + $0x380] sm:$0xff]  ;;  %v311_v57 = vld [vmem:[%s4218_s11 + $0x388] sm:$0xff] }
  0x33   : > { %254 = vst [vmem:[%s4223_s12 + $0xe0] sm:$0xff] %v253_v28  ;;  %v313_v58 = vld [vmem:[%s4218_s11 + $0x3a0] sm:$0xff]  ;;  %v315_v59 = vld [vmem:[%s4218_s11 + $0x3a8] sm:$0xff] }
  0x34   : > { %256 = vst [vmem:[%s4223_s12 + $0xe8] sm:$0xff] %v255_v29  ;;  %v317_v60 = vld [vmem:[%s4218_s11 + $0x3c0] sm:$0xff]  ;;  %v319_v61 = vld [vmem:[%s4218_s11 + $0x3c8] sm:$0xff] }
  0x35   : > { %258 = vst [vmem:[%s4223_s12 + $0xf0] sm:$0xff] %v257_v30  ;;  %v321_v62 = vld [vmem:[%s4218_s11 + $0x3e0] sm:$0xff]  ;;  %v323_v63 = vld [vmem:[%s4218_s11 + $0x3e8] sm:$0xff] }
  0x36   : > { %260 = vst [vmem:[%s4223_s12 + $0xf8] sm:$0xff] %v259_v31  ;;  %v325_v0 = vld [vmem:[%s4218_s11 + $0x400] sm:$0xff]  ;;  %v327_v1 = vld [vmem:[%s4218_s11 + $0x408] sm:$0xff] }
  0x37   : > { %262 = vst [vmem:[%s4223_s12 + $0x100] sm:$0xff] %v261_v32  ;;  %v329_v2 = vld [vmem:[%s4218_s11 + $0x420] sm:$0xff]  ;;  %v331_v3 = vld [vmem:[%s4218_s11 + $0x428] sm:$0xff] }
  0x38   : > { %264 = vst [vmem:[%s4223_s12 + $0x108] sm:$0xff] %v263_v33  ;;  %v333_v4 = vld [vmem:[%s4218_s11 + $0x440] sm:$0xff]  ;;  %v335_v5 = vld [vmem:[%s4218_s11 + $0x448] sm:$0xff] }
  0x39   : > { %266 = vst [vmem:[%s4223_s12 + $0x110] sm:$0xff] %v265_v34  ;;  %v337_v6 = vld [vmem:[%s4218_s11 + $0x460] sm:$0xff]  ;;  %v339_v7 = vld [vmem:[%s4218_s11 + $0x468] sm:$0xff] }
  0x3a   : > { %268 = vst [vmem:[%s4223_s12 + $0x118] sm:$0xff] %v267_v35  ;;  %v341_v8 = vld [vmem:[%s4218_s11 + $0x480] sm:$0xff]  ;;  %v343_v9 = vld [vmem:[%s4218_s11 + $0x488] sm:$0xff] }
  0x3b   : > { %270 = vst [vmem:[%s4223_s12 + $0x120] sm:$0xff] %v269_v36  ;;  %v345_v10 = vld [vmem:[%s4218_s11 + $0x4a0] sm:$0xff]  ;;  %v347_v11 = vld [vmem:[%s4218_s11 + $0x4a8] sm:$0xff] }
  0x3c   : > { %272 = vst [vmem:[%s4223_s12 + $0x128] sm:$0xff] %v271_v37  ;;  %v349_v12 = vld [vmem:[%s4218_s11 + $0x4c0] sm:$0xff]  ;;  %v351_v13 = vld [vmem:[%s4218_s11 + $0x4c8] sm:$0xff] }
  0x3d   : > { %274 = vst [vmem:[%s4223_s12 + $0x130] sm:$0xff] %v273_v38  ;;  %v353_v14 = vld [vmem:[%s4218_s11 + $0x4e0] sm:$0xff]  ;;  %v355_v15 = vld [vmem:[%s4218_s11 + $0x4e8] sm:$0xff] }
  0x3e   : > { %276 = vst [vmem:[%s4223_s12 + $0x138] sm:$0xff] %v275_v39  ;;  %v357_v16 = vld [vmem:[%s4218_s11 + $0x500] sm:$0xff]  ;;  %v359_v17 = vld [vmem:[%s4218_s11 + $0x508] sm:$0xff] }
  0x3f   : > { %278 = vst [vmem:[%s4223_s12 + $0x140] sm:$0xff] %v277_v40  ;;  %v361_v18 = vld [vmem:[%s4218_s11 + $0x520] sm:$0xff]  ;;  %v363_v19 = vld [vmem:[%s4218_s11 + $0x528] sm:$0xff] }
  0x40   : > { %280 = vst [vmem:[%s4223_s12 + $0x148] sm:$0xff] %v279_v41  ;;  %v365_v20 = vld [vmem:[%s4218_s11 + $0x540] sm:$0xff]  ;;  %v367_v21 = vld [vmem:[%s4218_s11 + $0x548] sm:$0xff] }
  0x41   : > { %282 = vst [vmem:[%s4223_s12 + $0x150] sm:$0xff] %v281_v42  ;;  %v369_v22 = vld [vmem:[%s4218_s11 + $0x560] sm:$0xff]  ;;  %v371_v23 = vld [vmem:[%s4218_s11 + $0x568] sm:$0xff] }
  0x42   : > { %284 = vst [vmem:[%s4223_s12 + $0x158] sm:$0xff] %v283_v43  ;;  %v373_v24 = vld [vmem:[%s4218_s11 + $0x580] sm:$0xff]  ;;  %v375_v25 = vld [vmem:[%s4218_s11 + $0x588] sm:$0xff] }
  0x43   : > { %286 = vst [vmem:[%s4223_s12 + $0x160] sm:$0xff] %v285_v44  ;;  %v377_v26 = vld [vmem:[%s4218_s11 + $0x5a0] sm:$0xff]  ;;  %v379_v27 = vld [vmem:[%s4218_s11 + $0x5a8] sm:$0xff] }
  0x44   : > { %288 = vst [vmem:[%s4223_s12 + $0x168] sm:$0xff] %v287_v45  ;;  %v381_v28 = vld [vmem:[%s4218_s11 + $0x5c0] sm:$0xff]  ;;  %v383_v29 = vld [vmem:[%s4218_s11 + $0x5c8] sm:$0xff] }
  0x45   : > { %290 = vst [vmem:[%s4223_s12 + $0x170] sm:$0xff] %v289_v46  ;;  %v385_v30 = vld [vmem:[%s4218_s11 + $0x5e0] sm:$0xff]  ;;  %v387_v31 = vld [vmem:[%s4218_s11 + $0x5e8] sm:$0xff] }
  0x46   : > { %292 = vst [vmem:[%s4223_s12 + $0x178] sm:$0xff] %v291_v47  ;;  %v389_v32 = vld [vmem:[%s4218_s11 + $0x600] sm:$0xff]  ;;  %v391_v33 = vld [vmem:[%s4218_s11 + $0x608] sm:$0xff] }
  0x47   : > { %294 = vst [vmem:[%s4223_s12 + $0x180] sm:$0xff] %v293_v48  ;;  %v393_v34 = vld [vmem:[%s4218_s11 + $0x620] sm:$0xff]  ;;  %v395_v35 = vld [vmem:[%s4218_s11 + $0x628] sm:$0xff] }
  0x48   : > { %296 = vst [vmem:[%s4223_s12 + $0x188] sm:$0xff] %v295_v49  ;;  %v397_v36 = vld [vmem:[%s4218_s11 + $0x640] sm:$0xff]  ;;  %v399_v37 = vld [vmem:[%s4218_s11 + $0x648] sm:$0xff] }
  0x49   : > { %298 = vst [vmem:[%s4223_s12 + $0x190] sm:$0xff] %v297_v50  ;;  %v401_v38 = vld [vmem:[%s4218_s11 + $0x660] sm:$0xff]  ;;  %v403_v39 = vld [vmem:[%s4218_s11 + $0x668] sm:$0xff] }
  0x4a   : > { %300 = vst [vmem:[%s4223_s12 + $0x198] sm:$0xff] %v299_v51  ;;  %v405_v40 = vld [vmem:[%s4218_s11 + $0x680] sm:$0xff]  ;;  %v407_v41 = vld [vmem:[%s4218_s11 + $0x688] sm:$0xff] }
  0x4b   : > { %302 = vst [vmem:[%s4223_s12 + $0x1a0] sm:$0xff] %v301_v52  ;;  %v409_v42 = vld [vmem:[%s4218_s11 + $0x6a0] sm:$0xff]  ;;  %v411_v43 = vld [vmem:[%s4218_s11 + $0x6a8] sm:$0xff] }
  0x4c   : > { %304 = vst [vmem:[%s4223_s12 + $0x1a8] sm:$0xff] %v303_v53  ;;  %v413_v44 = vld [vmem:[%s4218_s11 + $0x6c0] sm:$0xff]  ;;  %v415_v45 = vld [vmem:[%s4218_s11 + $0x6c8] sm:$0xff] }
  0x4d   : > { %306 = vst [vmem:[%s4223_s12 + $0x1b0] sm:$0xff] %v305_v54  ;;  %v417_v46 = vld [vmem:[%s4218_s11 + $0x6e0] sm:$0xff]  ;;  %v419_v47 = vld [vmem:[%s4218_s11 + $0x6e8] sm:$0xff] }
  0x4e   : > { %308 = vst [vmem:[%s4223_s12 + $0x1b8] sm:$0xff] %v307_v55  ;;  %v421_v48 = vld [vmem:[%s4218_s11 + $0x700] sm:$0xff]  ;;  %v423_v49 = vld [vmem:[%s4218_s11 + $0x708] sm:$0xff] }
  0x4f   : > { %310 = vst [vmem:[%s4223_s12 + $0x1c0] sm:$0xff] %v309_v56  ;;  %v425_v50 = vld [vmem:[%s4218_s11 + $0x720] sm:$0xff]  ;;  %v427_v51 = vld [vmem:[%s4218_s11 + $0x728] sm:$0xff] }
  0x50   : > { %312 = vst [vmem:[%s4223_s12 + $0x1c8] sm:$0xff] %v311_v57  ;;  %v429_v52 = vld [vmem:[%s4218_s11 + $0x740] sm:$0xff]  ;;  %v431_v53 = vld [vmem:[%s4218_s11 + $0x748] sm:$0xff] }
  0x51   : > { %314 = vst [vmem:[%s4223_s12 + $0x1d0] sm:$0xff] %v313_v58  ;;  %v433_v54 = vld [vmem:[%s4218_s11 + $0x760] sm:$0xff]  ;;  %v435_v55 = vld [vmem:[%s4218_s11 + $0x768] sm:$0xff] }
  0x52   : > { %316 = vst [vmem:[%s4223_s12 + $0x1d8] sm:$0xff] %v315_v59  ;;  %v437_v56 = vld [vmem:[%s4218_s11 + $0x780] sm:$0xff]  ;;  %v439_v57 = vld [vmem:[%s4218_s11 + $0x788] sm:$0xff] }
  0x53   : > { %318 = vst [vmem:[%s4223_s12 + $0x1e0] sm:$0xff] %v317_v60  ;;  %v441_v58 = vld [vmem:[%s4218_s11 + $0x7a0] sm:$0xff]  ;;  %v443_v59 = vld [vmem:[%s4218_s11 + $0x7a8] sm:$0xff] }
  0x54   : > { %320 = vst [vmem:[%s4223_s12 + $0x1e8] sm:$0xff] %v319_v61  ;;  %v445_v60 = vld [vmem:[%s4218_s11 + $0x7c0] sm:$0xff]  ;;  %v447_v61 = vld [vmem:[%s4218_s11 + $0x7c8] sm:$0xff] }
  0x55   : > { %322 = vst [vmem:[%s4223_s12 + $0x1f0] sm:$0xff] %v321_v62  ;;  %v449_v62 = vld [vmem:[%s4218_s11 + $0x7e0] sm:$0xff] }
  0x56   : > { %324 = vst [vmem:[%s4223_s12 + $0x1f8] sm:$0xff] %v323_v63  ;;  %v451_v63 = vld [vmem:[%s4218_s11 + $0x7e8] sm:$0xff] }
  0x57   : > { %326 = vst [vmem:[%s4223_s12 + $0x200] sm:$0xff] %v325_v0 }
  0x58   : > { %328 = vst [vmem:[%s4223_s12 + $0x208] sm:$0xff] %v327_v1 }
  0x59   : > { %330 = vst [vmem:[%s4223_s12 + $0x210] sm:$0xff] %v329_v2 }
  0x5a   : > { %332 = vst [vmem:[%s4223_s12 + $0x218] sm:$0xff] %v331_v3 }
  0x5b   : > { %334 = vst [vmem:[%s4223_s12 + $0x220] sm:$0xff] %v333_v4 }
  0x5c   : > { %336 = vst [vmem:[%s4223_s12 + $0x228] sm:$0xff] %v335_v5 }
  0x5d   : > { %338 = vst [vmem:[%s4223_s12 + $0x230] sm:$0xff] %v337_v6 }
  0x5e   : > { %340 = vst [vmem:[%s4223_s12 + $0x238] sm:$0xff] %v339_v7 }
  0x5f   : > { %342 = vst [vmem:[%s4223_s12 + $0x240] sm:$0xff] %v341_v8 }
  0x60   : > { %344 = vst [vmem:[%s4223_s12 + $0x248] sm:$0xff] %v343_v9 }
  0x61   : > { %346 = vst [vmem:[%s4223_s12 + $0x250] sm:$0xff] %v345_v10 }
  0x62   : > { %348 = vst [vmem:[%s4223_s12 + $0x258] sm:$0xff] %v347_v11 }
  0x63   : > { %350 = vst [vmem:[%s4223_s12 + $0x260] sm:$0xff] %v349_v12 }
  0x64   : > { %352 = vst [vmem:[%s4223_s12 + $0x268] sm:$0xff] %v351_v13 }
  0x65   : > { %354 = vst [vmem:[%s4223_s12 + $0x270] sm:$0xff] %v353_v14 }
  0x66   : > { %356 = vst [vmem:[%s4223_s12 + $0x278] sm:$0xff] %v355_v15 }
  0x67   : > { %358 = vst [vmem:[%s4223_s12 + $0x280] sm:$0xff] %v357_v16 }
  0x68   : > { %360 = vst [vmem:[%s4223_s12 + $0x288] sm:$0xff] %v359_v17 }
  0x69   : > { %362 = vst [vmem:[%s4223_s12 + $0x290] sm:$0xff] %v361_v18 }
  0x6a   : > { %364 = vst [vmem:[%s4223_s12 + $0x298] sm:$0xff] %v363_v19 }
  0x6b   : > { %366 = vst [vmem:[%s4223_s12 + $0x2a0] sm:$0xff] %v365_v20 }
  0x6c   : > { %368 = vst [vmem:[%s4223_s12 + $0x2a8] sm:$0xff] %v367_v21 }
  0x6d   : > { %370 = vst [vmem:[%s4223_s12 + $0x2b0] sm:$0xff] %v369_v22 }
  0x6e   : > { %372 = vst [vmem:[%s4223_s12 + $0x2b8] sm:$0xff] %v371_v23 }
  0x6f   : > { %374 = vst [vmem:[%s4223_s12 + $0x2c0] sm:$0xff] %v373_v24 }
  0x70   : > { %376 = vst [vmem:[%s4223_s12 + $0x2c8] sm:$0xff] %v375_v25 }
  0x71   : > { %378 = vst [vmem:[%s4223_s12 + $0x2d0] sm:$0xff] %v377_v26 }
  0x72   : > { %380 = vst [vmem:[%s4223_s12 + $0x2d8] sm:$0xff] %v379_v27 }
  0x73   : > { %382 = vst [vmem:[%s4223_s12 + $0x2e0] sm:$0xff] %v381_v28 }
  0x74   : > { %384 = vst [vmem:[%s4223_s12 + $0x2e8] sm:$0xff] %v383_v29 }
  0x75   : > { %386 = vst [vmem:[%s4223_s12 + $0x2f0] sm:$0xff] %v385_v30 }
  0x76   : > { %388 = vst [vmem:[%s4223_s12 + $0x2f8] sm:$0xff] %v387_v31 }
  0x77   : > { %390 = vst [vmem:[%s4223_s12 + $0x300] sm:$0xff] %v389_v32 }
  0x78   : > { %392 = vst [vmem:[%s4223_s12 + $0x308] sm:$0xff] %v391_v33 }
  0x79   : > { %394 = vst [vmem:[%s4223_s12 + $0x310] sm:$0xff] %v393_v34 }
  0x7a   : > { %396 = vst [vmem:[%s4223_s12 + $0x318] sm:$0xff] %v395_v35 }
  0x7b   : > { %398 = vst [vmem:[%s4223_s12 + $0x320] sm:$0xff] %v397_v36 }
  0x7c   : > { %400 = vst [vmem:[%s4223_s12 + $0x328] sm:$0xff] %v399_v37 }
  0x7d   : > { %402 = vst [vmem:[%s4223_s12 + $0x330] sm:$0xff] %v401_v38 }
  0x7e   : > { %404 = vst [vmem:[%s4223_s12 + $0x338] sm:$0xff] %v403_v39 }
  0x7f   : > { %406 = vst [vmem:[%s4223_s12 + $0x340] sm:$0xff] %v405_v40 }
  0x80   : > { %408 = vst [vmem:[%s4223_s12 + $0x348] sm:$0xff] %v407_v41 }
  0x81   : > { %410 = vst [vmem:[%s4223_s12 + $0x350] sm:$0xff] %v409_v42 }
  0x82   : > { %412 = vst [vmem:[%s4223_s12 + $0x358] sm:$0xff] %v411_v43 }
  0x83   : > { %414 = vst [vmem:[%s4223_s12 + $0x360] sm:$0xff] %v413_v44 }
  0x84   : > { %416 = vst [vmem:[%s4223_s12 + $0x368] sm:$0xff] %v415_v45 }
  0x85   : > { %418 = vst [vmem:[%s4223_s12 + $0x370] sm:$0xff] %v417_v46 }
  0x86   : > { %420 = vst [vmem:[%s4223_s12 + $0x378] sm:$0xff] %v419_v47 }
  0x87   : > { %422 = vst [vmem:[%s4223_s12 + $0x380] sm:$0xff] %v421_v48 }
  0x88   : > { %424 = vst [vmem:[%s4223_s12 + $0x388] sm:$0xff] %v423_v49 }
  0x89   : > { %426 = vst [vmem:[%s4223_s12 + $0x390] sm:$0xff] %v425_v50 }
  0x8a   : > { %428 = vst [vmem:[%s4223_s12 + $0x398] sm:$0xff] %v427_v51 }
  0x8b   : > { %430 = vst [vmem:[%s4223_s12 + $0x3a0] sm:$0xff] %v429_v52 }
  0x8c   : > { %432 = vst [vmem:[%s4223_s12 + $0x3a8] sm:$0xff] %v431_v53 }
  0x8d   : > { %434 = vst [vmem:[%s4223_s12 + $0x3b0] sm:$0xff] %v433_v54 }
  0x8e   : > { %436 = vst [vmem:[%s4223_s12 + $0x3b8] sm:$0xff] %v435_v55 }
  0x8f   : > { %438 = vst [vmem:[%s4223_s12 + $0x3c0] sm:$0xff] %v437_v56 }
  0x90   : > { %440 = vst [vmem:[%s4223_s12 + $0x3c8] sm:$0xff] %v439_v57 }
  0x91   : > { %442 = vst [vmem:[%s4223_s12 + $0x3d0] sm:$0xff] %v441_v58 }
  0x92   : > { %444 = vst [vmem:[%s4223_s12 + $0x3d8] sm:$0xff] %v443_v59 }
  0x93   : > { %446 = vst [vmem:[%s4223_s12 + $0x3e0] sm:$0xff] %v445_v60 }
  0x94   : > { %448 = vst [vmem:[%s4223_s12 + $0x3e8] sm:$0xff] %v447_v61 }
  0x95   : > { %450 = vst [vmem:[%s4223_s12 + $0x3f0] sm:$0xff] %v449_v62 }
  0x96   : > { %452 = vst [vmem:[%s4223_s12 + $0x3f8] sm:$0xff] %v451_v63 }
  0x97 PF: > { %p3015_p7 = scmp.ge.s32.totalorder %s4131_s21, 1  ;;  %p466_p8 = scmp.lt.s32.totalorder %s4131_s21, 5 }
  0x99   : > { %p467_p9 = pnand %p3015_p7, %p466_p8 }
  0x9a   : > { %s473_s13 = sand.u32 (!%p467_p9), 1, %s4107_s15   ;;  %s3017_s14 = sshll.u32 (!%p467_p9), %s4119_s18, 6 }
  0x9b   : > { %470 = sbr.rel (%p467_p9) target bundleno = 980 (0x3d4), region = 51  ;;  %s3016_s24 = sshll.u32 (!%p467_p9), %s473_s13, 10 }
  0x9c   : > { %p511_p10 = scmp.lt.s32.totalorder (!%p467_p9), %s3017_s14, 127  ;;  %s4497_s18 = scalar_lea.vmem (!%p467_p9), [#allocation2], %s3016_s24 }
  0x9d   : > { %p3023_p11 = scmp.ne.s32.totalorder (!%p467_p9), %s4115_s17, 0 }
  0xa0   : > { %s5442_s14 = smov (!%p511_p10, %s3017_s14), 127  ;;  %531 = sbr.rel (%p3023_p11) target bundleno = 251 (0xfb), region = 59 }
  0xa1   : > { %s3018_s25 = sshll.u32 %s5442_s14, 3  ;;  %s3020_s26 = sshll.u32 %s5442_s14, 2 }
  0xa2   : > { %s4485_s30 = scalar_lea.vmem %s5426_s2, %s3018_s25  ;;  %s4490_s7 = scalar_lea.vmem %s5427_s3, %s3020_s26 }
  0xa3   : > { %s4495_s15 = scalar_lea.vmem %s5428_s4, %s3018_s25 }
  0xa5   : > { %v4501_v0 = vld [vmem:[%s4485_s30] sm:$0xff]  ;;  %v4504_v1 = vld [vmem:[%s4485_s30 + $0x8] sm:$0xff]  ;;  %v4507_v2 = vld [vmem:[%s4485_s30 + $0x10] sm:$0xff] }
  0xa6   : > { %v4510_v3 = vld [vmem:[%s4485_s30 + $0x18] sm:$0xff]  ;;  %v4513_v4 = vld [vmem:[%s4485_s30 + $0x20] sm:$0xff]  ;;  %v4516_v5 = vld [vmem:[%s4485_s30 + $0x28] sm:$0xff] }
  0xa7   : > { %v4519_v6 = vld [vmem:[%s4485_s30 + $0x30] sm:$0xff]  ;;  %v4522_v7 = vld [vmem:[%s4485_s30 + $0x38] sm:$0xff]  ;;  %v4525_v8 = vld [vmem:[%s4485_s30 + $0x40] sm:$0xff] }
  0xa8   : > { %v4528_v9 = vld [vmem:[%s4485_s30 + $0x48] sm:$0xff]  ;;  %v4531_v10 = vld [vmem:[%s4485_s30 + $0x50] sm:$0xff]  ;;  %v4534_v11 = vld [vmem:[%s4485_s30 + $0x58] sm:$0xff] }
  0xa9   : > { %v4537_v12 = vld [vmem:[%s4485_s30 + $0x60] sm:$0xff]  ;;  %v4540_v13 = vld [vmem:[%s4485_s30 + $0x68] sm:$0xff]  ;;  %v4543_v14 = vld [vmem:[%s4485_s30 + $0x70] sm:$0xff] }
  0xaa   : > { %v4546_v15 = vld [vmem:[%s4485_s30 + $0x78] sm:$0xff]  ;;  %v4549_v16 = vld [vmem:[%s4485_s30 + $0x80] sm:$0xff]  ;;  %v4552_v17 = vld [vmem:[%s4485_s30 + $0x88] sm:$0xff] }
  0xab   : > { %v4555_v18 = vld [vmem:[%s4485_s30 + $0x90] sm:$0xff]  ;;  %v4558_v19 = vld [vmem:[%s4485_s30 + $0x98] sm:$0xff]  ;;  %v4561_v20 = vld [vmem:[%s4485_s30 + $0xa0] sm:$0xff] }
  0xac   : > { %v4564_v21 = vld [vmem:[%s4485_s30 + $0xa8] sm:$0xff]  ;;  %v4567_v22 = vld [vmem:[%s4485_s30 + $0xb0] sm:$0xff]  ;;  %v4570_v23 = vld [vmem:[%s4485_s30 + $0xb8] sm:$0xff] }
  0xad   : > { %v4573_v24 = vld [vmem:[%s4485_s30 + $0xc0] sm:$0xff]  ;;  %v4576_v25 = vld [vmem:[%s4485_s30 + $0xc8] sm:$0xff]  ;;  %v4579_v26 = vld [vmem:[%s4485_s30 + $0xd0] sm:$0xff] }
  0xae   : > { %v4582_v27 = vld [vmem:[%s4485_s30 + $0xd8] sm:$0xff]  ;;  %v4585_v28 = vld [vmem:[%s4485_s30 + $0xe0] sm:$0xff]  ;;  %v4588_v29 = vld [vmem:[%s4485_s30 + $0xe8] sm:$0xff] }
  0xaf   : > { %v4591_v30 = vld [vmem:[%s4485_s30 + $0xf0] sm:$0xff]  ;;  %v4594_v31 = vld [vmem:[%s4485_s30 + $0xf8] sm:$0xff]  ;;  %v4597_v32 = vld [vmem:[%s4485_s30 + $0x100] sm:$0xff] }
  0xb0   : > { %v4600_v33 = vld [vmem:[%s4485_s30 + $0x108] sm:$0xff]  ;;  %v4603_v34 = vld [vmem:[%s4485_s30 + $0x110] sm:$0xff]  ;;  %v4606_v35 = vld [vmem:[%s4485_s30 + $0x118] sm:$0xff] }
  0xb1   : > { %v4609_v36 = vld [vmem:[%s4485_s30 + $0x120] sm:$0xff]  ;;  %v4612_v37 = vld [vmem:[%s4485_s30 + $0x128] sm:$0xff]  ;;  %v4615_v38 = vld [vmem:[%s4485_s30 + $0x130] sm:$0xff] }
  0xb2   : > { %v4618_v39 = vld [vmem:[%s4485_s30 + $0x138] sm:$0xff]  ;;  %v4621_v40 = vld [vmem:[%s4485_s30 + $0x140] sm:$0xff]  ;;  %v4624_v41 = vld [vmem:[%s4485_s30 + $0x148] sm:$0xff] }
  0xb3   : > { %v4627_v42 = vld [vmem:[%s4485_s30 + $0x150] sm:$0xff]  ;;  %v4630_v43 = vld [vmem:[%s4485_s30 + $0x158] sm:$0xff]  ;;  %v4633_v44 = vld [vmem:[%s4485_s30 + $0x160] sm:$0xff] }
  0xb4   : > { %v4636_v45 = vld [vmem:[%s4485_s30 + $0x168] sm:$0xff]  ;;  %v4639_v46 = vld [vmem:[%s4485_s30 + $0x170] sm:$0xff]  ;;  %v4642_v47 = vld [vmem:[%s4485_s30 + $0x178] sm:$0xff] }
  0xb5   : > { %v4645_v48 = vld [vmem:[%s4485_s30 + $0x180] sm:$0xff]  ;;  %v4648_v49 = vld [vmem:[%s4485_s30 + $0x188] sm:$0xff]  ;;  %v4651_v50 = vld [vmem:[%s4485_s30 + $0x190] sm:$0xff] }
  0xb6   : > { %v4654_v51 = vld [vmem:[%s4485_s30 + $0x198] sm:$0xff]  ;;  %v4657_v52 = vld [vmem:[%s4485_s30 + $0x1a0] sm:$0xff]  ;;  %v4660_v53 = vld [vmem:[%s4485_s30 + $0x1a8] sm:$0xff] }
  0xb7   : > { %v4663_v54 = vld [vmem:[%s4485_s30 + $0x1b0] sm:$0xff]  ;;  %v4666_v55 = vld [vmem:[%s4485_s30 + $0x1b8] sm:$0xff]  ;;  %v4669_v56 = vld [vmem:[%s4485_s30 + $0x1c0] sm:$0xff] }
  0xb8   : > { %v4672_v57 = vld [vmem:[%s4485_s30 + $0x1c8] sm:$0xff]  ;;  %v4675_v58 = vld [vmem:[%s4485_s30 + $0x1d0] sm:$0xff]  ;;  %v4678_v59 = vld [vmem:[%s4485_s30 + $0x1d8] sm:$0xff] }
  0xb9   : > { %v4681_v60 = vld [vmem:[%s4485_s30 + $0x1e0] sm:$0xff]  ;;  %v4684_v61 = vld [vmem:[%s4485_s30 + $0x1e8] sm:$0xff]  ;;  %v4687_v62 = vld [vmem:[%s4485_s30 + $0x1f0] sm:$0xff] }
  0xba   : > { %v4690_v63 = vld [vmem:[%s4485_s30 + $0x1f8] sm:$0xff] }
  0xbb   : > { %596 = vst [vmem:[%s4495_s15] sm:$0xff] %v4501_v0 }
  0xbc   : > { %597 = vst [vmem:[%s4495_s15 + $0x8] sm:$0xff] %v4504_v1 }
  0xbd   : > { %598 = vst [vmem:[%s4495_s15 + $0x10] sm:$0xff] %v4507_v2 }
  0xbe   : > { %599 = vst [vmem:[%s4495_s15 + $0x18] sm:$0xff] %v4510_v3 }
  0xbf   : > { %600 = vst [vmem:[%s4495_s15 + $0x20] sm:$0xff] %v4513_v4 }
  0xc0   : > { %601 = vst [vmem:[%s4495_s15 + $0x28] sm:$0xff] %v4516_v5 }
  0xc1   : > { %602 = vst [vmem:[%s4495_s15 + $0x30] sm:$0xff] %v4519_v6 }
  0xc2   : > { %603 = vst [vmem:[%s4495_s15 + $0x38] sm:$0xff] %v4522_v7 }
  0xc3   : > { %604 = vst [vmem:[%s4495_s15 + $0x40] sm:$0xff] %v4525_v8 }
  0xc4   : > { %605 = vst [vmem:[%s4495_s15 + $0x48] sm:$0xff] %v4528_v9 }
  0xc5   : > { %606 = vst [vmem:[%s4495_s15 + $0x50] sm:$0xff] %v4531_v10 }
  0xc6   : > { %607 = vst [vmem:[%s4495_s15 + $0x58] sm:$0xff] %v4534_v11 }
  0xc7   : > { %608 = vst [vmem:[%s4495_s15 + $0x60] sm:$0xff] %v4537_v12 }
  0xc8   : > { %609 = vst [vmem:[%s4495_s15 + $0x68] sm:$0xff] %v4540_v13 }
  0xc9   : > { %610 = vst [vmem:[%s4495_s15 + $0x70] sm:$0xff] %v4543_v14 }
  0xca   : > { %611 = vst [vmem:[%s4495_s15 + $0x78] sm:$0xff] %v4546_v15 }
  0xcb   : > { %612 = vst [vmem:[%s4495_s15 + $0x80] sm:$0xff] %v4549_v16 }
  0xcc   : > { %613 = vst [vmem:[%s4495_s15 + $0x88] sm:$0xff] %v4552_v17 }
  0xcd   : > { %614 = vst [vmem:[%s4495_s15 + $0x90] sm:$0xff] %v4555_v18 }
  0xce   : > { %615 = vst [vmem:[%s4495_s15 + $0x98] sm:$0xff] %v4558_v19 }
  0xcf   : > { %616 = vst [vmem:[%s4495_s15 + $0xa0] sm:$0xff] %v4561_v20 }
  0xd0   : > { %617 = vst [vmem:[%s4495_s15 + $0xa8] sm:$0xff] %v4564_v21 }
  0xd1   : > { %618 = vst [vmem:[%s4495_s15 + $0xb0] sm:$0xff] %v4567_v22 }
  0xd2   : > { %619 = vst [vmem:[%s4495_s15 + $0xb8] sm:$0xff] %v4570_v23 }
  0xd3   : > { %620 = vst [vmem:[%s4495_s15 + $0xc0] sm:$0xff] %v4573_v24 }
  0xd4   : > { %621 = vst [vmem:[%s4495_s15 + $0xc8] sm:$0xff] %v4576_v25 }
  0xd5   : > { %622 = vst [vmem:[%s4495_s15 + $0xd0] sm:$0xff] %v4579_v26 }
  0xd6   : > { %623 = vst [vmem:[%s4495_s15 + $0xd8] sm:$0xff] %v4582_v27 }
  0xd7   : > { %624 = vst [vmem:[%s4495_s15 + $0xe0] sm:$0xff] %v4585_v28 }
  0xd8   : > { %625 = vst [vmem:[%s4495_s15 + $0xe8] sm:$0xff] %v4588_v29 }
  0xd9   : > { %626 = vst [vmem:[%s4495_s15 + $0xf0] sm:$0xff] %v4591_v30 }
  0xda   : > { %627 = vst [vmem:[%s4495_s15 + $0xf8] sm:$0xff] %v4594_v31 }
  0xdb   : > { %628 = vst [vmem:[%s4495_s15 + $0x100] sm:$0xff] %v4597_v32 }
  0xdc   : > { %629 = vst [vmem:[%s4495_s15 + $0x108] sm:$0xff] %v4600_v33 }
  0xdd   : > { %630 = vst [vmem:[%s4495_s15 + $0x110] sm:$0xff] %v4603_v34 }
  0xde   : > { %631 = vst [vmem:[%s4495_s15 + $0x118] sm:$0xff] %v4606_v35 }
  0xdf   : > { %632 = vst [vmem:[%s4495_s15 + $0x120] sm:$0xff] %v4609_v36 }
  0xe0   : > { %633 = vst [vmem:[%s4495_s15 + $0x128] sm:$0xff] %v4612_v37 }
  0xe1   : > { %634 = vst [vmem:[%s4495_s15 + $0x130] sm:$0xff] %v4615_v38 }
  0xe2   : > { %635 = vst [vmem:[%s4495_s15 + $0x138] sm:$0xff] %v4618_v39 }
  0xe3   : > { %636 = vst [vmem:[%s4495_s15 + $0x140] sm:$0xff] %v4621_v40 }
  0xe4   : > { %637 = vst [vmem:[%s4495_s15 + $0x148] sm:$0xff] %v4624_v41 }
  0xe5   : > { %638 = vst [vmem:[%s4495_s15 + $0x150] sm:$0xff] %v4627_v42 }
  0xe6   : > { %639 = vst [vmem:[%s4495_s15 + $0x158] sm:$0xff] %v4630_v43 }
  0xe7   : > { %640 = vst [vmem:[%s4495_s15 + $0x160] sm:$0xff] %v4633_v44 }
  0xe8   : > { %641 = vst [vmem:[%s4495_s15 + $0x168] sm:$0xff] %v4636_v45 }
  0xe9   : > { %642 = vst [vmem:[%s4495_s15 + $0x170] sm:$0xff] %v4639_v46 }
  0xea   : > { %643 = vst [vmem:[%s4495_s15 + $0x178] sm:$0xff] %v4642_v47 }
  0xeb   : > { %644 = vst [vmem:[%s4495_s15 + $0x180] sm:$0xff] %v4645_v48 }
  0xec   : > { %645 = vst [vmem:[%s4495_s15 + $0x188] sm:$0xff] %v4648_v49 }
  0xed   : > { %646 = vst [vmem:[%s4495_s15 + $0x190] sm:$0xff] %v4651_v50 }
  0xee   : > { %647 = vst [vmem:[%s4495_s15 + $0x198] sm:$0xff] %v4654_v51 }
  0xef   : > { %648 = vst [vmem:[%s4495_s15 + $0x1a0] sm:$0xff] %v4657_v52 }
  0xf0   : > { %649 = vst [vmem:[%s4495_s15 + $0x1a8] sm:$0xff] %v4660_v53 }
  0xf1   : > { %650 = vst [vmem:[%s4495_s15 + $0x1b0] sm:$0xff] %v4663_v54 }
  0xf2   : > { %651 = vst [vmem:[%s4495_s15 + $0x1b8] sm:$0xff] %v4666_v55 }
  0xf3   : > { %652 = vst [vmem:[%s4495_s15 + $0x1c0] sm:$0xff] %v4669_v56 }
  0xf4   : > { %653 = vst [vmem:[%s4495_s15 + $0x1c8] sm:$0xff] %v4672_v57 }
  0xf5   : > { %654 = vst [vmem:[%s4495_s15 + $0x1d0] sm:$0xff] %v4675_v58 }
  0xf6   : > { %655 = vst [vmem:[%s4495_s15 + $0x1d8] sm:$0xff] %v4678_v59 }
  0xf7   : > { %656 = vst [vmem:[%s4495_s15 + $0x1e0] sm:$0xff] %v4681_v60 }
  0xf8   : > { %657 = vst [vmem:[%s4495_s15 + $0x1e8] sm:$0xff] %v4684_v61 }
  0xf9   : > { %658 = vst [vmem:[%s4495_s15 + $0x1f0] sm:$0xff] %v4687_v62 }
  0xfa   : > { %659 = vst [vmem:[%s4495_s15 + $0x1f8] sm:$0xff] %v4690_v63 }
  0xfb PF: > { %s3024_s10 = sshll.u32 %s4115_s17, 9  ;;  %v3028_v28 = vld [vmem:[%s4497_s18] sm:$0xf]  ;;  %v3672_v29 = vld [vmem:[%s4497_s18 + $0xc] sm:$0xf0]  ;;  %p3666_p12 = scmp.ne.s32.totalorder %s4115_s17, 1 }
  0xfc   : > { %s853_s11 = sshra.s32 %s3024_s10, 3  ;;  %v3670_v30 = vld [vmem:[%s4497_s18 + $0x4] sm:$0xf]  ;;  %v3030_v35 = vld [vmem:[%s4497_s18 + $0x10] sm:$0xf0]  ;;  %v3029_v40 = vor.u32 %v3672_v29, %v3028_v28 }
  0xfd   : > { %s3025_s12 = sshll.u32 %s853_s11, 2  ;;  %v3036_v36 = vld [vmem:[%s4497_s18 + $0x8] sm:$0xf]  ;;  %v3673_v37 = vld [vmem:[%s4497_s18 + $0x14] sm:$0xf0]  ;;  %v3033_v41 = vor.u32 %v3670_v30, %v3030_v35 }
  0xfe   : > { %s4824_s24 = scalar_lea.vmem %s5425_s1, %s3025_s12  ;;  %v3671_v38 = vld [vmem:[%s4497_s18 + $0xc] sm:$0xf]  ;;  %v3038_v39 = vld [vmem:[%s4497_s18 + $0x18] sm:$0xf0]  ;;  %v3037_v42 = vor.u32 %v3673_v37, %v3036_v36  ;;  %v3044_v44 = vld [vmem:[%s4497_s18 + $0x20] sm:$0xf] }
  0xff   : > { %v3805_v0 = vld [vmem:[%s4824_s24 + $0x38] sm:$0xff]  ;;  %v3804_v4 = vld [vmem:[%s4824_s24 + $0x30] sm:$0xff]  ;;  %v3803_v8 = vld [vmem:[%s4824_s24 + $0x28] sm:$0xff]  ;;  %v3041_v43 = vor.u32 %v3671_v38, %v3038_v39 }
 0x100   : > { %v3813_v1 = vld [vmem:[%s4824_s24 + $0x78] sm:$0xff]  ;;  %1753 = vmatpush.bf16.msra.mxu0 %v3805_v0  ;;  %v3812_v5 = vld [vmem:[%s4824_s24 + $0x70] sm:$0xff]  ;;  %v3811_v9 = vld [vmem:[%s4824_s24 + $0x68] sm:$0xff] }
 0x101   : > { %v3821_v2 = vld [vmem:[%s4824_s24 + $0xb8] sm:$0xff]  ;;  %1922 = vmatpush.bf16.msra.mxu1 %v3813_v1  ;;  %v3820_v6 = vld [vmem:[%s4824_s24 + $0xb0] sm:$0xff]  ;;  %v3819_v10 = vld [vmem:[%s4824_s24 + $0xa8] sm:$0xff] }
 0x102   : > { %v3829_v3 = vld [vmem:[%s4824_s24 + $0xf8] sm:$0xff]  ;;  %2091 = vmatpush.bf16.msra.mxu2 %v3821_v2  ;;  %v3828_v7 = vld [vmem:[%s4824_s24 + $0xf0] sm:$0xff]  ;;  %v3827_v11 = vld [vmem:[%s4824_s24 + $0xe8] sm:$0xff] }
 0x103   : > { %2260 = vmatpush.bf16.msra.mxu3 %v3829_v3  ;;  %v3802_v12 = vld [vmem:[%s4824_s24 + $0x20] sm:$0xff]  ;;  %v3801_v16 = vld [vmem:[%s4824_s24 + $0x18] sm:$0xff]  ;;  %v3800_v20 = vld [vmem:[%s4824_s24 + $0x10] sm:$0xff] }
 0x104   : > { %1754 = vmatpush.bf16.msra.mxu0 %v3804_v4  ;;  %v3810_v13 = vld [vmem:[%s4824_s24 + $0x60] sm:$0xff]  ;;  %v3809_v17 = vld [vmem:[%s4824_s24 + $0x58] sm:$0xff]  ;;  %v3808_v21 = vld [vmem:[%s4824_s24 + $0x50] sm:$0xff] }
 0x105   : > { %1923 = vmatpush.bf16.msra.mxu1 %v3812_v5  ;;  %v3818_v14 = vld [vmem:[%s4824_s24 + $0xa0] sm:$0xff]  ;;  %v3817_v18 = vld [vmem:[%s4824_s24 + $0x98] sm:$0xff]  ;;  %v3816_v22 = vld [vmem:[%s4824_s24 + $0x90] sm:$0xff] }
 0x106   : > { %2092 = vmatpush.bf16.msra.mxu2 %v3820_v6  ;;  %v3826_v15 = vld [vmem:[%s4824_s24 + $0xe0] sm:$0xff]  ;;  %v3825_v19 = vld [vmem:[%s4824_s24 + $0xd8] sm:$0xff]  ;;  %v3824_v23 = vld [vmem:[%s4824_s24 + $0xd0] sm:$0xff] }
 0x107   : > { %2261 = vmatpush.bf16.msra.mxu3 %v3828_v7  ;;  %v3799_v24 = vld [vmem:[%s4824_s24 + $0x8] sm:$0xff]  ;;  %v3798_v31 = vld [vmem:[%s4824_s24] sm:$0xff]  ;;  %v3676_v45 = vld [vmem:[%s4497_s18 + $0x2c] sm:$0xf0] }
 0x108   : > { %1755 = vmatpush.bf16.msra.mxu0 %v3803_v8  ;;  %v3807_v25 = vld [vmem:[%s4824_s24 + $0x48] sm:$0xff]  ;;  %v3806_v32 = vld [vmem:[%s4824_s24 + $0x40] sm:$0xff]  ;;  %v3046_v47 = vld [vmem:[%s4497_s18 + $0x30] sm:$0xf0]  ;;  %v3045_v52 = vor.u32 %v3676_v45, %v3044_v44 }
 0x109   : > { %1924 = vmatpush.bf16.msra.mxu1 %v3811_v9  ;;  %v3815_v26 = vld [vmem:[%s4824_s24 + $0x88] sm:$0xff]  ;;  %v3814_v33 = vld [vmem:[%s4824_s24 + $0x80] sm:$0xff]  ;;  %v3677_v49 = vld [vmem:[%s4497_s18 + $0x34] sm:$0xf0] }
 0x10a   : > { %2093 = vmatpush.bf16.msra.mxu2 %v3819_v10  ;;  %v3823_v27 = vld [vmem:[%s4824_s24 + $0xc8] sm:$0xff]  ;;  %v3822_v34 = vld [vmem:[%s4824_s24 + $0xc0] sm:$0xff]  ;;  %v3054_v51 = vld [vmem:[%s4497_s18 + $0x38] sm:$0xf0] }
 0x10b   : > { %2262 = vmatpush.bf16.msra.mxu3 %v3827_v11  ;;  %v3674_v46 = vld [vmem:[%s4497_s18 + $0x24] sm:$0xf]  ;;  %v3052_v48 = vld [vmem:[%s4497_s18 + $0x28] sm:$0xf]  ;;  %v3675_v50 = vld [vmem:[%s4497_s18 + $0x2c] sm:$0xf] }
 0x10c   : > { %1756 = vmatpush.bf16.msra.mxu0 %v3802_v12  ;;  %v3049_v53 = vor.u32 %v3674_v46, %v3046_v47  ;;  %v3053_v54 = vor.u32 %v3677_v49, %v3052_v48  ;;  %v3057_v55 = vor.u32 %v3675_v50, %v3054_v51  ;;  %v3060_v56 = vld [vmem:[%s4497_s18 + $0x40] sm:$0xf]  ;;  %v3680_v57 = vld [vmem:[%s4497_s18 + $0x4c] sm:$0xf0]  ;;  %v3678_v58 = vld [vmem:[%s4497_s18 + $0x44] sm:$0xf] }
 0x10d   : > { %1925 = vmatpush.bf16.msra.mxu1 %v3810_v13  ;;  %v3062_v59 = vld [vmem:[%s4497_s18 + $0x50] sm:$0xf0]  ;;  %v3068_v60 = vld [vmem:[%s4497_s18 + $0x48] sm:$0xf]  ;;  %v3681_v61 = vld [vmem:[%s4497_s18 + $0x54] sm:$0xf0]  ;;  %v3061_v0 = vor.u32 %v3680_v57, %v3060_v56 }
 0x10e   : > { %2094 = vmatpush.bf16.msra.mxu2 %v3818_v14  ;;  %v3679_v62 = vld [vmem:[%s4497_s18 + $0x4c] sm:$0xf]  ;;  %v3070_v63 = vld [vmem:[%s4497_s18 + $0x58] sm:$0xf0]  ;;  %v3065_v1 = vor.u32 %v3678_v58, %v3062_v59  ;;  %v3069_v2 = vor.u32 %v3681_v61, %v3068_v60  ;;  %v3076_v4 = vld [vmem:[%s4497_s18 + $0x60] sm:$0xf] }
 0x10f   : > { %2263 = vmatpush.bf16.msra.mxu3 %v3826_v15  ;;  %v3073_v3 = vor.u32 %v3679_v62, %v3070_v63  ;;  %v3684_v5 = vld [vmem:[%s4497_s18 + $0x6c] sm:$0xf0]  ;;  %v3682_v6 = vld [vmem:[%s4497_s18 + $0x64] sm:$0xf]  ;;  %v3078_v7 = vld [vmem:[%s4497_s18 + $0x70] sm:$0xf0] }
 0x110   : > { %1757 = vmatpush.bf16.msra.mxu0 %v3801_v16  ;;  %v3084_v8 = vld [vmem:[%s4497_s18 + $0x68] sm:$0xf]  ;;  %v3685_v9 = vld [vmem:[%s4497_s18 + $0x74] sm:$0xf0]  ;;  %v3683_v10 = vld [vmem:[%s4497_s18 + $0x6c] sm:$0xf]  ;;  %v3077_v12 = vor.u32 %v3684_v5, %v3076_v4  ;;  %v3081_v13 = vor.u32 %v3682_v6, %v3078_v7 }
 0x111   : > { %1926 = vmatpush.bf16.msra.mxu1 %v3809_v17  ;;  %v3086_v11 = vld [vmem:[%s4497_s18 + $0x78] sm:$0xf0]  ;;  %v3085_v14 = vor.u32 %v3685_v9, %v3084_v8  ;;  %v3092_v16 = vld [vmem:[%s4497_s18 + $0x80] sm:$0xf]  ;;  %v3688_v17 = vld [vmem:[%s4497_s18 + $0x8c] sm:$0xf0] }
 0x112   : > { %2095 = vmatpush.bf16.msra.mxu2 %v3817_v18  ;;  %v3089_v15 = vor.u32 %v3683_v10, %v3086_v11  ;;  %v3686_v18 = vld [vmem:[%s4497_s18 + $0x84] sm:$0xf]  ;;  %v3108_v28 = vld [vmem:[%s4497_s18 + $0xa0] sm:$0xf]  ;;  %v3692_v29 = vld [vmem:[%s4497_s18 + $0xac] sm:$0xf0] }
 0x113   : > { %2264 = vmatpush.bf16.msra.mxu3 %v3825_v19  ;;  %v3094_v19 = vld [vmem:[%s4497_s18 + $0x90] sm:$0xf0]  ;;  %v3690_v30 = vld [vmem:[%s4497_s18 + $0xa4] sm:$0xf]  ;;  %v3118_v35 = vld [vmem:[%s4497_s18 + $0xb8] sm:$0xf0]  ;;  %v3109_v36 = vor.u32 %v3692_v29, %v3108_v28 }
 0x114   : > { %1758 = vmatpush.bf16.msra.mxu0 %v3800_v20  ;;  %v3100_v20 = vld [vmem:[%s4497_s18 + $0x88] sm:$0xf]  ;;  %v3697_v45 = vld [vmem:[%s4497_s18 + $0xd4] sm:$0xf0]  ;;  %v3695_v46 = vld [vmem:[%s4497_s18 + $0xcc] sm:$0xf] }
 0x115   : > { %1927 = vmatpush.bf16.msra.mxu1 %v3808_v21  ;;  %v3689_v21 = vld [vmem:[%s4497_s18 + $0x94] sm:$0xf0]  ;;  %v3132_v44 = vld [vmem:[%s4497_s18 + $0xc8] sm:$0xf]  ;;  %v3134_v47 = vld [vmem:[%s4497_s18 + $0xd8] sm:$0xf0] }
 0x116   : > { %2096 = vmatpush.bf16.msra.mxu2 %v3816_v22  ;;  %v3687_v22 = vld [vmem:[%s4497_s18 + $0x8c] sm:$0xf]  ;;  %v3133_v50 = vor.u32 %v3697_v45, %v3132_v44  ;;  %v3137_v51 = vor.u32 %v3695_v46, %v3134_v47  ;;  %v3148_v56 = vld [vmem:[%s4497_s18 + $0xe8] sm:$0xf]  ;;  %v3701_v57 = vld [vmem:[%s4497_s18 + $0xf4] sm:$0xf0] }
 0x117   : > { %2265 = vmatpush.bf16.msra.mxu3 %v3824_v23  ;;  %v3102_v23 = vld [vmem:[%s4497_s18 + $0x98] sm:$0xf0]  ;;  %v3699_v58 = vld [vmem:[%s4497_s18 + $0xec] sm:$0xf]  ;;  %v3149_v62 = vor.u32 %v3701_v57, %v3148_v56  ;;  %v3164_v4 = vld [vmem:[%s4497_s18 + $0x108] sm:$0xf] }
 0x118   : > { %1759 = vmatpush.bf16.msra.mxu0 %v3799_v24  ;;  %v3093_v24 = vor.u32 %v3688_v17, %v3092_v16  ;;  %v3150_v59 = vld [vmem:[%s4497_s18 + $0xf8] sm:$0xf0]  ;;  %v3705_v5 = vld [vmem:[%s4497_s18 + $0x114] sm:$0xf0]  ;;  %v3703_v6 = vld [vmem:[%s4497_s18 + $0x10c] sm:$0xf] }
 0x119   : > { %1928 = vmatpush.bf16.msra.mxu1 %v3807_v25  ;;  %v3097_v25 = vor.u32 %v3686_v18, %v3094_v19  ;;  %v3153_v63 = vor.u32 %v3699_v58, %v3150_v59  ;;  %v3166_v7 = vld [vmem:[%s4497_s18 + $0x118] sm:$0xf0]  ;;  %v3709_v28 = vld [vmem:[%s4497_s18 + $0x134] sm:$0xf0]  ;;  %v3707_v29 = vld [vmem:[%s4497_s18 + $0x12c] sm:$0xf] }
 0x11a   : > { %2097 = vmatpush.bf16.msra.mxu2 %v3815_v26  ;;  %v3101_v26 = vor.u32 %v3689_v21, %v3100_v20  ;;  %v660_v20 = vld [vmem:[%s4495_s15] sm:$0xff]  ;;  %v3190_v56 = vld [vmem:[%s4497_s18 + $0x150] sm:$0xf0]  ;;  %v3196_v57 = vld [vmem:[%s4497_s18 + $0x148] sm:$0xf] }
 0x11b   : > { %2266 = vmatpush.bf16.msra.mxu3 %v3823_v27  ;;  %v3105_v27 = vor.u32 %v3687_v22, %v3102_v23  ;;  %v3172_v22 = vld [vmem:[%s4497_s18 + $0x120] sm:$0xf]  ;;  %v3708_v23 = vld [vmem:[%s4497_s18 + $0x12c] sm:$0xf0]  ;;  %v3713_v58 = vld [vmem:[%s4497_s18 + $0x154] sm:$0xf0] }
 0x11c   : > { %1760 = vmatpush.bf16.msra.mxu0 %v3798_v31  ;;  %v3110_v31 = vld [vmem:[%s4497_s18 + $0xb0] sm:$0xf0]  ;;  %v3711_v59 = vld [vmem:[%s4497_s18 + $0x14c] sm:$0xf] }
 0x11d   : > { %1929 = vmatpush.bf16.msra.mxu1 %v3806_v32  ;;  %v3116_v32 = vld [vmem:[%s4497_s18 + $0xa8] sm:$0xf]  ;;  %v3113_v37 = vor.u32 %v3690_v30, %v3110_v31  ;;  %v3182_v30 = vld [vmem:[%s4497_s18 + $0x138] sm:$0xf0] }
 0x11e   : > { %2098 = vmatpush.bf16.msra.mxu2 %v3814_v33  ;;  %v3693_v33 = vld [vmem:[%s4497_s18 + $0xb4] sm:$0xf0] }
 0x11f   : > { %2267 = vmatpush.bf16.msra.mxu3 %v3822_v34  ;;  %1761 = vmatmul.bf16.vlgmr.msra.gmra.mxu0 %v3029_v40  ;;  %v3691_v34 = vld [vmem:[%s4497_s18 + $0xac] sm:$0xf]  ;;  %v3117_v38 = vor.u32 %v3693_v33, %v3116_v32  ;;  %v3124_v40 = vld [vmem:[%s4497_s18 + $0xc0] sm:$0xf] }
 0x120   : > { %1930 = vmatmul.bf16.vlgmr.msra.gmra.mxu1 %v3033_v41  ;;  %v3121_v39 = vor.u32 %v3691_v34, %v3118_v35  ;;  %v3696_v41 = vld [vmem:[%s4497_s18 + $0xcc] sm:$0xf0]  ;;  %v3173_v34 = vor.u32 %v3708_v23, %v3172_v22  ;;  %v3206_v22 = vld [vmem:[%s4497_s18 + $0x170] sm:$0xf0]  ;;  %v3212_v23 = vld [vmem:[%s4497_s18 + $0x168] sm:$0xf] }
 0x121   : > { %2099 = vmatmul.bf16.vlgmr.msra.gmra.mxu2 %v3037_v42  ;;  %v3694_v42 = vld [vmem:[%s4497_s18 + $0xc4] sm:$0xf]  ;;  %v3125_v48 = vor.u32 %v3696_v41, %v3124_v40  ;;  %v3185_v40 = vor.u32 %v3707_v29, %v3182_v30  ;;  %v661_v41 = vld [vmem:[%s4495_s15 + $0x8] sm:$0xff] }
 0x122   : > { %2268 = vmatmul.bf16.vlgmr.msra.gmra.mxu3 %v3041_v43  ;;  %v3126_v43 = vld [vmem:[%s4497_s18 + $0xd0] sm:$0xf0] }
 0x123   : > { %v3129_v49 = vor.u32 %v3694_v42, %v3126_v43 }
 0x12f   : > { %1766 = vmatmul.bf16.gmra.mxu0 %v3045_v52  ;;  %v3140_v52 = vld [vmem:[%s4497_s18 + $0xe0] sm:$0xf] }
 0x130   : > { %1935 = vmatmul.bf16.gmra.mxu1 %v3049_v53  ;;  %v3700_v53 = vld [vmem:[%s4497_s18 + $0xec] sm:$0xf0] }
 0x131   : > { %2104 = vmatmul.bf16.gmra.mxu2 %v3053_v54  ;;  %v3698_v54 = vld [vmem:[%s4497_s18 + $0xe4] sm:$0xf]  ;;  %v3141_v60 = vor.u32 %v3700_v53, %v3140_v52  ;;  %v3188_v52 = vld [vmem:[%s4497_s18 + $0x140] sm:$0xf]  ;;  %v3712_v53 = vld [vmem:[%s4497_s18 + $0x14c] sm:$0xf0] }
 0x132   : > { %2273 = vmatmul.bf16.gmra.mxu3 %v3057_v55  ;;  %v3142_v55 = vld [vmem:[%s4497_s18 + $0xf0] sm:$0xf0] }
 0x133   : > { %v3145_v61 = vor.u32 %v3698_v54, %v3142_v55  ;;  %v3710_v55 = vld [vmem:[%s4497_s18 + $0x144] sm:$0xf] }
 0x13f   : > { %1771 = vmatmul.bf16.gmra.mxu0 %v3061_v0  ;;  %v3156_v0 = vld [vmem:[%s4497_s18 + $0x100] sm:$0xf] }
 0x140   : > { %1940 = vmatmul.bf16.gmra.mxu1 %v3065_v1  ;;  %v3704_v1 = vld [vmem:[%s4497_s18 + $0x10c] sm:$0xf0] }
 0x141   : > { %2109 = vmatmul.bf16.gmra.mxu2 %v3069_v2  ;;  %v3702_v2 = vld [vmem:[%s4497_s18 + $0x104] sm:$0xf]  ;;  %v3157_v8 = vor.u32 %v3704_v1, %v3156_v0  ;;  %v3189_v0 = vor.u32 %v3712_v53, %v3188_v52  ;;  %v3193_v1 = vor.u32 %v3710_v55, %v3190_v56  ;;  %v3222_v52 = vld [vmem:[%s4497_s18 + $0x190] sm:$0xf0]  ;;  %v3228_v53 = vld [vmem:[%s4497_s18 + $0x188] sm:$0xf] }
 0x142   : > { %2278 = vmatmul.bf16.gmra.mxu3 %v3073_v3  ;;  %v3158_v3 = vld [vmem:[%s4497_s18 + $0x110] sm:$0xf0]  ;;  %v3719_v55 = vld [vmem:[%s4497_s18 + $0x18c] sm:$0xf]  ;;  %v3230_v56 = vld [vmem:[%s4497_s18 + $0x198] sm:$0xf0] }
 0x143   : > { %v3161_v9 = vor.u32 %v3702_v2, %v3158_v3 }
 0x14f   : > { %1776 = vmatmul.bf16.gmra.mxu0 %v3077_v12  ;;  %v3165_v12 = vor.u32 %v3705_v5, %v3164_v4  ;;  %v3197_v5 = vor.u32 %v3713_v58, %v3196_v57 }
 0x150   : > { %1945 = vmatmul.bf16.gmra.mxu1 %v3081_v13  ;;  %v3169_v13 = vor.u32 %v3703_v6, %v3166_v7  ;;  %v663_v7 = vld [vmem:[%s4495_s15 + $0x18] sm:$0xff] }
 0x151   : > { %2114 = vmatmul.bf16.gmra.mxu2 %v3085_v14 }
 0x152   : > { %2283 = vmatmul.bf16.gmra.mxu3 %v3089_v15 }
 0x15f   : > { %1781 = vmatmul.bf16.gmra.mxu0 %v3093_v24 }
 0x160   : > { %1950 = vmatmul.bf16.gmra.mxu1 %v3097_v25  ;;  %v3706_v25 = vld [vmem:[%s4497_s18 + $0x124] sm:$0xf] }
 0x161   : > { %2119 = vmatmul.bf16.gmra.mxu2 %v3101_v26  ;;  %v3174_v26 = vld [vmem:[%s4497_s18 + $0x130] sm:$0xf0] }
 0x162   : > { %2288 = vmatmul.bf16.gmra.mxu3 %v3105_v27  ;;  %v3180_v27 = vld [vmem:[%s4497_s18 + $0x128] sm:$0xf]  ;;  %v3177_v35 = vor.u32 %v3706_v25, %v3174_v26  ;;  %v3715_v25 = vld [vmem:[%s4497_s18 + $0x16c] sm:$0xf]  ;;  %v3214_v26 = vld [vmem:[%s4497_s18 + $0x178] sm:$0xf0] }
 0x16f   : > { %1786 = vmatmul.bf16.gmra.mxu0 %v3109_v36 }
 0x170   : > { %1955 = vmatmul.bf16.gmra.mxu1 %v3113_v37 }
 0x171   : > { %2124 = vmatmul.bf16.gmra.mxu2 %v3117_v38 }
 0x172   : > { %2293 = vmatmul.bf16.gmra.mxu3 %v3121_v39  ;;  %v3181_v39 = vor.u32 %v3709_v28, %v3180_v27 }
 0x17f   : > { %1791 = vmatmul.bf16.gmra.mxu0 %v3125_v48 }
 0x180   : > { %1960 = vmatmul.bf16.gmra.mxu1 %v3129_v49 }
 0x181   : > { %2129 = vmatmul.bf16.gmra.mxu2 %v3133_v50  ;;  %v662_v50 = vld [vmem:[%s4495_s15 + $0x10] sm:$0xff] }
 0x182   : > { %2298 = vmatmul.bf16.gmra.mxu3 %v3137_v51 }
 0x18f   : > { %1796 = vmatmul.bf16.gmra.mxu0 %v3141_v60  ;;  %v3198_v60 = vld [vmem:[%s4497_s18 + $0x158] sm:$0xf0] }
 0x190   : > { %1965 = vmatmul.bf16.gmra.mxu1 %v3145_v61  ;;  %v3201_v6 = vor.u32 %v3711_v59, %v3198_v60 }
 0x191   : > { %2134 = vmatmul.bf16.gmra.mxu2 %v3149_v62 }
 0x192   : > { %2303 = vmatmul.bf16.gmra.mxu3 %v3153_v63 }
 0x19c   : > { %v1762_v10 = vpop.f32.mrf.mxu0 }
 0x19d   : > { %v1931_v11 = vpop.f32.mrf.mxu1 }
 0x19e   : > { %v1932_v14 = vadd.f32 %v1931_v11, %v1762_v10 }
 0x19f   : > { %1801 = vmatmul.bf16.gmra.mxu0 %v3157_v8 }
 0x1a0   : > { %1970 = vmatmul.bf16.gmra.mxu1 %v3161_v9 }
 0x1a1   : > { %2139 = vmatmul.bf16.gmra.mxu2 %v3165_v12 }
 0x1a2   : > { %2308 = vmatmul.bf16.gmra.mxu3 %v3169_v13 }
 0x1a4   : > { %v2100_v15 = vpop.f32.mrf.mxu2  ;;  %v1764_v18 = vpop.f32.mrf.mxu0 }
 0x1a5   : > { %v2269_v16 = vpop.f32.mrf.mxu3  ;;  %v2101_v17 = vadd.f32 %v2100_v15, %v1932_v14  ;;  %v1933_v19 = vpop.f32.mrf.mxu1 }
 0x1a6   : > { %v1934_v31 = vadd.f32 %v1933_v19, %v1764_v18  ;;  %v3204_v18 = vld [vmem:[%s4497_s18 + $0x160] sm:$0xf]  ;;  %v3716_v19 = vld [vmem:[%s4497_s18 + $0x16c] sm:$0xf0] }
 0x1a7   : > { %v2270_v21 = vadd.f32 %v2269_v16, %v2101_v17  ;;  %v664_v16 = vld [vmem:[%s4495_s15 + $0x20] sm:$0xff]  ;;  %v3205_v30 = vor.u32 %v3716_v19, %v3204_v18  ;;  %v3238_v18 = vld [vmem:[%s4497_s18 + $0x1b0] sm:$0xf0]  ;;  %v3244_v19 = vld [vmem:[%s4497_s18 + $0x1a8] sm:$0xf] }
 0x1a9   : > { %v2429_v24 = vadd.f32 %v2270_v21, %v660_v20  ;;  %v3714_v21 = vld [vmem:[%s4497_s18 + $0x164] sm:$0xf] }
 0x1ab   : > { %2493 = vst [vmem:[%s4495_s15] sm:$0xff] %v2429_v24  ;;  %v3717_v24 = vld [vmem:[%s4497_s18 + $0x174] sm:$0xf0] }
 0x1ac   : > { %v2102_v32 = vpop.f32.mrf.mxu2  ;;  %v1767_v37 = vpop.f32.mrf.mxu0 }
 0x1ad   : > { %v2271_v33 = vpop.f32.mrf.mxu3  ;;  %v2103_v36 = vadd.f32 %v2102_v32, %v1934_v31  ;;  %v1936_v38 = vpop.f32.mrf.mxu1  ;;  %v3209_v31 = vor.u32 %v3714_v21, %v3206_v22  ;;  %v3723_v21 = vld [vmem:[%s4497_s18 + $0x1ac] sm:$0xf]  ;;  %v3246_v22 = vld [vmem:[%s4497_s18 + $0x1b8] sm:$0xf0] }
 0x1ae   : > { %v1937_v44 = vadd.f32 %v1936_v38, %v1767_v37  ;;  %v665_v37 = vld [vmem:[%s4495_s15 + $0x28] sm:$0xff] }
 0x1af   : > { %v2272_v42 = vadd.f32 %v2271_v33, %v2103_v36  ;;  %1806 = vmatmul.bf16.gmra.mxu0 %v3173_v34  ;;  %v3217_v36 = vor.u32 %v3715_v25, %v3214_v26 }
 0x1b0   : > { %1975 = vmatmul.bf16.gmra.mxu1 %v3177_v35  ;;  %v3213_v35 = vor.u32 %v3717_v24, %v3212_v23 }
 0x1b1   : > { %v2430_v43 = vadd.f32 %v2272_v42, %v661_v41  ;;  %2144 = vmatmul.bf16.gmra.mxu2 %v3181_v39 }
 0x1b2   : > { %2313 = vmatmul.bf16.gmra.mxu3 %v3185_v40 }
 0x1b3   : > { %2494 = vst [vmem:[%s4495_s15 + $0x8] sm:$0xff] %v2430_v43 }
 0x1b4   : > { %v2105_v45 = vpop.f32.mrf.mxu2  ;;  %v1769_v48 = vpop.f32.mrf.mxu0 }
 0x1b5   : > { %v2274_v46 = vpop.f32.mrf.mxu3  ;;  %v2106_v47 = vadd.f32 %v2105_v45, %v1937_v44  ;;  %v1938_v49 = vpop.f32.mrf.mxu1 }
 0x1b6   : > { %v1939_v61 = vadd.f32 %v1938_v49, %v1769_v48  ;;  %v3220_v48 = vld [vmem:[%s4497_s18 + $0x180] sm:$0xf]  ;;  %v3720_v49 = vld [vmem:[%s4497_s18 + $0x18c] sm:$0xf0] }
 0x1b7   : > { %v2275_v51 = vadd.f32 %v2274_v46, %v2106_v47  ;;  %v666_v46 = vld [vmem:[%s4495_s15 + $0x30] sm:$0xff]  ;;  %v3221_v60 = vor.u32 %v3720_v49, %v3220_v48  ;;  %v3260_v49 = vld [vmem:[%s4497_s18 + $0x1c8] sm:$0xf] }
 0x1b8   : > { %v3254_v48 = vld [vmem:[%s4497_s18 + $0x1d0] sm:$0xf0] }
 0x1b9   : > { %v2431_v54 = vadd.f32 %v2275_v51, %v662_v50  ;;  %v3718_v51 = vld [vmem:[%s4497_s18 + $0x184] sm:$0xf] }
 0x1bb   : > { %2495 = vst [vmem:[%s4495_s15 + $0x10] sm:$0xff] %v2431_v54  ;;  %v3721_v54 = vld [vmem:[%s4497_s18 + $0x194] sm:$0xf0] }
 0x1bc   : > { %v2107_v62 = vpop.f32.mrf.mxu2  ;;  %v1772_v3 = vpop.f32.mrf.mxu0 }
 0x1bd   : > { %v2276_v63 = vpop.f32.mrf.mxu3  ;;  %v2108_v2 = vadd.f32 %v2107_v62, %v1939_v61  ;;  %v1941_v4 = vpop.f32.mrf.mxu1  ;;  %v3225_v61 = vor.u32 %v3718_v51, %v3222_v52  ;;  %v3727_v51 = vld [vmem:[%s4497_s18 + $0x1cc] sm:$0xf]  ;;  %v3262_v52 = vld [vmem:[%s4497_s18 + $0x1d8] sm:$0xf0] }
 0x1be   : > { %v1942_v10 = vadd.f32 %v1941_v4, %v1772_v3  ;;  %v667_v3 = vld [vmem:[%s4495_s15 + $0x38] sm:$0xff] }
 0x1bf   : > { %v2277_v8 = vadd.f32 %v2276_v63, %v2108_v2  ;;  %1811 = vmatmul.bf16.gmra.mxu0 %v3189_v0  ;;  %v3233_v2 = vor.u32 %v3719_v55, %v3230_v56 }
 0x1c0   : > { %1980 = vmatmul.bf16.gmra.mxu1 %v3193_v1  ;;  %v3229_v1 = vor.u32 %v3721_v54, %v3228_v53 }
 0x1c1   : > { %v2432_v9 = vadd.f32 %v2277_v8, %v663_v7  ;;  %2149 = vmatmul.bf16.gmra.mxu2 %v3197_v5 }
 0x1c2   : > { %2318 = vmatmul.bf16.gmra.mxu3 %v3201_v6 }
 0x1c3   : > { %2496 = vst [vmem:[%s4495_s15 + $0x18] sm:$0xff] %v2432_v9 }
 0x1c4   : > { %v2110_v11 = vpop.f32.mrf.mxu2  ;;  %v1774_v14 = vpop.f32.mrf.mxu0 }
 0x1c5   : > { %v2279_v12 = vpop.f32.mrf.mxu3  ;;  %v2111_v13 = vadd.f32 %v2110_v11, %v1942_v10  ;;  %v1943_v15 = vpop.f32.mrf.mxu1 }
 0x1c6   : > { %v1944_v27 = vadd.f32 %v1943_v15, %v1774_v14  ;;  %v3236_v14 = vld [vmem:[%s4497_s18 + $0x1a0] sm:$0xf]  ;;  %v3724_v15 = vld [vmem:[%s4497_s18 + $0x1ac] sm:$0xf0] }
 0x1c7   : > { %v2280_v17 = vadd.f32 %v2279_v12, %v2111_v13  ;;  %v668_v12 = vld [vmem:[%s4495_s15 + $0x40] sm:$0xff]  ;;  %v3237_v26 = vor.u32 %v3724_v15, %v3236_v14  ;;  %v3270_v14 = vld [vmem:[%s4497_s18 + $0x1f0] sm:$0xf0]  ;;  %v3276_v15 = vld [vmem:[%s4497_s18 + $0x1e8] sm:$0xf] }
 0x1c9   : > { %v2433_v20 = vadd.f32 %v2280_v17, %v664_v16  ;;  %v3722_v17 = vld [vmem:[%s4497_s18 + $0x1a4] sm:$0xf] }
 0x1cb   : > { %2497 = vst [vmem:[%s4495_s15 + $0x20] sm:$0xff] %v2433_v20  ;;  %v3725_v20 = vld [vmem:[%s4497_s18 + $0x1b4] sm:$0xf0] }
 0x1cc   : > { %v2112_v28 = vpop.f32.mrf.mxu2  ;;  %v1777_v33 = vpop.f32.mrf.mxu0 }
 0x1cd   : > { %v2281_v29 = vpop.f32.mrf.mxu3  ;;  %v2113_v32 = vadd.f32 %v2112_v28, %v1944_v27  ;;  %v1946_v34 = vpop.f32.mrf.mxu1  ;;  %v3241_v27 = vor.u32 %v3722_v17, %v3238_v18  ;;  %v3731_v17 = vld [vmem:[%s4497_s18 + $0x1ec] sm:$0xf]  ;;  %v3278_v18 = vld [vmem:[%s4497_s18 + $0x1f8] sm:$0xf0] }
 0x1ce   : > { %v1947_v40 = vadd.f32 %v1946_v34, %v1777_v33  ;;  %v669_v33 = vld [vmem:[%s4495_s15 + $0x48] sm:$0xff] }
 0x1cf   : > { %v2282_v38 = vadd.f32 %v2281_v29, %v2113_v32  ;;  %1816 = vmatmul.bf16.gmra.mxu0 %v3205_v30  ;;  %v3249_v32 = vor.u32 %v3723_v21, %v3246_v22 }
 0x1d0   : > { %1985 = vmatmul.bf16.gmra.mxu1 %v3209_v31  ;;  %v3245_v31 = vor.u32 %v3725_v20, %v3244_v19 }
 0x1d1   : > { %v2434_v39 = vadd.f32 %v2282_v38, %v665_v37  ;;  %2154 = vmatmul.bf16.gmra.mxu2 %v3213_v35 }
 0x1d2   : > { %2323 = vmatmul.bf16.gmra.mxu3 %v3217_v36 }
 0x1d3   : > { %2498 = vst [vmem:[%s4495_s15 + $0x28] sm:$0xff] %v2434_v39 }
 0x1d4   : > { %v2115_v41 = vpop.f32.mrf.mxu2  ;;  %v1779_v44 = vpop.f32.mrf.mxu0 }
 0x1d5   : > { %v2284_v42 = vpop.f32.mrf.mxu3  ;;  %v2116_v43 = vadd.f32 %v2115_v41, %v1947_v40  ;;  %v1948_v45 = vpop.f32.mrf.mxu1 }
 0x1d6   : > { %v1949_v57 = vadd.f32 %v1948_v45, %v1779_v44  ;;  %v3252_v44 = vld [vmem:[%s4497_s18 + $0x1c0] sm:$0xf]  ;;  %v3728_v45 = vld [vmem:[%s4497_s18 + $0x1cc] sm:$0xf0] }
 0x1d7   : > { %v2285_v47 = vadd.f32 %v2284_v42, %v2116_v43  ;;  %v670_v42 = vld [vmem:[%s4495_s15 + $0x50] sm:$0xff]  ;;  %v3253_v56 = vor.u32 %v3728_v45, %v3252_v44  ;;  %v3292_v45 = vld [vmem:[%s4497_s18 + $0x208] sm:$0xf] }
 0x1d8   : > { %v3286_v44 = vld [vmem:[%s4497_s18 + $0x210] sm:$0xf0] }
 0x1d9   : > { %v2435_v50 = vadd.f32 %v2285_v47, %v666_v46  ;;  %v3726_v47 = vld [vmem:[%s4497_s18 + $0x1c4] sm:$0xf] }
 0x1db   : > { %2499 = vst [vmem:[%s4495_s15 + $0x30] sm:$0xff] %v2435_v50  ;;  %v3729_v50 = vld [vmem:[%s4497_s18 + $0x1d4] sm:$0xf0] }
 0x1dc   : > { %v2117_v58 = vpop.f32.mrf.mxu2  ;;  %v1782_v63 = vpop.f32.mrf.mxu0 }
 0x1dd   : > { %v2286_v59 = vpop.f32.mrf.mxu3  ;;  %v2118_v62 = vadd.f32 %v2117_v58, %v1949_v57  ;;  %v1951_v0 = vpop.f32.mrf.mxu1  ;;  %v3257_v57 = vor.u32 %v3726_v47, %v3254_v48  ;;  %v3735_v47 = vld [vmem:[%s4497_s18 + $0x20c] sm:$0xf]  ;;  %v3294_v48 = vld [vmem:[%s4497_s18 + $0x218] sm:$0xf0] }
 0x1de   : > { %v1952_v6 = vadd.f32 %v1951_v0, %v1782_v63  ;;  %v671_v63 = vld [vmem:[%s4495_s15 + $0x58] sm:$0xff] }
 0x1df   : > { %v2287_v4 = vadd.f32 %v2286_v59, %v2118_v62  ;;  %1821 = vmatmul.bf16.gmra.mxu0 %v3221_v60  ;;  %v3265_v62 = vor.u32 %v3727_v51, %v3262_v52 }
 0x1e0   : > { %1990 = vmatmul.bf16.gmra.mxu1 %v3225_v61  ;;  %v3261_v61 = vor.u32 %v3729_v50, %v3260_v49 }
 0x1e1   : > { %v2436_v5 = vadd.f32 %v2287_v4, %v667_v3  ;;  %2159 = vmatmul.bf16.gmra.mxu2 %v3229_v1 }
 0x1e2   : > { %2328 = vmatmul.bf16.gmra.mxu3 %v3233_v2 }
 0x1e3   : > { %2500 = vst [vmem:[%s4495_s15 + $0x38] sm:$0xff] %v2436_v5 }
 0x1e4   : > { %v2120_v7 = vpop.f32.mrf.mxu2  ;;  %v1784_v10 = vpop.f32.mrf.mxu0 }
 0x1e5   : > { %v2289_v8 = vpop.f32.mrf.mxu3  ;;  %v2121_v9 = vadd.f32 %v2120_v7, %v1952_v6  ;;  %v1953_v11 = vpop.f32.mrf.mxu1 }
 0x1e6   : > { %v1954_v23 = vadd.f32 %v1953_v11, %v1784_v10  ;;  %v3268_v10 = vld [vmem:[%s4497_s18 + $0x1e0] sm:$0xf]  ;;  %v3732_v11 = vld [vmem:[%s4497_s18 + $0x1ec] sm:$0xf0] }
 0x1e7   : > { %v2290_v13 = vadd.f32 %v2289_v8, %v2121_v9  ;;  %v672_v8 = vld [vmem:[%s4495_s15 + $0x60] sm:$0xff]  ;;  %v3269_v22 = vor.u32 %v3732_v11, %v3268_v10  ;;  %v3302_v10 = vld [vmem:[%s4497_s18 + $0x230] sm:$0xf0]  ;;  %v3308_v11 = vld [vmem:[%s4497_s18 + $0x228] sm:$0xf] }
 0x1e9   : > { %v2437_v16 = vadd.f32 %v2290_v13, %v668_v12  ;;  %v3730_v13 = vld [vmem:[%s4497_s18 + $0x1e4] sm:$0xf] }
 0x1eb   : > { %2501 = vst [vmem:[%s4495_s15 + $0x40] sm:$0xff] %v2437_v16  ;;  %v3733_v16 = vld [vmem:[%s4497_s18 + $0x1f4] sm:$0xf0] }
 0x1ec   : > { %v2122_v24 = vpop.f32.mrf.mxu2  ;;  %v1787_v29 = vpop.f32.mrf.mxu0 }
 0x1ed   : > { %v2291_v25 = vpop.f32.mrf.mxu3  ;;  %v2123_v28 = vadd.f32 %v2122_v24, %v1954_v23  ;;  %v1956_v30 = vpop.f32.mrf.mxu1  ;;  %v3273_v23 = vor.u32 %v3730_v13, %v3270_v14  ;;  %v3739_v13 = vld [vmem:[%s4497_s18 + $0x22c] sm:$0xf]  ;;  %v3310_v14 = vld [vmem:[%s4497_s18 + $0x238] sm:$0xf0] }
 0x1ee   : > { %v1957_v36 = vadd.f32 %v1956_v30, %v1787_v29  ;;  %v673_v29 = vld [vmem:[%s4495_s15 + $0x68] sm:$0xff] }
 0x1ef   : > { %v2292_v34 = vadd.f32 %v2291_v25, %v2123_v28  ;;  %1826 = vmatmul.bf16.gmra.mxu0 %v3237_v26  ;;  %v3281_v28 = vor.u32 %v3731_v17, %v3278_v18 }
 0x1f0   : > { %1995 = vmatmul.bf16.gmra.mxu1 %v3241_v27  ;;  %v3277_v27 = vor.u32 %v3733_v16, %v3276_v15 }
 0x1f1   : > { %v2438_v35 = vadd.f32 %v2292_v34, %v669_v33  ;;  %2164 = vmatmul.bf16.gmra.mxu2 %v3245_v31 }
 0x1f2   : > { %2333 = vmatmul.bf16.gmra.mxu3 %v3249_v32 }
 0x1f3   : > { %2502 = vst [vmem:[%s4495_s15 + $0x48] sm:$0xff] %v2438_v35 }
 0x1f4   : > { %v2125_v37 = vpop.f32.mrf.mxu2  ;;  %v1789_v40 = vpop.f32.mrf.mxu0 }
 0x1f5   : > { %v2294_v38 = vpop.f32.mrf.mxu3  ;;  %v2126_v39 = vadd.f32 %v2125_v37, %v1957_v36  ;;  %v1958_v41 = vpop.f32.mrf.mxu1 }
 0x1f6   : > { %v1959_v53 = vadd.f32 %v1958_v41, %v1789_v40  ;;  %v3284_v40 = vld [vmem:[%s4497_s18 + $0x200] sm:$0xf]  ;;  %v3736_v41 = vld [vmem:[%s4497_s18 + $0x20c] sm:$0xf0] }
 0x1f7   : > { %v2295_v43 = vadd.f32 %v2294_v38, %v2126_v39  ;;  %v674_v38 = vld [vmem:[%s4495_s15 + $0x70] sm:$0xff]  ;;  %v3285_v52 = vor.u32 %v3736_v41, %v3284_v40  ;;  %v3324_v41 = vld [vmem:[%s4497_s18 + $0x248] sm:$0xf] }
 0x1f8   : > { %v3318_v40 = vld [vmem:[%s4497_s18 + $0x250] sm:$0xf0] }
 0x1f9   : > { %v2439_v46 = vadd.f32 %v2295_v43, %v670_v42  ;;  %v3734_v43 = vld [vmem:[%s4497_s18 + $0x204] sm:$0xf] }
 0x1fb   : > { %2503 = vst [vmem:[%s4495_s15 + $0x50] sm:$0xff] %v2439_v46  ;;  %v3737_v46 = vld [vmem:[%s4497_s18 + $0x214] sm:$0xf0] }
 0x1fc   : > { %v2127_v54 = vpop.f32.mrf.mxu2  ;;  %v1792_v59 = vpop.f32.mrf.mxu0 }
 0x1fd   : > { %v2296_v55 = vpop.f32.mrf.mxu3  ;;  %v2128_v58 = vadd.f32 %v2127_v54, %v1959_v53  ;;  %v1961_v60 = vpop.f32.mrf.mxu1  ;;  %v3289_v53 = vor.u32 %v3734_v43, %v3286_v44  ;;  %v3743_v43 = vld [vmem:[%s4497_s18 + $0x24c] sm:$0xf]  ;;  %v3326_v44 = vld [vmem:[%s4497_s18 + $0x258] sm:$0xf0] }
 0x1fe   : > { %v1962_v2 = vadd.f32 %v1961_v60, %v1792_v59  ;;  %v675_v59 = vld [vmem:[%s4495_s15 + $0x78] sm:$0xff] }
 0x1ff   : > { %v2297_v0 = vadd.f32 %v2296_v55, %v2128_v58  ;;  %1831 = vmatmul.bf16.gmra.mxu0 %v3253_v56  ;;  %v3297_v58 = vor.u32 %v3735_v47, %v3294_v48 }
 0x200   : > { %2000 = vmatmul.bf16.gmra.mxu1 %v3257_v57  ;;  %v3293_v57 = vor.u32 %v3737_v46, %v3292_v45 }
 0x201   : > { %v2440_v1 = vadd.f32 %v2297_v0, %v671_v63  ;;  %2169 = vmatmul.bf16.gmra.mxu2 %v3261_v61 }
 0x202   : > { %2338 = vmatmul.bf16.gmra.mxu3 %v3265_v62 }
 0x203   : > { %2504 = vst [vmem:[%s4495_s15 + $0x58] sm:$0xff] %v2440_v1 }
 0x204   : > { %v2130_v3 = vpop.f32.mrf.mxu2  ;;  %v1794_v6 = vpop.f32.mrf.mxu0 }
 0x205   : > { %v2299_v4 = vpop.f32.mrf.mxu3  ;;  %v2131_v5 = vadd.f32 %v2130_v3, %v1962_v2  ;;  %v1963_v7 = vpop.f32.mrf.mxu1 }
 0x206   : > { %v1964_v19 = vadd.f32 %v1963_v7, %v1794_v6  ;;  %v3300_v6 = vld [vmem:[%s4497_s18 + $0x220] sm:$0xf]  ;;  %v3740_v7 = vld [vmem:[%s4497_s18 + $0x22c] sm:$0xf0] }
 0x207   : > { %v2300_v9 = vadd.f32 %v2299_v4, %v2131_v5  ;;  %v676_v4 = vld [vmem:[%s4495_s15 + $0x80] sm:$0xff]  ;;  %v3301_v18 = vor.u32 %v3740_v7, %v3300_v6  ;;  %v3334_v6 = vld [vmem:[%s4497_s18 + $0x270] sm:$0xf0]  ;;  %v3340_v7 = vld [vmem:[%s4497_s18 + $0x268] sm:$0xf] }
 0x209   : > { %v2441_v12 = vadd.f32 %v2300_v9, %v672_v8  ;;  %v3738_v9 = vld [vmem:[%s4497_s18 + $0x224] sm:$0xf] }
 0x20b   : > { %2505 = vst [vmem:[%s4495_s15 + $0x60] sm:$0xff] %v2441_v12  ;;  %v3741_v12 = vld [vmem:[%s4497_s18 + $0x234] sm:$0xf0] }
 0x20c   : > { %v2132_v20 = vpop.f32.mrf.mxu2  ;;  %v1797_v25 = vpop.f32.mrf.mxu0 }
 0x20d   : > { %v2301_v21 = vpop.f32.mrf.mxu3  ;;  %v2133_v24 = vadd.f32 %v2132_v20, %v1964_v19  ;;  %v1966_v26 = vpop.f32.mrf.mxu1  ;;  %v3305_v19 = vor.u32 %v3738_v9, %v3302_v10  ;;  %v3747_v9 = vld [vmem:[%s4497_s18 + $0x26c] sm:$0xf]  ;;  %v3342_v10 = vld [vmem:[%s4497_s18 + $0x278] sm:$0xf0] }
 0x20e   : > { %v1967_v32 = vadd.f32 %v1966_v26, %v1797_v25  ;;  %v677_v25 = vld [vmem:[%s4495_s15 + $0x88] sm:$0xff] }
 0x20f   : > { %v2302_v30 = vadd.f32 %v2301_v21, %v2133_v24  ;;  %1836 = vmatmul.bf16.gmra.mxu0 %v3269_v22  ;;  %v3313_v24 = vor.u32 %v3739_v13, %v3310_v14 }
 0x210   : > { %2005 = vmatmul.bf16.gmra.mxu1 %v3273_v23  ;;  %v3309_v23 = vor.u32 %v3741_v12, %v3308_v11 }
 0x211   : > { %v2442_v31 = vadd.f32 %v2302_v30, %v673_v29  ;;  %2174 = vmatmul.bf16.gmra.mxu2 %v3277_v27 }
 0x212   : > { %2343 = vmatmul.bf16.gmra.mxu3 %v3281_v28 }
 0x213   : > { %2506 = vst [vmem:[%s4495_s15 + $0x68] sm:$0xff] %v2442_v31 }
 0x214   : > { %v2135_v33 = vpop.f32.mrf.mxu2  ;;  %v1799_v36 = vpop.f32.mrf.mxu0 }
 0x215   : > { %v2304_v34 = vpop.f32.mrf.mxu3  ;;  %v2136_v35 = vadd.f32 %v2135_v33, %v1967_v32  ;;  %v1968_v37 = vpop.f32.mrf.mxu1 }
 0x216   : > { %v1969_v49 = vadd.f32 %v1968_v37, %v1799_v36  ;;  %v3316_v36 = vld [vmem:[%s4497_s18 + $0x240] sm:$0xf]  ;;  %v3744_v37 = vld [vmem:[%s4497_s18 + $0x24c] sm:$0xf0] }
 0x217   : > { %v2305_v39 = vadd.f32 %v2304_v34, %v2136_v35  ;;  %v678_v34 = vld [vmem:[%s4495_s15 + $0x90] sm:$0xff]  ;;  %v3317_v48 = vor.u32 %v3744_v37, %v3316_v36  ;;  %v3356_v37 = vld [vmem:[%s4497_s18 + $0x288] sm:$0xf] }
 0x218   : > { %v3350_v36 = vld [vmem:[%s4497_s18 + $0x290] sm:$0xf0] }
 0x219   : > { %v2443_v42 = vadd.f32 %v2305_v39, %v674_v38  ;;  %v3742_v39 = vld [vmem:[%s4497_s18 + $0x244] sm:$0xf] }
 0x21b   : > { %2507 = vst [vmem:[%s4495_s15 + $0x70] sm:$0xff] %v2443_v42  ;;  %v3745_v42 = vld [vmem:[%s4497_s18 + $0x254] sm:$0xf0] }
 0x21c   : > { %v2137_v50 = vpop.f32.mrf.mxu2  ;;  %v1802_v55 = vpop.f32.mrf.mxu0 }
 0x21d   : > { %v2306_v51 = vpop.f32.mrf.mxu3  ;;  %v2138_v54 = vadd.f32 %v2137_v50, %v1969_v49  ;;  %v1971_v56 = vpop.f32.mrf.mxu1  ;;  %v3321_v49 = vor.u32 %v3742_v39, %v3318_v40  ;;  %v3751_v39 = vld [vmem:[%s4497_s18 + $0x28c] sm:$0xf]  ;;  %v3358_v40 = vld [vmem:[%s4497_s18 + $0x298] sm:$0xf0] }
 0x21e   : > { %v1972_v62 = vadd.f32 %v1971_v56, %v1802_v55  ;;  %v679_v55 = vld [vmem:[%s4495_s15 + $0x98] sm:$0xff] }
 0x21f   : > { %v2307_v60 = vadd.f32 %v2306_v51, %v2138_v54  ;;  %1841 = vmatmul.bf16.gmra.mxu0 %v3285_v52  ;;  %v3329_v54 = vor.u32 %v3743_v43, %v3326_v44 }
 0x220   : > { %2010 = vmatmul.bf16.gmra.mxu1 %v3289_v53  ;;  %v3325_v53 = vor.u32 %v3745_v42, %v3324_v41 }
 0x221   : > { %v2444_v61 = vadd.f32 %v2307_v60, %v675_v59  ;;  %2179 = vmatmul.bf16.gmra.mxu2 %v3293_v57 }
 0x222   : > { %2348 = vmatmul.bf16.gmra.mxu3 %v3297_v58 }
 0x223   : > { %2508 = vst [vmem:[%s4495_s15 + $0x78] sm:$0xff] %v2444_v61 }
 0x224   : > { %v2140_v63 = vpop.f32.mrf.mxu2  ;;  %v1804_v2 = vpop.f32.mrf.mxu0 }
 0x225   : > { %v2309_v0 = vpop.f32.mrf.mxu3  ;;  %v2141_v1 = vadd.f32 %v2140_v63, %v1972_v62  ;;  %v1973_v3 = vpop.f32.mrf.mxu1 }
 0x226   : > { %v1974_v15 = vadd.f32 %v1973_v3, %v1804_v2  ;;  %v3332_v2 = vld [vmem:[%s4497_s18 + $0x260] sm:$0xf]  ;;  %v3748_v3 = vld [vmem:[%s4497_s18 + $0x26c] sm:$0xf0] }
 0x227   : > { %v2310_v5 = vadd.f32 %v2309_v0, %v2141_v1  ;;  %v680_v0 = vld [vmem:[%s4495_s15 + $0xa0] sm:$0xff]  ;;  %v3333_v14 = vor.u32 %v3748_v3, %v3332_v2  ;;  %v3366_v2 = vld [vmem:[%s4497_s18 + $0x2b0] sm:$0xf0]  ;;  %v3372_v3 = vld [vmem:[%s4497_s18 + $0x2a8] sm:$0xf] }
 0x229   : > { %v2445_v8 = vadd.f32 %v2310_v5, %v676_v4  ;;  %v3746_v5 = vld [vmem:[%s4497_s18 + $0x264] sm:$0xf] }
 0x22b   : > { %2509 = vst [vmem:[%s4495_s15 + $0x80] sm:$0xff] %v2445_v8  ;;  %v3749_v8 = vld [vmem:[%s4497_s18 + $0x274] sm:$0xf0] }
 0x22c   : > { %v2142_v16 = vpop.f32.mrf.mxu2  ;;  %v1807_v21 = vpop.f32.mrf.mxu0 }
 0x22d   : > { %v2311_v17 = vpop.f32.mrf.mxu3  ;;  %v2143_v20 = vadd.f32 %v2142_v16, %v1974_v15  ;;  %v1976_v22 = vpop.f32.mrf.mxu1  ;;  %v3337_v15 = vor.u32 %v3746_v5, %v3334_v6  ;;  %v3755_v5 = vld [vmem:[%s4497_s18 + $0x2ac] sm:$0xf]  ;;  %v3374_v6 = vld [vmem:[%s4497_s18 + $0x2b8] sm:$0xf0] }
 0x22e   : > { %v1977_v28 = vadd.f32 %v1976_v22, %v1807_v21  ;;  %v681_v21 = vld [vmem:[%s4495_s15 + $0xa8] sm:$0xff] }
 0x22f   : > { %v2312_v26 = vadd.f32 %v2311_v17, %v2143_v20  ;;  %1846 = vmatmul.bf16.gmra.mxu0 %v3301_v18  ;;  %v3345_v20 = vor.u32 %v3747_v9, %v3342_v10 }
 0x230   : > { %2015 = vmatmul.bf16.gmra.mxu1 %v3305_v19  ;;  %v3341_v19 = vor.u32 %v3749_v8, %v3340_v7 }
 0x231   : > { %v2446_v27 = vadd.f32 %v2312_v26, %v677_v25  ;;  %2184 = vmatmul.bf16.gmra.mxu2 %v3309_v23 }
 0x232   : > { %2353 = vmatmul.bf16.gmra.mxu3 %v3313_v24 }
 0x233   : > { %2510 = vst [vmem:[%s4495_s15 + $0x88] sm:$0xff] %v2446_v27 }
 0x234   : > { %v2145_v29 = vpop.f32.mrf.mxu2  ;;  %v1809_v32 = vpop.f32.mrf.mxu0 }
 0x235   : > { %v2314_v30 = vpop.f32.mrf.mxu3  ;;  %v2146_v31 = vadd.f32 %v2145_v29, %v1977_v28  ;;  %v1978_v33 = vpop.f32.mrf.mxu1 }
 0x236   : > { %v1979_v45 = vadd.f32 %v1978_v33, %v1809_v32  ;;  %v3348_v32 = vld [vmem:[%s4497_s18 + $0x280] sm:$0xf]  ;;  %v3752_v33 = vld [vmem:[%s4497_s18 + $0x28c] sm:$0xf0] }
 0x237   : > { %v2315_v35 = vadd.f32 %v2314_v30, %v2146_v31  ;;  %v682_v30 = vld [vmem:[%s4495_s15 + $0xb0] sm:$0xff]  ;;  %v3349_v44 = vor.u32 %v3752_v33, %v3348_v32  ;;  %v3388_v33 = vld [vmem:[%s4497_s18 + $0x2c8] sm:$0xf] }
 0x238   : > { %v3382_v32 = vld [vmem:[%s4497_s18 + $0x2d0] sm:$0xf0] }
 0x239   : > { %v2447_v38 = vadd.f32 %v2315_v35, %v678_v34  ;;  %v3750_v35 = vld [vmem:[%s4497_s18 + $0x284] sm:$0xf] }
 0x23b   : > { %2511 = vst [vmem:[%s4495_s15 + $0x90] sm:$0xff] %v2447_v38  ;;  %v3753_v38 = vld [vmem:[%s4497_s18 + $0x294] sm:$0xf0] }
 0x23c   : > { %v2147_v46 = vpop.f32.mrf.mxu2  ;;  %v1812_v51 = vpop.f32.mrf.mxu0 }
 0x23d   : > { %v2316_v47 = vpop.f32.mrf.mxu3  ;;  %v2148_v50 = vadd.f32 %v2147_v46, %v1979_v45  ;;  %v1981_v52 = vpop.f32.mrf.mxu1  ;;  %v3353_v45 = vor.u32 %v3750_v35, %v3350_v36  ;;  %v3759_v35 = vld [vmem:[%s4497_s18 + $0x2cc] sm:$0xf]  ;;  %v3390_v36 = vld [vmem:[%s4497_s18 + $0x2d8] sm:$0xf0] }
 0x23e   : > { %v1982_v58 = vadd.f32 %v1981_v52, %v1812_v51  ;;  %v683_v51 = vld [vmem:[%s4495_s15 + $0xb8] sm:$0xff] }
 0x23f   : > { %v2317_v56 = vadd.f32 %v2316_v47, %v2148_v50  ;;  %1851 = vmatmul.bf16.gmra.mxu0 %v3317_v48  ;;  %v3361_v50 = vor.u32 %v3751_v39, %v3358_v40 }
 0x240   : > { %2020 = vmatmul.bf16.gmra.mxu1 %v3321_v49  ;;  %v3357_v49 = vor.u32 %v3753_v38, %v3356_v37 }
 0x241   : > { %v2448_v57 = vadd.f32 %v2317_v56, %v679_v55  ;;  %2189 = vmatmul.bf16.gmra.mxu2 %v3325_v53 }
 0x242   : > { %2358 = vmatmul.bf16.gmra.mxu3 %v3329_v54 }
 0x243   : > { %2512 = vst [vmem:[%s4495_s15 + $0x98] sm:$0xff] %v2448_v57 }
 0x244   : > { %v2150_v59 = vpop.f32.mrf.mxu2  ;;  %v1814_v62 = vpop.f32.mrf.mxu0 }
 0x245   : > { %v2319_v60 = vpop.f32.mrf.mxu3  ;;  %v2151_v61 = vadd.f32 %v2150_v59, %v1982_v58  ;;  %v1983_v63 = vpop.f32.mrf.mxu1 }
 0x246   : > { %v1984_v11 = vadd.f32 %v1983_v63, %v1814_v62  ;;  %v3364_v62 = vld [vmem:[%s4497_s18 + $0x2a0] sm:$0xf]  ;;  %v3756_v63 = vld [vmem:[%s4497_s18 + $0x2ac] sm:$0xf0] }
 0x247   : > { %v2320_v1 = vadd.f32 %v2319_v60, %v2151_v61  ;;  %v684_v60 = vld [vmem:[%s4495_s15 + $0xc0] sm:$0xff]  ;;  %v3365_v10 = vor.u32 %v3756_v63, %v3364_v62  ;;  %v3398_v62 = vld [vmem:[%s4497_s18 + $0x2f0] sm:$0xf0]  ;;  %v3404_v63 = vld [vmem:[%s4497_s18 + $0x2e8] sm:$0xf] }
 0x249   : > { %v2449_v4 = vadd.f32 %v2320_v1, %v680_v0  ;;  %v3754_v1 = vld [vmem:[%s4497_s18 + $0x2a4] sm:$0xf] }
 0x24b   : > { %2513 = vst [vmem:[%s4495_s15 + $0xa0] sm:$0xff] %v2449_v4  ;;  %v3757_v4 = vld [vmem:[%s4497_s18 + $0x2b4] sm:$0xf0] }
 0x24c   : > { %v2152_v12 = vpop.f32.mrf.mxu2  ;;  %v1817_v17 = vpop.f32.mrf.mxu0 }
 0x24d   : > { %v2321_v13 = vpop.f32.mrf.mxu3  ;;  %v2153_v16 = vadd.f32 %v2152_v12, %v1984_v11  ;;  %v1986_v18 = vpop.f32.mrf.mxu1  ;;  %v3369_v11 = vor.u32 %v3754_v1, %v3366_v2  ;;  %v3763_v1 = vld [vmem:[%s4497_s18 + $0x2ec] sm:$0xf]  ;;  %v3406_v2 = vld [vmem:[%s4497_s18 + $0x2f8] sm:$0xf0] }
 0x24e   : > { %v1987_v24 = vadd.f32 %v1986_v18, %v1817_v17  ;;  %v685_v17 = vld [vmem:[%s4495_s15 + $0xc8] sm:$0xff] }
 0x24f   : > { %v2322_v22 = vadd.f32 %v2321_v13, %v2153_v16  ;;  %1856 = vmatmul.bf16.gmra.mxu0 %v3333_v14  ;;  %v3377_v16 = vor.u32 %v3755_v5, %v3374_v6 }
 0x250   : > { %2025 = vmatmul.bf16.gmra.mxu1 %v3337_v15  ;;  %v3373_v15 = vor.u32 %v3757_v4, %v3372_v3 }
 0x251   : > { %v2450_v23 = vadd.f32 %v2322_v22, %v681_v21  ;;  %2194 = vmatmul.bf16.gmra.mxu2 %v3341_v19 }
 0x252   : > { %2363 = vmatmul.bf16.gmra.mxu3 %v3345_v20 }
 0x253   : > { %2514 = vst [vmem:[%s4495_s15 + $0xa8] sm:$0xff] %v2450_v23 }
 0x254   : > { %v2155_v25 = vpop.f32.mrf.mxu2  ;;  %v1819_v28 = vpop.f32.mrf.mxu0 }
 0x255   : > { %v2324_v26 = vpop.f32.mrf.mxu3  ;;  %v2156_v27 = vadd.f32 %v2155_v25, %v1987_v24  ;;  %v1988_v29 = vpop.f32.mrf.mxu1 }
 0x256   : > { %v1989_v41 = vadd.f32 %v1988_v29, %v1819_v28  ;;  %v3380_v28 = vld [vmem:[%s4497_s18 + $0x2c0] sm:$0xf]  ;;  %v3760_v29 = vld [vmem:[%s4497_s18 + $0x2cc] sm:$0xf0] }
 0x257   : > { %v2325_v31 = vadd.f32 %v2324_v26, %v2156_v27  ;;  %v686_v26 = vld [vmem:[%s4495_s15 + $0xd0] sm:$0xff]  ;;  %v3381_v40 = vor.u32 %v3760_v29, %v3380_v28  ;;  %v3420_v29 = vld [vmem:[%s4497_s18 + $0x308] sm:$0xf] }
 0x258   : > { %v3414_v28 = vld [vmem:[%s4497_s18 + $0x310] sm:$0xf0] }
 0x259   : > { %v2451_v34 = vadd.f32 %v2325_v31, %v682_v30  ;;  %v3758_v31 = vld [vmem:[%s4497_s18 + $0x2c4] sm:$0xf] }
 0x25b   : > { %2515 = vst [vmem:[%s4495_s15 + $0xb0] sm:$0xff] %v2451_v34  ;;  %v3761_v34 = vld [vmem:[%s4497_s18 + $0x2d4] sm:$0xf0] }
 0x25c   : > { %v2157_v42 = vpop.f32.mrf.mxu2  ;;  %v1822_v47 = vpop.f32.mrf.mxu0 }
 0x25d   : > { %v2326_v43 = vpop.f32.mrf.mxu3  ;;  %v2158_v46 = vadd.f32 %v2157_v42, %v1989_v41  ;;  %v1991_v48 = vpop.f32.mrf.mxu1  ;;  %v3385_v41 = vor.u32 %v3758_v31, %v3382_v32  ;;  %v3767_v31 = vld [vmem:[%s4497_s18 + $0x30c] sm:$0xf]  ;;  %v3422_v32 = vld [vmem:[%s4497_s18 + $0x318] sm:$0xf0] }
 0x25e   : > { %v1992_v54 = vadd.f32 %v1991_v48, %v1822_v47  ;;  %v687_v47 = vld [vmem:[%s4495_s15 + $0xd8] sm:$0xff] }
 0x25f   : > { %v2327_v52 = vadd.f32 %v2326_v43, %v2158_v46  ;;  %1861 = vmatmul.bf16.gmra.mxu0 %v3349_v44  ;;  %v3393_v46 = vor.u32 %v3759_v35, %v3390_v36 }
 0x260   : > { %2030 = vmatmul.bf16.gmra.mxu1 %v3353_v45  ;;  %v3389_v45 = vor.u32 %v3761_v34, %v3388_v33 }
 0x261   : > { %v2452_v53 = vadd.f32 %v2327_v52, %v683_v51  ;;  %2199 = vmatmul.bf16.gmra.mxu2 %v3357_v49 }
 0x262   : > { %2368 = vmatmul.bf16.gmra.mxu3 %v3361_v50 }
 0x263   : > { %2516 = vst [vmem:[%s4495_s15 + $0xb8] sm:$0xff] %v2452_v53 }
 0x264   : > { %v2160_v55 = vpop.f32.mrf.mxu2  ;;  %v1824_v58 = vpop.f32.mrf.mxu0 }
 0x265   : > { %v2329_v56 = vpop.f32.mrf.mxu3  ;;  %v2161_v57 = vadd.f32 %v2160_v55, %v1992_v54  ;;  %v1993_v59 = vpop.f32.mrf.mxu1 }
 0x266   : > { %v1994_v7 = vadd.f32 %v1993_v59, %v1824_v58  ;;  %v3396_v58 = vld [vmem:[%s4497_s18 + $0x2e0] sm:$0xf]  ;;  %v3764_v59 = vld [vmem:[%s4497_s18 + $0x2ec] sm:$0xf0] }
 0x267   : > { %v2330_v61 = vadd.f32 %v2329_v56, %v2161_v57  ;;  %v688_v56 = vld [vmem:[%s4495_s15 + $0xe0] sm:$0xff]  ;;  %v3397_v6 = vor.u32 %v3764_v59, %v3396_v58  ;;  %v3430_v58 = vld [vmem:[%s4497_s18 + $0x330] sm:$0xf0]  ;;  %v3436_v59 = vld [vmem:[%s4497_s18 + $0x328] sm:$0xf] }
 0x269   : > { %v2453_v0 = vadd.f32 %v2330_v61, %v684_v60  ;;  %v3762_v61 = vld [vmem:[%s4497_s18 + $0x2e4] sm:$0xf] }
 0x26b   : > { %2517 = vst [vmem:[%s4495_s15 + $0xc0] sm:$0xff] %v2453_v0  ;;  %v3765_v0 = vld [vmem:[%s4497_s18 + $0x2f4] sm:$0xf0] }
 0x26c   : > { %v2162_v8 = vpop.f32.mrf.mxu2  ;;  %v1827_v13 = vpop.f32.mrf.mxu0 }
 0x26d   : > { %v2331_v9 = vpop.f32.mrf.mxu3  ;;  %v2163_v12 = vadd.f32 %v2162_v8, %v1994_v7  ;;  %v1996_v14 = vpop.f32.mrf.mxu1  ;;  %v3401_v7 = vor.u32 %v3762_v61, %v3398_v62  ;;  %v3771_v61 = vld [vmem:[%s4497_s18 + $0x32c] sm:$0xf]  ;;  %v3438_v62 = vld [vmem:[%s4497_s18 + $0x338] sm:$0xf0] }
 0x26e   : > { %v1997_v20 = vadd.f32 %v1996_v14, %v1827_v13  ;;  %v689_v13 = vld [vmem:[%s4495_s15 + $0xe8] sm:$0xff] }
 0x26f   : > { %v2332_v18 = vadd.f32 %v2331_v9, %v2163_v12  ;;  %1866 = vmatmul.bf16.gmra.mxu0 %v3365_v10  ;;  %v3409_v12 = vor.u32 %v3763_v1, %v3406_v2 }
 0x270   : > { %2035 = vmatmul.bf16.gmra.mxu1 %v3369_v11  ;;  %v3405_v11 = vor.u32 %v3765_v0, %v3404_v63 }
 0x271   : > { %v2454_v19 = vadd.f32 %v2332_v18, %v685_v17  ;;  %2204 = vmatmul.bf16.gmra.mxu2 %v3373_v15 }
 0x272   : > { %2373 = vmatmul.bf16.gmra.mxu3 %v3377_v16 }
 0x273   : > { %2518 = vst [vmem:[%s4495_s15 + $0xc8] sm:$0xff] %v2454_v19 }
 0x274   : > { %v2165_v21 = vpop.f32.mrf.mxu2  ;;  %v1829_v24 = vpop.f32.mrf.mxu0 }
 0x275   : > { %v2334_v22 = vpop.f32.mrf.mxu3  ;;  %v2166_v23 = vadd.f32 %v2165_v21, %v1997_v20  ;;  %v1998_v25 = vpop.f32.mrf.mxu1 }
 0x276   : > { %v1999_v37 = vadd.f32 %v1998_v25, %v1829_v24  ;;  %v3412_v24 = vld [vmem:[%s4497_s18 + $0x300] sm:$0xf]  ;;  %v3768_v25 = vld [vmem:[%s4497_s18 + $0x30c] sm:$0xf0] }
 0x277   : > { %v2335_v27 = vadd.f32 %v2334_v22, %v2166_v23  ;;  %v690_v22 = vld [vmem:[%s4495_s15 + $0xf0] sm:$0xff]  ;;  %v3413_v36 = vor.u32 %v3768_v25, %v3412_v24  ;;  %v3452_v25 = vld [vmem:[%s4497_s18 + $0x348] sm:$0xf] }
 0x278   : > { %v3446_v24 = vld [vmem:[%s4497_s18 + $0x350] sm:$0xf0] }
 0x279   : > { %v2455_v30 = vadd.f32 %v2335_v27, %v686_v26  ;;  %v3766_v27 = vld [vmem:[%s4497_s18 + $0x304] sm:$0xf] }
 0x27b   : > { %2519 = vst [vmem:[%s4495_s15 + $0xd0] sm:$0xff] %v2455_v30  ;;  %v3769_v30 = vld [vmem:[%s4497_s18 + $0x314] sm:$0xf0] }
 0x27c   : > { %v2167_v38 = vpop.f32.mrf.mxu2  ;;  %v1832_v43 = vpop.f32.mrf.mxu0 }
 0x27d   : > { %v2336_v39 = vpop.f32.mrf.mxu3  ;;  %v2168_v42 = vadd.f32 %v2167_v38, %v1999_v37  ;;  %v2001_v44 = vpop.f32.mrf.mxu1  ;;  %v3417_v37 = vor.u32 %v3766_v27, %v3414_v28  ;;  %v3775_v27 = vld [vmem:[%s4497_s18 + $0x34c] sm:$0xf]  ;;  %v3454_v28 = vld [vmem:[%s4497_s18 + $0x358] sm:$0xf0] }
 0x27e   : > { %v2002_v50 = vadd.f32 %v2001_v44, %v1832_v43  ;;  %v691_v43 = vld [vmem:[%s4495_s15 + $0xf8] sm:$0xff] }
 0x27f   : > { %v2337_v48 = vadd.f32 %v2336_v39, %v2168_v42  ;;  %1871 = vmatmul.bf16.gmra.mxu0 %v3381_v40  ;;  %v3425_v42 = vor.u32 %v3767_v31, %v3422_v32 }
 0x280   : > { %2040 = vmatmul.bf16.gmra.mxu1 %v3385_v41  ;;  %v3421_v41 = vor.u32 %v3769_v30, %v3420_v29 }
 0x281   : > { %v2456_v49 = vadd.f32 %v2337_v48, %v687_v47  ;;  %2209 = vmatmul.bf16.gmra.mxu2 %v3389_v45 }
 0x282   : > { %2378 = vmatmul.bf16.gmra.mxu3 %v3393_v46 }
 0x283   : > { %2520 = vst [vmem:[%s4495_s15 + $0xd8] sm:$0xff] %v2456_v49 }
 0x284   : > { %v2170_v51 = vpop.f32.mrf.mxu2  ;;  %v1834_v54 = vpop.f32.mrf.mxu0 }
 0x285   : > { %v2339_v52 = vpop.f32.mrf.mxu3  ;;  %v2171_v53 = vadd.f32 %v2170_v51, %v2002_v50  ;;  %v2003_v55 = vpop.f32.mrf.mxu1 }
 0x286   : > { %v2004_v3 = vadd.f32 %v2003_v55, %v1834_v54  ;;  %v3428_v54 = vld [vmem:[%s4497_s18 + $0x320] sm:$0xf]  ;;  %v3772_v55 = vld [vmem:[%s4497_s18 + $0x32c] sm:$0xf0] }
 0x287   : > { %v2340_v57 = vadd.f32 %v2339_v52, %v2171_v53  ;;  %v692_v52 = vld [vmem:[%s4495_s15 + $0x100] sm:$0xff]  ;;  %v3429_v2 = vor.u32 %v3772_v55, %v3428_v54  ;;  %v3462_v54 = vld [vmem:[%s4497_s18 + $0x370] sm:$0xf0]  ;;  %v3468_v55 = vld [vmem:[%s4497_s18 + $0x368] sm:$0xf] }
 0x289   : > { %v2457_v60 = vadd.f32 %v2340_v57, %v688_v56  ;;  %v3770_v57 = vld [vmem:[%s4497_s18 + $0x324] sm:$0xf] }
 0x28b   : > { %2521 = vst [vmem:[%s4495_s15 + $0xe0] sm:$0xff] %v2457_v60  ;;  %v3773_v60 = vld [vmem:[%s4497_s18 + $0x334] sm:$0xf0] }
 0x28c   : > { %v2172_v4 = vpop.f32.mrf.mxu2  ;;  %v1837_v9 = vpop.f32.mrf.mxu0 }
 0x28d   : > { %v2341_v5 = vpop.f32.mrf.mxu3  ;;  %v2173_v8 = vadd.f32 %v2172_v4, %v2004_v3  ;;  %v2006_v10 = vpop.f32.mrf.mxu1  ;;  %v3433_v3 = vor.u32 %v3770_v57, %v3430_v58  ;;  %v3779_v57 = vld [vmem:[%s4497_s18 + $0x36c] sm:$0xf]  ;;  %v3470_v58 = vld [vmem:[%s4497_s18 + $0x378] sm:$0xf0] }
 0x28e   : > { %v2007_v16 = vadd.f32 %v2006_v10, %v1837_v9  ;;  %v693_v9 = vld [vmem:[%s4495_s15 + $0x108] sm:$0xff] }
 0x28f   : > { %v2342_v14 = vadd.f32 %v2341_v5, %v2173_v8  ;;  %1876 = vmatmul.bf16.gmra.mxu0 %v3397_v6  ;;  %v3441_v8 = vor.u32 %v3771_v61, %v3438_v62 }
 0x290   : > { %2045 = vmatmul.bf16.gmra.mxu1 %v3401_v7  ;;  %v3437_v7 = vor.u32 %v3773_v60, %v3436_v59 }
 0x291   : > { %v2458_v15 = vadd.f32 %v2342_v14, %v689_v13  ;;  %2214 = vmatmul.bf16.gmra.mxu2 %v3405_v11 }
 0x292   : > { %2383 = vmatmul.bf16.gmra.mxu3 %v3409_v12 }
 0x293   : > { %2522 = vst [vmem:[%s4495_s15 + $0xe8] sm:$0xff] %v2458_v15 }
 0x294   : > { %v2175_v17 = vpop.f32.mrf.mxu2  ;;  %v1839_v20 = vpop.f32.mrf.mxu0 }
 0x295   : > { %v2344_v18 = vpop.f32.mrf.mxu3  ;;  %v2176_v19 = vadd.f32 %v2175_v17, %v2007_v16  ;;  %v2008_v21 = vpop.f32.mrf.mxu1 }
 0x296   : > { %v2009_v33 = vadd.f32 %v2008_v21, %v1839_v20  ;;  %v3444_v20 = vld [vmem:[%s4497_s18 + $0x340] sm:$0xf]  ;;  %v3776_v21 = vld [vmem:[%s4497_s18 + $0x34c] sm:$0xf0] }
 0x297   : > { %v2345_v23 = vadd.f32 %v2344_v18, %v2176_v19  ;;  %v694_v18 = vld [vmem:[%s4495_s15 + $0x110] sm:$0xff]  ;;  %v3445_v32 = vor.u32 %v3776_v21, %v3444_v20  ;;  %v3484_v21 = vld [vmem:[%s4497_s18 + $0x388] sm:$0xf] }
 0x298   : > { %v3478_v20 = vld [vmem:[%s4497_s18 + $0x390] sm:$0xf0] }
 0x299   : > { %v2459_v26 = vadd.f32 %v2345_v23, %v690_v22  ;;  %v3774_v23 = vld [vmem:[%s4497_s18 + $0x344] sm:$0xf] }
 0x29b   : > { %2523 = vst [vmem:[%s4495_s15 + $0xf0] sm:$0xff] %v2459_v26  ;;  %v3777_v26 = vld [vmem:[%s4497_s18 + $0x354] sm:$0xf0] }
 0x29c   : > { %v2177_v34 = vpop.f32.mrf.mxu2  ;;  %v1842_v39 = vpop.f32.mrf.mxu0 }
 0x29d   : > { %v2346_v35 = vpop.f32.mrf.mxu3  ;;  %v2178_v38 = vadd.f32 %v2177_v34, %v2009_v33  ;;  %v2011_v40 = vpop.f32.mrf.mxu1  ;;  %v3449_v33 = vor.u32 %v3774_v23, %v3446_v24  ;;  %v3783_v23 = vld [vmem:[%s4497_s18 + $0x38c] sm:$0xf]  ;;  %v3486_v24 = vld [vmem:[%s4497_s18 + $0x398] sm:$0xf0] }
 0x29e   : > { %v2012_v46 = vadd.f32 %v2011_v40, %v1842_v39  ;;  %v695_v39 = vld [vmem:[%s4495_s15 + $0x118] sm:$0xff] }
 0x29f   : > { %v2347_v44 = vadd.f32 %v2346_v35, %v2178_v38  ;;  %1881 = vmatmul.bf16.gmra.mxu0 %v3413_v36  ;;  %v3457_v38 = vor.u32 %v3775_v27, %v3454_v28 }
 0x2a0   : > { %2050 = vmatmul.bf16.gmra.mxu1 %v3417_v37  ;;  %v3453_v37 = vor.u32 %v3777_v26, %v3452_v25 }
 0x2a1   : > { %v2460_v45 = vadd.f32 %v2347_v44, %v691_v43  ;;  %2219 = vmatmul.bf16.gmra.mxu2 %v3421_v41 }
 0x2a2   : > { %2388 = vmatmul.bf16.gmra.mxu3 %v3425_v42 }
 0x2a3   : > { %2524 = vst [vmem:[%s4495_s15 + $0xf8] sm:$0xff] %v2460_v45 }
 0x2a4   : > { %v2180_v47 = vpop.f32.mrf.mxu2  ;;  %v1844_v50 = vpop.f32.mrf.mxu0 }
 0x2a5   : > { %v2349_v48 = vpop.f32.mrf.mxu3  ;;  %v2181_v49 = vadd.f32 %v2180_v47, %v2012_v46  ;;  %v2013_v51 = vpop.f32.mrf.mxu1 }
 0x2a6   : > { %v2014_v63 = vadd.f32 %v2013_v51, %v1844_v50  ;;  %v3460_v50 = vld [vmem:[%s4497_s18 + $0x360] sm:$0xf]  ;;  %v3780_v51 = vld [vmem:[%s4497_s18 + $0x36c] sm:$0xf0] }
 0x2a7   : > { %v2350_v53 = vadd.f32 %v2349_v48, %v2181_v49  ;;  %v696_v48 = vld [vmem:[%s4495_s15 + $0x120] sm:$0xff]  ;;  %v3461_v62 = vor.u32 %v3780_v51, %v3460_v50  ;;  %v3494_v50 = vld [vmem:[%s4497_s18 + $0x3b0] sm:$0xf0]  ;;  %v3500_v51 = vld [vmem:[%s4497_s18 + $0x3a8] sm:$0xf] }
 0x2a9   : > { %v2461_v56 = vadd.f32 %v2350_v53, %v692_v52  ;;  %v3778_v53 = vld [vmem:[%s4497_s18 + $0x364] sm:$0xf] }
 0x2ab   : > { %2525 = vst [vmem:[%s4495_s15 + $0x100] sm:$0xff] %v2461_v56  ;;  %v3781_v56 = vld [vmem:[%s4497_s18 + $0x374] sm:$0xf0] }
 0x2ac   : > { %v2182_v0 = vpop.f32.mrf.mxu2  ;;  %v1847_v5 = vpop.f32.mrf.mxu0 }
 0x2ad   : > { %v2351_v1 = vpop.f32.mrf.mxu3  ;;  %v2183_v4 = vadd.f32 %v2182_v0, %v2014_v63  ;;  %v2016_v6 = vpop.f32.mrf.mxu1  ;;  %v3465_v63 = vor.u32 %v3778_v53, %v3462_v54  ;;  %v3787_v53 = vld [vmem:[%s4497_s18 + $0x3ac] sm:$0xf]  ;;  %v3502_v54 = vld [vmem:[%s4497_s18 + $0x3b8] sm:$0xf0] }
 0x2ae   : > { %v2017_v12 = vadd.f32 %v2016_v6, %v1847_v5  ;;  %v697_v5 = vld [vmem:[%s4495_s15 + $0x128] sm:$0xff] }
 0x2af   : > { %v2352_v10 = vadd.f32 %v2351_v1, %v2183_v4  ;;  %1886 = vmatmul.bf16.gmra.mxu0 %v3429_v2  ;;  %v3473_v4 = vor.u32 %v3779_v57, %v3470_v58 }
 0x2b0   : > { %2055 = vmatmul.bf16.gmra.mxu1 %v3433_v3  ;;  %v3469_v3 = vor.u32 %v3781_v56, %v3468_v55 }
 0x2b1   : > { %v2462_v11 = vadd.f32 %v2352_v10, %v693_v9  ;;  %2224 = vmatmul.bf16.gmra.mxu2 %v3437_v7 }
 0x2b2   : > { %2393 = vmatmul.bf16.gmra.mxu3 %v3441_v8 }
 0x2b3   : > { %2526 = vst [vmem:[%s4495_s15 + $0x108] sm:$0xff] %v2462_v11 }
 0x2b4   : > { %v2185_v13 = vpop.f32.mrf.mxu2  ;;  %v1849_v16 = vpop.f32.mrf.mxu0 }
 0x2b5   : > { %v2354_v14 = vpop.f32.mrf.mxu3  ;;  %v2186_v15 = vadd.f32 %v2185_v13, %v2017_v12  ;;  %v2018_v17 = vpop.f32.mrf.mxu1 }
 0x2b6   : > { %v2019_v29 = vadd.f32 %v2018_v17, %v1849_v16  ;;  %v3476_v16 = vld [vmem:[%s4497_s18 + $0x380] sm:$0xf]  ;;  %v3784_v17 = vld [vmem:[%s4497_s18 + $0x38c] sm:$0xf0] }
 0x2b7   : > { %v2355_v19 = vadd.f32 %v2354_v14, %v2186_v15  ;;  %v698_v14 = vld [vmem:[%s4495_s15 + $0x130] sm:$0xff]  ;;  %v3477_v28 = vor.u32 %v3784_v17, %v3476_v16  ;;  %v3516_v17 = vld [vmem:[%s4497_s18 + $0x3c8] sm:$0xf] }
 0x2b8   : > { %v3510_v16 = vld [vmem:[%s4497_s18 + $0x3d0] sm:$0xf0] }
 0x2b9   : > { %v2463_v22 = vadd.f32 %v2355_v19, %v694_v18  ;;  %v3782_v19 = vld [vmem:[%s4497_s18 + $0x384] sm:$0xf] }
 0x2bb   : > { %2527 = vst [vmem:[%s4495_s15 + $0x110] sm:$0xff] %v2463_v22  ;;  %v3785_v22 = vld [vmem:[%s4497_s18 + $0x394] sm:$0xf0] }
 0x2bc   : > { %v2187_v30 = vpop.f32.mrf.mxu2  ;;  %v1852_v35 = vpop.f32.mrf.mxu0 }
 0x2bd   : > { %v2356_v31 = vpop.f32.mrf.mxu3  ;;  %v2188_v34 = vadd.f32 %v2187_v30, %v2019_v29  ;;  %v2021_v36 = vpop.f32.mrf.mxu1  ;;  %v3481_v29 = vor.u32 %v3782_v19, %v3478_v20  ;;  %v3791_v19 = vld [vmem:[%s4497_s18 + $0x3cc] sm:$0xf]  ;;  %v3518_v20 = vld [vmem:[%s4497_s18 + $0x3d8] sm:$0xf0] }
 0x2be   : > { %v2022_v42 = vadd.f32 %v2021_v36, %v1852_v35  ;;  %v699_v35 = vld [vmem:[%s4495_s15 + $0x138] sm:$0xff] }
 0x2bf   : > { %v2357_v40 = vadd.f32 %v2356_v31, %v2188_v34  ;;  %1891 = vmatmul.bf16.gmra.mxu0 %v3445_v32  ;;  %v3489_v34 = vor.u32 %v3783_v23, %v3486_v24 }
 0x2c0   : > { %2060 = vmatmul.bf16.gmra.mxu1 %v3449_v33  ;;  %v3485_v33 = vor.u32 %v3785_v22, %v3484_v21 }
 0x2c1   : > { %v2464_v41 = vadd.f32 %v2357_v40, %v695_v39  ;;  %2229 = vmatmul.bf16.gmra.mxu2 %v3453_v37 }
 0x2c2   : > { %2398 = vmatmul.bf16.gmra.mxu3 %v3457_v38 }
 0x2c3   : > { %2528 = vst [vmem:[%s4495_s15 + $0x118] sm:$0xff] %v2464_v41 }
 0x2c4   : > { %v2190_v43 = vpop.f32.mrf.mxu2  ;;  %v1854_v46 = vpop.f32.mrf.mxu0 }
 0x2c5   : > { %v2359_v44 = vpop.f32.mrf.mxu3  ;;  %v2191_v45 = vadd.f32 %v2190_v43, %v2022_v42  ;;  %v2023_v47 = vpop.f32.mrf.mxu1 }
 0x2c6   : > { %v2024_v59 = vadd.f32 %v2023_v47, %v1854_v46  ;;  %v3492_v46 = vld [vmem:[%s4497_s18 + $0x3a0] sm:$0xf]  ;;  %v3788_v47 = vld [vmem:[%s4497_s18 + $0x3ac] sm:$0xf0] }
 0x2c7   : > { %v2360_v49 = vadd.f32 %v2359_v44, %v2191_v45  ;;  %v700_v44 = vld [vmem:[%s4495_s15 + $0x140] sm:$0xff]  ;;  %v3493_v58 = vor.u32 %v3788_v47, %v3492_v46  ;;  %v3526_v46 = vld [vmem:[%s4497_s18 + $0x3f0] sm:$0xf0]  ;;  %v3532_v47 = vld [vmem:[%s4497_s18 + $0x3e8] sm:$0xf] }
 0x2c9   : > { %v2465_v52 = vadd.f32 %v2360_v49, %v696_v48  ;;  %v3786_v49 = vld [vmem:[%s4497_s18 + $0x3a4] sm:$0xf] }
 0x2cb   : > { %2529 = vst [vmem:[%s4495_s15 + $0x120] sm:$0xff] %v2465_v52  ;;  %v3789_v52 = vld [vmem:[%s4497_s18 + $0x3b4] sm:$0xf0] }
 0x2cc   : > { %v2192_v60 = vpop.f32.mrf.mxu2  ;;  %v1857_v1 = vpop.f32.mrf.mxu0 }
 0x2cd   : > { %v2361_v61 = vpop.f32.mrf.mxu3  ;;  %v2193_v0 = vadd.f32 %v2192_v60, %v2024_v59  ;;  %v2026_v2 = vpop.f32.mrf.mxu1  ;;  %v3497_v59 = vor.u32 %v3786_v49, %v3494_v50  ;;  %v3795_v49 = vld [vmem:[%s4497_s18 + $0x3ec] sm:$0xf]  ;;  %v3534_v50 = vld [vmem:[%s4497_s18 + $0x3f8] sm:$0xf0] }
 0x2ce   : > { %v2027_v8 = vadd.f32 %v2026_v2, %v1857_v1  ;;  %v701_v1 = vld [vmem:[%s4495_s15 + $0x148] sm:$0xff] }
 0x2cf   : > { %v2362_v6 = vadd.f32 %v2361_v61, %v2193_v0  ;;  %1896 = vmatmul.bf16.gmra.mxu0 %v3461_v62  ;;  %v3505_v0 = vor.u32 %v3787_v53, %v3502_v54 }
 0x2d0   : > { %2065 = vmatmul.bf16.gmra.mxu1 %v3465_v63  ;;  %v3501_v63 = vor.u32 %v3789_v52, %v3500_v51 }
 0x2d1   : > { %v2466_v7 = vadd.f32 %v2362_v6, %v697_v5  ;;  %2234 = vmatmul.bf16.gmra.mxu2 %v3469_v3 }
 0x2d2   : > { %2403 = vmatmul.bf16.gmra.mxu3 %v3473_v4 }
 0x2d3   : > { %2530 = vst [vmem:[%s4495_s15 + $0x128] sm:$0xff] %v2466_v7 }
 0x2d4   : > { %v2195_v9 = vpop.f32.mrf.mxu2  ;;  %v1859_v12 = vpop.f32.mrf.mxu0 }
 0x2d5   : > { %v2364_v10 = vpop.f32.mrf.mxu3  ;;  %v2196_v11 = vadd.f32 %v2195_v9, %v2027_v8  ;;  %v2028_v13 = vpop.f32.mrf.mxu1 }
 0x2d6   : > { %v2029_v25 = vadd.f32 %v2028_v13, %v1859_v12  ;;  %v3508_v12 = vld [vmem:[%s4497_s18 + $0x3c0] sm:$0xf]  ;;  %v3792_v13 = vld [vmem:[%s4497_s18 + $0x3cc] sm:$0xf0] }
 0x2d7   : > { %v2365_v15 = vadd.f32 %v2364_v10, %v2196_v11  ;;  %v702_v10 = vld [vmem:[%s4495_s15 + $0x150] sm:$0xff]  ;;  %v3509_v24 = vor.u32 %v3792_v13, %v3508_v12 }
 0x2d9   : > { %v2467_v18 = vadd.f32 %v2365_v15, %v698_v14  ;;  %v3790_v15 = vld [vmem:[%s4497_s18 + $0x3c4] sm:$0xf] }
 0x2db   : > { %2531 = vst [vmem:[%s4495_s15 + $0x130] sm:$0xff] %v2467_v18  ;;  %v3793_v18 = vld [vmem:[%s4497_s18 + $0x3d4] sm:$0xf0] }
 0x2dc   : > { %v2197_v26 = vpop.f32.mrf.mxu2  ;;  %v1862_v31 = vpop.f32.mrf.mxu0 }
 0x2dd   : > { %v2366_v27 = vpop.f32.mrf.mxu3  ;;  %v2198_v30 = vadd.f32 %v2197_v26, %v2029_v25  ;;  %v2031_v32 = vpop.f32.mrf.mxu1  ;;  %v3513_v25 = vor.u32 %v3790_v15, %v3510_v16  ;;  %v707_v15 = vld [vmem:[%s4495_s15 + $0x178] sm:$0xff] }
 0x2de   : > { %v2032_v38 = vadd.f32 %v2031_v32, %v1862_v31  ;;  %v703_v31 = vld [vmem:[%s4495_s15 + $0x158] sm:$0xff] }
 0x2df   : > { %v2367_v36 = vadd.f32 %v2366_v27, %v2198_v30  ;;  %1901 = vmatmul.bf16.gmra.mxu0 %v3477_v28  ;;  %v3521_v30 = vor.u32 %v3791_v19, %v3518_v20 }
 0x2e0   : > { %2070 = vmatmul.bf16.gmra.mxu1 %v3481_v29  ;;  %v3517_v29 = vor.u32 %v3793_v18, %v3516_v17 }
 0x2e1   : > { %v2468_v37 = vadd.f32 %v2367_v36, %v699_v35  ;;  %2239 = vmatmul.bf16.gmra.mxu2 %v3485_v33 }
 0x2e2   : > { %2408 = vmatmul.bf16.gmra.mxu3 %v3489_v34 }
 0x2e3   : > { %2532 = vst [vmem:[%s4495_s15 + $0x138] sm:$0xff] %v2468_v37 }
 0x2e4   : > { %v2200_v39 = vpop.f32.mrf.mxu2  ;;  %v1864_v42 = vpop.f32.mrf.mxu0 }
 0x2e5   : > { %v2369_v40 = vpop.f32.mrf.mxu3  ;;  %v2201_v41 = vadd.f32 %v2200_v39, %v2032_v38  ;;  %v2033_v43 = vpop.f32.mrf.mxu1 }
 0x2e6   : > { %v2034_v55 = vadd.f32 %v2033_v43, %v1864_v42  ;;  %v3524_v42 = vld [vmem:[%s4497_s18 + $0x3e0] sm:$0xf]  ;;  %v3796_v43 = vld [vmem:[%s4497_s18 + $0x3ec] sm:$0xf0] }
 0x2e7   : > { %v2370_v45 = vadd.f32 %v2369_v40, %v2201_v41  ;;  %v704_v40 = vld [vmem:[%s4495_s15 + $0x160] sm:$0xff]  ;;  %v3525_v54 = vor.u32 %v3796_v43, %v3524_v42  ;;  %v710_v42 = vld [vmem:[%s4495_s15 + $0x190] sm:$0xff] }
 0x2e9   : > { %v2469_v48 = vadd.f32 %v2370_v45, %v700_v44  ;;  %v3794_v45 = vld [vmem:[%s4497_s18 + $0x3e4] sm:$0xf] }
 0x2eb   : > { %2533 = vst [vmem:[%s4495_s15 + $0x140] sm:$0xff] %v2469_v48  ;;  %v3797_v48 = vld [vmem:[%s4497_s18 + $0x3f4] sm:$0xf0] }
 0x2ec   : > { %v2202_v56 = vpop.f32.mrf.mxu2  ;;  %v1867_v61 = vpop.f32.mrf.mxu0 }
 0x2ed   : > { %v2371_v57 = vpop.f32.mrf.mxu3  ;;  %v2203_v60 = vadd.f32 %v2202_v56, %v2034_v55  ;;  %v2036_v62 = vpop.f32.mrf.mxu1  ;;  %v3529_v55 = vor.u32 %v3794_v45, %v3526_v46 }
 0x2ee   : > { %v2037_v4 = vadd.f32 %v2036_v62, %v1867_v61  ;;  %v705_v61 = vld [vmem:[%s4495_s15 + $0x168] sm:$0xff] }
 0x2ef   : > { %v2372_v2 = vadd.f32 %v2371_v57, %v2203_v60  ;;  %1906 = vmatmul.bf16.gmra.mxu0 %v3493_v58  ;;  %v3537_v60 = vor.u32 %v3795_v49, %v3534_v50 }
 0x2f0   : > { %2075 = vmatmul.bf16.gmra.mxu1 %v3497_v59  ;;  %v3533_v59 = vor.u32 %v3797_v48, %v3532_v47 }
 0x2f1   : > { %v2470_v3 = vadd.f32 %v2372_v2, %v701_v1  ;;  %2244 = vmatmul.bf16.gmra.mxu2 %v3501_v63 }
 0x2f2   : > { %2413 = vmatmul.bf16.gmra.mxu3 %v3505_v0 }
 0x2f3   : > { %2534 = vst [vmem:[%s4495_s15 + $0x148] sm:$0xff] %v2470_v3 }
 0x2f4   : > { %v2205_v5 = vpop.f32.mrf.mxu2  ;;  %v1869_v8 = vpop.f32.mrf.mxu0 }
 0x2f5   : > { %v2374_v6 = vpop.f32.mrf.mxu3  ;;  %v2206_v7 = vadd.f32 %v2205_v5, %v2037_v4  ;;  %v2038_v9 = vpop.f32.mrf.mxu1 }
 0x2f6   : > { %v2039_v21 = vadd.f32 %v2038_v9, %v1869_v8 }
 0x2f7   : > { %v2375_v11 = vadd.f32 %v2374_v6, %v2206_v7  ;;  %v706_v6 = vld [vmem:[%s4495_s15 + $0x170] sm:$0xff] }
 0x2f9   : > { %v2471_v14 = vadd.f32 %v2375_v11, %v702_v10 }
 0x2fb   : > { %2535 = vst [vmem:[%s4495_s15 + $0x150] sm:$0xff] %v2471_v14 }
 0x2fc   : > { %v2207_v22 = vpop.f32.mrf.mxu2  ;;  %v1872_v27 = vpop.f32.mrf.mxu0 }
 0x2fd   : > { %v2376_v23 = vpop.f32.mrf.mxu3  ;;  %v2208_v26 = vadd.f32 %v2207_v22, %v2039_v21  ;;  %v2041_v28 = vpop.f32.mrf.mxu1 }
 0x2fe   : > { %v2042_v34 = vadd.f32 %v2041_v28, %v1872_v27 }
 0x2ff   : > { %v2377_v32 = vadd.f32 %v2376_v23, %v2208_v26  ;;  %1911 = vmatmul.bf16.gmra.mxu0 %v3509_v24  ;;  %v708_v24 = vld [vmem:[%s4495_s15 + $0x180] sm:$0xff] }
 0x300   : > { %2080 = vmatmul.bf16.gmra.mxu1 %v3513_v25 }
 0x301   : > { %v2472_v33 = vadd.f32 %v2377_v32, %v703_v31  ;;  %2249 = vmatmul.bf16.gmra.mxu2 %v3517_v29 }
 0x302   : > { %2418 = vmatmul.bf16.gmra.mxu3 %v3521_v30 }
 0x303   : > { %2536 = vst [vmem:[%s4495_s15 + $0x158] sm:$0xff] %v2472_v33  ;;  %v709_v33 = vld [vmem:[%s4495_s15 + $0x188] sm:$0xff] }
 0x304   : > { %v2210_v35 = vpop.f32.mrf.mxu2  ;;  %v1874_v38 = vpop.f32.mrf.mxu0 }
 0x305   : > { %v2379_v36 = vpop.f32.mrf.mxu3  ;;  %v2211_v37 = vadd.f32 %v2210_v35, %v2042_v34  ;;  %v2043_v39 = vpop.f32.mrf.mxu1 }
 0x306   : > { %v2044_v51 = vadd.f32 %v2043_v39, %v1874_v38 }
 0x307   : > { %v2380_v41 = vadd.f32 %v2379_v36, %v2211_v37 }
 0x309   : > { %v2473_v44 = vadd.f32 %v2380_v41, %v704_v40 }
 0x30b   : > { %2537 = vst [vmem:[%s4495_s15 + $0x160] sm:$0xff] %v2473_v44 }
 0x30c   : > { %v2212_v52 = vpop.f32.mrf.mxu2  ;;  %v1877_v57 = vpop.f32.mrf.mxu0 }
 0x30d   : > { %v2381_v53 = vpop.f32.mrf.mxu3  ;;  %v2213_v56 = vadd.f32 %v2212_v52, %v2044_v51  ;;  %v2046_v58 = vpop.f32.mrf.mxu1  ;;  %v711_v51 = vld [vmem:[%s4495_s15 + $0x198] sm:$0xff] }
 0x30e   : > { %v2047_v0 = vadd.f32 %v2046_v58, %v1877_v57 }
 0x30f   : > { %v2382_v62 = vadd.f32 %v2381_v53, %v2213_v56  ;;  %1916 = vmatmul.bf16.gmra.mxu0 %v3525_v54 }
 0x310   : > { %2085 = vmatmul.bf16.gmra.mxu1 %v3529_v55 }
 0x311   : > { %v2474_v63 = vadd.f32 %v2382_v62, %v705_v61  ;;  %2254 = vmatmul.bf16.gmra.mxu2 %v3533_v59 }
 0x312   : > { %2423 = vmatmul.bf16.gmra.mxu3 %v3537_v60  ;;  %v712_v60 = vld [vmem:[%s4495_s15 + $0x1a0] sm:$0xff] }
 0x313   : > { %2538 = vst [vmem:[%s4495_s15 + $0x168] sm:$0xff] %v2474_v63 }
 0x314   : > { %v2215_v1 = vpop.f32.mrf.mxu2  ;;  %v1879_v4 = vpop.f32.mrf.mxu0 }
 0x315   : > { %v2384_v2 = vpop.f32.mrf.mxu3  ;;  %v2216_v3 = vadd.f32 %v2215_v1, %v2047_v0  ;;  %v2048_v5 = vpop.f32.mrf.mxu1 }
 0x316   : > { %v2049_v9 = vadd.f32 %v2048_v5, %v1879_v4  ;;  %v713_v5 = vld [vmem:[%s4495_s15 + $0x1a8] sm:$0xff] }
 0x317   : > { %v2385_v7 = vadd.f32 %v2384_v2, %v2216_v3 }
 0x319   : > { %v2475_v8 = vadd.f32 %v2385_v7, %v706_v6 }
 0x31b   : > { %2539 = vst [vmem:[%s4495_s15 + $0x170] sm:$0xff] %v2475_v8 }
 0x31c   : > { %v2217_v10 = vpop.f32.mrf.mxu2  ;;  %v1882_v13 = vpop.f32.mrf.mxu0 }
 0x31d   : > { %v2386_v11 = vpop.f32.mrf.mxu3  ;;  %v2218_v12 = vadd.f32 %v2217_v10, %v2049_v9  ;;  %v2051_v14 = vpop.f32.mrf.mxu1 }
 0x31e   : > { %v2052_v18 = vadd.f32 %v2051_v14, %v1882_v13  ;;  %v714_v14 = vld [vmem:[%s4495_s15 + $0x1b0] sm:$0xff] }
 0x31f   : > { %v2387_v16 = vadd.f32 %v2386_v11, %v2218_v12 }
 0x321   : > { %v2476_v17 = vadd.f32 %v2387_v16, %v707_v15 }
 0x323   : > { %2540 = vst [vmem:[%s4495_s15 + $0x178] sm:$0xff] %v2476_v17 }
 0x324   : > { %v2220_v19 = vpop.f32.mrf.mxu2  ;;  %v1884_v22 = vpop.f32.mrf.mxu0 }
 0x325   : > { %v2389_v20 = vpop.f32.mrf.mxu3  ;;  %v2221_v21 = vadd.f32 %v2220_v19, %v2052_v18  ;;  %v2053_v23 = vpop.f32.mrf.mxu1 }
 0x326   : > { %v2054_v27 = vadd.f32 %v2053_v23, %v1884_v22  ;;  %v715_v23 = vld [vmem:[%s4495_s15 + $0x1b8] sm:$0xff] }
 0x327   : > { %v2390_v25 = vadd.f32 %v2389_v20, %v2221_v21 }
 0x329   : > { %v2477_v26 = vadd.f32 %v2390_v25, %v708_v24 }
 0x32b   : > { %2541 = vst [vmem:[%s4495_s15 + $0x180] sm:$0xff] %v2477_v26 }
 0x32c   : > { %v2222_v28 = vpop.f32.mrf.mxu2  ;;  %v1887_v31 = vpop.f32.mrf.mxu0 }
 0x32d   : > { %v2391_v29 = vpop.f32.mrf.mxu3  ;;  %v2223_v30 = vadd.f32 %v2222_v28, %v2054_v27  ;;  %v2056_v32 = vpop.f32.mrf.mxu1 }
 0x32e   : > { %v2057_v36 = vadd.f32 %v2056_v32, %v1887_v31  ;;  %v716_v32 = vld [vmem:[%s4495_s15 + $0x1c0] sm:$0xff] }
 0x32f   : > { %v2392_v34 = vadd.f32 %v2391_v29, %v2223_v30 }
 0x331   : > { %v2478_v35 = vadd.f32 %v2392_v34, %v709_v33 }
 0x333   : > { %2542 = vst [vmem:[%s4495_s15 + $0x188] sm:$0xff] %v2478_v35 }
 0x334   : > { %v2225_v37 = vpop.f32.mrf.mxu2  ;;  %v1889_v40 = vpop.f32.mrf.mxu0 }
 0x335   : > { %v2394_v38 = vpop.f32.mrf.mxu3  ;;  %v2226_v39 = vadd.f32 %v2225_v37, %v2057_v36  ;;  %v2058_v41 = vpop.f32.mrf.mxu1 }
 0x336   : > { %v2059_v45 = vadd.f32 %v2058_v41, %v1889_v40  ;;  %v717_v41 = vld [vmem:[%s4495_s15 + $0x1c8] sm:$0xff] }
 0x337   : > { %v2395_v43 = vadd.f32 %v2394_v38, %v2226_v39 }
 0x339   : > { %v2479_v44 = vadd.f32 %v2395_v43, %v710_v42 }
 0x33b   : > { %2543 = vst [vmem:[%s4495_s15 + $0x190] sm:$0xff] %v2479_v44 }
 0x33c   : > { %v2227_v46 = vpop.f32.mrf.mxu2  ;;  %v1892_v49 = vpop.f32.mrf.mxu0 }
 0x33d   : > { %v2396_v47 = vpop.f32.mrf.mxu3  ;;  %v2228_v48 = vadd.f32 %v2227_v46, %v2059_v45  ;;  %v2061_v50 = vpop.f32.mrf.mxu1 }
 0x33e   : > { %v2062_v54 = vadd.f32 %v2061_v50, %v1892_v49  ;;  %v718_v50 = vld [vmem:[%s4495_s15 + $0x1d0] sm:$0xff] }
 0x33f   : > { %v2397_v52 = vadd.f32 %v2396_v47, %v2228_v48 }
 0x341   : > { %v2480_v53 = vadd.f32 %v2397_v52, %v711_v51 }
 0x343   : > { %2544 = vst [vmem:[%s4495_s15 + $0x198] sm:$0xff] %v2480_v53 }
 0x344   : > { %v2230_v55 = vpop.f32.mrf.mxu2  ;;  %v1894_v58 = vpop.f32.mrf.mxu0 }
 0x345   : > { %v2399_v56 = vpop.f32.mrf.mxu3  ;;  %v2231_v57 = vadd.f32 %v2230_v55, %v2062_v54  ;;  %v2063_v59 = vpop.f32.mrf.mxu1 }
 0x346   : > { %v2064_v63 = vadd.f32 %v2063_v59, %v1894_v58  ;;  %v719_v59 = vld [vmem:[%s4495_s15 + $0x1d8] sm:$0xff] }
 0x347   : > { %v2400_v61 = vadd.f32 %v2399_v56, %v2231_v57 }
 0x349   : > { %v2481_v62 = vadd.f32 %v2400_v61, %v712_v60 }
 0x34b   : > { %2545 = vst [vmem:[%s4495_s15 + $0x1a0] sm:$0xff] %v2481_v62 }
 0x34c   : > { %v2232_v0 = vpop.f32.mrf.mxu2  ;;  %v1897_v3 = vpop.f32.mrf.mxu0 }
 0x34d   : > { %v2401_v1 = vpop.f32.mrf.mxu3  ;;  %v2233_v2 = vadd.f32 %v2232_v0, %v2064_v63  ;;  %v2066_v4 = vpop.f32.mrf.mxu1 }
 0x34e   : > { %v2067_v8 = vadd.f32 %v2066_v4, %v1897_v3  ;;  %v720_v4 = vld [vmem:[%s4495_s15 + $0x1e0] sm:$0xff] }
 0x34f   : > { %v2402_v6 = vadd.f32 %v2401_v1, %v2233_v2 }
 0x351   : > { %v2482_v7 = vadd.f32 %v2402_v6, %v713_v5 }
 0x353   : > { %2546 = vst [vmem:[%s4495_s15 + $0x1a8] sm:$0xff] %v2482_v7 }
 0x354   : > { %v2235_v9 = vpop.f32.mrf.mxu2  ;;  %v1899_v12 = vpop.f32.mrf.mxu0 }
 0x355   : > { %v2404_v10 = vpop.f32.mrf.mxu3  ;;  %v2236_v11 = vadd.f32 %v2235_v9, %v2067_v8  ;;  %v2068_v13 = vpop.f32.mrf.mxu1 }
 0x356   : > { %v2069_v17 = vadd.f32 %v2068_v13, %v1899_v12 }
 0x357   : > { %v2405_v15 = vadd.f32 %v2404_v10, %v2236_v11  ;;  %v721_v11 = vld [vmem:[%s4495_s15 + $0x1e8] sm:$0xff] }
 0x359   : > { %v2483_v16 = vadd.f32 %v2405_v15, %v714_v14 }
 0x35b   : > { %2547 = vst [vmem:[%s4495_s15 + $0x1b0] sm:$0xff] %v2483_v16 }
 0x35c   : > { %v2237_v18 = vpop.f32.mrf.mxu2  ;;  %v1902_v21 = vpop.f32.mrf.mxu0 }
 0x35d   : > { %v2406_v19 = vpop.f32.mrf.mxu3  ;;  %v2238_v20 = vadd.f32 %v2237_v18, %v2069_v17  ;;  %v2071_v22 = vpop.f32.mrf.mxu1 }
 0x35e   : > { %v2072_v26 = vadd.f32 %v2071_v22, %v1902_v21 }
 0x35f   : > { %v2407_v24 = vadd.f32 %v2406_v19, %v2238_v20  ;;  %v722_v20 = vld [vmem:[%s4495_s15 + $0x1f0] sm:$0xff] }
 0x361   : > { %v2484_v25 = vadd.f32 %v2407_v24, %v715_v23 }
 0x363   : > { %2548 = vst [vmem:[%s4495_s15 + $0x1b8] sm:$0xff] %v2484_v25 }
 0x364   : > { %v2240_v27 = vpop.f32.mrf.mxu2  ;;  %v1904_v30 = vpop.f32.mrf.mxu0 }
 0x365   : > { %v2409_v28 = vpop.f32.mrf.mxu3  ;;  %v2241_v29 = vadd.f32 %v2240_v27, %v2072_v26  ;;  %v2073_v31 = vpop.f32.mrf.mxu1 }
 0x366   : > { %v2074_v35 = vadd.f32 %v2073_v31, %v1904_v30 }
 0x367   : > { %v2410_v33 = vadd.f32 %v2409_v28, %v2241_v29  ;;  %v723_v28 = vld [vmem:[%s4495_s15 + $0x1f8] sm:$0xff] }
 0x369   : > { %v2485_v34 = vadd.f32 %v2410_v33, %v716_v32 }
 0x36b   : > { %2549 = vst [vmem:[%s4495_s15 + $0x1c0] sm:$0xff] %v2485_v34 }
 0x36c   : > { %v2242_v36 = vpop.f32.mrf.mxu2  ;;  %v1907_v39 = vpop.f32.mrf.mxu0 }
 0x36d   : > { %v2411_v37 = vpop.f32.mrf.mxu3  ;;  %v2243_v38 = vadd.f32 %v2242_v36, %v2074_v35  ;;  %v2076_v40 = vpop.f32.mrf.mxu1 }
 0x36e   : > { %v2077_v44 = vadd.f32 %v2076_v40, %v1907_v39 }
 0x36f   : > { %v2412_v42 = vadd.f32 %v2411_v37, %v2243_v38 }
 0x371   : > { %v2486_v43 = vadd.f32 %v2412_v42, %v717_v41 }
 0x373   : > { %2550 = vst [vmem:[%s4495_s15 + $0x1c8] sm:$0xff] %v2486_v43 }
 0x374   : > { %v2245_v45 = vpop.f32.mrf.mxu2  ;;  %v1909_v48 = vpop.f32.mrf.mxu0 }
 0x375   : > { %v2414_v46 = vpop.f32.mrf.mxu3  ;;  %v2246_v47 = vadd.f32 %v2245_v45, %v2077_v44  ;;  %v2078_v49 = vpop.f32.mrf.mxu1 }
 0x376   : > { %v2079_v53 = vadd.f32 %v2078_v49, %v1909_v48 }
 0x377   : > { %v2415_v51 = vadd.f32 %v2414_v46, %v2246_v47 }
 0x379   : > { %v2487_v52 = vadd.f32 %v2415_v51, %v718_v50 }
 0x37b   : > { %2551 = vst [vmem:[%s4495_s15 + $0x1d0] sm:$0xff] %v2487_v52 }
 0x37c   : > { %v2247_v54 = vpop.f32.mrf.mxu2  ;;  %v1912_v57 = vpop.f32.mrf.mxu0 }
 0x37d   : > { %v2416_v55 = vpop.f32.mrf.mxu3  ;;  %v2248_v56 = vadd.f32 %v2247_v54, %v2079_v53  ;;  %v2081_v58 = vpop.f32.mrf.mxu1 }
 0x37e   : > { %v2082_v62 = vadd.f32 %v2081_v58, %v1912_v57 }
 0x37f   : > { %v2417_v60 = vadd.f32 %v2416_v55, %v2248_v56 }
 0x381   : > { %v2488_v61 = vadd.f32 %v2417_v60, %v719_v59 }
 0x383   : > { %2552 = vst [vmem:[%s4495_s15 + $0x1d8] sm:$0xff] %v2488_v61 }
 0x384   : > { %v2250_v63 = vpop.f32.mrf.mxu2  ;;  %v1914_v2 = vpop.f32.mrf.mxu0 }
 0x385   : > { %v2419_v0 = vpop.f32.mrf.mxu3  ;;  %v2251_v1 = vadd.f32 %v2250_v63, %v2082_v62  ;;  %v2083_v3 = vpop.f32.mrf.mxu1 }
 0x386   : > { %v2084_v7 = vadd.f32 %v2083_v3, %v1914_v2 }
 0x387   : > { %v2420_v5 = vadd.f32 %v2419_v0, %v2251_v1 }
 0x389   : > { %v2489_v6 = vadd.f32 %v2420_v5, %v720_v4 }
 0x38b   : > { %2553 = vst [vmem:[%s4495_s15 + $0x1e0] sm:$0xff] %v2489_v6 }
 0x38c   : > { %v2252_v8 = vpop.f32.mrf.mxu2  ;;  %v1917_v12 = vpop.f32.mrf.mxu0 }
 0x38d   : > { %v2421_v9 = vpop.f32.mrf.mxu3  ;;  %v2253_v10 = vadd.f32 %v2252_v8, %v2084_v7  ;;  %v2086_v13 = vpop.f32.mrf.mxu1 }
 0x38e   : > { %v2087_v16 = vadd.f32 %v2086_v13, %v1917_v12 }
 0x38f   : > { %v2422_v14 = vadd.f32 %v2421_v9, %v2253_v10 }
 0x391   : > { %v2490_v15 = vadd.f32 %v2422_v14, %v721_v11 }
 0x393   : > { %2554 = vst [vmem:[%s4495_s15 + $0x1e8] sm:$0xff] %v2490_v15 }
 0x394   : > { %v2255_v17 = vpop.f32.mrf.mxu2  ;;  %v1919_v22 = vpop.f32.mrf.mxu0 }
 0x395   : > { %v2424_v18 = vpop.f32.mrf.mxu3  ;;  %v2256_v19 = vadd.f32 %v2255_v17, %v2087_v16  ;;  %v2088_v23 = vpop.f32.mrf.mxu1 }
 0x396   : > { %v2089_v25 = vadd.f32 %v2088_v23, %v1919_v22 }
 0x397   : > { %v2425_v21 = vadd.f32 %v2424_v18, %v2256_v19 }
 0x399   : > { %v2491_v24 = vadd.f32 %v2425_v21, %v722_v20 }
 0x39b   : > { %2555 = vst [vmem:[%s4495_s15 + $0x1f0] sm:$0xff] %v2491_v24 }
 0x39c   : > { %v2257_v26 = vpop.f32.mrf.mxu2 }
 0x39d   : > { %v2258_v27 = vadd.f32 %v2257_v26, %v2089_v25  ;;  %v2426_v29 = vpop.f32.mrf.mxu3 }
 0x39f   : > { %v2427_v30 = vadd.f32 %v2426_v29, %v2258_v27  ;;  %2560 = sbr.rel (%p3666_p12) target bundleno = 980 (0x3d4), region = 63 }
 0x3a1   : > { %v2492_v31 = vadd.f32 %v2427_v30, %v723_v28 }
 0x3a3   : > { %2556 = vst [vmem:[%s4495_s15 + $0x1f8] sm:$0xff] %v2492_v31 }
 0x3a4   : > { %v2561_v32 = vld [vmem:[%s4495_s15] sm:$0xff]  ;;  %v2562_v33 = vld [vmem:[%s4495_s15 + $0x8] sm:$0xff]  ;;  %v2563_v37 = vld [vmem:[%s4495_s15 + $0x10] sm:$0xff] }
 0x3a5   : > { %v2564_v38 = vld [vmem:[%s4495_s15 + $0x18] sm:$0xff]  ;;  %v2565_v42 = vld [vmem:[%s4495_s15 + $0x20] sm:$0xff]  ;;  %v2566_v45 = vld [vmem:[%s4495_s15 + $0x28] sm:$0xff] }
 0x3a6   : > { %v2567_v51 = vld [vmem:[%s4495_s15 + $0x30] sm:$0xff]  ;;  %v2568_v52 = vld [vmem:[%s4495_s15 + $0x38] sm:$0xff]  ;;  %v2569_v57 = vld [vmem:[%s4495_s15 + $0x40] sm:$0xff] }
 0x3a7   : > { %v2570_v58 = vld [vmem:[%s4495_s15 + $0x48] sm:$0xff]  ;;  %v2571_v63 = vld [vmem:[%s4495_s15 + $0x50] sm:$0xff]  ;;  %v2572_v2 = vld [vmem:[%s4495_s15 + $0x58] sm:$0xff] }
 0x3a8   : > { %v2573_v8 = vld [vmem:[%s4495_s15 + $0x60] sm:$0xff]  ;;  %v2574_v9 = vld [vmem:[%s4495_s15 + $0x68] sm:$0xff]  ;;  %v2575_v14 = vld [vmem:[%s4495_s15 + $0x70] sm:$0xff] }
 0x3a9   : > { %v2576_v15 = vld [vmem:[%s4495_s15 + $0x78] sm:$0xff]  ;;  %v2577_v20 = vld [vmem:[%s4495_s15 + $0x80] sm:$0xff]  ;;  %v2578_v23 = vld [vmem:[%s4495_s15 + $0x88] sm:$0xff] }
 0x3aa   : > { %v2625_v34 = vld [vmem:[%s4485_s30] sm:$0xff]  ;;  %v2626_v35 = vld [vmem:[%s4485_s30 + $0x8] sm:$0xff]  ;;  %v2627_v40 = vld [vmem:[%s4485_s30 + $0x10] sm:$0xff] }
 0x3ab   : > { %v2689_v36 = vsub.f32 %v2561_v32, %v2625_v34  ;;  %v2690_v39 = vsub.f32 %v2562_v33, %v2626_v35  ;;  %v2628_v41 = vld [vmem:[%s4485_s30 + $0x18] sm:$0xff]  ;;  %v2691_v43 = vsub.f32 %v2563_v37, %v2627_v40  ;;  %v2629_v46 = vld [vmem:[%s4485_s30 + $0x20] sm:$0xff]  ;;  %v2630_v47 = vld [vmem:[%s4485_s30 + $0x28] sm:$0xff] }
 0x3ac   : > { %v2692_v44 = vsub.f32 %v2564_v38, %v2628_v41  ;;  %v2693_v49 = vsub.f32 %v2565_v42, %v2629_v46  ;;  %v2694_v50 = vsub.f32 %v2566_v45, %v2630_v47  ;;  %v2631_v53 = vld [vmem:[%s4485_s30 + $0x30] sm:$0xff]  ;;  %v2632_v55 = vld [vmem:[%s4485_s30 + $0x38] sm:$0xff]  ;;  %v2633_v61 = vld [vmem:[%s4485_s30 + $0x40] sm:$0xff] }
 0x3ad   : > { %v3833_v48 = vpack.c.bf16 %v2690_v39, %v2689_v36  ;;  %v2695_v56 = vsub.f32 %v2567_v51, %v2631_v53  ;;  %v2696_v60 = vsub.f32 %v2568_v52, %v2632_v55  ;;  %v2634_v62 = vld [vmem:[%s4485_s30 + $0x48] sm:$0xff]  ;;  %v2697_v0 = vsub.f32 %v2569_v57, %v2633_v61  ;;  %v2635_v3 = vld [vmem:[%s4485_s30 + $0x50] sm:$0xff]  ;;  %v2636_v4 = vld [vmem:[%s4485_s30 + $0x58] sm:$0xff] }
 0x3ae   : > { %v3838_v54 = vpack.c.bf16 %v2692_v44, %v2691_v43  ;;  %v3843_v59 = vpack.c.bf16 %v2694_v50, %v2693_v49  ;;  %v2698_v1 = vsub.f32 %v2570_v58, %v2634_v62  ;;  %v2699_v6 = vsub.f32 %v2571_v63, %v2635_v3  ;;  %v2637_v10 = vld [vmem:[%s4485_s30 + $0x60] sm:$0xff]  ;;  %v2638_v12 = vld [vmem:[%s4485_s30 + $0x68] sm:$0xff]  ;;  %v2639_v18 = vld [vmem:[%s4485_s30 + $0x70] sm:$0xff] }
 0x3af   : > { %3834 = vst [vmem:[%s4490_s7] sm:$0xff] %v3833_v48   ;;  %v3848_v5 = vpack.c.bf16 %v2696_v60, %v2695_v56  ;;  %v2700_v7 = vsub.f32 %v2572_v2, %v2636_v4  ;;  %v2701_v13 = vsub.f32 %v2573_v8, %v2637_v10  ;;  %v2702_v17 = vsub.f32 %v2574_v9, %v2638_v12  ;;  %v2640_v19 = vld [vmem:[%s4485_s30 + $0x78] sm:$0xff]  ;;  %v2641_v24 = vld [vmem:[%s4485_s30 + $0x80] sm:$0xff]  ;;  %v2642_v25 = vld [vmem:[%s4485_s30 + $0x88] sm:$0xff] }
 0x3b0   : > { %3990 = vst [vmem:[%s4490_s7 + $0x8] sm:$0xff] %v3838_v54   ;;  %v3853_v11 = vpack.c.bf16 %v2698_v1, %v2697_v0  ;;  %v2703_v21 = vsub.f32 %v2575_v14, %v2639_v18  ;;  %v2704_v22 = vsub.f32 %v2576_v15, %v2640_v19  ;;  %v2705_v27 = vsub.f32 %v2577_v20, %v2641_v24  ;;  %v2579_v29 = vld [vmem:[%s4495_s15 + $0x90] sm:$0xff]  ;;  %v2580_v30 = vld [vmem:[%s4495_s15 + $0x98] sm:$0xff]  ;;  %v2581_v35 = vld [vmem:[%s4495_s15 + $0xa0] sm:$0xff] }
 0x3b1   : > { %3991 = vst [vmem:[%s4490_s7 + $0x10] sm:$0xff] %v3843_v59   ;;  %v3858_v16 = vpack.c.bf16 %v2700_v7, %v2699_v6  ;;  %v3863_v26 = vpack.c.bf16 %v2702_v17, %v2701_v13  ;;  %v2706_v28 = vsub.f32 %v2578_v23, %v2642_v25  ;;  %v2643_v31 = vld [vmem:[%s4485_s30 + $0x90] sm:$0xff]  ;;  %v2644_v33 = vld [vmem:[%s4485_s30 + $0x98] sm:$0xff]  ;;  %v2582_v36 = vld [vmem:[%s4495_s15 + $0xa8] sm:$0xff] }
 0x3b2   : > { %3992 = vst [vmem:[%s4490_s7 + $0x18] sm:$0xff] %v3848_v5   ;;  %v3868_v32 = vpack.c.bf16 %v2704_v22, %v2703_v21  ;;  %v2707_v34 = vsub.f32 %v2579_v29, %v2643_v31  ;;  %v2708_v38 = vsub.f32 %v2580_v30, %v2644_v33  ;;  %v2645_v39 = vld [vmem:[%s4485_s30 + $0xa0] sm:$0xff]  ;;  %v2646_v40 = vld [vmem:[%s4485_s30 + $0xa8] sm:$0xff]  ;;  %v2583_v41 = vld [vmem:[%s4495_s15 + $0xb0] sm:$0xff] }
 0x3b3   : > { %3993 = vst [vmem:[%s4490_s7 + $0x20] sm:$0xff] %v3853_v11   ;;  %v3873_v37 = vpack.c.bf16 %v2706_v28, %v2705_v27  ;;  %v2709_v42 = vsub.f32 %v2581_v35, %v2645_v39  ;;  %v2710_v43 = vsub.f32 %v2582_v36, %v2646_v40  ;;  %v2584_v44 = vld [vmem:[%s4495_s15 + $0xb8] sm:$0xff]  ;;  %v2647_v45 = vld [vmem:[%s4485_s30 + $0xb0] sm:$0xff]  ;;  %v2585_v50 = vld [vmem:[%s4495_s15 + $0xc0] sm:$0xff] }
 0x3b4   : > { %3994 = vst [vmem:[%s4490_s7 + $0x28] sm:$0xff] %v3858_v16   ;;  %v2648_v46 = vld [vmem:[%s4485_s30 + $0xb8] sm:$0xff]  ;;  %v3878_v47 = vpack.c.bf16 %v2708_v38, %v2707_v34  ;;  %v2711_v48 = vsub.f32 %v2583_v41, %v2647_v45  ;;  %v2586_v51 = vld [vmem:[%s4495_s15 + $0xc8] sm:$0xff]  ;;  %v2649_v52 = vld [vmem:[%s4485_s30 + $0xc0] sm:$0xff] }
 0x3b5   : > { %3995 = vst [vmem:[%s4490_s7 + $0x30] sm:$0xff] %v3863_v26   ;;  %v2712_v49 = vsub.f32 %v2584_v44, %v2648_v46  ;;  %v3883_v53 = vpack.c.bf16 %v2710_v43, %v2709_v42  ;;  %v2650_v54 = vld [vmem:[%s4485_s30 + $0xc8] sm:$0xff]  ;;  %v2713_v55 = vsub.f32 %v2585_v50, %v2649_v52  ;;  %v2587_v56 = vld [vmem:[%s4495_s15 + $0xd0] sm:$0xff]  ;;  %v2588_v57 = vld [vmem:[%s4495_s15 + $0xd8] sm:$0xff] }
 0x3b6   : > { %3996 = vst [vmem:[%s4490_s7 + $0x38] sm:$0xff] %v3868_v32   ;;  %v2714_v59 = vsub.f32 %v2586_v51, %v2650_v54  ;;  %v2651_v60 = vld [vmem:[%s4485_s30 + $0xd0] sm:$0xff]  ;;  %v2652_v61 = vld [vmem:[%s4485_s30 + $0xd8] sm:$0xff]  ;;  %v2589_v62 = vld [vmem:[%s4495_s15 + $0xe0] sm:$0xff] }
 0x3b7   : > { %3997 = vst [vmem:[%s4490_s7 + $0x40] sm:$0xff] %v3873_v37   ;;  %v3888_v58 = vpack.c.bf16 %v2712_v49, %v2711_v48  ;;  %v2715_v63 = vsub.f32 %v2587_v56, %v2651_v60  ;;  %v2716_v0 = vsub.f32 %v2588_v57, %v2652_v61  ;;  %v2590_v1 = vld [vmem:[%s4495_s15 + $0xe8] sm:$0xff]  ;;  %v2653_v2 = vld [vmem:[%s4485_s30 + $0xe0] sm:$0xff]  ;;  %v2591_v7 = vld [vmem:[%s4495_s15 + $0xf0] sm:$0xff] }
 0x3b8   : > { %3998 = vst [vmem:[%s4490_s7 + $0x48] sm:$0xff] %v3878_v47   ;;  %v2654_v3 = vld [vmem:[%s4485_s30 + $0xe8] sm:$0xff]  ;;  %v3893_v4 = vpack.c.bf16 %v2714_v59, %v2713_v55  ;;  %v2717_v5 = vsub.f32 %v2589_v62, %v2653_v2  ;;  %v2592_v8 = vld [vmem:[%s4495_s15 + $0xf8] sm:$0xff]  ;;  %v2655_v9 = vld [vmem:[%s4485_s30 + $0xf0] sm:$0xff] }
 0x3b9   : > { %3999 = vst [vmem:[%s4490_s7 + $0x50] sm:$0xff] %v3883_v53   ;;  %v2718_v6 = vsub.f32 %v2590_v1, %v2654_v3  ;;  %v3898_v10 = vpack.c.bf16 %v2716_v0, %v2715_v63  ;;  %v2656_v11 = vld [vmem:[%s4485_s30 + $0xf8] sm:$0xff]  ;;  %v2719_v12 = vsub.f32 %v2591_v7, %v2655_v9  ;;  %v2593_v13 = vld [vmem:[%s4495_s15 + $0x100] sm:$0xff]  ;;  %v2594_v14 = vld [vmem:[%s4495_s15 + $0x108] sm:$0xff] }
 0x3ba   : > { %4000 = vst [vmem:[%s4490_s7 + $0x58] sm:$0xff] %v3888_v58   ;;  %v2720_v16 = vsub.f32 %v2592_v8, %v2656_v11  ;;  %v2657_v17 = vld [vmem:[%s4485_s30 + $0x100] sm:$0xff]  ;;  %v2658_v18 = vld [vmem:[%s4485_s30 + $0x108] sm:$0xff]  ;;  %v2595_v19 = vld [vmem:[%s4495_s15 + $0x110] sm:$0xff] }
 0x3bb   : > { %4001 = vst [vmem:[%s4490_s7 + $0x60] sm:$0xff] %v3893_v4   ;;  %v3903_v15 = vpack.c.bf16 %v2718_v6, %v2717_v5  ;;  %v2721_v20 = vsub.f32 %v2593_v13, %v2657_v17  ;;  %v2722_v21 = vsub.f32 %v2594_v14, %v2658_v18  ;;  %v2596_v22 = vld [vmem:[%s4495_s15 + $0x118] sm:$0xff]  ;;  %v2659_v23 = vld [vmem:[%s4485_s30 + $0x110] sm:$0xff]  ;;  %v2597_v28 = vld [vmem:[%s4495_s15 + $0x120] sm:$0xff] }
 0x3bc   : > { %4002 = vst [vmem:[%s4490_s7 + $0x68] sm:$0xff] %v3898_v10   ;;  %v2660_v24 = vld [vmem:[%s4485_s30 + $0x118] sm:$0xff]  ;;  %v3908_v25 = vpack.c.bf16 %v2720_v16, %v2719_v12  ;;  %v2723_v26 = vsub.f32 %v2595_v19, %v2659_v23  ;;  %v2598_v29 = vld [vmem:[%s4495_s15 + $0x128] sm:$0xff]  ;;  %v2661_v30 = vld [vmem:[%s4485_s30 + $0x120] sm:$0xff] }
 0x3bd   : > { %4003 = vst [vmem:[%s4490_s7 + $0x70] sm:$0xff] %v3903_v15   ;;  %v2724_v27 = vsub.f32 %v2596_v22, %v2660_v24  ;;  %v3913_v31 = vpack.c.bf16 %v2722_v21, %v2721_v20  ;;  %v2662_v32 = vld [vmem:[%s4485_s30 + $0x128] sm:$0xff]  ;;  %v2725_v33 = vsub.f32 %v2597_v28, %v2661_v30  ;;  %v2599_v34 = vld [vmem:[%s4495_s15 + $0x130] sm:$0xff]  ;;  %v2600_v35 = vld [vmem:[%s4495_s15 + $0x138] sm:$0xff] }
 0x3be   : > { %4004 = vst [vmem:[%s4490_s7 + $0x78] sm:$0xff] %v3908_v25   ;;  %v2726_v37 = vsub.f32 %v2598_v29, %v2662_v32  ;;  %v2663_v38 = vld [vmem:[%s4485_s30 + $0x130] sm:$0xff]  ;;  %v2664_v39 = vld [vmem:[%s4485_s30 + $0x138] sm:$0xff]  ;;  %v2601_v40 = vld [vmem:[%s4495_s15 + $0x140] sm:$0xff] }
 0x3bf   : > { %v3918_v36 = vpack.c.bf16 %v2724_v27, %v2723_v26  ;;  %4005 = vst [vmem:[%s4490_s7 + $0x80] sm:$0xff] %v3913_v31   ;;  %v2727_v41 = vsub.f32 %v2599_v34, %v2663_v38  ;;  %v2728_v42 = vsub.f32 %v2600_v35, %v2664_v39  ;;  %v2602_v43 = vld [vmem:[%s4495_s15 + $0x148] sm:$0xff]  ;;  %v2665_v44 = vld [vmem:[%s4485_s30 + $0x140] sm:$0xff]  ;;  %v2603_v49 = vld [vmem:[%s4495_s15 + $0x150] sm:$0xff] }
 0x3c0   : > { %v2666_v45 = vld [vmem:[%s4485_s30 + $0x148] sm:$0xff]  ;;  %v3923_v46 = vpack.c.bf16 %v2726_v37, %v2725_v33  ;;  %v2729_v47 = vsub.f32 %v2601_v40, %v2665_v44  ;;  %v2604_v50 = vld [vmem:[%s4495_s15 + $0x158] sm:$0xff]  ;;  %v2667_v51 = vld [vmem:[%s4485_s30 + $0x150] sm:$0xff] }
 0x3c1   : > { %4006 = vst [vmem:[%s4490_s7 + $0x88] sm:$0xff] %v3918_v36   ;;  %v2730_v48 = vsub.f32 %v2602_v43, %v2666_v45  ;;  %v3928_v52 = vpack.c.bf16 %v2728_v42, %v2727_v41  ;;  %v2668_v53 = vld [vmem:[%s4485_s30 + $0x158] sm:$0xff]  ;;  %v2731_v54 = vsub.f32 %v2603_v49, %v2667_v51  ;;  %v2605_v55 = vld [vmem:[%s4495_s15 + $0x160] sm:$0xff]  ;;  %v2606_v56 = vld [vmem:[%s4495_s15 + $0x168] sm:$0xff] }
 0x3c2   : > { %4007 = vst [vmem:[%s4490_s7 + $0x90] sm:$0xff] %v3923_v46   ;;  %v2732_v58 = vsub.f32 %v2604_v50, %v2668_v53  ;;  %v2669_v59 = vld [vmem:[%s4485_s30 + $0x160] sm:$0xff]  ;;  %v2670_v60 = vld [vmem:[%s4485_s30 + $0x168] sm:$0xff]  ;;  %v2607_v61 = vld [vmem:[%s4495_s15 + $0x170] sm:$0xff] }
 0x3c3   : > { %v3933_v57 = vpack.c.bf16 %v2730_v48, %v2729_v47  ;;  %4008 = vst [vmem:[%s4490_s7 + $0x98] sm:$0xff] %v3928_v52   ;;  %v2733_v62 = vsub.f32 %v2605_v55, %v2669_v59  ;;  %v2734_v63 = vsub.f32 %v2606_v56, %v2670_v60  ;;  %v2608_v0 = vld [vmem:[%s4495_s15 + $0x178] sm:$0xff]  ;;  %v2671_v1 = vld [vmem:[%s4485_s30 + $0x170] sm:$0xff]  ;;  %v2609_v6 = vld [vmem:[%s4495_s15 + $0x180] sm:$0xff] }
 0x3c4   : > { %v2672_v2 = vld [vmem:[%s4485_s30 + $0x178] sm:$0xff]  ;;  %v3938_v3 = vpack.c.bf16 %v2732_v58, %v2731_v54  ;;  %v2735_v4 = vsub.f32 %v2607_v61, %v2671_v1  ;;  %v2610_v7 = vld [vmem:[%s4495_s15 + $0x188] sm:$0xff]  ;;  %v2673_v8 = vld [vmem:[%s4485_s30 + $0x180] sm:$0xff] }
 0x3c5   : > { %4009 = vst [vmem:[%s4490_s7 + $0xa0] sm:$0xff] %v3933_v57   ;;  %v2736_v5 = vsub.f32 %v2608_v0, %v2672_v2  ;;  %v3943_v9 = vpack.c.bf16 %v2734_v63, %v2733_v62  ;;  %v2674_v10 = vld [vmem:[%s4485_s30 + $0x188] sm:$0xff]  ;;  %v2737_v11 = vsub.f32 %v2609_v6, %v2673_v8  ;;  %v2611_v12 = vld [vmem:[%s4495_s15 + $0x190] sm:$0xff]  ;;  %v2612_v13 = vld [vmem:[%s4495_s15 + $0x198] sm:$0xff] }
 0x3c6   : > { %4010 = vst [vmem:[%s4490_s7 + $0xa8] sm:$0xff] %v3938_v3   ;;  %v2738_v15 = vsub.f32 %v2610_v7, %v2674_v10  ;;  %v2675_v16 = vld [vmem:[%s4485_s30 + $0x190] sm:$0xff]  ;;  %v2676_v17 = vld [vmem:[%s4485_s30 + $0x198] sm:$0xff]  ;;  %v2613_v18 = vld [vmem:[%s4495_s15 + $0x1a0] sm:$0xff] }
 0x3c7   : > { %v3948_v14 = vpack.c.bf16 %v2736_v5, %v2735_v4  ;;  %4011 = vst [vmem:[%s4490_s7 + $0xb0] sm:$0xff] %v3943_v9   ;;  %v2739_v19 = vsub.f32 %v2611_v12, %v2675_v16  ;;  %v2740_v20 = vsub.f32 %v2612_v13, %v2676_v17  ;;  %v2614_v21 = vld [vmem:[%s4495_s15 + $0x1a8] sm:$0xff]  ;;  %v2677_v22 = vld [vmem:[%s4485_s30 + $0x1a0] sm:$0xff]  ;;  %v2615_v27 = vld [vmem:[%s4495_s15 + $0x1b0] sm:$0xff] }
 0x3c8   : > { %v2678_v23 = vld [vmem:[%s4485_s30 + $0x1a8] sm:$0xff]  ;;  %v3953_v24 = vpack.c.bf16 %v2738_v15, %v2737_v11  ;;  %v2741_v25 = vsub.f32 %v2613_v18, %v2677_v22  ;;  %v2616_v28 = vld [vmem:[%s4495_s15 + $0x1b8] sm:$0xff]  ;;  %v2679_v29 = vld [vmem:[%s4485_s30 + $0x1b0] sm:$0xff] }
 0x3c9   : > { %4012 = vst [vmem:[%s4490_s7 + $0xb8] sm:$0xff] %v3948_v14   ;;  %v2742_v26 = vsub.f32 %v2614_v21, %v2678_v23  ;;  %v3958_v30 = vpack.c.bf16 %v2740_v20, %v2739_v19  ;;  %v2680_v31 = vld [vmem:[%s4485_s30 + $0x1b8] sm:$0xff]  ;;  %v2743_v32 = vsub.f32 %v2615_v27, %v2679_v29  ;;  %v2617_v33 = vld [vmem:[%s4495_s15 + $0x1c0] sm:$0xff]  ;;  %v2618_v34 = vld [vmem:[%s4495_s15 + $0x1c8] sm:$0xff] }
 0x3ca   : > { %4013 = vst [vmem:[%s4490_s7 + $0xc0] sm:$0xff] %v3953_v24   ;;  %v2744_v36 = vsub.f32 %v2616_v28, %v2680_v31  ;;  %v2681_v37 = vld [vmem:[%s4485_s30 + $0x1c0] sm:$0xff]  ;;  %v2682_v38 = vld [vmem:[%s4485_s30 + $0x1c8] sm:$0xff]  ;;  %v2619_v39 = vld [vmem:[%s4495_s15 + $0x1d0] sm:$0xff] }
 0x3cb   : > { %v3963_v35 = vpack.c.bf16 %v2742_v26, %v2741_v25  ;;  %4014 = vst [vmem:[%s4490_s7 + $0xc8] sm:$0xff] %v3958_v30   ;;  %v2745_v40 = vsub.f32 %v2617_v33, %v2681_v37  ;;  %v2746_v41 = vsub.f32 %v2618_v34, %v2682_v38  ;;  %v2620_v42 = vld [vmem:[%s4495_s15 + $0x1d8] sm:$0xff]  ;;  %v2683_v43 = vld [vmem:[%s4485_s30 + $0x1d0] sm:$0xff]  ;;  %v2621_v48 = vld [vmem:[%s4495_s15 + $0x1e0] sm:$0xff] }
 0x3cc   : > { %v2684_v44 = vld [vmem:[%s4485_s30 + $0x1d8] sm:$0xff]  ;;  %v3968_v45 = vpack.c.bf16 %v2744_v36, %v2743_v32  ;;  %v2747_v46 = vsub.f32 %v2619_v39, %v2683_v43  ;;  %v2622_v49 = vld [vmem:[%s4495_s15 + $0x1e8] sm:$0xff]  ;;  %v2685_v50 = vld [vmem:[%s4485_s30 + $0x1e0] sm:$0xff] }
 0x3cd   : > { %4015 = vst [vmem:[%s4490_s7 + $0xd0] sm:$0xff] %v3963_v35   ;;  %v2748_v47 = vsub.f32 %v2620_v42, %v2684_v44  ;;  %v3973_v51 = vpack.c.bf16 %v2746_v41, %v2745_v40  ;;  %v2686_v52 = vld [vmem:[%s4485_s30 + $0x1e8] sm:$0xff]  ;;  %v2749_v53 = vsub.f32 %v2621_v48, %v2685_v50  ;;  %v2623_v54 = vld [vmem:[%s4495_s15 + $0x1f0] sm:$0xff]  ;;  %v2624_v55 = vld [vmem:[%s4495_s15 + $0x1f8] sm:$0xff] }
 0x3ce   : > { %4016 = vst [vmem:[%s4490_s7 + $0xd8] sm:$0xff] %v3968_v45   ;;  %v2750_v57 = vsub.f32 %v2622_v49, %v2686_v52  ;;  %v2687_v58 = vld [vmem:[%s4485_s30 + $0x1f0] sm:$0xff]  ;;  %v2688_v59 = vld [vmem:[%s4485_s30 + $0x1f8] sm:$0xff] }
 0x3cf   : > { %v3978_v56 = vpack.c.bf16 %v2748_v47, %v2747_v46  ;;  %4017 = vst [vmem:[%s4490_s7 + $0xe0] sm:$0xff] %v3973_v51   ;;  %v2751_v60 = vsub.f32 %v2623_v54, %v2687_v58  ;;  %v2752_v61 = vsub.f32 %v2624_v55, %v2688_v59 }
 0x3d0   : > { %v3983_v62 = vpack.c.bf16 %v2750_v57, %v2749_v53 }
 0x3d1   : > { %4018 = vst [vmem:[%s4490_s7 + $0xe8] sm:$0xff] %v3978_v56   ;;  %v3988_v63 = vpack.c.bf16 %v2752_v61, %v2751_v60 }
 0x3d2   : > { %4019 = vst [vmem:[%s4490_s7 + $0xf0] sm:$0xff] %v3983_v62  }
 0x3d3   : > { %4020 = vst [vmem:[%s4490_s7 + $0xf8] sm:$0xff] %v3988_v63  }
 0x3d4 PF: > { %s15_s21 = sadd.s32 1, %s4131_s21   ;;  %s5429_s15 = smov %s4111_s16 }
 0x3d5   : > { %p12_p13 = scmp.ge.s32.totalorder %s15_s21, 6   ;;  %s5430_s16 = smov %s4209_s28 }
 0x3d6   : > { %s5431_s17 = smov %s4123_s19  ;;  %s5432_s18 = smov %s4127_s20 }
 0x3d7   : > { %s5433_s19 = smov %s5436_s22  ;;  %s5434_s20 = smov %s5440_s23 }
 0x3d8   :  { %14 = sbr.rel (!%p12_p13) target bundleno = 4 (0x4), region = 114 }

// kernel: slmrec_forward.7
= control target key start
LH: loop header
LB: loop body
LE: loop exit
PB: predicated region body
PF: predicated region fallthrough
CT: control target
= control target key end

     0   :  { %s4035_s18 = smov 0   ;;  %s4037_s19 = smov 0   ;;  %s4933_s0 = inlined_call_operand.vmem [shape: bf16[1024,1024], index: 0, kind: input, shape index: {}]   ;;  %s4934_s1 = inlined_call_operand.vmem [shape: bf16[1024,128], index: 1, kind: input, shape index: {}]   ;;  %s4935_s2 = inlined_call_operand.vmem [shape: f32[1024,128], index: 2, kind: input, shape index: {}]   ;;  %s4936_s3 = inlined_call_operand.vmem [shape: f32[128,128], index: 3, kind: input, shape index: {}]   ;;  %s4937_s4 = inlined_call_operand.vmem [shape: f32[1,128], index: 4, kind: input, shape index: {}]   ;;  %s4938_s5 = inlined_call_operand.vmem [shape: f32[1024,128], index: 5, kind: output, shape index: {}]  }
   0x1   :  { %s4039_s20 = smov 0   ;;  %s4041_s21 = smov 0  }
   0x2   :  { %s4043_s22 = smov 0   ;;  %s4045_s23 = smov 0  }
   0x3   :  { %s4047_s24 = smov 0  }
   0x4 LB: > { %s24_s25 = sadd.s32 1, %s3995_s22  ;;  %s27_s26 = sadd.s32 1, %s3999_s23  ;;  %s4003_s24 = sphi %s4047_s24, %s15_s24   ;;  %s3999_s23 = sphi %s4045_s23, %s4944_s23   ;;  %s3995_s22 = sphi %s4043_s22, %s4943_s22   ;;  %s3991_s21 = sphi %s4041_s21, %s4942_s21   ;;  %s3987_s20 = sphi %s4039_s20, %s4941_s20   ;;  %s3983_s19 = sphi %s4037_s19, %s4940_s19   ;;  %s3979_s18 = sphi %s4035_s18, %s4939_s18  }
   0x5   : > { %p25_p0 = scmp.ge.s32.totalorder %s24_s25, 2  ;;  %p43_p1 = scmp.ne.s32.totalorder %s3983_s19, %s3979_s18 }
   0x6   : > { %p44_p2 = scmp.eq.s32.totalorder %s4003_s24, 0  ;;  %s36_s30 = sadd.s32 1, %s3983_s19 }
   0x7   : > { %s4946_s25 = smov (%p25_p0, %s24_s25), 0  ;;  %s4948_s26 = smov (!%p25_p0, %s27_s26), %s3999_s23 }
   0x8   : > { %p45_p3 = por %p44_p2, %p43_p1  ;;  %p29_p4 = scmp.ge.s32.totalorder %s4948_s26, 2 }
   0x9   : > { %s32_s27 = ssub.s32 %s3995_s22, %s4946_s25  ;;  %p3025_p6 = scmp.ge.s32.totalorder %s4003_s24, 4 }
   0xa   : > { %s4950_s26 = smov (%p29_p4, %s4948_s26), 0 }
   0xb   : > { %s31_s28 = ssub.s32 %s3999_s23, %s4950_s26  ;;  %193 = sbr.rel (%p3025_p6) target bundleno = 151 (0x97), region = 28 }
   0xc   : > { %s33_s29 = sor.u32 %s32_s27, %s31_s28 }
   0xd   : > { %p34_p5 = scmp.eq.s32.totalorder %s33_s29, 0 }
   0xf   : > { %s4086_s6 = scalar_select %p34_p5, %s3983_s19, %s36_s30  }
  0x10   : > { %196 = sbr.rel (!%p45_p3) target bundleno = 151 (0x97), region = 32  ;;  %s198_s7 = sand.u32 (%p45_p3), 1, %s3983_s19  }
  0x11   : > { %s3028_s8 = sshll.u32 (%p45_p3), %s3995_s22, 2  ;;  %s3026_s9 = sshll.u32 (%p45_p3), %s198_s7, 10 }
  0x12   : > { %s3683_s10 = sshll.u32 (%p45_p3), %s3999_s23, 9  ;;  %s4100_s16 = scalar_lea.vmem (%p45_p3), [#allocation3], %s3026_s9 }
  0x13   : > { %s204_s11 = sadd.s32 (%p45_p3), %s3683_s10, %s3028_s8 }
  0x14   : > { %s3030_s12 = sshll.u32 (%p45_p3), %s204_s11, 2 }
  0x15   : > { %s4095_s15 = scalar_lea.vmem %s4933_s0, %s3030_s12 }
  0x16   : > { %v219_v0 = vld [vmem:[%s4095_s15] sm:$0xff]  ;;  %v221_v1 = vld [vmem:[%s4095_s15 + $0x8] sm:$0xff] }
  0x17   : > { %v223_v2 = vld [vmem:[%s4095_s15 + $0x20] sm:$0xff]  ;;  %220 = vst [vmem:[%s4100_s16] sm:$0xff] %v219_v0  ;;  %v225_v3 = vld [vmem:[%s4095_s15 + $0x28] sm:$0xff] }
  0x18   : > { %222 = vst [vmem:[%s4100_s16 + $0x8] sm:$0xff] %v221_v1  ;;  %v227_v4 = vld [vmem:[%s4095_s15 + $0x40] sm:$0xff]  ;;  %v229_v5 = vld [vmem:[%s4095_s15 + $0x48] sm:$0xff] }
  0x19   : > { %224 = vst [vmem:[%s4100_s16 + $0x10] sm:$0xff] %v223_v2  ;;  %v231_v6 = vld [vmem:[%s4095_s15 + $0x60] sm:$0xff]  ;;  %v233_v7 = vld [vmem:[%s4095_s15 + $0x68] sm:$0xff] }
  0x1a   : > { %226 = vst [vmem:[%s4100_s16 + $0x18] sm:$0xff] %v225_v3  ;;  %v235_v8 = vld [vmem:[%s4095_s15 + $0x80] sm:$0xff]  ;;  %v237_v9 = vld [vmem:[%s4095_s15 + $0x88] sm:$0xff] }
  0x1b   : > { %228 = vst [vmem:[%s4100_s16 + $0x20] sm:$0xff] %v227_v4  ;;  %v239_v10 = vld [vmem:[%s4095_s15 + $0xa0] sm:$0xff]  ;;  %v241_v11 = vld [vmem:[%s4095_s15 + $0xa8] sm:$0xff] }
  0x1c   : > { %230 = vst [vmem:[%s4100_s16 + $0x28] sm:$0xff] %v229_v5  ;;  %v243_v12 = vld [vmem:[%s4095_s15 + $0xc0] sm:$0xff]  ;;  %v245_v13 = vld [vmem:[%s4095_s15 + $0xc8] sm:$0xff] }
  0x1d   : > { %232 = vst [vmem:[%s4100_s16 + $0x30] sm:$0xff] %v231_v6  ;;  %v247_v14 = vld [vmem:[%s4095_s15 + $0xe0] sm:$0xff]  ;;  %v249_v15 = vld [vmem:[%s4095_s15 + $0xe8] sm:$0xff] }
  0x1e   : > { %234 = vst [vmem:[%s4100_s16 + $0x38] sm:$0xff] %v233_v7  ;;  %v251_v16 = vld [vmem:[%s4095_s15 + $0x100] sm:$0xff]  ;;  %v253_v17 = vld [vmem:[%s4095_s15 + $0x108] sm:$0xff] }
  0x1f   : > { %236 = vst [vmem:[%s4100_s16 + $0x40] sm:$0xff] %v235_v8  ;;  %v255_v18 = vld [vmem:[%s4095_s15 + $0x120] sm:$0xff]  ;;  %v257_v19 = vld [vmem:[%s4095_s15 + $0x128] sm:$0xff] }
  0x20   : > { %238 = vst [vmem:[%s4100_s16 + $0x48] sm:$0xff] %v237_v9  ;;  %v259_v20 = vld [vmem:[%s4095_s15 + $0x140] sm:$0xff]  ;;  %v261_v21 = vld [vmem:[%s4095_s15 + $0x148] sm:$0xff] }
  0x21   : > { %240 = vst [vmem:[%s4100_s16 + $0x50] sm:$0xff] %v239_v10  ;;  %v263_v22 = vld [vmem:[%s4095_s15 + $0x160] sm:$0xff]  ;;  %v265_v23 = vld [vmem:[%s4095_s15 + $0x168] sm:$0xff] }
  0x22   : > { %242 = vst [vmem:[%s4100_s16 + $0x58] sm:$0xff] %v241_v11  ;;  %v267_v24 = vld [vmem:[%s4095_s15 + $0x180] sm:$0xff]  ;;  %v269_v25 = vld [vmem:[%s4095_s15 + $0x188] sm:$0xff] }
  0x23   : > { %244 = vst [vmem:[%s4100_s16 + $0x60] sm:$0xff] %v243_v12  ;;  %v271_v26 = vld [vmem:[%s4095_s15 + $0x1a0] sm:$0xff]  ;;  %v273_v27 = vld [vmem:[%s4095_s15 + $0x1a8] sm:$0xff] }
  0x24   : > { %246 = vst [vmem:[%s4100_s16 + $0x68] sm:$0xff] %v245_v13  ;;  %v275_v28 = vld [vmem:[%s4095_s15 + $0x1c0] sm:$0xff]  ;;  %v277_v29 = vld [vmem:[%s4095_s15 + $0x1c8] sm:$0xff] }
  0x25   : > { %248 = vst [vmem:[%s4100_s16 + $0x70] sm:$0xff] %v247_v14  ;;  %v279_v30 = vld [vmem:[%s4095_s15 + $0x1e0] sm:$0xff]  ;;  %v281_v31 = vld [vmem:[%s4095_s15 + $0x1e8] sm:$0xff] }
  0x26   : > { %250 = vst [vmem:[%s4100_s16 + $0x78] sm:$0xff] %v249_v15  ;;  %v283_v32 = vld [vmem:[%s4095_s15 + $0x200] sm:$0xff]  ;;  %v285_v33 = vld [vmem:[%s4095_s15 + $0x208] sm:$0xff] }
  0x27   : > { %252 = vst [vmem:[%s4100_s16 + $0x80] sm:$0xff] %v251_v16  ;;  %v287_v34 = vld [vmem:[%s4095_s15 + $0x220] sm:$0xff]  ;;  %v289_v35 = vld [vmem:[%s4095_s15 + $0x228] sm:$0xff] }
  0x28   : > { %254 = vst [vmem:[%s4100_s16 + $0x88] sm:$0xff] %v253_v17  ;;  %v291_v36 = vld [vmem:[%s4095_s15 + $0x240] sm:$0xff]  ;;  %v293_v37 = vld [vmem:[%s4095_s15 + $0x248] sm:$0xff] }
  0x29   : > { %256 = vst [vmem:[%s4100_s16 + $0x90] sm:$0xff] %v255_v18  ;;  %v295_v38 = vld [vmem:[%s4095_s15 + $0x260] sm:$0xff]  ;;  %v297_v39 = vld [vmem:[%s4095_s15 + $0x268] sm:$0xff] }
  0x2a   : > { %258 = vst [vmem:[%s4100_s16 + $0x98] sm:$0xff] %v257_v19  ;;  %v299_v40 = vld [vmem:[%s4095_s15 + $0x280] sm:$0xff]  ;;  %v301_v41 = vld [vmem:[%s4095_s15 + $0x288] sm:$0xff] }
  0x2b   : > { %260 = vst [vmem:[%s4100_s16 + $0xa0] sm:$0xff] %v259_v20  ;;  %v303_v42 = vld [vmem:[%s4095_s15 + $0x2a0] sm:$0xff]  ;;  %v305_v43 = vld [vmem:[%s4095_s15 + $0x2a8] sm:$0xff] }
  0x2c   : > { %262 = vst [vmem:[%s4100_s16 + $0xa8] sm:$0xff] %v261_v21  ;;  %v307_v44 = vld [vmem:[%s4095_s15 + $0x2c0] sm:$0xff]  ;;  %v309_v45 = vld [vmem:[%s4095_s15 + $0x2c8] sm:$0xff] }
  0x2d   : > { %264 = vst [vmem:[%s4100_s16 + $0xb0] sm:$0xff] %v263_v22  ;;  %v311_v46 = vld [vmem:[%s4095_s15 + $0x2e0] sm:$0xff]  ;;  %v313_v47 = vld [vmem:[%s4095_s15 + $0x2e8] sm:$0xff] }
  0x2e   : > { %266 = vst [vmem:[%s4100_s16 + $0xb8] sm:$0xff] %v265_v23  ;;  %v315_v48 = vld [vmem:[%s4095_s15 + $0x300] sm:$0xff]  ;;  %v317_v49 = vld [vmem:[%s4095_s15 + $0x308] sm:$0xff] }
  0x2f   : > { %268 = vst [vmem:[%s4100_s16 + $0xc0] sm:$0xff] %v267_v24  ;;  %v319_v50 = vld [vmem:[%s4095_s15 + $0x320] sm:$0xff]  ;;  %v321_v51 = vld [vmem:[%s4095_s15 + $0x328] sm:$0xff] }
  0x30   : > { %270 = vst [vmem:[%s4100_s16 + $0xc8] sm:$0xff] %v269_v25  ;;  %v323_v52 = vld [vmem:[%s4095_s15 + $0x340] sm:$0xff]  ;;  %v325_v53 = vld [vmem:[%s4095_s15 + $0x348] sm:$0xff] }
  0x31   : > { %272 = vst [vmem:[%s4100_s16 + $0xd0] sm:$0xff] %v271_v26  ;;  %v327_v54 = vld [vmem:[%s4095_s15 + $0x360] sm:$0xff]  ;;  %v329_v55 = vld [vmem:[%s4095_s15 + $0x368] sm:$0xff] }
  0x32   : > { %274 = vst [vmem:[%s4100_s16 + $0xd8] sm:$0xff] %v273_v27  ;;  %v331_v56 = vld [vmem:[%s4095_s15 + $0x380] sm:$0xff]  ;;  %v333_v57 = vld [vmem:[%s4095_s15 + $0x388] sm:$0xff] }
  0x33   : > { %276 = vst [vmem:[%s4100_s16 + $0xe0] sm:$0xff] %v275_v28  ;;  %v335_v58 = vld [vmem:[%s4095_s15 + $0x3a0] sm:$0xff]  ;;  %v337_v59 = vld [vmem:[%s4095_s15 + $0x3a8] sm:$0xff] }
  0x34   : > { %278 = vst [vmem:[%s4100_s16 + $0xe8] sm:$0xff] %v277_v29  ;;  %v339_v60 = vld [vmem:[%s4095_s15 + $0x3c0] sm:$0xff]  ;;  %v341_v61 = vld [vmem:[%s4095_s15 + $0x3c8] sm:$0xff] }
  0x35   : > { %280 = vst [vmem:[%s4100_s16 + $0xf0] sm:$0xff] %v279_v30  ;;  %v343_v62 = vld [vmem:[%s4095_s15 + $0x3e0] sm:$0xff]  ;;  %v345_v63 = vld [vmem:[%s4095_s15 + $0x3e8] sm:$0xff] }
  0x36   : > { %282 = vst [vmem:[%s4100_s16 + $0xf8] sm:$0xff] %v281_v31  ;;  %v347_v0 = vld [vmem:[%s4095_s15 + $0x400] sm:$0xff]  ;;  %v349_v1 = vld [vmem:[%s4095_s15 + $0x408] sm:$0xff] }
  0x37   : > { %284 = vst [vmem:[%s4100_s16 + $0x100] sm:$0xff] %v283_v32  ;;  %v351_v2 = vld [vmem:[%s4095_s15 + $0x420] sm:$0xff]  ;;  %v353_v3 = vld [vmem:[%s4095_s15 + $0x428] sm:$0xff] }
  0x38   : > { %286 = vst [vmem:[%s4100_s16 + $0x108] sm:$0xff] %v285_v33  ;;  %v355_v4 = vld [vmem:[%s4095_s15 + $0x440] sm:$0xff]  ;;  %v357_v5 = vld [vmem:[%s4095_s15 + $0x448] sm:$0xff] }
  0x39   : > { %288 = vst [vmem:[%s4100_s16 + $0x110] sm:$0xff] %v287_v34  ;;  %v359_v6 = vld [vmem:[%s4095_s15 + $0x460] sm:$0xff]  ;;  %v361_v7 = vld [vmem:[%s4095_s15 + $0x468] sm:$0xff] }
  0x3a   : > { %290 = vst [vmem:[%s4100_s16 + $0x118] sm:$0xff] %v289_v35  ;;  %v363_v8 = vld [vmem:[%s4095_s15 + $0x480] sm:$0xff]  ;;  %v365_v9 = vld [vmem:[%s4095_s15 + $0x488] sm:$0xff] }
  0x3b   : > { %292 = vst [vmem:[%s4100_s16 + $0x120] sm:$0xff] %v291_v36  ;;  %v367_v10 = vld [vmem:[%s4095_s15 + $0x4a0] sm:$0xff]  ;;  %v369_v11 = vld [vmem:[%s4095_s15 + $0x4a8] sm:$0xff] }
  0x3c   : > { %294 = vst [vmem:[%s4100_s16 + $0x128] sm:$0xff] %v293_v37  ;;  %v371_v12 = vld [vmem:[%s4095_s15 + $0x4c0] sm:$0xff]  ;;  %v373_v13 = vld [vmem:[%s4095_s15 + $0x4c8] sm:$0xff] }
  0x3d   : > { %296 = vst [vmem:[%s4100_s16 + $0x130] sm:$0xff] %v295_v38  ;;  %v375_v14 = vld [vmem:[%s4095_s15 + $0x4e0] sm:$0xff]  ;;  %v377_v15 = vld [vmem:[%s4095_s15 + $0x4e8] sm:$0xff] }
  0x3e   : > { %298 = vst [vmem:[%s4100_s16 + $0x138] sm:$0xff] %v297_v39  ;;  %v379_v16 = vld [vmem:[%s4095_s15 + $0x500] sm:$0xff]  ;;  %v381_v17 = vld [vmem:[%s4095_s15 + $0x508] sm:$0xff] }
  0x3f   : > { %300 = vst [vmem:[%s4100_s16 + $0x140] sm:$0xff] %v299_v40  ;;  %v383_v18 = vld [vmem:[%s4095_s15 + $0x520] sm:$0xff]  ;;  %v385_v19 = vld [vmem:[%s4095_s15 + $0x528] sm:$0xff] }
  0x40   : > { %302 = vst [vmem:[%s4100_s16 + $0x148] sm:$0xff] %v301_v41  ;;  %v387_v20 = vld [vmem:[%s4095_s15 + $0x540] sm:$0xff]  ;;  %v389_v21 = vld [vmem:[%s4095_s15 + $0x548] sm:$0xff] }
  0x41   : > { %304 = vst [vmem:[%s4100_s16 + $0x150] sm:$0xff] %v303_v42  ;;  %v391_v22 = vld [vmem:[%s4095_s15 + $0x560] sm:$0xff]  ;;  %v393_v23 = vld [vmem:[%s4095_s15 + $0x568] sm:$0xff] }
  0x42   : > { %306 = vst [vmem:[%s4100_s16 + $0x158] sm:$0xff] %v305_v43  ;;  %v395_v24 = vld [vmem:[%s4095_s15 + $0x580] sm:$0xff]  ;;  %v397_v25 = vld [vmem:[%s4095_s15 + $0x588] sm:$0xff] }
  0x43   : > { %308 = vst [vmem:[%s4100_s16 + $0x160] sm:$0xff] %v307_v44  ;;  %v399_v26 = vld [vmem:[%s4095_s15 + $0x5a0] sm:$0xff]  ;;  %v401_v27 = vld [vmem:[%s4095_s15 + $0x5a8] sm:$0xff] }
  0x44   : > { %310 = vst [vmem:[%s4100_s16 + $0x168] sm:$0xff] %v309_v45  ;;  %v403_v28 = vld [vmem:[%s4095_s15 + $0x5c0] sm:$0xff]  ;;  %v405_v29 = vld [vmem:[%s4095_s15 + $0x5c8] sm:$0xff] }
  0x45   : > { %312 = vst [vmem:[%s4100_s16 + $0x170] sm:$0xff] %v311_v46  ;;  %v407_v30 = vld [vmem:[%s4095_s15 + $0x5e0] sm:$0xff]  ;;  %v409_v31 = vld [vmem:[%s4095_s15 + $0x5e8] sm:$0xff] }
  0x46   : > { %314 = vst [vmem:[%s4100_s16 + $0x178] sm:$0xff] %v313_v47  ;;  %v411_v32 = vld [vmem:[%s4095_s15 + $0x600] sm:$0xff]  ;;  %v413_v33 = vld [vmem:[%s4095_s15 + $0x608] sm:$0xff] }
  0x47   : > { %316 = vst [vmem:[%s4100_s16 + $0x180] sm:$0xff] %v315_v48  ;;  %v415_v34 = vld [vmem:[%s4095_s15 + $0x620] sm:$0xff]  ;;  %v417_v35 = vld [vmem:[%s4095_s15 + $0x628] sm:$0xff] }
  0x48   : > { %318 = vst [vmem:[%s4100_s16 + $0x188] sm:$0xff] %v317_v49  ;;  %v419_v36 = vld [vmem:[%s4095_s15 + $0x640] sm:$0xff]  ;;  %v421_v37 = vld [vmem:[%s4095_s15 + $0x648] sm:$0xff] }
  0x49   : > { %320 = vst [vmem:[%s4100_s16 + $0x190] sm:$0xff] %v319_v50  ;;  %v423_v38 = vld [vmem:[%s4095_s15 + $0x660] sm:$0xff]  ;;  %v425_v39 = vld [vmem:[%s4095_s15 + $0x668] sm:$0xff] }
  0x4a   : > { %322 = vst [vmem:[%s4100_s16 + $0x198] sm:$0xff] %v321_v51  ;;  %v427_v40 = vld [vmem:[%s4095_s15 + $0x680] sm:$0xff]  ;;  %v429_v41 = vld [vmem:[%s4095_s15 + $0x688] sm:$0xff] }
  0x4b   : > { %324 = vst [vmem:[%s4100_s16 + $0x1a0] sm:$0xff] %v323_v52  ;;  %v431_v42 = vld [vmem:[%s4095_s15 + $0x6a0] sm:$0xff]  ;;  %v433_v43 = vld [vmem:[%s4095_s15 + $0x6a8] sm:$0xff] }
  0x4c   : > { %326 = vst [vmem:[%s4100_s16 + $0x1a8] sm:$0xff] %v325_v53  ;;  %v435_v44 = vld [vmem:[%s4095_s15 + $0x6c0] sm:$0xff]  ;;  %v437_v45 = vld [vmem:[%s4095_s15 + $0x6c8] sm:$0xff] }
  0x4d   : > { %328 = vst [vmem:[%s4100_s16 + $0x1b0] sm:$0xff] %v327_v54  ;;  %v439_v46 = vld [vmem:[%s4095_s15 + $0x6e0] sm:$0xff]  ;;  %v441_v47 = vld [vmem:[%s4095_s15 + $0x6e8] sm:$0xff] }
  0x4e   : > { %330 = vst [vmem:[%s4100_s16 + $0x1b8] sm:$0xff] %v329_v55  ;;  %v443_v48 = vld [vmem:[%s4095_s15 + $0x700] sm:$0xff]  ;;  %v445_v49 = vld [vmem:[%s4095_s15 + $0x708] sm:$0xff] }
  0x4f   : > { %332 = vst [vmem:[%s4100_s16 + $0x1c0] sm:$0xff] %v331_v56  ;;  %v447_v50 = vld [vmem:[%s4095_s15 + $0x720] sm:$0xff]  ;;  %v449_v51 = vld [vmem:[%s4095_s15 + $0x728] sm:$0xff] }
  0x50   : > { %334 = vst [vmem:[%s4100_s16 + $0x1c8] sm:$0xff] %v333_v57  ;;  %v451_v52 = vld [vmem:[%s4095_s15 + $0x740] sm:$0xff]  ;;  %v453_v53 = vld [vmem:[%s4095_s15 + $0x748] sm:$0xff] }
  0x51   : > { %336 = vst [vmem:[%s4100_s16 + $0x1d0] sm:$0xff] %v335_v58  ;;  %v455_v54 = vld [vmem:[%s4095_s15 + $0x760] sm:$0xff]  ;;  %v457_v55 = vld [vmem:[%s4095_s15 + $0x768] sm:$0xff] }
  0x52   : > { %338 = vst [vmem:[%s4100_s16 + $0x1d8] sm:$0xff] %v337_v59  ;;  %v459_v56 = vld [vmem:[%s4095_s15 + $0x780] sm:$0xff]  ;;  %v461_v57 = vld [vmem:[%s4095_s15 + $0x788] sm:$0xff] }
  0x53   : > { %340 = vst [vmem:[%s4100_s16 + $0x1e0] sm:$0xff] %v339_v60  ;;  %v463_v58 = vld [vmem:[%s4095_s15 + $0x7a0] sm:$0xff]  ;;  %v465_v59 = vld [vmem:[%s4095_s15 + $0x7a8] sm:$0xff] }
  0x54   : > { %342 = vst [vmem:[%s4100_s16 + $0x1e8] sm:$0xff] %v341_v61  ;;  %v467_v60 = vld [vmem:[%s4095_s15 + $0x7c0] sm:$0xff]  ;;  %v469_v61 = vld [vmem:[%s4095_s15 + $0x7c8] sm:$0xff] }
  0x55   : > { %344 = vst [vmem:[%s4100_s16 + $0x1f0] sm:$0xff] %v343_v62  ;;  %v471_v62 = vld [vmem:[%s4095_s15 + $0x7e0] sm:$0xff] }
  0x56   : > { %346 = vst [vmem:[%s4100_s16 + $0x1f8] sm:$0xff] %v345_v63  ;;  %v473_v63 = vld [vmem:[%s4095_s15 + $0x7e8] sm:$0xff] }
  0x57   : > { %348 = vst [vmem:[%s4100_s16 + $0x200] sm:$0xff] %v347_v0 }
  0x58   : > { %350 = vst [vmem:[%s4100_s16 + $0x208] sm:$0xff] %v349_v1 }
  0x59   : > { %352 = vst [vmem:[%s4100_s16 + $0x210] sm:$0xff] %v351_v2 }
  0x5a   : > { %354 = vst [vmem:[%s4100_s16 + $0x218] sm:$0xff] %v353_v3 }
  0x5b   : > { %356 = vst [vmem:[%s4100_s16 + $0x220] sm:$0xff] %v355_v4 }
  0x5c   : > { %358 = vst [vmem:[%s4100_s16 + $0x228] sm:$0xff] %v357_v5 }
  0x5d   : > { %360 = vst [vmem:[%s4100_s16 + $0x230] sm:$0xff] %v359_v6 }
  0x5e   : > { %362 = vst [vmem:[%s4100_s16 + $0x238] sm:$0xff] %v361_v7 }
  0x5f   : > { %364 = vst [vmem:[%s4100_s16 + $0x240] sm:$0xff] %v363_v8 }
  0x60   : > { %366 = vst [vmem:[%s4100_s16 + $0x248] sm:$0xff] %v365_v9 }
  0x61   : > { %368 = vst [vmem:[%s4100_s16 + $0x250] sm:$0xff] %v367_v10 }
  0x62   : > { %370 = vst [vmem:[%s4100_s16 + $0x258] sm:$0xff] %v369_v11 }
  0x63   : > { %372 = vst [vmem:[%s4100_s16 + $0x260] sm:$0xff] %v371_v12 }
  0x64   : > { %374 = vst [vmem:[%s4100_s16 + $0x268] sm:$0xff] %v373_v13 }
  0x65   : > { %376 = vst [vmem:[%s4100_s16 + $0x270] sm:$0xff] %v375_v14 }
  0x66   : > { %378 = vst [vmem:[%s4100_s16 + $0x278] sm:$0xff] %v377_v15 }
  0x67   : > { %380 = vst [vmem:[%s4100_s16 + $0x280] sm:$0xff] %v379_v16 }
  0x68   : > { %382 = vst [vmem:[%s4100_s16 + $0x288] sm:$0xff] %v381_v17 }
  0x69   : > { %384 = vst [vmem:[%s4100_s16 + $0x290] sm:$0xff] %v383_v18 }
  0x6a   : > { %386 = vst [vmem:[%s4100_s16 + $0x298] sm:$0xff] %v385_v19 }
  0x6b   : > { %388 = vst [vmem:[%s4100_s16 + $0x2a0] sm:$0xff] %v387_v20 }
  0x6c   : > { %390 = vst [vmem:[%s4100_s16 + $0x2a8] sm:$0xff] %v389_v21 }
  0x6d   : > { %392 = vst [vmem:[%s4100_s16 + $0x2b0] sm:$0xff] %v391_v22 }
  0x6e   : > { %394 = vst [vmem:[%s4100_s16 + $0x2b8] sm:$0xff] %v393_v23 }
  0x6f   : > { %396 = vst [vmem:[%s4100_s16 + $0x2c0] sm:$0xff] %v395_v24 }
  0x70   : > { %398 = vst [vmem:[%s4100_s16 + $0x2c8] sm:$0xff] %v397_v25 }
  0x71   : > { %400 = vst [vmem:[%s4100_s16 + $0x2d0] sm:$0xff] %v399_v26 }
  0x72   : > { %402 = vst [vmem:[%s4100_s16 + $0x2d8] sm:$0xff] %v401_v27 }
  0x73   : > { %404 = vst [vmem:[%s4100_s16 + $0x2e0] sm:$0xff] %v403_v28 }
  0x74   : > { %406 = vst [vmem:[%s4100_s16 + $0x2e8] sm:$0xff] %v405_v29 }
  0x75   : > { %408 = vst [vmem:[%s4100_s16 + $0x2f0] sm:$0xff] %v407_v30 }
  0x76   : > { %410 = vst [vmem:[%s4100_s16 + $0x2f8] sm:$0xff] %v409_v31 }
  0x77   : > { %412 = vst [vmem:[%s4100_s16 + $0x300] sm:$0xff] %v411_v32 }
  0x78   : > { %414 = vst [vmem:[%s4100_s16 + $0x308] sm:$0xff] %v413_v33 }
  0x79   : > { %416 = vst [vmem:[%s4100_s16 + $0x310] sm:$0xff] %v415_v34 }
  0x7a   : > { %418 = vst [vmem:[%s4100_s16 + $0x318] sm:$0xff] %v417_v35 }
  0x7b   : > { %420 = vst [vmem:[%s4100_s16 + $0x320] sm:$0xff] %v419_v36 }
  0x7c   : > { %422 = vst [vmem:[%s4100_s16 + $0x328] sm:$0xff] %v421_v37 }
  0x7d   : > { %424 = vst [vmem:[%s4100_s16 + $0x330] sm:$0xff] %v423_v38 }
  0x7e   : > { %426 = vst [vmem:[%s4100_s16 + $0x338] sm:$0xff] %v425_v39 }
  0x7f   : > { %428 = vst [vmem:[%s4100_s16 + $0x340] sm:$0xff] %v427_v40 }
  0x80   : > { %430 = vst [vmem:[%s4100_s16 + $0x348] sm:$0xff] %v429_v41 }
  0x81   : > { %432 = vst [vmem:[%s4100_s16 + $0x350] sm:$0xff] %v431_v42 }
  0x82   : > { %434 = vst [vmem:[%s4100_s16 + $0x358] sm:$0xff] %v433_v43 }
  0x83   : > { %436 = vst [vmem:[%s4100_s16 + $0x360] sm:$0xff] %v435_v44 }
  0x84   : > { %438 = vst [vmem:[%s4100_s16 + $0x368] sm:$0xff] %v437_v45 }
  0x85   : > { %440 = vst [vmem:[%s4100_s16 + $0x370] sm:$0xff] %v439_v46 }
  0x86   : > { %442 = vst [vmem:[%s4100_s16 + $0x378] sm:$0xff] %v441_v47 }
  0x87   : > { %444 = vst [vmem:[%s4100_s16 + $0x380] sm:$0xff] %v443_v48 }
  0x88   : > { %446 = vst [vmem:[%s4100_s16 + $0x388] sm:$0xff] %v445_v49 }
  0x89   : > { %448 = vst [vmem:[%s4100_s16 + $0x390] sm:$0xff] %v447_v50 }
  0x8a   : > { %450 = vst [vmem:[%s4100_s16 + $0x398] sm:$0xff] %v449_v51 }
  0x8b   : > { %452 = vst [vmem:[%s4100_s16 + $0x3a0] sm:$0xff] %v451_v52 }
  0x8c   : > { %454 = vst [vmem:[%s4100_s16 + $0x3a8] sm:$0xff] %v453_v53 }
  0x8d   : > { %456 = vst [vmem:[%s4100_s16 + $0x3b0] sm:$0xff] %v455_v54 }
  0x8e   : > { %458 = vst [vmem:[%s4100_s16 + $0x3b8] sm:$0xff] %v457_v55 }
  0x8f   : > { %460 = vst [vmem:[%s4100_s16 + $0x3c0] sm:$0xff] %v459_v56 }
  0x90   : > { %462 = vst [vmem:[%s4100_s16 + $0x3c8] sm:$0xff] %v461_v57 }
  0x91   : > { %464 = vst [vmem:[%s4100_s16 + $0x3d0] sm:$0xff] %v463_v58 }
  0x92   : > { %466 = vst [vmem:[%s4100_s16 + $0x3d8] sm:$0xff] %v465_v59 }
  0x93   : > { %468 = vst [vmem:[%s4100_s16 + $0x3e0] sm:$0xff] %v467_v60 }
  0x94   : > { %470 = vst [vmem:[%s4100_s16 + $0x3e8] sm:$0xff] %v469_v61 }
  0x95   : > { %472 = vst [vmem:[%s4100_s16 + $0x3f0] sm:$0xff] %v471_v62 }
  0x96   : > { %474 = vst [vmem:[%s4100_s16 + $0x3f8] sm:$0xff] %v473_v63 }
  0x97 PF: > { %p3031_p7 = scmp.ge.s32.totalorder %s4003_s24, 1  ;;  %p488_p8 = scmp.lt.s32.totalorder %s4003_s24, 5 }
  0x99   : > { %p489_p9 = pnand %p3031_p7, %p488_p8 }
  0x9a   : > { %s495_s17 = sand.u32 (!%p489_p9), 1, %s3979_s18   ;;  %s3033_s27 = sshll.u32 (!%p489_p9), %s3991_s21, 6 }
  0x9b   : > { %492 = sbr.rel (%p489_p9) target bundleno = 1199 (0x4af), region = 59  ;;  %s3032_s28 = sshll.u32 (!%p489_p9), %s495_s17, 10 }
  0x9c   : > { %p530_p10 = scmp.lt.s32.totalorder (!%p489_p9), %s3033_s27, 127  ;;  %s4369_s12 = scalar_lea.vmem (!%p489_p9), [#allocation3], %s3032_s28 }
  0x9d   : > { %p3037_p11 = scmp.ne.s32.totalorder (!%p489_p9), %s3987_s20, 0 }
  0xa0   : > { %s4952_s27 = smov (!%p530_p10, %s3033_s27), 127  ;;  %544 = sbr.rel (%p3037_p11) target bundleno = 230 (0xe6), region = 67 }
  0xa1   : > { %s3034_s29 = sshll.u32 %s4952_s27, 3 }
  0xa2   : > { %s4362_s8 = scalar_lea.vmem %s4935_s2, %s3034_s29  ;;  %s4367_s11 = scalar_lea.vmem %s4938_s5, %s3034_s29 }
  0xa5   : > { %v545_v0 = vld [vmem:[%s4362_s8] sm:$0xff]  ;;  %v546_v1 = vld [vmem:[%s4362_s8 + $0x8] sm:$0xff]  ;;  %v547_v2 = vld [vmem:[%s4362_s8 + $0x10] sm:$0xff] }
  0xa6   : > { %609 = vst [vmem:[#allocation2 + $0xb0] sm:$0xff] %v545_v0  ;;  %v548_v3 = vld [vmem:[%s4362_s8 + $0x18] sm:$0xff]  ;;  %v549_v4 = vld [vmem:[%s4362_s8 + $0x20] sm:$0xff]  ;;  %v550_v5 = vld [vmem:[%s4362_s8 + $0x28] sm:$0xff] }
  0xa7   : > { %610 = vst [vmem:[#allocation2 + $0x1b0] sm:$0xff] %v546_v1  ;;  %v551_v6 = vld [vmem:[%s4362_s8 + $0x30] sm:$0xff]  ;;  %v552_v7 = vld [vmem:[%s4362_s8 + $0x38] sm:$0xff]  ;;  %v553_v8 = vld [vmem:[%s4362_s8 + $0x40] sm:$0xff] }
  0xa8   : > { %611 = vst [vmem:[#allocation2 + $0xd8] sm:$0xff] %v547_v2  ;;  %v554_v9 = vld [vmem:[%s4362_s8 + $0x48] sm:$0xff]  ;;  %v555_v10 = vld [vmem:[%s4362_s8 + $0x50] sm:$0xff]  ;;  %v556_v11 = vld [vmem:[%s4362_s8 + $0x58] sm:$0xff] }
  0xa9   : > { %612 = vst [vmem:[#allocation2 + $0x18] sm:$0xff] %v548_v3  ;;  %v557_v12 = vld [vmem:[%s4362_s8 + $0x60] sm:$0xff]  ;;  %v558_v13 = vld [vmem:[%s4362_s8 + $0x68] sm:$0xff]  ;;  %v559_v14 = vld [vmem:[%s4362_s8 + $0x70] sm:$0xff] }
  0xaa   : > { %613 = vst [vmem:[#allocation2 + $0x50] sm:$0xff] %v549_v4  ;;  %v560_v15 = vld [vmem:[%s4362_s8 + $0x78] sm:$0xff]  ;;  %v561_v16 = vld [vmem:[%s4362_s8 + $0x80] sm:$0xff]  ;;  %v562_v17 = vld [vmem:[%s4362_s8 + $0x88] sm:$0xff] }
  0xab   : > { %614 = vst [vmem:[#allocation2 + $0x168] sm:$0xff] %v550_v5  ;;  %v563_v18 = vld [vmem:[%s4362_s8 + $0x90] sm:$0xff]  ;;  %v564_v19 = vld [vmem:[%s4362_s8 + $0x98] sm:$0xff]  ;;  %v565_v20 = vld [vmem:[%s4362_s8 + $0xa0] sm:$0xff] }
  0xac   : > { %615 = vst [vmem:[#allocation2 + $0x130] sm:$0xff] %v551_v6  ;;  %v566_v21 = vld [vmem:[%s4362_s8 + $0xa8] sm:$0xff]  ;;  %v567_v22 = vld [vmem:[%s4362_s8 + $0xb0] sm:$0xff]  ;;  %v568_v23 = vld [vmem:[%s4362_s8 + $0xb8] sm:$0xff] }
  0xad   : > { %616 = vst [vmem:[#allocation2 + $0x48] sm:$0xff] %v552_v7  ;;  %v569_v24 = vld [vmem:[%s4362_s8 + $0xc0] sm:$0xff]  ;;  %v570_v25 = vld [vmem:[%s4362_s8 + $0xc8] sm:$0xff]  ;;  %v571_v26 = vld [vmem:[%s4362_s8 + $0xd0] sm:$0xff] }
  0xae   : > { %617 = vst [vmem:[#allocation2 + $0x180] sm:$0xff] %v553_v8  ;;  %v572_v27 = vld [vmem:[%s4362_s8 + $0xd8] sm:$0xff]  ;;  %v573_v28 = vld [vmem:[%s4362_s8 + $0xe0] sm:$0xff]  ;;  %v574_v29 = vld [vmem:[%s4362_s8 + $0xe8] sm:$0xff] }
  0xaf   : > { %618 = vst [vmem:[#allocation2 + $0x110] sm:$0xff] %v554_v9  ;;  %v575_v30 = vld [vmem:[%s4362_s8 + $0xf0] sm:$0xff]  ;;  %v576_v31 = vld [vmem:[%s4362_s8 + $0xf8] sm:$0xff]  ;;  %v577_v32 = vld [vmem:[%s4362_s8 + $0x100] sm:$0xff] }
  0xb0   : > { %619 = vst [vmem:[#allocation2 + $0x118] sm:$0xff] %v555_v10  ;;  %v578_v33 = vld [vmem:[%s4362_s8 + $0x108] sm:$0xff]  ;;  %v579_v34 = vld [vmem:[%s4362_s8 + $0x110] sm:$0xff]  ;;  %v580_v35 = vld [vmem:[%s4362_s8 + $0x118] sm:$0xff] }
  0xb1   : > { %620 = vst [vmem:[#allocation2 + $0x98] sm:$0xff] %v556_v11  ;;  %v581_v36 = vld [vmem:[%s4362_s8 + $0x120] sm:$0xff]  ;;  %v582_v37 = vld [vmem:[%s4362_s8 + $0x128] sm:$0xff]  ;;  %v583_v38 = vld [vmem:[%s4362_s8 + $0x130] sm:$0xff] }
  0xb2   : > { %621 = vst [vmem:[#allocation2 + $0x120] sm:$0xff] %v557_v12  ;;  %v584_v39 = vld [vmem:[%s4362_s8 + $0x138] sm:$0xff]  ;;  %v585_v40 = vld [vmem:[%s4362_s8 + $0x140] sm:$0xff]  ;;  %v586_v41 = vld [vmem:[%s4362_s8 + $0x148] sm:$0xff] }
  0xb3   : > { %622 = vst [vmem:[#allocation2 + $0x150] sm:$0xff] %v558_v13  ;;  %v587_v42 = vld [vmem:[%s4362_s8 + $0x150] sm:$0xff]  ;;  %v588_v43 = vld [vmem:[%s4362_s8 + $0x158] sm:$0xff]  ;;  %v589_v44 = vld [vmem:[%s4362_s8 + $0x160] sm:$0xff] }
  0xb4   : > { %623 = vst [vmem:[#allocation2 + $0x108] sm:$0xff] %v559_v14  ;;  %v590_v45 = vld [vmem:[%s4362_s8 + $0x168] sm:$0xff]  ;;  %v591_v46 = vld [vmem:[%s4362_s8 + $0x170] sm:$0xff]  ;;  %v592_v47 = vld [vmem:[%s4362_s8 + $0x178] sm:$0xff] }
  0xb5   : > { %624 = vst [vmem:[#allocation2 + $0x60] sm:$0xff] %v560_v15  ;;  %v593_v48 = vld [vmem:[%s4362_s8 + $0x180] sm:$0xff]  ;;  %v594_v49 = vld [vmem:[%s4362_s8 + $0x188] sm:$0xff]  ;;  %v595_v50 = vld [vmem:[%s4362_s8 + $0x190] sm:$0xff] }
  0xb6   : > { %625 = vst [vmem:[#allocation2 + $0xe0] sm:$0xff] %v561_v16  ;;  %v596_v51 = vld [vmem:[%s4362_s8 + $0x198] sm:$0xff]  ;;  %v597_v52 = vld [vmem:[%s4362_s8 + $0x1a0] sm:$0xff]  ;;  %v598_v53 = vld [vmem:[%s4362_s8 + $0x1a8] sm:$0xff] }
  0xb7   : > { %626 = vst [vmem:[#allocation2 + $0x188] sm:$0xff] %v562_v17  ;;  %v599_v54 = vld [vmem:[%s4362_s8 + $0x1b0] sm:$0xff]  ;;  %v600_v55 = vld [vmem:[%s4362_s8 + $0x1b8] sm:$0xff]  ;;  %v601_v56 = vld [vmem:[%s4362_s8 + $0x1c0] sm:$0xff] }
  0xb8   : > { %627 = vst [vmem:[#allocation2 + $0x138] sm:$0xff] %v563_v18  ;;  %v602_v57 = vld [vmem:[%s4362_s8 + $0x1c8] sm:$0xff]  ;;  %v603_v58 = vld [vmem:[%s4362_s8 + $0x1d0] sm:$0xff]  ;;  %v604_v59 = vld [vmem:[%s4362_s8 + $0x1d8] sm:$0xff] }
  0xb9   : > { %628 = vst [vmem:[#allocation2 + $0x140] sm:$0xff] %v564_v19  ;;  %v605_v60 = vld [vmem:[%s4362_s8 + $0x1e0] sm:$0xff]  ;;  %v606_v61 = vld [vmem:[%s4362_s8 + $0x1e8] sm:$0xff]  ;;  %v607_v62 = vld [vmem:[%s4362_s8 + $0x1f0] sm:$0xff] }
  0xba   : > { %629 = vst [vmem:[#allocation2 + $0x80] sm:$0xff] %v565_v20  ;;  %v608_v63 = vld [vmem:[%s4362_s8 + $0x1f8] sm:$0xff] }
  0xbb   : > { %630 = vst [vmem:[#allocation2 + $0x1a8] sm:$0xff] %v566_v21 }
  0xbc   : > { %631 = vst [vmem:[#allocation2 + $0x1b8] sm:$0xff] %v567_v22 }
  0xbd   : > { %632 = vst [vmem:[#allocation2 + $0x28] sm:$0xff] %v568_v23 }
  0xbe   : > { %633 = vst [vmem:[#allocation2 + $0x1e8] sm:$0xff] %v569_v24 }
  0xbf   : > { %634 = vst [vmem:[#allocation2 + $0xf8] sm:$0xff] %v570_v25 }
  0xc0   : > { %635 = vst [vmem:[#allocation2 + $0x160] sm:$0xff] %v571_v26 }
  0xc1   : > { %636 = vst [vmem:[#allocation2 + $0x30] sm:$0xff] %v572_v27 }
  0xc2   : > { %637 = vst [vmem:[#allocation2 + $0x1e0] sm:$0xff] %v573_v28 }
  0xc3   : > { %638 = vst [vmem:[#allocation2] sm:$0xff] %v574_v29 }
  0xc4   : > { %639 = vst [vmem:[#allocation2 + $0xf0] sm:$0xff] %v575_v30 }
  0xc5   : > { %640 = vst [vmem:[#allocation2 + $0x8] sm:$0xff] %v576_v31 }
  0xc6   : > { %641 = vst [vmem:[#allocation2 + $0x148] sm:$0xff] %v577_v32 }
  0xc7   : > { %642 = vst [vmem:[#allocation2 + $0x1d0] sm:$0xff] %v578_v33 }
  0xc8   : > { %643 = vst [vmem:[#allocation2 + $0x100] sm:$0xff] %v579_v34 }
  0xc9   : > { %644 = vst [vmem:[#allocation2 + $0xc8] sm:$0xff] %v580_v35 }
  0xca   : > { %645 = vst [vmem:[#allocation2 + $0x40] sm:$0xff] %v581_v36 }
  0xcb   : > { %646 = vst [vmem:[#allocation2 + $0x1f8] sm:$0xff] %v582_v37 }
  0xcc   : > { %647 = vst [vmem:[#allocation2 + $0x20] sm:$0xff] %v583_v38 }
  0xcd   : > { %648 = vst [vmem:[#allocation2 + $0x128] sm:$0xff] %v584_v39 }
  0xce   : > { %649 = vst [vmem:[#allocation2 + $0x1a0] sm:$0xff] %v585_v40 }
  0xcf   : > { %650 = vst [vmem:[#allocation2 + $0x1f0] sm:$0xff] %v586_v41 }
  0xd0   : > { %651 = vst [vmem:[#allocation2 + $0xe8] sm:$0xff] %v587_v42 }
  0xd1   : > { %652 = vst [vmem:[#allocation2 + $0x78] sm:$0xff] %v588_v43 }
  0xd2   : > { %653 = vst [vmem:[#allocation2 + $0x70] sm:$0xff] %v589_v44 }
  0xd3   : > { %654 = vst [vmem:[#allocation2 + $0x90] sm:$0xff] %v590_v45 }
  0xd4   : > { %655 = vst [vmem:[#allocation2 + $0x1d8] sm:$0xff] %v591_v46 }
  0xd5   : > { %656 = vst [vmem:[#allocation2 + $0xd0] sm:$0xff] %v592_v47 }
  0xd6   : > { %657 = vst [vmem:[#allocation2 + $0xb8] sm:$0xff] %v593_v48 }
  0xd7   : > { %658 = vst [vmem:[#allocation2 + $0x88] sm:$0xff] %v594_v49 }
  0xd8   : > { %659 = vst [vmem:[#allocation2 + $0xa8] sm:$0xff] %v595_v50 }
  0xd9   : > { %660 = vst [vmem:[#allocation2 + $0x1c8] sm:$0xff] %v596_v51 }
  0xda   : > { %661 = vst [vmem:[#allocation2 + $0x170] sm:$0xff] %v597_v52 }
  0xdb   : > { %662 = vst [vmem:[#allocation2 + $0x178] sm:$0xff] %v598_v53 }
  0xdc   : > { %663 = vst [vmem:[#allocation2 + $0x68] sm:$0xff] %v599_v54 }
  0xdd   : > { %664 = vst [vmem:[#allocation2 + $0x190] sm:$0xff] %v600_v55 }
  0xde   : > { %665 = vst [vmem:[#allocation2 + $0x198] sm:$0xff] %v601_v56 }
  0xdf   : > { %666 = vst [vmem:[#allocation2 + $0x38] sm:$0xff] %v602_v57 }
  0xe0   : > { %667 = vst [vmem:[#allocation2 + $0xc0] sm:$0xff] %v603_v58 }
  0xe1   : > { %668 = vst [vmem:[#allocation2 + $0x1c0] sm:$0xff] %v604_v59 }
  0xe2   : > { %669 = vst [vmem:[#allocation2 + $0x158] sm:$0xff] %v605_v60 }
  0xe3   : > { %670 = vst [vmem:[#allocation2 + $0x10] sm:$0xff] %v606_v61 }
  0xe4   : > { %671 = vst [vmem:[#allocation2 + $0x58] sm:$0xff] %v607_v62 }
  0xe5   : > { %672 = vst [vmem:[#allocation2 + $0xa0] sm:$0xff] %v608_v63 }
  0xe6 PF: > { %s3038_s18 = sshll.u32 %s3987_s20, 9  ;;  %v3042_v28 = vld [vmem:[%s4369_s12] sm:$0xf]  ;;  %v3686_v29 = vld [vmem:[%s4369_s12 + $0xc] sm:$0xf0]  ;;  %p3680_p12 = scmp.ne.s32.totalorder %s3987_s20, 1 }
  0xe7   : > { %s866_s21 = sshra.s32 %s3038_s18, 3  ;;  %v3684_v30 = vld [vmem:[%s4369_s12 + $0x4] sm:$0xf]  ;;  %v3044_v35 = vld [vmem:[%s4369_s12 + $0x10] sm:$0xf0]  ;;  %v3043_v40 = vor.u32 %v3686_v29, %v3042_v28 }
  0xe8   : > { %s3039_s13 = sshll.u32 %s866_s21, 2  ;;  %v3050_v36 = vld [vmem:[%s4369_s12 + $0x8] sm:$0xf]  ;;  %v3687_v37 = vld [vmem:[%s4369_s12 + $0x14] sm:$0xf0]  ;;  %v3047_v41 = vor.u32 %v3684_v30, %v3044_v35 }
  0xe9   : > { %s4440_s16 = scalar_lea.vmem %s4934_s1, %s3039_s13  ;;  %v3685_v38 = vld [vmem:[%s4369_s12 + $0xc] sm:$0xf]  ;;  %v3052_v39 = vld [vmem:[%s4369_s12 + $0x18] sm:$0xf0]  ;;  %v3051_v42 = vor.u32 %v3687_v37, %v3050_v36  ;;  %v3058_v44 = vld [vmem:[%s4369_s12 + $0x20] sm:$0xf] }
  0xea   : > { %v3819_v0 = vld [vmem:[%s4440_s16 + $0x38] sm:$0xff]  ;;  %v3818_v4 = vld [vmem:[%s4440_s16 + $0x30] sm:$0xff]  ;;  %v3817_v8 = vld [vmem:[%s4440_s16 + $0x28] sm:$0xff]  ;;  %v3055_v43 = vor.u32 %v3685_v38, %v3052_v39 }
  0xeb   : > { %v3827_v1 = vld [vmem:[%s4440_s16 + $0x78] sm:$0xff]  ;;  %1766 = vmatpush.bf16.msra.mxu0 %v3819_v0  ;;  %v3826_v5 = vld [vmem:[%s4440_s16 + $0x70] sm:$0xff]  ;;  %v3825_v9 = vld [vmem:[%s4440_s16 + $0x68] sm:$0xff] }
  0xec   : > { %v3835_v2 = vld [vmem:[%s4440_s16 + $0xb8] sm:$0xff]  ;;  %1935 = vmatpush.bf16.msra.mxu1 %v3827_v1  ;;  %v3834_v6 = vld [vmem:[%s4440_s16 + $0xb0] sm:$0xff]  ;;  %v3833_v10 = vld [vmem:[%s4440_s16 + $0xa8] sm:$0xff] }
  0xed   : > { %v3843_v3 = vld [vmem:[%s4440_s16 + $0xf8] sm:$0xff]  ;;  %2104 = vmatpush.bf16.msra.mxu2 %v3835_v2  ;;  %v3842_v7 = vld [vmem:[%s4440_s16 + $0xf0] sm:$0xff]  ;;  %v3841_v11 = vld [vmem:[%s4440_s16 + $0xe8] sm:$0xff] }
  0xee   : > { %2273 = vmatpush.bf16.msra.mxu3 %v3843_v3  ;;  %v3816_v12 = vld [vmem:[%s4440_s16 + $0x20] sm:$0xff]  ;;  %v3815_v16 = vld [vmem:[%s4440_s16 + $0x18] sm:$0xff]  ;;  %v3814_v20 = vld [vmem:[%s4440_s16 + $0x10] sm:$0xff] }
  0xef   : > { %1767 = vmatpush.bf16.msra.mxu0 %v3818_v4  ;;  %v3824_v13 = vld [vmem:[%s4440_s16 + $0x60] sm:$0xff]  ;;  %v3823_v17 = vld [vmem:[%s4440_s16 + $0x58] sm:$0xff]  ;;  %v3822_v21 = vld [vmem:[%s4440_s16 + $0x50] sm:$0xff] }
  0xf0   : > { %1936 = vmatpush.bf16.msra.mxu1 %v3826_v5  ;;  %v3832_v14 = vld [vmem:[%s4440_s16 + $0xa0] sm:$0xff]  ;;  %v3831_v18 = vld [vmem:[%s4440_s16 + $0x98] sm:$0xff]  ;;  %v3830_v22 = vld [vmem:[%s4440_s16 + $0x90] sm:$0xff] }
  0xf1   : > { %2105 = vmatpush.bf16.msra.mxu2 %v3834_v6  ;;  %v3840_v15 = vld [vmem:[%s4440_s16 + $0xe0] sm:$0xff]  ;;  %v3839_v19 = vld [vmem:[%s4440_s16 + $0xd8] sm:$0xff]  ;;  %v3838_v23 = vld [vmem:[%s4440_s16 + $0xd0] sm:$0xff] }
  0xf2   : > { %2274 = vmatpush.bf16.msra.mxu3 %v3842_v7  ;;  %v3813_v24 = vld [vmem:[%s4440_s16 + $0x8] sm:$0xff]  ;;  %v3812_v31 = vld [vmem:[%s4440_s16] sm:$0xff]  ;;  %v3690_v45 = vld [vmem:[%s4369_s12 + $0x2c] sm:$0xf0] }
  0xf3   : > { %1768 = vmatpush.bf16.msra.mxu0 %v3817_v8  ;;  %v3821_v25 = vld [vmem:[%s4440_s16 + $0x48] sm:$0xff]  ;;  %v3820_v32 = vld [vmem:[%s4440_s16 + $0x40] sm:$0xff]  ;;  %v3060_v47 = vld [vmem:[%s4369_s12 + $0x30] sm:$0xf0]  ;;  %v3059_v52 = vor.u32 %v3690_v45, %v3058_v44 }
  0xf4   : > { %1937 = vmatpush.bf16.msra.mxu1 %v3825_v9  ;;  %v3829_v26 = vld [vmem:[%s4440_s16 + $0x88] sm:$0xff]  ;;  %v3828_v33 = vld [vmem:[%s4440_s16 + $0x80] sm:$0xff]  ;;  %v3691_v49 = vld [vmem:[%s4369_s12 + $0x34] sm:$0xf0] }
  0xf5   : > { %2106 = vmatpush.bf16.msra.mxu2 %v3833_v10  ;;  %v3837_v27 = vld [vmem:[%s4440_s16 + $0xc8] sm:$0xff]  ;;  %v3836_v34 = vld [vmem:[%s4440_s16 + $0xc0] sm:$0xff]  ;;  %v3068_v51 = vld [vmem:[%s4369_s12 + $0x38] sm:$0xf0] }
  0xf6   : > { %2275 = vmatpush.bf16.msra.mxu3 %v3841_v11  ;;  %v3688_v46 = vld [vmem:[%s4369_s12 + $0x24] sm:$0xf]  ;;  %v3066_v48 = vld [vmem:[%s4369_s12 + $0x28] sm:$0xf]  ;;  %v3689_v50 = vld [vmem:[%s4369_s12 + $0x2c] sm:$0xf] }
  0xf7   : > { %1769 = vmatpush.bf16.msra.mxu0 %v3816_v12  ;;  %v3063_v53 = vor.u32 %v3688_v46, %v3060_v47  ;;  %v3067_v54 = vor.u32 %v3691_v49, %v3066_v48  ;;  %v3071_v55 = vor.u32 %v3689_v50, %v3068_v51  ;;  %v3074_v56 = vld [vmem:[%s4369_s12 + $0x40] sm:$0xf]  ;;  %v3694_v57 = vld [vmem:[%s4369_s12 + $0x4c] sm:$0xf0]  ;;  %v3692_v58 = vld [vmem:[%s4369_s12 + $0x44] sm:$0xf] }
  0xf8   : > { %1938 = vmatpush.bf16.msra.mxu1 %v3824_v13  ;;  %v3076_v59 = vld [vmem:[%s4369_s12 + $0x50] sm:$0xf0]  ;;  %v3082_v60 = vld [vmem:[%s4369_s12 + $0x48] sm:$0xf]  ;;  %v3695_v61 = vld [vmem:[%s4369_s12 + $0x54] sm:$0xf0]  ;;  %v3075_v0 = vor.u32 %v3694_v57, %v3074_v56 }
  0xf9   : > { %2107 = vmatpush.bf16.msra.mxu2 %v3832_v14  ;;  %v3693_v62 = vld [vmem:[%s4369_s12 + $0x4c] sm:$0xf]  ;;  %v3084_v63 = vld [vmem:[%s4369_s12 + $0x58] sm:$0xf0]  ;;  %v3079_v1 = vor.u32 %v3692_v58, %v3076_v59  ;;  %v3083_v2 = vor.u32 %v3695_v61, %v3082_v60  ;;  %v3090_v4 = vld [vmem:[%s4369_s12 + $0x60] sm:$0xf] }
  0xfa   : > { %2276 = vmatpush.bf16.msra.mxu3 %v3840_v15  ;;  %v3087_v3 = vor.u32 %v3693_v62, %v3084_v63  ;;  %v3698_v5 = vld [vmem:[%s4369_s12 + $0x6c] sm:$0xf0]  ;;  %v3696_v6 = vld [vmem:[%s4369_s12 + $0x64] sm:$0xf]  ;;  %v3092_v7 = vld [vmem:[%s4369_s12 + $0x70] sm:$0xf0] }
  0xfb   : > { %1770 = vmatpush.bf16.msra.mxu0 %v3815_v16  ;;  %v3098_v8 = vld [vmem:[%s4369_s12 + $0x68] sm:$0xf]  ;;  %v3699_v9 = vld [vmem:[%s4369_s12 + $0x74] sm:$0xf0]  ;;  %v3697_v10 = vld [vmem:[%s4369_s12 + $0x6c] sm:$0xf]  ;;  %v3091_v12 = vor.u32 %v3698_v5, %v3090_v4  ;;  %v3095_v13 = vor.u32 %v3696_v6, %v3092_v7 }
  0xfc   : > { %1939 = vmatpush.bf16.msra.mxu1 %v3823_v17  ;;  %v3100_v11 = vld [vmem:[%s4369_s12 + $0x78] sm:$0xf0]  ;;  %v3099_v14 = vor.u32 %v3699_v9, %v3098_v8  ;;  %v3106_v16 = vld [vmem:[%s4369_s12 + $0x80] sm:$0xf]  ;;  %v3702_v17 = vld [vmem:[%s4369_s12 + $0x8c] sm:$0xf0] }
  0xfd   : > { %2108 = vmatpush.bf16.msra.mxu2 %v3831_v18  ;;  %v3103_v15 = vor.u32 %v3697_v10, %v3100_v11  ;;  %v3700_v18 = vld [vmem:[%s4369_s12 + $0x84] sm:$0xf]  ;;  %v3122_v28 = vld [vmem:[%s4369_s12 + $0xa0] sm:$0xf]  ;;  %v3706_v29 = vld [vmem:[%s4369_s12 + $0xac] sm:$0xf0] }
  0xfe   : > { %2277 = vmatpush.bf16.msra.mxu3 %v3839_v19  ;;  %v3108_v19 = vld [vmem:[%s4369_s12 + $0x90] sm:$0xf0]  ;;  %v3704_v30 = vld [vmem:[%s4369_s12 + $0xa4] sm:$0xf]  ;;  %v3132_v35 = vld [vmem:[%s4369_s12 + $0xb8] sm:$0xf0]  ;;  %v3123_v36 = vor.u32 %v3706_v29, %v3122_v28 }
  0xff   : > { %1771 = vmatpush.bf16.msra.mxu0 %v3814_v20  ;;  %v3114_v20 = vld [vmem:[%s4369_s12 + $0x88] sm:$0xf]  ;;  %v3711_v45 = vld [vmem:[%s4369_s12 + $0xd4] sm:$0xf0]  ;;  %v3709_v46 = vld [vmem:[%s4369_s12 + $0xcc] sm:$0xf] }
 0x100   : > { %1940 = vmatpush.bf16.msra.mxu1 %v3822_v21  ;;  %v3703_v21 = vld [vmem:[%s4369_s12 + $0x94] sm:$0xf0]  ;;  %v3146_v44 = vld [vmem:[%s4369_s12 + $0xc8] sm:$0xf]  ;;  %v3148_v47 = vld [vmem:[%s4369_s12 + $0xd8] sm:$0xf0] }
 0x101   : > { %2109 = vmatpush.bf16.msra.mxu2 %v3830_v22  ;;  %v3701_v22 = vld [vmem:[%s4369_s12 + $0x8c] sm:$0xf]  ;;  %v3147_v50 = vor.u32 %v3711_v45, %v3146_v44  ;;  %v3151_v51 = vor.u32 %v3709_v46, %v3148_v47  ;;  %v3162_v56 = vld [vmem:[%s4369_s12 + $0xe8] sm:$0xf]  ;;  %v3715_v57 = vld [vmem:[%s4369_s12 + $0xf4] sm:$0xf0] }
 0x102   : > { %2278 = vmatpush.bf16.msra.mxu3 %v3838_v23  ;;  %v3116_v23 = vld [vmem:[%s4369_s12 + $0x98] sm:$0xf0]  ;;  %v3713_v58 = vld [vmem:[%s4369_s12 + $0xec] sm:$0xf]  ;;  %v3163_v62 = vor.u32 %v3715_v57, %v3162_v56  ;;  %v3178_v4 = vld [vmem:[%s4369_s12 + $0x108] sm:$0xf] }
 0x103   : > { %1772 = vmatpush.bf16.msra.mxu0 %v3813_v24  ;;  %v3107_v24 = vor.u32 %v3702_v17, %v3106_v16  ;;  %v3164_v59 = vld [vmem:[%s4369_s12 + $0xf8] sm:$0xf0]  ;;  %v3719_v5 = vld [vmem:[%s4369_s12 + $0x114] sm:$0xf0]  ;;  %v3717_v6 = vld [vmem:[%s4369_s12 + $0x10c] sm:$0xf] }
 0x104   : > { %1941 = vmatpush.bf16.msra.mxu1 %v3821_v25  ;;  %v3111_v25 = vor.u32 %v3700_v18, %v3108_v19  ;;  %v3167_v63 = vor.u32 %v3713_v58, %v3164_v59  ;;  %v3180_v7 = vld [vmem:[%s4369_s12 + $0x118] sm:$0xf0]  ;;  %v3723_v28 = vld [vmem:[%s4369_s12 + $0x134] sm:$0xf0]  ;;  %v3721_v29 = vld [vmem:[%s4369_s12 + $0x12c] sm:$0xf] }
 0x105   : > { %2110 = vmatpush.bf16.msra.mxu2 %v3829_v26  ;;  %v3115_v26 = vor.u32 %v3703_v21, %v3114_v20  ;;  %v673_v20 = vld [vmem:[#allocation2 + $0xb0] sm:$0xff]  ;;  %v3210_v57 = vld [vmem:[%s4369_s12 + $0x148] sm:$0xf]  ;;  %v3727_v58 = vld [vmem:[%s4369_s12 + $0x154] sm:$0xf0] }
 0x106   : > { %2279 = vmatpush.bf16.msra.mxu3 %v3837_v27  ;;  %v3119_v27 = vor.u32 %v3701_v22, %v3116_v23  ;;  %v3186_v22 = vld [vmem:[%s4369_s12 + $0x120] sm:$0xf]  ;;  %v3722_v23 = vld [vmem:[%s4369_s12 + $0x12c] sm:$0xf0]  ;;  %v3204_v56 = vld [vmem:[%s4369_s12 + $0x150] sm:$0xf0] }
 0x107   : > { %1773 = vmatpush.bf16.msra.mxu0 %v3812_v31  ;;  %v3124_v31 = vld [vmem:[%s4369_s12 + $0xb0] sm:$0xf0]  ;;  %v3725_v59 = vld [vmem:[%s4369_s12 + $0x14c] sm:$0xf] }
 0x108   : > { %1942 = vmatpush.bf16.msra.mxu1 %v3820_v32  ;;  %v3130_v32 = vld [vmem:[%s4369_s12 + $0xa8] sm:$0xf]  ;;  %v3127_v37 = vor.u32 %v3704_v30, %v3124_v31  ;;  %v3196_v30 = vld [vmem:[%s4369_s12 + $0x138] sm:$0xf0] }
 0x109   : > { %2111 = vmatpush.bf16.msra.mxu2 %v3828_v33  ;;  %v3707_v33 = vld [vmem:[%s4369_s12 + $0xb4] sm:$0xf0] }
 0x10a   : > { %2280 = vmatpush.bf16.msra.mxu3 %v3836_v34  ;;  %1774 = vmatmul.bf16.vlgmr.msra.gmra.mxu0 %v3043_v40  ;;  %v3705_v34 = vld [vmem:[%s4369_s12 + $0xac] sm:$0xf]  ;;  %v3131_v38 = vor.u32 %v3707_v33, %v3130_v32  ;;  %v3138_v40 = vld [vmem:[%s4369_s12 + $0xc0] sm:$0xf] }
 0x10b   : > { %1943 = vmatmul.bf16.vlgmr.msra.gmra.mxu1 %v3047_v41  ;;  %v3135_v39 = vor.u32 %v3705_v34, %v3132_v35  ;;  %v3710_v41 = vld [vmem:[%s4369_s12 + $0xcc] sm:$0xf0]  ;;  %v3187_v34 = vor.u32 %v3722_v23, %v3186_v22  ;;  %v3220_v22 = vld [vmem:[%s4369_s12 + $0x170] sm:$0xf0]  ;;  %v3226_v23 = vld [vmem:[%s4369_s12 + $0x168] sm:$0xf] }
 0x10c   : > { %2112 = vmatmul.bf16.vlgmr.msra.gmra.mxu2 %v3051_v42  ;;  %v3708_v42 = vld [vmem:[%s4369_s12 + $0xc4] sm:$0xf]  ;;  %v3139_v48 = vor.u32 %v3710_v41, %v3138_v40  ;;  %v3199_v40 = vor.u32 %v3721_v29, %v3196_v30  ;;  %v674_v41 = vld [vmem:[#allocation2 + $0x1b0] sm:$0xff] }
 0x10d   : > { %2281 = vmatmul.bf16.vlgmr.msra.gmra.mxu3 %v3055_v43  ;;  %v3140_v43 = vld [vmem:[%s4369_s12 + $0xd0] sm:$0xf0] }
 0x10e   : > { %v3143_v49 = vor.u32 %v3708_v42, %v3140_v43 }
 0x11a   : > { %1779 = vmatmul.bf16.gmra.mxu0 %v3059_v52  ;;  %v3154_v52 = vld [vmem:[%s4369_s12 + $0xe0] sm:$0xf] }
 0x11b   : > { %1948 = vmatmul.bf16.gmra.mxu1 %v3063_v53  ;;  %v3714_v53 = vld [vmem:[%s4369_s12 + $0xec] sm:$0xf0] }
 0x11c   : > { %2117 = vmatmul.bf16.gmra.mxu2 %v3067_v54  ;;  %v3712_v54 = vld [vmem:[%s4369_s12 + $0xe4] sm:$0xf]  ;;  %v3155_v60 = vor.u32 %v3714_v53, %v3154_v52  ;;  %v3202_v52 = vld [vmem:[%s4369_s12 + $0x140] sm:$0xf]  ;;  %v3726_v53 = vld [vmem:[%s4369_s12 + $0x14c] sm:$0xf0] }
 0x11d   : > { %2286 = vmatmul.bf16.gmra.mxu3 %v3071_v55  ;;  %v3156_v55 = vld [vmem:[%s4369_s12 + $0xf0] sm:$0xf0] }
 0x11e   : > { %v3159_v61 = vor.u32 %v3712_v54, %v3156_v55  ;;  %v3724_v55 = vld [vmem:[%s4369_s12 + $0x144] sm:$0xf] }
 0x12a   : > { %1784 = vmatmul.bf16.gmra.mxu0 %v3075_v0  ;;  %v3170_v0 = vld [vmem:[%s4369_s12 + $0x100] sm:$0xf] }
 0x12b   : > { %1953 = vmatmul.bf16.gmra.mxu1 %v3079_v1  ;;  %v3718_v1 = vld [vmem:[%s4369_s12 + $0x10c] sm:$0xf0] }
 0x12c   : > { %2122 = vmatmul.bf16.gmra.mxu2 %v3083_v2  ;;  %v3716_v2 = vld [vmem:[%s4369_s12 + $0x104] sm:$0xf]  ;;  %v3171_v8 = vor.u32 %v3718_v1, %v3170_v0  ;;  %v3203_v0 = vor.u32 %v3726_v53, %v3202_v52  ;;  %v3207_v1 = vor.u32 %v3724_v55, %v3204_v56  ;;  %v3236_v52 = vld [vmem:[%s4369_s12 + $0x190] sm:$0xf0]  ;;  %v3242_v53 = vld [vmem:[%s4369_s12 + $0x188] sm:$0xf] }
 0x12d   : > { %2291 = vmatmul.bf16.gmra.mxu3 %v3087_v3  ;;  %v3172_v3 = vld [vmem:[%s4369_s12 + $0x110] sm:$0xf0]  ;;  %v3733_v55 = vld [vmem:[%s4369_s12 + $0x18c] sm:$0xf]  ;;  %v3244_v56 = vld [vmem:[%s4369_s12 + $0x198] sm:$0xf0] }
 0x12e   : > { %v3175_v9 = vor.u32 %v3716_v2, %v3172_v3 }
 0x13a   : > { %1789 = vmatmul.bf16.gmra.mxu0 %v3091_v12  ;;  %v3179_v12 = vor.u32 %v3719_v5, %v3178_v4  ;;  %v3211_v5 = vor.u32 %v3727_v58, %v3210_v57 }
 0x13b   : > { %1958 = vmatmul.bf16.gmra.mxu1 %v3095_v13  ;;  %v3183_v13 = vor.u32 %v3717_v6, %v3180_v7  ;;  %v676_v7 = vld [vmem:[#allocation2 + $0x18] sm:$0xff] }
 0x13c   : > { %2127 = vmatmul.bf16.gmra.mxu2 %v3099_v14 }
 0x13d   : > { %2296 = vmatmul.bf16.gmra.mxu3 %v3103_v15 }
 0x14a   : > { %1794 = vmatmul.bf16.gmra.mxu0 %v3107_v24 }
 0x14b   : > { %1963 = vmatmul.bf16.gmra.mxu1 %v3111_v25  ;;  %v3720_v25 = vld [vmem:[%s4369_s12 + $0x124] sm:$0xf] }
 0x14c   : > { %2132 = vmatmul.bf16.gmra.mxu2 %v3115_v26  ;;  %v3188_v26 = vld [vmem:[%s4369_s12 + $0x130] sm:$0xf0] }
 0x14d   : > { %2301 = vmatmul.bf16.gmra.mxu3 %v3119_v27  ;;  %v3194_v27 = vld [vmem:[%s4369_s12 + $0x128] sm:$0xf]  ;;  %v3191_v35 = vor.u32 %v3720_v25, %v3188_v26  ;;  %v3729_v25 = vld [vmem:[%s4369_s12 + $0x16c] sm:$0xf]  ;;  %v3228_v26 = vld [vmem:[%s4369_s12 + $0x178] sm:$0xf0] }
 0x15a   : > { %1799 = vmatmul.bf16.gmra.mxu0 %v3123_v36 }
 0x15b   : > { %1968 = vmatmul.bf16.gmra.mxu1 %v3127_v37 }
 0x15c   : > { %2137 = vmatmul.bf16.gmra.mxu2 %v3131_v38 }
 0x15d   : > { %2306 = vmatmul.bf16.gmra.mxu3 %v3135_v39  ;;  %v3195_v39 = vor.u32 %v3723_v28, %v3194_v27 }
 0x16a   : > { %1804 = vmatmul.bf16.gmra.mxu0 %v3139_v48 }
 0x16b   : > { %1973 = vmatmul.bf16.gmra.mxu1 %v3143_v49 }
 0x16c   : > { %2142 = vmatmul.bf16.gmra.mxu2 %v3147_v50  ;;  %v675_v50 = vld [vmem:[#allocation2 + $0xd8] sm:$0xff] }
 0x16d   : > { %2311 = vmatmul.bf16.gmra.mxu3 %v3151_v51 }
 0x17a   : > { %1809 = vmatmul.bf16.gmra.mxu0 %v3155_v60  ;;  %v3212_v60 = vld [vmem:[%s4369_s12 + $0x158] sm:$0xf0] }
 0x17b   : > { %1978 = vmatmul.bf16.gmra.mxu1 %v3159_v61  ;;  %v3215_v6 = vor.u32 %v3725_v59, %v3212_v60 }
 0x17c   : > { %2147 = vmatmul.bf16.gmra.mxu2 %v3163_v62 }
 0x17d   : > { %2316 = vmatmul.bf16.gmra.mxu3 %v3167_v63 }
 0x187   : > { %v1775_v10 = vpop.f32.mrf.mxu0 }
 0x188   : > { %v1944_v11 = vpop.f32.mrf.mxu1 }
 0x189   : > { %v1945_v14 = vadd.f32 %v1944_v11, %v1775_v10 }
 0x18a   : > { %1814 = vmatmul.bf16.gmra.mxu0 %v3171_v8 }
 0x18b   : > { %1983 = vmatmul.bf16.gmra.mxu1 %v3175_v9 }
 0x18c   : > { %2152 = vmatmul.bf16.gmra.mxu2 %v3179_v12 }
 0x18d   : > { %2321 = vmatmul.bf16.gmra.mxu3 %v3183_v13 }
 0x18f   : > { %v2113_v15 = vpop.f32.mrf.mxu2  ;;  %v1777_v18 = vpop.f32.mrf.mxu0 }
 0x190   : > { %v2282_v16 = vpop.f32.mrf.mxu3  ;;  %v2114_v17 = vadd.f32 %v2113_v15, %v1945_v14  ;;  %v1946_v19 = vpop.f32.mrf.mxu1 }
 0x191   : > { %v1947_v31 = vadd.f32 %v1946_v19, %v1777_v18  ;;  %v3218_v18 = vld [vmem:[%s4369_s12 + $0x160] sm:$0xf]  ;;  %v3730_v19 = vld [vmem:[%s4369_s12 + $0x16c] sm:$0xf0] }
 0x192   : > { %v2283_v21 = vadd.f32 %v2282_v16, %v2114_v17  ;;  %v677_v16 = vld [vmem:[#allocation2 + $0x50] sm:$0xff]  ;;  %v3219_v30 = vor.u32 %v3730_v19, %v3218_v18  ;;  %v3258_v19 = vld [vmem:[%s4369_s12 + $0x1a8] sm:$0xf] }
 0x193   : > { %v3252_v18 = vld [vmem:[%s4369_s12 + $0x1b0] sm:$0xf0] }
 0x194   : > { %v2442_v24 = vadd.f32 %v2283_v21, %v673_v20  ;;  %v3728_v21 = vld [vmem:[%s4369_s12 + $0x164] sm:$0xf] }
 0x196   : > { %2506 = vst [vmem:[#allocation2 + $0xb0] sm:$0xff] %v2442_v24  ;;  %v3731_v24 = vld [vmem:[%s4369_s12 + $0x174] sm:$0xf0] }
 0x197   : > { %v2115_v32 = vpop.f32.mrf.mxu2  ;;  %v1780_v37 = vpop.f32.mrf.mxu0 }
 0x198   : > { %v2284_v33 = vpop.f32.mrf.mxu3  ;;  %v2116_v36 = vadd.f32 %v2115_v32, %v1947_v31  ;;  %v1949_v38 = vpop.f32.mrf.mxu1  ;;  %v3223_v31 = vor.u32 %v3728_v21, %v3220_v22  ;;  %v3737_v21 = vld [vmem:[%s4369_s12 + $0x1ac] sm:$0xf]  ;;  %v3260_v22 = vld [vmem:[%s4369_s12 + $0x1b8] sm:$0xf0] }
 0x199   : > { %v1950_v44 = vadd.f32 %v1949_v38, %v1780_v37  ;;  %v678_v37 = vld [vmem:[#allocation2 + $0x168] sm:$0xff] }
 0x19a   : > { %v2285_v42 = vadd.f32 %v2284_v33, %v2116_v36  ;;  %1819 = vmatmul.bf16.gmra.mxu0 %v3187_v34  ;;  %v3231_v36 = vor.u32 %v3729_v25, %v3228_v26 }
 0x19b   : > { %1988 = vmatmul.bf16.gmra.mxu1 %v3191_v35  ;;  %v3227_v35 = vor.u32 %v3731_v24, %v3226_v23 }
 0x19c   : > { %v2443_v43 = vadd.f32 %v2285_v42, %v674_v41  ;;  %2157 = vmatmul.bf16.gmra.mxu2 %v3195_v39 }
 0x19d   : > { %2326 = vmatmul.bf16.gmra.mxu3 %v3199_v40 }
 0x19e   : > { %2507 = vst [vmem:[#allocation2 + $0x1b0] sm:$0xff] %v2443_v43 }
 0x19f   : > { %v2118_v45 = vpop.f32.mrf.mxu2  ;;  %v1782_v48 = vpop.f32.mrf.mxu0 }
 0x1a0   : > { %v2287_v46 = vpop.f32.mrf.mxu3  ;;  %v2119_v47 = vadd.f32 %v2118_v45, %v1950_v44  ;;  %v1951_v49 = vpop.f32.mrf.mxu1 }
 0x1a1   : > { %v1952_v61 = vadd.f32 %v1951_v49, %v1782_v48  ;;  %v3234_v48 = vld [vmem:[%s4369_s12 + $0x180] sm:$0xf]  ;;  %v3734_v49 = vld [vmem:[%s4369_s12 + $0x18c] sm:$0xf0] }
 0x1a2   : > { %v2288_v51 = vadd.f32 %v2287_v46, %v2119_v47  ;;  %v679_v46 = vld [vmem:[#allocation2 + $0x130] sm:$0xff]  ;;  %v3235_v60 = vor.u32 %v3734_v49, %v3234_v48  ;;  %v3274_v49 = vld [vmem:[%s4369_s12 + $0x1c8] sm:$0xf] }
 0x1a3   : > { %v3268_v48 = vld [vmem:[%s4369_s12 + $0x1d0] sm:$0xf0] }
 0x1a4   : > { %v2444_v54 = vadd.f32 %v2288_v51, %v675_v50  ;;  %v3732_v51 = vld [vmem:[%s4369_s12 + $0x184] sm:$0xf] }
 0x1a6   : > { %2508 = vst [vmem:[#allocation2 + $0xd8] sm:$0xff] %v2444_v54  ;;  %v3735_v54 = vld [vmem:[%s4369_s12 + $0x194] sm:$0xf0] }
 0x1a7   : > { %v2120_v62 = vpop.f32.mrf.mxu2  ;;  %v1785_v3 = vpop.f32.mrf.mxu0 }
 0x1a8   : > { %v2289_v63 = vpop.f32.mrf.mxu3  ;;  %v2121_v2 = vadd.f32 %v2120_v62, %v1952_v61  ;;  %v1954_v4 = vpop.f32.mrf.mxu1  ;;  %v3239_v61 = vor.u32 %v3732_v51, %v3236_v52  ;;  %v3741_v51 = vld [vmem:[%s4369_s12 + $0x1cc] sm:$0xf]  ;;  %v3276_v52 = vld [vmem:[%s4369_s12 + $0x1d8] sm:$0xf0] }
 0x1a9   : > { %v1955_v10 = vadd.f32 %v1954_v4, %v1785_v3  ;;  %v680_v3 = vld [vmem:[#allocation2 + $0x48] sm:$0xff] }
 0x1aa   : > { %v2290_v8 = vadd.f32 %v2289_v63, %v2121_v2  ;;  %1824 = vmatmul.bf16.gmra.mxu0 %v3203_v0  ;;  %v3247_v2 = vor.u32 %v3733_v55, %v3244_v56 }
 0x1ab   : > { %1993 = vmatmul.bf16.gmra.mxu1 %v3207_v1  ;;  %v3243_v1 = vor.u32 %v3735_v54, %v3242_v53 }
 0x1ac   : > { %v2445_v9 = vadd.f32 %v2290_v8, %v676_v7  ;;  %2162 = vmatmul.bf16.gmra.mxu2 %v3211_v5 }
 0x1ad   : > { %2331 = vmatmul.bf16.gmra.mxu3 %v3215_v6 }
 0x1ae   : > { %2509 = vst [vmem:[#allocation2 + $0x18] sm:$0xff] %v2445_v9 }
 0x1af   : > { %v2123_v11 = vpop.f32.mrf.mxu2  ;;  %v1787_v14 = vpop.f32.mrf.mxu0 }
 0x1b0   : > { %v2292_v12 = vpop.f32.mrf.mxu3  ;;  %v2124_v13 = vadd.f32 %v2123_v11, %v1955_v10  ;;  %v1956_v15 = vpop.f32.mrf.mxu1 }
 0x1b1   : > { %v1957_v27 = vadd.f32 %v1956_v15, %v1787_v14  ;;  %v3250_v14 = vld [vmem:[%s4369_s12 + $0x1a0] sm:$0xf]  ;;  %v3738_v15 = vld [vmem:[%s4369_s12 + $0x1ac] sm:$0xf0] }
 0x1b2   : > { %v2293_v17 = vadd.f32 %v2292_v12, %v2124_v13  ;;  %v681_v12 = vld [vmem:[#allocation2 + $0x180] sm:$0xff]  ;;  %v3251_v26 = vor.u32 %v3738_v15, %v3250_v14  ;;  %v3284_v14 = vld [vmem:[%s4369_s12 + $0x1f0] sm:$0xf0]  ;;  %v3290_v15 = vld [vmem:[%s4369_s12 + $0x1e8] sm:$0xf] }
 0x1b4   : > { %v2446_v20 = vadd.f32 %v2293_v17, %v677_v16  ;;  %v3736_v17 = vld [vmem:[%s4369_s12 + $0x1a4] sm:$0xf] }
 0x1b6   : > { %2510 = vst [vmem:[#allocation2 + $0x50] sm:$0xff] %v2446_v20  ;;  %v3739_v20 = vld [vmem:[%s4369_s12 + $0x1b4] sm:$0xf0] }
 0x1b7   : > { %v2125_v28 = vpop.f32.mrf.mxu2  ;;  %v1790_v33 = vpop.f32.mrf.mxu0 }
 0x1b8   : > { %v2294_v29 = vpop.f32.mrf.mxu3  ;;  %v2126_v32 = vadd.f32 %v2125_v28, %v1957_v27  ;;  %v1959_v34 = vpop.f32.mrf.mxu1  ;;  %v3255_v27 = vor.u32 %v3736_v17, %v3252_v18  ;;  %v3745_v17 = vld [vmem:[%s4369_s12 + $0x1ec] sm:$0xf]  ;;  %v3292_v18 = vld [vmem:[%s4369_s12 + $0x1f8] sm:$0xf0] }
 0x1b9   : > { %v1960_v40 = vadd.f32 %v1959_v34, %v1790_v33  ;;  %v682_v33 = vld [vmem:[#allocation2 + $0x110] sm:$0xff] }
 0x1ba   : > { %v2295_v38 = vadd.f32 %v2294_v29, %v2126_v32  ;;  %1829 = vmatmul.bf16.gmra.mxu0 %v3219_v30  ;;  %v3263_v32 = vor.u32 %v3737_v21, %v3260_v22 }
 0x1bb   : > { %1998 = vmatmul.bf16.gmra.mxu1 %v3223_v31  ;;  %v3259_v31 = vor.u32 %v3739_v20, %v3258_v19 }
 0x1bc   : > { %v2447_v39 = vadd.f32 %v2295_v38, %v678_v37  ;;  %2167 = vmatmul.bf16.gmra.mxu2 %v3227_v35 }
 0x1bd   : > { %2336 = vmatmul.bf16.gmra.mxu3 %v3231_v36 }
 0x1be   : > { %2511 = vst [vmem:[#allocation2 + $0x168] sm:$0xff] %v2447_v39 }
 0x1bf   : > { %v2128_v41 = vpop.f32.mrf.mxu2  ;;  %v1792_v44 = vpop.f32.mrf.mxu0 }
 0x1c0   : > { %v2297_v42 = vpop.f32.mrf.mxu3  ;;  %v2129_v43 = vadd.f32 %v2128_v41, %v1960_v40  ;;  %v1961_v45 = vpop.f32.mrf.mxu1 }
 0x1c1   : > { %v1962_v57 = vadd.f32 %v1961_v45, %v1792_v44  ;;  %v3266_v44 = vld [vmem:[%s4369_s12 + $0x1c0] sm:$0xf]  ;;  %v3742_v45 = vld [vmem:[%s4369_s12 + $0x1cc] sm:$0xf0] }
 0x1c2   : > { %v2298_v47 = vadd.f32 %v2297_v42, %v2129_v43  ;;  %v683_v42 = vld [vmem:[#allocation2 + $0x118] sm:$0xff]  ;;  %v3267_v56 = vor.u32 %v3742_v45, %v3266_v44  ;;  %v3300_v44 = vld [vmem:[%s4369_s12 + $0x210] sm:$0xf0]  ;;  %v3306_v45 = vld [vmem:[%s4369_s12 + $0x208] sm:$0xf] }
 0x1c4   : > { %v2448_v50 = vadd.f32 %v2298_v47, %v679_v46  ;;  %v3740_v47 = vld [vmem:[%s4369_s12 + $0x1c4] sm:$0xf] }
 0x1c6   : > { %2512 = vst [vmem:[#allocation2 + $0x130] sm:$0xff] %v2448_v50  ;;  %v3743_v50 = vld [vmem:[%s4369_s12 + $0x1d4] sm:$0xf0] }
 0x1c7   : > { %v2130_v58 = vpop.f32.mrf.mxu2  ;;  %v1795_v63 = vpop.f32.mrf.mxu0 }
 0x1c8   : > { %v2299_v59 = vpop.f32.mrf.mxu3  ;;  %v2131_v62 = vadd.f32 %v2130_v58, %v1962_v57  ;;  %v1964_v0 = vpop.f32.mrf.mxu1  ;;  %v3271_v57 = vor.u32 %v3740_v47, %v3268_v48  ;;  %v3749_v47 = vld [vmem:[%s4369_s12 + $0x20c] sm:$0xf]  ;;  %v3308_v48 = vld [vmem:[%s4369_s12 + $0x218] sm:$0xf0] }
 0x1c9   : > { %v1965_v6 = vadd.f32 %v1964_v0, %v1795_v63  ;;  %v684_v63 = vld [vmem:[#allocation2 + $0x98] sm:$0xff] }
 0x1ca   : > { %v2300_v4 = vadd.f32 %v2299_v59, %v2131_v62  ;;  %1834 = vmatmul.bf16.gmra.mxu0 %v3235_v60  ;;  %v3279_v62 = vor.u32 %v3741_v51, %v3276_v52 }
 0x1cb   : > { %2003 = vmatmul.bf16.gmra.mxu1 %v3239_v61  ;;  %v3275_v61 = vor.u32 %v3743_v50, %v3274_v49 }
 0x1cc   : > { %v2449_v5 = vadd.f32 %v2300_v4, %v680_v3  ;;  %2172 = vmatmul.bf16.gmra.mxu2 %v3243_v1 }
 0x1cd   : > { %2341 = vmatmul.bf16.gmra.mxu3 %v3247_v2 }
 0x1ce   : > { %2513 = vst [vmem:[#allocation2 + $0x48] sm:$0xff] %v2449_v5 }
 0x1cf   : > { %v2133_v7 = vpop.f32.mrf.mxu2  ;;  %v1797_v10 = vpop.f32.mrf.mxu0 }
 0x1d0   : > { %v2302_v8 = vpop.f32.mrf.mxu3  ;;  %v2134_v9 = vadd.f32 %v2133_v7, %v1965_v6  ;;  %v1966_v11 = vpop.f32.mrf.mxu1 }
 0x1d1   : > { %v1967_v23 = vadd.f32 %v1966_v11, %v1797_v10  ;;  %v3282_v10 = vld [vmem:[%s4369_s12 + $0x1e0] sm:$0xf]  ;;  %v3746_v11 = vld [vmem:[%s4369_s12 + $0x1ec] sm:$0xf0] }
 0x1d2   : > { %v2303_v13 = vadd.f32 %v2302_v8, %v2134_v9  ;;  %v685_v8 = vld [vmem:[#allocation2 + $0x120] sm:$0xff]  ;;  %v3283_v22 = vor.u32 %v3746_v11, %v3282_v10  ;;  %v3316_v10 = vld [vmem:[%s4369_s12 + $0x230] sm:$0xf0]  ;;  %v3322_v11 = vld [vmem:[%s4369_s12 + $0x228] sm:$0xf] }
 0x1d4   : > { %v2450_v16 = vadd.f32 %v2303_v13, %v681_v12  ;;  %v3744_v13 = vld [vmem:[%s4369_s12 + $0x1e4] sm:$0xf] }
 0x1d6   : > { %2514 = vst [vmem:[#allocation2 + $0x180] sm:$0xff] %v2450_v16  ;;  %v3747_v16 = vld [vmem:[%s4369_s12 + $0x1f4] sm:$0xf0] }
 0x1d7   : > { %v2135_v24 = vpop.f32.mrf.mxu2  ;;  %v1800_v29 = vpop.f32.mrf.mxu0 }
 0x1d8   : > { %v2304_v25 = vpop.f32.mrf.mxu3  ;;  %v2136_v28 = vadd.f32 %v2135_v24, %v1967_v23  ;;  %v1969_v30 = vpop.f32.mrf.mxu1  ;;  %v3287_v23 = vor.u32 %v3744_v13, %v3284_v14  ;;  %v3753_v13 = vld [vmem:[%s4369_s12 + $0x22c] sm:$0xf]  ;;  %v3324_v14 = vld [vmem:[%s4369_s12 + $0x238] sm:$0xf0] }
 0x1d9   : > { %v1970_v36 = vadd.f32 %v1969_v30, %v1800_v29  ;;  %v686_v29 = vld [vmem:[#allocation2 + $0x150] sm:$0xff] }
 0x1da   : > { %v2305_v34 = vadd.f32 %v2304_v25, %v2136_v28  ;;  %1839 = vmatmul.bf16.gmra.mxu0 %v3251_v26  ;;  %v3295_v28 = vor.u32 %v3745_v17, %v3292_v18 }
 0x1db   : > { %2008 = vmatmul.bf16.gmra.mxu1 %v3255_v27  ;;  %v3291_v27 = vor.u32 %v3747_v16, %v3290_v15 }
 0x1dc   : > { %v2451_v35 = vadd.f32 %v2305_v34, %v682_v33  ;;  %2177 = vmatmul.bf16.gmra.mxu2 %v3259_v31 }
 0x1dd   : > { %2346 = vmatmul.bf16.gmra.mxu3 %v3263_v32 }
 0x1de   : > { %2515 = vst [vmem:[#allocation2 + $0x110] sm:$0xff] %v2451_v35 }
 0x1df   : > { %v2138_v37 = vpop.f32.mrf.mxu2  ;;  %v1802_v40 = vpop.f32.mrf.mxu0 }
 0x1e0   : > { %v2307_v38 = vpop.f32.mrf.mxu3  ;;  %v2139_v39 = vadd.f32 %v2138_v37, %v1970_v36  ;;  %v1971_v41 = vpop.f32.mrf.mxu1 }
 0x1e1   : > { %v1972_v53 = vadd.f32 %v1971_v41, %v1802_v40  ;;  %v3298_v40 = vld [vmem:[%s4369_s12 + $0x200] sm:$0xf]  ;;  %v3750_v41 = vld [vmem:[%s4369_s12 + $0x20c] sm:$0xf0] }
 0x1e2   : > { %v2308_v43 = vadd.f32 %v2307_v38, %v2139_v39  ;;  %v687_v38 = vld [vmem:[#allocation2 + $0x108] sm:$0xff]  ;;  %v3299_v52 = vor.u32 %v3750_v41, %v3298_v40  ;;  %v3332_v40 = vld [vmem:[%s4369_s12 + $0x250] sm:$0xf0] }
 0x1e3   : > { %v3338_v41 = vld [vmem:[%s4369_s12 + $0x248] sm:$0xf] }
 0x1e4   : > { %v2452_v46 = vadd.f32 %v2308_v43, %v683_v42  ;;  %v3748_v43 = vld [vmem:[%s4369_s12 + $0x204] sm:$0xf] }
 0x1e6   : > { %2516 = vst [vmem:[#allocation2 + $0x118] sm:$0xff] %v2452_v46  ;;  %v3751_v46 = vld [vmem:[%s4369_s12 + $0x214] sm:$0xf0] }
 0x1e7   : > { %v2140_v54 = vpop.f32.mrf.mxu2  ;;  %v1805_v59 = vpop.f32.mrf.mxu0 }
 0x1e8   : > { %v2309_v55 = vpop.f32.mrf.mxu3  ;;  %v2141_v58 = vadd.f32 %v2140_v54, %v1972_v53  ;;  %v1974_v60 = vpop.f32.mrf.mxu1  ;;  %v3303_v53 = vor.u32 %v3748_v43, %v3300_v44  ;;  %v3757_v43 = vld [vmem:[%s4369_s12 + $0x24c] sm:$0xf]  ;;  %v3340_v44 = vld [vmem:[%s4369_s12 + $0x258] sm:$0xf0] }
 0x1e9   : > { %v1975_v2 = vadd.f32 %v1974_v60, %v1805_v59  ;;  %v688_v59 = vld [vmem:[#allocation2 + $0x60] sm:$0xff] }
 0x1ea   : > { %v2310_v0 = vadd.f32 %v2309_v55, %v2141_v58  ;;  %1844 = vmatmul.bf16.gmra.mxu0 %v3267_v56  ;;  %v3311_v58 = vor.u32 %v3749_v47, %v3308_v48 }
 0x1eb   : > { %2013 = vmatmul.bf16.gmra.mxu1 %v3271_v57  ;;  %v3307_v57 = vor.u32 %v3751_v46, %v3306_v45 }
 0x1ec   : > { %v2453_v1 = vadd.f32 %v2310_v0, %v684_v63  ;;  %2182 = vmatmul.bf16.gmra.mxu2 %v3275_v61 }
 0x1ed   : > { %2351 = vmatmul.bf16.gmra.mxu3 %v3279_v62 }
 0x1ee   : > { %2517 = vst [vmem:[#allocation2 + $0x98] sm:$0xff] %v2453_v1 }
 0x1ef   : > { %v2143_v3 = vpop.f32.mrf.mxu2  ;;  %v1807_v6 = vpop.f32.mrf.mxu0 }
 0x1f0   : > { %v2312_v4 = vpop.f32.mrf.mxu3  ;;  %v2144_v5 = vadd.f32 %v2143_v3, %v1975_v2  ;;  %v1976_v7 = vpop.f32.mrf.mxu1 }
 0x1f1   : > { %v1977_v19 = vadd.f32 %v1976_v7, %v1807_v6  ;;  %v3314_v6 = vld [vmem:[%s4369_s12 + $0x220] sm:$0xf]  ;;  %v3754_v7 = vld [vmem:[%s4369_s12 + $0x22c] sm:$0xf0] }
 0x1f2   : > { %v2313_v9 = vadd.f32 %v2312_v4, %v2144_v5  ;;  %v689_v4 = vld [vmem:[#allocation2 + $0xe0] sm:$0xff]  ;;  %v3315_v18 = vor.u32 %v3754_v7, %v3314_v6  ;;  %v3348_v6 = vld [vmem:[%s4369_s12 + $0x270] sm:$0xf0]  ;;  %v3354_v7 = vld [vmem:[%s4369_s12 + $0x268] sm:$0xf] }
 0x1f4   : > { %v2454_v12 = vadd.f32 %v2313_v9, %v685_v8  ;;  %v3752_v9 = vld [vmem:[%s4369_s12 + $0x224] sm:$0xf] }
 0x1f6   : > { %2518 = vst [vmem:[#allocation2 + $0x120] sm:$0xff] %v2454_v12  ;;  %v3755_v12 = vld [vmem:[%s4369_s12 + $0x234] sm:$0xf0] }
 0x1f7   : > { %v2145_v20 = vpop.f32.mrf.mxu2  ;;  %v1810_v25 = vpop.f32.mrf.mxu0 }
 0x1f8   : > { %v2314_v21 = vpop.f32.mrf.mxu3  ;;  %v2146_v24 = vadd.f32 %v2145_v20, %v1977_v19  ;;  %v1979_v26 = vpop.f32.mrf.mxu1  ;;  %v3319_v19 = vor.u32 %v3752_v9, %v3316_v10  ;;  %v3761_v9 = vld [vmem:[%s4369_s12 + $0x26c] sm:$0xf]  ;;  %v3356_v10 = vld [vmem:[%s4369_s12 + $0x278] sm:$0xf0] }
 0x1f9   : > { %v1980_v32 = vadd.f32 %v1979_v26, %v1810_v25  ;;  %v690_v25 = vld [vmem:[#allocation2 + $0x188] sm:$0xff] }
 0x1fa   : > { %v2315_v30 = vadd.f32 %v2314_v21, %v2146_v24  ;;  %1849 = vmatmul.bf16.gmra.mxu0 %v3283_v22  ;;  %v3327_v24 = vor.u32 %v3753_v13, %v3324_v14 }
 0x1fb   : > { %2018 = vmatmul.bf16.gmra.mxu1 %v3287_v23  ;;  %v3323_v23 = vor.u32 %v3755_v12, %v3322_v11 }
 0x1fc   : > { %v2455_v31 = vadd.f32 %v2315_v30, %v686_v29  ;;  %2187 = vmatmul.bf16.gmra.mxu2 %v3291_v27 }
 0x1fd   : > { %2356 = vmatmul.bf16.gmra.mxu3 %v3295_v28 }
 0x1fe   : > { %2519 = vst [vmem:[#allocation2 + $0x150] sm:$0xff] %v2455_v31 }
 0x1ff   : > { %v2148_v33 = vpop.f32.mrf.mxu2  ;;  %v1812_v36 = vpop.f32.mrf.mxu0 }
 0x200   : > { %v2317_v34 = vpop.f32.mrf.mxu3  ;;  %v2149_v35 = vadd.f32 %v2148_v33, %v1980_v32  ;;  %v1981_v37 = vpop.f32.mrf.mxu1 }
 0x201   : > { %v1982_v49 = vadd.f32 %v1981_v37, %v1812_v36  ;;  %v3330_v36 = vld [vmem:[%s4369_s12 + $0x240] sm:$0xf]  ;;  %v3758_v37 = vld [vmem:[%s4369_s12 + $0x24c] sm:$0xf0] }
 0x202   : > { %v2318_v39 = vadd.f32 %v2317_v34, %v2149_v35  ;;  %v691_v34 = vld [vmem:[#allocation2 + $0x138] sm:$0xff]  ;;  %v3331_v48 = vor.u32 %v3758_v37, %v3330_v36  ;;  %v3364_v36 = vld [vmem:[%s4369_s12 + $0x290] sm:$0xf0]  ;;  %v3370_v37 = vld [vmem:[%s4369_s12 + $0x288] sm:$0xf] }
 0x204   : > { %v2456_v42 = vadd.f32 %v2318_v39, %v687_v38  ;;  %v3756_v39 = vld [vmem:[%s4369_s12 + $0x244] sm:$0xf] }
 0x206   : > { %2520 = vst [vmem:[#allocation2 + $0x108] sm:$0xff] %v2456_v42  ;;  %v3759_v42 = vld [vmem:[%s4369_s12 + $0x254] sm:$0xf0] }
 0x207   : > { %v2150_v50 = vpop.f32.mrf.mxu2  ;;  %v1815_v55 = vpop.f32.mrf.mxu0 }
 0x208   : > { %v2319_v51 = vpop.f32.mrf.mxu3  ;;  %v2151_v54 = vadd.f32 %v2150_v50, %v1982_v49  ;;  %v1984_v56 = vpop.f32.mrf.mxu1  ;;  %v3335_v49 = vor.u32 %v3756_v39, %v3332_v40  ;;  %v3765_v39 = vld [vmem:[%s4369_s12 + $0x28c] sm:$0xf]  ;;  %v3372_v40 = vld [vmem:[%s4369_s12 + $0x298] sm:$0xf0] }
 0x209   : > { %v1985_v62 = vadd.f32 %v1984_v56, %v1815_v55  ;;  %v692_v55 = vld [vmem:[#allocation2 + $0x140] sm:$0xff] }
 0x20a   : > { %v2320_v60 = vadd.f32 %v2319_v51, %v2151_v54  ;;  %1854 = vmatmul.bf16.gmra.mxu0 %v3299_v52  ;;  %v3343_v54 = vor.u32 %v3757_v43, %v3340_v44 }
 0x20b   : > { %2023 = vmatmul.bf16.gmra.mxu1 %v3303_v53  ;;  %v3339_v53 = vor.u32 %v3759_v42, %v3338_v41 }
 0x20c   : > { %v2457_v61 = vadd.f32 %v2320_v60, %v688_v59  ;;  %2192 = vmatmul.bf16.gmra.mxu2 %v3307_v57 }
 0x20d   : > { %2361 = vmatmul.bf16.gmra.mxu3 %v3311_v58 }
 0x20e   : > { %2521 = vst [vmem:[#allocation2 + $0x60] sm:$0xff] %v2457_v61 }
 0x20f   : > { %v2153_v63 = vpop.f32.mrf.mxu2  ;;  %v1817_v2 = vpop.f32.mrf.mxu0 }
 0x210   : > { %v2322_v0 = vpop.f32.mrf.mxu3  ;;  %v2154_v1 = vadd.f32 %v2153_v63, %v1985_v62  ;;  %v1986_v3 = vpop.f32.mrf.mxu1 }
 0x211   : > { %v1987_v15 = vadd.f32 %v1986_v3, %v1817_v2  ;;  %v3346_v2 = vld [vmem:[%s4369_s12 + $0x260] sm:$0xf]  ;;  %v3762_v3 = vld [vmem:[%s4369_s12 + $0x26c] sm:$0xf0] }
 0x212   : > { %v2323_v5 = vadd.f32 %v2322_v0, %v2154_v1  ;;  %v693_v0 = vld [vmem:[#allocation2 + $0x80] sm:$0xff]  ;;  %v3347_v14 = vor.u32 %v3762_v3, %v3346_v2  ;;  %v3380_v2 = vld [vmem:[%s4369_s12 + $0x2b0] sm:$0xf0]  ;;  %v3386_v3 = vld [vmem:[%s4369_s12 + $0x2a8] sm:$0xf] }
 0x214   : > { %v2458_v8 = vadd.f32 %v2323_v5, %v689_v4  ;;  %v3760_v5 = vld [vmem:[%s4369_s12 + $0x264] sm:$0xf] }
 0x216   : > { %2522 = vst [vmem:[#allocation2 + $0xe0] sm:$0xff] %v2458_v8  ;;  %v3763_v8 = vld [vmem:[%s4369_s12 + $0x274] sm:$0xf0] }
 0x217   : > { %v2155_v16 = vpop.f32.mrf.mxu2  ;;  %v1820_v21 = vpop.f32.mrf.mxu0 }
 0x218   : > { %v2324_v17 = vpop.f32.mrf.mxu3  ;;  %v2156_v20 = vadd.f32 %v2155_v16, %v1987_v15  ;;  %v1989_v22 = vpop.f32.mrf.mxu1  ;;  %v3351_v15 = vor.u32 %v3760_v5, %v3348_v6  ;;  %v3769_v5 = vld [vmem:[%s4369_s12 + $0x2ac] sm:$0xf]  ;;  %v3388_v6 = vld [vmem:[%s4369_s12 + $0x2b8] sm:$0xf0] }
 0x219   : > { %v1990_v28 = vadd.f32 %v1989_v22, %v1820_v21  ;;  %v694_v21 = vld [vmem:[#allocation2 + $0x1a8] sm:$0xff] }
 0x21a   : > { %v2325_v26 = vadd.f32 %v2324_v17, %v2156_v20  ;;  %1859 = vmatmul.bf16.gmra.mxu0 %v3315_v18  ;;  %v3359_v20 = vor.u32 %v3761_v9, %v3356_v10 }
 0x21b   : > { %2028 = vmatmul.bf16.gmra.mxu1 %v3319_v19  ;;  %v3355_v19 = vor.u32 %v3763_v8, %v3354_v7 }
 0x21c   : > { %v2459_v27 = vadd.f32 %v2325_v26, %v690_v25  ;;  %2197 = vmatmul.bf16.gmra.mxu2 %v3323_v23 }
 0x21d   : > { %2366 = vmatmul.bf16.gmra.mxu3 %v3327_v24 }
 0x21e   : > { %2523 = vst [vmem:[#allocation2 + $0x188] sm:$0xff] %v2459_v27 }
 0x21f   : > { %v2158_v29 = vpop.f32.mrf.mxu2  ;;  %v1822_v32 = vpop.f32.mrf.mxu0 }
 0x220   : > { %v2327_v30 = vpop.f32.mrf.mxu3  ;;  %v2159_v31 = vadd.f32 %v2158_v29, %v1990_v28  ;;  %v1991_v33 = vpop.f32.mrf.mxu1 }
 0x221   : > { %v1992_v45 = vadd.f32 %v1991_v33, %v1822_v32  ;;  %v3362_v32 = vld [vmem:[%s4369_s12 + $0x280] sm:$0xf]  ;;  %v3766_v33 = vld [vmem:[%s4369_s12 + $0x28c] sm:$0xf0] }
 0x222   : > { %v2328_v35 = vadd.f32 %v2327_v30, %v2159_v31  ;;  %v695_v30 = vld [vmem:[#allocation2 + $0x1b8] sm:$0xff]  ;;  %v3363_v44 = vor.u32 %v3766_v33, %v3362_v32  ;;  %v3396_v32 = vld [vmem:[%s4369_s12 + $0x2d0] sm:$0xf0]  ;;  %v3402_v33 = vld [vmem:[%s4369_s12 + $0x2c8] sm:$0xf] }
 0x224   : > { %v2460_v38 = vadd.f32 %v2328_v35, %v691_v34  ;;  %v3764_v35 = vld [vmem:[%s4369_s12 + $0x284] sm:$0xf] }
 0x226   : > { %2524 = vst [vmem:[#allocation2 + $0x138] sm:$0xff] %v2460_v38  ;;  %v3767_v38 = vld [vmem:[%s4369_s12 + $0x294] sm:$0xf0] }
 0x227   : > { %v2160_v46 = vpop.f32.mrf.mxu2  ;;  %v1825_v51 = vpop.f32.mrf.mxu0 }
 0x228   : > { %v2329_v47 = vpop.f32.mrf.mxu3  ;;  %v2161_v50 = vadd.f32 %v2160_v46, %v1992_v45  ;;  %v1994_v52 = vpop.f32.mrf.mxu1  ;;  %v3367_v45 = vor.u32 %v3764_v35, %v3364_v36  ;;  %v3773_v35 = vld [vmem:[%s4369_s12 + $0x2cc] sm:$0xf]  ;;  %v3404_v36 = vld [vmem:[%s4369_s12 + $0x2d8] sm:$0xf0] }
 0x229   : > { %v1995_v58 = vadd.f32 %v1994_v52, %v1825_v51  ;;  %v696_v51 = vld [vmem:[#allocation2 + $0x28] sm:$0xff] }
 0x22a   : > { %v2330_v56 = vadd.f32 %v2329_v47, %v2161_v50  ;;  %1864 = vmatmul.bf16.gmra.mxu0 %v3331_v48  ;;  %v3375_v50 = vor.u32 %v3765_v39, %v3372_v40 }
 0x22b   : > { %2033 = vmatmul.bf16.gmra.mxu1 %v3335_v49  ;;  %v3371_v49 = vor.u32 %v3767_v38, %v3370_v37 }
 0x22c   : > { %v2461_v57 = vadd.f32 %v2330_v56, %v692_v55  ;;  %2202 = vmatmul.bf16.gmra.mxu2 %v3339_v53 }
 0x22d   : > { %2371 = vmatmul.bf16.gmra.mxu3 %v3343_v54 }
 0x22e   : > { %2525 = vst [vmem:[#allocation2 + $0x140] sm:$0xff] %v2461_v57 }
 0x22f   : > { %v2163_v59 = vpop.f32.mrf.mxu2  ;;  %v1827_v62 = vpop.f32.mrf.mxu0 }
 0x230   : > { %v2332_v60 = vpop.f32.mrf.mxu3  ;;  %v2164_v61 = vadd.f32 %v2163_v59, %v1995_v58  ;;  %v1996_v63 = vpop.f32.mrf.mxu1 }
 0x231   : > { %v1997_v11 = vadd.f32 %v1996_v63, %v1827_v62  ;;  %v3378_v62 = vld [vmem:[%s4369_s12 + $0x2a0] sm:$0xf]  ;;  %v3770_v63 = vld [vmem:[%s4369_s12 + $0x2ac] sm:$0xf0] }
 0x232   : > { %v2333_v1 = vadd.f32 %v2332_v60, %v2164_v61  ;;  %v697_v60 = vld [vmem:[#allocation2 + $0x1e8] sm:$0xff]  ;;  %v3379_v10 = vor.u32 %v3770_v63, %v3378_v62  ;;  %v3412_v62 = vld [vmem:[%s4369_s12 + $0x2f0] sm:$0xf0] }
 0x233   : > { %v3418_v63 = vld [vmem:[%s4369_s12 + $0x2e8] sm:$0xf] }
 0x234   : > { %v2462_v4 = vadd.f32 %v2333_v1, %v693_v0  ;;  %v3768_v1 = vld [vmem:[%s4369_s12 + $0x2a4] sm:$0xf] }
 0x236   : > { %2526 = vst [vmem:[#allocation2 + $0x80] sm:$0xff] %v2462_v4  ;;  %v3771_v4 = vld [vmem:[%s4369_s12 + $0x2b4] sm:$0xf0] }
 0x237   : > { %v2165_v12 = vpop.f32.mrf.mxu2  ;;  %v1830_v17 = vpop.f32.mrf.mxu0 }
 0x238   : > { %v2334_v13 = vpop.f32.mrf.mxu3  ;;  %v2166_v16 = vadd.f32 %v2165_v12, %v1997_v11  ;;  %v1999_v18 = vpop.f32.mrf.mxu1  ;;  %v3383_v11 = vor.u32 %v3768_v1, %v3380_v2  ;;  %v3777_v1 = vld [vmem:[%s4369_s12 + $0x2ec] sm:$0xf]  ;;  %v3420_v2 = vld [vmem:[%s4369_s12 + $0x2f8] sm:$0xf0] }
 0x239   : > { %v2000_v24 = vadd.f32 %v1999_v18, %v1830_v17  ;;  %v698_v17 = vld [vmem:[#allocation2 + $0xf8] sm:$0xff] }
 0x23a   : > { %v2335_v22 = vadd.f32 %v2334_v13, %v2166_v16  ;;  %1869 = vmatmul.bf16.gmra.mxu0 %v3347_v14  ;;  %v3391_v16 = vor.u32 %v3769_v5, %v3388_v6 }
 0x23b   : > { %2038 = vmatmul.bf16.gmra.mxu1 %v3351_v15  ;;  %v3387_v15 = vor.u32 %v3771_v4, %v3386_v3 }
 0x23c   : > { %v2463_v23 = vadd.f32 %v2335_v22, %v694_v21  ;;  %2207 = vmatmul.bf16.gmra.mxu2 %v3355_v19 }
 0x23d   : > { %2376 = vmatmul.bf16.gmra.mxu3 %v3359_v20 }
 0x23e   : > { %2527 = vst [vmem:[#allocation2 + $0x1a8] sm:$0xff] %v2463_v23 }
 0x23f   : > { %v2168_v25 = vpop.f32.mrf.mxu2  ;;  %v1832_v28 = vpop.f32.mrf.mxu0 }
 0x240   : > { %v2337_v26 = vpop.f32.mrf.mxu3  ;;  %v2169_v27 = vadd.f32 %v2168_v25, %v2000_v24  ;;  %v2001_v29 = vpop.f32.mrf.mxu1 }
 0x241   : > { %v2002_v41 = vadd.f32 %v2001_v29, %v1832_v28  ;;  %v3394_v28 = vld [vmem:[%s4369_s12 + $0x2c0] sm:$0xf]  ;;  %v3774_v29 = vld [vmem:[%s4369_s12 + $0x2cc] sm:$0xf0] }
 0x242   : > { %v2338_v31 = vadd.f32 %v2337_v26, %v2169_v27  ;;  %v699_v26 = vld [vmem:[#allocation2 + $0x160] sm:$0xff]  ;;  %v3395_v40 = vor.u32 %v3774_v29, %v3394_v28  ;;  %v3428_v28 = vld [vmem:[%s4369_s12 + $0x310] sm:$0xf0]  ;;  %v3434_v29 = vld [vmem:[%s4369_s12 + $0x308] sm:$0xf] }
 0x244   : > { %v2464_v34 = vadd.f32 %v2338_v31, %v695_v30  ;;  %v3772_v31 = vld [vmem:[%s4369_s12 + $0x2c4] sm:$0xf] }
 0x246   : > { %2528 = vst [vmem:[#allocation2 + $0x1b8] sm:$0xff] %v2464_v34  ;;  %v3775_v34 = vld [vmem:[%s4369_s12 + $0x2d4] sm:$0xf0] }
 0x247   : > { %v2170_v42 = vpop.f32.mrf.mxu2  ;;  %v1835_v47 = vpop.f32.mrf.mxu0 }
 0x248   : > { %v2339_v43 = vpop.f32.mrf.mxu3  ;;  %v2171_v46 = vadd.f32 %v2170_v42, %v2002_v41  ;;  %v2004_v48 = vpop.f32.mrf.mxu1  ;;  %v3399_v41 = vor.u32 %v3772_v31, %v3396_v32  ;;  %v3781_v31 = vld [vmem:[%s4369_s12 + $0x30c] sm:$0xf]  ;;  %v3436_v32 = vld [vmem:[%s4369_s12 + $0x318] sm:$0xf0] }
 0x249   : > { %v2005_v54 = vadd.f32 %v2004_v48, %v1835_v47  ;;  %v700_v47 = vld [vmem:[#allocation2 + $0x30] sm:$0xff] }
 0x24a   : > { %v2340_v52 = vadd.f32 %v2339_v43, %v2171_v46  ;;  %1874 = vmatmul.bf16.gmra.mxu0 %v3363_v44  ;;  %v3407_v46 = vor.u32 %v3773_v35, %v3404_v36 }
 0x24b   : > { %2043 = vmatmul.bf16.gmra.mxu1 %v3367_v45  ;;  %v3403_v45 = vor.u32 %v3775_v34, %v3402_v33 }
 0x24c   : > { %v2465_v53 = vadd.f32 %v2340_v52, %v696_v51  ;;  %2212 = vmatmul.bf16.gmra.mxu2 %v3371_v49 }
 0x24d   : > { %2381 = vmatmul.bf16.gmra.mxu3 %v3375_v50 }
 0x24e   : > { %2529 = vst [vmem:[#allocation2 + $0x28] sm:$0xff] %v2465_v53 }
 0x24f   : > { %v2173_v55 = vpop.f32.mrf.mxu2  ;;  %v1837_v58 = vpop.f32.mrf.mxu0 }
 0x250   : > { %v2342_v56 = vpop.f32.mrf.mxu3  ;;  %v2174_v57 = vadd.f32 %v2173_v55, %v2005_v54  ;;  %v2006_v59 = vpop.f32.mrf.mxu1 }
 0x251   : > { %v2007_v7 = vadd.f32 %v2006_v59, %v1837_v58  ;;  %v3410_v58 = vld [vmem:[%s4369_s12 + $0x2e0] sm:$0xf]  ;;  %v3778_v59 = vld [vmem:[%s4369_s12 + $0x2ec] sm:$0xf0] }
 0x252   : > { %v2343_v61 = vadd.f32 %v2342_v56, %v2174_v57  ;;  %v701_v56 = vld [vmem:[#allocation2 + $0x1e0] sm:$0xff]  ;;  %v3411_v6 = vor.u32 %v3778_v59, %v3410_v58  ;;  %v3444_v58 = vld [vmem:[%s4369_s12 + $0x330] sm:$0xf0]  ;;  %v3450_v59 = vld [vmem:[%s4369_s12 + $0x328] sm:$0xf] }
 0x254   : > { %v2466_v0 = vadd.f32 %v2343_v61, %v697_v60  ;;  %v3776_v61 = vld [vmem:[%s4369_s12 + $0x2e4] sm:$0xf] }
 0x256   : > { %2530 = vst [vmem:[#allocation2 + $0x1e8] sm:$0xff] %v2466_v0  ;;  %v3779_v0 = vld [vmem:[%s4369_s12 + $0x2f4] sm:$0xf0] }
 0x257   : > { %v2175_v8 = vpop.f32.mrf.mxu2  ;;  %v1840_v13 = vpop.f32.mrf.mxu0 }
 0x258   : > { %v2344_v9 = vpop.f32.mrf.mxu3  ;;  %v2176_v12 = vadd.f32 %v2175_v8, %v2007_v7  ;;  %v2009_v14 = vpop.f32.mrf.mxu1  ;;  %v3415_v7 = vor.u32 %v3776_v61, %v3412_v62  ;;  %v3785_v61 = vld [vmem:[%s4369_s12 + $0x32c] sm:$0xf]  ;;  %v3452_v62 = vld [vmem:[%s4369_s12 + $0x338] sm:$0xf0] }
 0x259   : > { %v2010_v20 = vadd.f32 %v2009_v14, %v1840_v13  ;;  %v702_v13 = vld [vmem:[#allocation2] sm:$0xff] }
 0x25a   : > { %v2345_v18 = vadd.f32 %v2344_v9, %v2176_v12  ;;  %1879 = vmatmul.bf16.gmra.mxu0 %v3379_v10  ;;  %v3423_v12 = vor.u32 %v3777_v1, %v3420_v2 }
 0x25b   : > { %2048 = vmatmul.bf16.gmra.mxu1 %v3383_v11  ;;  %v3419_v11 = vor.u32 %v3779_v0, %v3418_v63 }
 0x25c   : > { %v2467_v19 = vadd.f32 %v2345_v18, %v698_v17  ;;  %2217 = vmatmul.bf16.gmra.mxu2 %v3387_v15 }
 0x25d   : > { %2386 = vmatmul.bf16.gmra.mxu3 %v3391_v16 }
 0x25e   : > { %2531 = vst [vmem:[#allocation2 + $0xf8] sm:$0xff] %v2467_v19 }
 0x25f   : > { %v2178_v21 = vpop.f32.mrf.mxu2  ;;  %v1842_v24 = vpop.f32.mrf.mxu0 }
 0x260   : > { %v2347_v22 = vpop.f32.mrf.mxu3  ;;  %v2179_v23 = vadd.f32 %v2178_v21, %v2010_v20  ;;  %v2011_v25 = vpop.f32.mrf.mxu1 }
 0x261   : > { %v2012_v37 = vadd.f32 %v2011_v25, %v1842_v24  ;;  %v3426_v24 = vld [vmem:[%s4369_s12 + $0x300] sm:$0xf]  ;;  %v3782_v25 = vld [vmem:[%s4369_s12 + $0x30c] sm:$0xf0] }
 0x262   : > { %v2348_v27 = vadd.f32 %v2347_v22, %v2179_v23  ;;  %v703_v22 = vld [vmem:[#allocation2 + $0xf0] sm:$0xff]  ;;  %v3427_v36 = vor.u32 %v3782_v25, %v3426_v24  ;;  %v3466_v25 = vld [vmem:[%s4369_s12 + $0x348] sm:$0xf] }
 0x263   : > { %v3460_v24 = vld [vmem:[%s4369_s12 + $0x350] sm:$0xf0] }
 0x264   : > { %v2468_v30 = vadd.f32 %v2348_v27, %v699_v26  ;;  %v3780_v27 = vld [vmem:[%s4369_s12 + $0x304] sm:$0xf] }
 0x266   : > { %2532 = vst [vmem:[#allocation2 + $0x160] sm:$0xff] %v2468_v30  ;;  %v3783_v30 = vld [vmem:[%s4369_s12 + $0x314] sm:$0xf0] }
 0x267   : > { %v2180_v38 = vpop.f32.mrf.mxu2  ;;  %v1845_v43 = vpop.f32.mrf.mxu0 }
 0x268   : > { %v2349_v39 = vpop.f32.mrf.mxu3  ;;  %v2181_v42 = vadd.f32 %v2180_v38, %v2012_v37  ;;  %v2014_v44 = vpop.f32.mrf.mxu1  ;;  %v3431_v37 = vor.u32 %v3780_v27, %v3428_v28  ;;  %v3789_v27 = vld [vmem:[%s4369_s12 + $0x34c] sm:$0xf]  ;;  %v3468_v28 = vld [vmem:[%s4369_s12 + $0x358] sm:$0xf0] }
 0x269   : > { %v2015_v50 = vadd.f32 %v2014_v44, %v1845_v43  ;;  %v704_v43 = vld [vmem:[#allocation2 + $0x8] sm:$0xff] }
 0x26a   : > { %v2350_v48 = vadd.f32 %v2349_v39, %v2181_v42  ;;  %1884 = vmatmul.bf16.gmra.mxu0 %v3395_v40  ;;  %v3439_v42 = vor.u32 %v3781_v31, %v3436_v32 }
 0x26b   : > { %2053 = vmatmul.bf16.gmra.mxu1 %v3399_v41  ;;  %v3435_v41 = vor.u32 %v3783_v30, %v3434_v29 }
 0x26c   : > { %v2469_v49 = vadd.f32 %v2350_v48, %v700_v47  ;;  %2222 = vmatmul.bf16.gmra.mxu2 %v3403_v45 }
 0x26d   : > { %2391 = vmatmul.bf16.gmra.mxu3 %v3407_v46 }
 0x26e   : > { %2533 = vst [vmem:[#allocation2 + $0x30] sm:$0xff] %v2469_v49 }
 0x26f   : > { %v2183_v51 = vpop.f32.mrf.mxu2  ;;  %v1847_v54 = vpop.f32.mrf.mxu0 }
 0x270   : > { %v2352_v52 = vpop.f32.mrf.mxu3  ;;  %v2184_v53 = vadd.f32 %v2183_v51, %v2015_v50  ;;  %v2016_v55 = vpop.f32.mrf.mxu1 }
 0x271   : > { %v2017_v3 = vadd.f32 %v2016_v55, %v1847_v54  ;;  %v3442_v54 = vld [vmem:[%s4369_s12 + $0x320] sm:$0xf]  ;;  %v3786_v55 = vld [vmem:[%s4369_s12 + $0x32c] sm:$0xf0] }
 0x272   : > { %v2353_v57 = vadd.f32 %v2352_v52, %v2184_v53  ;;  %v705_v52 = vld [vmem:[#allocation2 + $0x148] sm:$0xff]  ;;  %v3443_v2 = vor.u32 %v3786_v55, %v3442_v54  ;;  %v3476_v54 = vld [vmem:[%s4369_s12 + $0x370] sm:$0xf0] }
 0x273   : > { %v3482_v55 = vld [vmem:[%s4369_s12 + $0x368] sm:$0xf] }
 0x274   : > { %v2470_v60 = vadd.f32 %v2353_v57, %v701_v56  ;;  %v3784_v57 = vld [vmem:[%s4369_s12 + $0x324] sm:$0xf] }
 0x276   : > { %2534 = vst [vmem:[#allocation2 + $0x1e0] sm:$0xff] %v2470_v60  ;;  %v3787_v60 = vld [vmem:[%s4369_s12 + $0x334] sm:$0xf0] }
 0x277   : > { %v2185_v4 = vpop.f32.mrf.mxu2  ;;  %v1850_v9 = vpop.f32.mrf.mxu0 }
 0x278   : > { %v2354_v5 = vpop.f32.mrf.mxu3  ;;  %v2186_v8 = vadd.f32 %v2185_v4, %v2017_v3  ;;  %v2019_v10 = vpop.f32.mrf.mxu1  ;;  %v3447_v3 = vor.u32 %v3784_v57, %v3444_v58  ;;  %v3793_v57 = vld [vmem:[%s4369_s12 + $0x36c] sm:$0xf]  ;;  %v3484_v58 = vld [vmem:[%s4369_s12 + $0x378] sm:$0xf0] }
 0x279   : > { %v2020_v16 = vadd.f32 %v2019_v10, %v1850_v9  ;;  %v706_v9 = vld [vmem:[#allocation2 + $0x1d0] sm:$0xff] }
 0x27a   : > { %v2355_v14 = vadd.f32 %v2354_v5, %v2186_v8  ;;  %1889 = vmatmul.bf16.gmra.mxu0 %v3411_v6  ;;  %v3455_v8 = vor.u32 %v3785_v61, %v3452_v62 }
 0x27b   : > { %2058 = vmatmul.bf16.gmra.mxu1 %v3415_v7  ;;  %v3451_v7 = vor.u32 %v3787_v60, %v3450_v59 }
 0x27c   : > { %v2471_v15 = vadd.f32 %v2355_v14, %v702_v13  ;;  %2227 = vmatmul.bf16.gmra.mxu2 %v3419_v11 }
 0x27d   : > { %2396 = vmatmul.bf16.gmra.mxu3 %v3423_v12 }
 0x27e   : > { %2535 = vst [vmem:[#allocation2] sm:$0xff] %v2471_v15 }
 0x27f   : > { %v2188_v17 = vpop.f32.mrf.mxu2  ;;  %v1852_v20 = vpop.f32.mrf.mxu0 }
 0x280   : > { %v2357_v18 = vpop.f32.mrf.mxu3  ;;  %v2189_v19 = vadd.f32 %v2188_v17, %v2020_v16  ;;  %v2021_v21 = vpop.f32.mrf.mxu1 }
 0x281   : > { %v2022_v33 = vadd.f32 %v2021_v21, %v1852_v20  ;;  %v3458_v20 = vld [vmem:[%s4369_s12 + $0x340] sm:$0xf]  ;;  %v3790_v21 = vld [vmem:[%s4369_s12 + $0x34c] sm:$0xf0] }
 0x282   : > { %v2358_v23 = vadd.f32 %v2357_v18, %v2189_v19  ;;  %v707_v18 = vld [vmem:[#allocation2 + $0x100] sm:$0xff]  ;;  %v3459_v32 = vor.u32 %v3790_v21, %v3458_v20  ;;  %v3492_v20 = vld [vmem:[%s4369_s12 + $0x390] sm:$0xf0]  ;;  %v3498_v21 = vld [vmem:[%s4369_s12 + $0x388] sm:$0xf] }
 0x284   : > { %v2472_v26 = vadd.f32 %v2358_v23, %v703_v22  ;;  %v3788_v23 = vld [vmem:[%s4369_s12 + $0x344] sm:$0xf] }
 0x286   : > { %2536 = vst [vmem:[#allocation2 + $0xf0] sm:$0xff] %v2472_v26  ;;  %v3791_v26 = vld [vmem:[%s4369_s12 + $0x354] sm:$0xf0] }
 0x287   : > { %v2190_v34 = vpop.f32.mrf.mxu2  ;;  %v1855_v39 = vpop.f32.mrf.mxu0 }
 0x288   : > { %v2359_v35 = vpop.f32.mrf.mxu3  ;;  %v2191_v38 = vadd.f32 %v2190_v34, %v2022_v33  ;;  %v2024_v40 = vpop.f32.mrf.mxu1  ;;  %v3463_v33 = vor.u32 %v3788_v23, %v3460_v24  ;;  %v3797_v23 = vld [vmem:[%s4369_s12 + $0x38c] sm:$0xf]  ;;  %v3500_v24 = vld [vmem:[%s4369_s12 + $0x398] sm:$0xf0] }
 0x289   : > { %v2025_v46 = vadd.f32 %v2024_v40, %v1855_v39  ;;  %v708_v39 = vld [vmem:[#allocation2 + $0xc8] sm:$0xff] }
 0x28a   : > { %v2360_v44 = vadd.f32 %v2359_v35, %v2191_v38  ;;  %1894 = vmatmul.bf16.gmra.mxu0 %v3427_v36  ;;  %v3471_v38 = vor.u32 %v3789_v27, %v3468_v28 }
 0x28b   : > { %2063 = vmatmul.bf16.gmra.mxu1 %v3431_v37  ;;  %v3467_v37 = vor.u32 %v3791_v26, %v3466_v25 }
 0x28c   : > { %v2473_v45 = vadd.f32 %v2360_v44, %v704_v43  ;;  %2232 = vmatmul.bf16.gmra.mxu2 %v3435_v41 }
 0x28d   : > { %2401 = vmatmul.bf16.gmra.mxu3 %v3439_v42 }
 0x28e   : > { %2537 = vst [vmem:[#allocation2 + $0x8] sm:$0xff] %v2473_v45 }
 0x28f   : > { %v2193_v47 = vpop.f32.mrf.mxu2  ;;  %v1857_v50 = vpop.f32.mrf.mxu0 }
 0x290   : > { %v2362_v48 = vpop.f32.mrf.mxu3  ;;  %v2194_v49 = vadd.f32 %v2193_v47, %v2025_v46  ;;  %v2026_v51 = vpop.f32.mrf.mxu1 }
 0x291   : > { %v2027_v63 = vadd.f32 %v2026_v51, %v1857_v50  ;;  %v3474_v50 = vld [vmem:[%s4369_s12 + $0x360] sm:$0xf]  ;;  %v3794_v51 = vld [vmem:[%s4369_s12 + $0x36c] sm:$0xf0] }
 0x292   : > { %v2363_v53 = vadd.f32 %v2362_v48, %v2194_v49  ;;  %v709_v48 = vld [vmem:[#allocation2 + $0x40] sm:$0xff]  ;;  %v3475_v62 = vor.u32 %v3794_v51, %v3474_v50  ;;  %v3508_v50 = vld [vmem:[%s4369_s12 + $0x3b0] sm:$0xf0]  ;;  %v3514_v51 = vld [vmem:[%s4369_s12 + $0x3a8] sm:$0xf] }
 0x294   : > { %v2474_v56 = vadd.f32 %v2363_v53, %v705_v52  ;;  %v3792_v53 = vld [vmem:[%s4369_s12 + $0x364] sm:$0xf] }
 0x296   : > { %2538 = vst [vmem:[#allocation2 + $0x148] sm:$0xff] %v2474_v56  ;;  %v3795_v56 = vld [vmem:[%s4369_s12 + $0x374] sm:$0xf0] }
 0x297   : > { %v2195_v0 = vpop.f32.mrf.mxu2  ;;  %v1860_v5 = vpop.f32.mrf.mxu0 }
 0x298   : > { %v2364_v1 = vpop.f32.mrf.mxu3  ;;  %v2196_v4 = vadd.f32 %v2195_v0, %v2027_v63  ;;  %v2029_v6 = vpop.f32.mrf.mxu1  ;;  %v3479_v63 = vor.u32 %v3792_v53, %v3476_v54  ;;  %v3801_v53 = vld [vmem:[%s4369_s12 + $0x3ac] sm:$0xf]  ;;  %v3516_v54 = vld [vmem:[%s4369_s12 + $0x3b8] sm:$0xf0] }
 0x299   : > { %v2030_v12 = vadd.f32 %v2029_v6, %v1860_v5  ;;  %v710_v5 = vld [vmem:[#allocation2 + $0x1f8] sm:$0xff] }
 0x29a   : > { %v2365_v10 = vadd.f32 %v2364_v1, %v2196_v4  ;;  %1899 = vmatmul.bf16.gmra.mxu0 %v3443_v2  ;;  %v3487_v4 = vor.u32 %v3793_v57, %v3484_v58 }
 0x29b   : > { %2068 = vmatmul.bf16.gmra.mxu1 %v3447_v3  ;;  %v3483_v3 = vor.u32 %v3795_v56, %v3482_v55 }
 0x29c   : > { %v2475_v11 = vadd.f32 %v2365_v10, %v706_v9  ;;  %2237 = vmatmul.bf16.gmra.mxu2 %v3451_v7 }
 0x29d   : > { %2406 = vmatmul.bf16.gmra.mxu3 %v3455_v8 }
 0x29e   : > { %2539 = vst [vmem:[#allocation2 + $0x1d0] sm:$0xff] %v2475_v11 }
 0x29f   : > { %v2198_v13 = vpop.f32.mrf.mxu2  ;;  %v1862_v16 = vpop.f32.mrf.mxu0 }
 0x2a0   : > { %v2367_v14 = vpop.f32.mrf.mxu3  ;;  %v2199_v15 = vadd.f32 %v2198_v13, %v2030_v12  ;;  %v2031_v17 = vpop.f32.mrf.mxu1 }
 0x2a1   : > { %v2032_v29 = vadd.f32 %v2031_v17, %v1862_v16  ;;  %v3490_v16 = vld [vmem:[%s4369_s12 + $0x380] sm:$0xf]  ;;  %v3798_v17 = vld [vmem:[%s4369_s12 + $0x38c] sm:$0xf0] }
 0x2a2   : > { %v2368_v19 = vadd.f32 %v2367_v14, %v2199_v15  ;;  %v711_v14 = vld [vmem:[#allocation2 + $0x20] sm:$0xff]  ;;  %v3491_v28 = vor.u32 %v3798_v17, %v3490_v16  ;;  %v3524_v16 = vld [vmem:[%s4369_s12 + $0x3d0] sm:$0xf0]  ;;  %v3530_v17 = vld [vmem:[%s4369_s12 + $0x3c8] sm:$0xf] }
 0x2a4   : > { %v2476_v22 = vadd.f32 %v2368_v19, %v707_v18  ;;  %v3796_v19 = vld [vmem:[%s4369_s12 + $0x384] sm:$0xf] }
 0x2a6   : > { %2540 = vst [vmem:[#allocation2 + $0x100] sm:$0xff] %v2476_v22  ;;  %v3799_v22 = vld [vmem:[%s4369_s12 + $0x394] sm:$0xf0] }
 0x2a7   : > { %v2200_v30 = vpop.f32.mrf.mxu2  ;;  %v1865_v35 = vpop.f32.mrf.mxu0 }
 0x2a8   : > { %v2369_v31 = vpop.f32.mrf.mxu3  ;;  %v2201_v34 = vadd.f32 %v2200_v30, %v2032_v29  ;;  %v2034_v36 = vpop.f32.mrf.mxu1  ;;  %v3495_v29 = vor.u32 %v3796_v19, %v3492_v20  ;;  %v3805_v19 = vld [vmem:[%s4369_s12 + $0x3cc] sm:$0xf]  ;;  %v3532_v20 = vld [vmem:[%s4369_s12 + $0x3d8] sm:$0xf0] }
 0x2a9   : > { %v2035_v42 = vadd.f32 %v2034_v36, %v1865_v35  ;;  %v712_v35 = vld [vmem:[#allocation2 + $0x128] sm:$0xff] }
 0x2aa   : > { %v2370_v40 = vadd.f32 %v2369_v31, %v2201_v34  ;;  %1904 = vmatmul.bf16.gmra.mxu0 %v3459_v32  ;;  %v3503_v34 = vor.u32 %v3797_v23, %v3500_v24 }
 0x2ab   : > { %2073 = vmatmul.bf16.gmra.mxu1 %v3463_v33  ;;  %v3499_v33 = vor.u32 %v3799_v22, %v3498_v21 }
 0x2ac   : > { %v2477_v41 = vadd.f32 %v2370_v40, %v708_v39  ;;  %2242 = vmatmul.bf16.gmra.mxu2 %v3467_v37 }
 0x2ad   : > { %2411 = vmatmul.bf16.gmra.mxu3 %v3471_v38 }
 0x2ae   : > { %2541 = vst [vmem:[#allocation2 + $0xc8] sm:$0xff] %v2477_v41 }
 0x2af   : > { %v2203_v43 = vpop.f32.mrf.mxu2  ;;  %v1867_v46 = vpop.f32.mrf.mxu0 }
 0x2b0   : > { %v2372_v44 = vpop.f32.mrf.mxu3  ;;  %v2204_v45 = vadd.f32 %v2203_v43, %v2035_v42  ;;  %v2036_v47 = vpop.f32.mrf.mxu1 }
 0x2b1   : > { %v2037_v59 = vadd.f32 %v2036_v47, %v1867_v46  ;;  %v3506_v46 = vld [vmem:[%s4369_s12 + $0x3a0] sm:$0xf]  ;;  %v3802_v47 = vld [vmem:[%s4369_s12 + $0x3ac] sm:$0xf0] }
 0x2b2   : > { %v2373_v49 = vadd.f32 %v2372_v44, %v2204_v45  ;;  %v713_v44 = vld [vmem:[#allocation2 + $0x1a0] sm:$0xff]  ;;  %v3507_v58 = vor.u32 %v3802_v47, %v3506_v46  ;;  %v3540_v46 = vld [vmem:[%s4369_s12 + $0x3f0] sm:$0xf0]  ;;  %v3546_v47 = vld [vmem:[%s4369_s12 + $0x3e8] sm:$0xf] }
 0x2b4   : > { %v2478_v52 = vadd.f32 %v2373_v49, %v709_v48  ;;  %v3800_v49 = vld [vmem:[%s4369_s12 + $0x3a4] sm:$0xf] }
 0x2b6   : > { %2542 = vst [vmem:[#allocation2 + $0x40] sm:$0xff] %v2478_v52  ;;  %v3803_v52 = vld [vmem:[%s4369_s12 + $0x3b4] sm:$0xf0] }
 0x2b7   : > { %v2205_v60 = vpop.f32.mrf.mxu2  ;;  %v1870_v1 = vpop.f32.mrf.mxu0 }
 0x2b8   : > { %v2374_v61 = vpop.f32.mrf.mxu3  ;;  %v2206_v0 = vadd.f32 %v2205_v60, %v2037_v59  ;;  %v2039_v2 = vpop.f32.mrf.mxu1  ;;  %v3511_v59 = vor.u32 %v3800_v49, %v3508_v50  ;;  %v3809_v49 = vld [vmem:[%s4369_s12 + $0x3ec] sm:$0xf]  ;;  %v3548_v50 = vld [vmem:[%s4369_s12 + $0x3f8] sm:$0xf0] }
 0x2b9   : > { %v2040_v8 = vadd.f32 %v2039_v2, %v1870_v1  ;;  %v714_v1 = vld [vmem:[#allocation2 + $0x1f0] sm:$0xff] }
 0x2ba   : > { %v2375_v6 = vadd.f32 %v2374_v61, %v2206_v0  ;;  %1909 = vmatmul.bf16.gmra.mxu0 %v3475_v62  ;;  %v3519_v0 = vor.u32 %v3801_v53, %v3516_v54 }
 0x2bb   : > { %2078 = vmatmul.bf16.gmra.mxu1 %v3479_v63  ;;  %v3515_v63 = vor.u32 %v3803_v52, %v3514_v51 }
 0x2bc   : > { %v2479_v7 = vadd.f32 %v2375_v6, %v710_v5  ;;  %2247 = vmatmul.bf16.gmra.mxu2 %v3483_v3 }
 0x2bd   : > { %2416 = vmatmul.bf16.gmra.mxu3 %v3487_v4 }
 0x2be   : > { %2543 = vst [vmem:[#allocation2 + $0x1f8] sm:$0xff] %v2479_v7 }
 0x2bf   : > { %v2208_v9 = vpop.f32.mrf.mxu2  ;;  %v1872_v12 = vpop.f32.mrf.mxu0 }
 0x2c0   : > { %v2377_v10 = vpop.f32.mrf.mxu3  ;;  %v2209_v11 = vadd.f32 %v2208_v9, %v2040_v8  ;;  %v2041_v13 = vpop.f32.mrf.mxu1 }
 0x2c1   : > { %v2042_v25 = vadd.f32 %v2041_v13, %v1872_v12  ;;  %v3522_v12 = vld [vmem:[%s4369_s12 + $0x3c0] sm:$0xf]  ;;  %v3806_v13 = vld [vmem:[%s4369_s12 + $0x3cc] sm:$0xf0] }
 0x2c2   : > { %v2378_v15 = vadd.f32 %v2377_v10, %v2209_v11  ;;  %v715_v10 = vld [vmem:[#allocation2 + $0xe8] sm:$0xff]  ;;  %v3523_v24 = vor.u32 %v3806_v13, %v3522_v12 }
 0x2c4   : > { %v2480_v18 = vadd.f32 %v2378_v15, %v711_v14  ;;  %v3804_v15 = vld [vmem:[%s4369_s12 + $0x3c4] sm:$0xf] }
 0x2c6   : > { %2544 = vst [vmem:[#allocation2 + $0x20] sm:$0xff] %v2480_v18  ;;  %v3807_v18 = vld [vmem:[%s4369_s12 + $0x3d4] sm:$0xf0] }
 0x2c7   : > { %v2210_v26 = vpop.f32.mrf.mxu2  ;;  %v1875_v31 = vpop.f32.mrf.mxu0 }
 0x2c8   : > { %v2379_v27 = vpop.f32.mrf.mxu3  ;;  %v2211_v30 = vadd.f32 %v2210_v26, %v2042_v25  ;;  %v2044_v32 = vpop.f32.mrf.mxu1  ;;  %v3527_v25 = vor.u32 %v3804_v15, %v3524_v16  ;;  %v720_v15 = vld [vmem:[#allocation2 + $0xd0] sm:$0xff] }
 0x2c9   : > { %v2045_v38 = vadd.f32 %v2044_v32, %v1875_v31  ;;  %v716_v31 = vld [vmem:[#allocation2 + $0x78] sm:$0xff] }
 0x2ca   : > { %v2380_v36 = vadd.f32 %v2379_v27, %v2211_v30  ;;  %1914 = vmatmul.bf16.gmra.mxu0 %v3491_v28  ;;  %v3535_v30 = vor.u32 %v3805_v19, %v3532_v20 }
 0x2cb   : > { %2083 = vmatmul.bf16.gmra.mxu1 %v3495_v29  ;;  %v3531_v29 = vor.u32 %v3807_v18, %v3530_v17 }
 0x2cc   : > { %v2481_v37 = vadd.f32 %v2380_v36, %v712_v35  ;;  %2252 = vmatmul.bf16.gmra.mxu2 %v3499_v33 }
 0x2cd   : > { %2421 = vmatmul.bf16.gmra.mxu3 %v3503_v34 }
 0x2ce   : > { %2545 = vst [vmem:[#allocation2 + $0x128] sm:$0xff] %v2481_v37 }
 0x2cf   : > { %v2213_v39 = vpop.f32.mrf.mxu2  ;;  %v1877_v42 = vpop.f32.mrf.mxu0 }
 0x2d0   : > { %v2382_v40 = vpop.f32.mrf.mxu3  ;;  %v2214_v41 = vadd.f32 %v2213_v39, %v2045_v38  ;;  %v2046_v43 = vpop.f32.mrf.mxu1 }
 0x2d1   : > { %v2047_v55 = vadd.f32 %v2046_v43, %v1877_v42  ;;  %v3538_v42 = vld [vmem:[%s4369_s12 + $0x3e0] sm:$0xf]  ;;  %v3810_v43 = vld [vmem:[%s4369_s12 + $0x3ec] sm:$0xf0] }
 0x2d2   : > { %v2383_v45 = vadd.f32 %v2382_v40, %v2214_v41  ;;  %v717_v40 = vld [vmem:[#allocation2 + $0x70] sm:$0xff]  ;;  %v3539_v54 = vor.u32 %v3810_v43, %v3538_v42  ;;  %v723_v42 = vld [vmem:[#allocation2 + $0xa8] sm:$0xff] }
 0x2d4   : > { %v2482_v48 = vadd.f32 %v2383_v45, %v713_v44  ;;  %v3808_v45 = vld [vmem:[%s4369_s12 + $0x3e4] sm:$0xf] }
 0x2d6   : > { %2546 = vst [vmem:[#allocation2 + $0x1a0] sm:$0xff] %v2482_v48  ;;  %v3811_v48 = vld [vmem:[%s4369_s12 + $0x3f4] sm:$0xf0] }
 0x2d7   : > { %v2215_v56 = vpop.f32.mrf.mxu2  ;;  %v1880_v61 = vpop.f32.mrf.mxu0 }
 0x2d8   : > { %v2384_v57 = vpop.f32.mrf.mxu3  ;;  %v2216_v60 = vadd.f32 %v2215_v56, %v2047_v55  ;;  %v2049_v62 = vpop.f32.mrf.mxu1  ;;  %v3543_v55 = vor.u32 %v3808_v45, %v3540_v46 }
 0x2d9   : > { %v2050_v4 = vadd.f32 %v2049_v62, %v1880_v61  ;;  %v718_v61 = vld [vmem:[#allocation2 + $0x90] sm:$0xff] }
 0x2da   : > { %v2385_v2 = vadd.f32 %v2384_v57, %v2216_v60  ;;  %1919 = vmatmul.bf16.gmra.mxu0 %v3507_v58  ;;  %v3551_v60 = vor.u32 %v3809_v49, %v3548_v50 }
 0x2db   : > { %2088 = vmatmul.bf16.gmra.mxu1 %v3511_v59  ;;  %v3547_v59 = vor.u32 %v3811_v48, %v3546_v47 }
 0x2dc   : > { %v2483_v3 = vadd.f32 %v2385_v2, %v714_v1  ;;  %2257 = vmatmul.bf16.gmra.mxu2 %v3515_v63 }
 0x2dd   : > { %2426 = vmatmul.bf16.gmra.mxu3 %v3519_v0 }
 0x2de   : > { %2547 = vst [vmem:[#allocation2 + $0x1f0] sm:$0xff] %v2483_v3 }
 0x2df   : > { %v2218_v5 = vpop.f32.mrf.mxu2  ;;  %v1882_v8 = vpop.f32.mrf.mxu0 }
 0x2e0   : > { %v2387_v6 = vpop.f32.mrf.mxu3  ;;  %v2219_v7 = vadd.f32 %v2218_v5, %v2050_v4  ;;  %v2051_v9 = vpop.f32.mrf.mxu1 }
 0x2e1   : > { %v2052_v21 = vadd.f32 %v2051_v9, %v1882_v8 }
 0x2e2   : > { %v2388_v11 = vadd.f32 %v2387_v6, %v2219_v7  ;;  %v719_v6 = vld [vmem:[#allocation2 + $0x1d8] sm:$0xff] }
 0x2e4   : > { %v2484_v14 = vadd.f32 %v2388_v11, %v715_v10 }
 0x2e6   : > { %2548 = vst [vmem:[#allocation2 + $0xe8] sm:$0xff] %v2484_v14 }
 0x2e7   : > { %v2220_v22 = vpop.f32.mrf.mxu2  ;;  %v1885_v27 = vpop.f32.mrf.mxu0 }
 0x2e8   : > { %v2389_v23 = vpop.f32.mrf.mxu3  ;;  %v2221_v26 = vadd.f32 %v2220_v22, %v2052_v21  ;;  %v2054_v28 = vpop.f32.mrf.mxu1 }
 0x2e9   : > { %v2055_v34 = vadd.f32 %v2054_v28, %v1885_v27 }
 0x2ea   : > { %v2390_v32 = vadd.f32 %v2389_v23, %v2221_v26  ;;  %1924 = vmatmul.bf16.gmra.mxu0 %v3523_v24  ;;  %v721_v24 = vld [vmem:[#allocation2 + $0xb8] sm:$0xff] }
 0x2eb   : > { %2093 = vmatmul.bf16.gmra.mxu1 %v3527_v25 }
 0x2ec   : > { %v2485_v33 = vadd.f32 %v2390_v32, %v716_v31  ;;  %2262 = vmatmul.bf16.gmra.mxu2 %v3531_v29 }
 0x2ed   : > { %2431 = vmatmul.bf16.gmra.mxu3 %v3535_v30 }
 0x2ee   : > { %2549 = vst [vmem:[#allocation2 + $0x78] sm:$0xff] %v2485_v33  ;;  %v722_v33 = vld [vmem:[#allocation2 + $0x88] sm:$0xff] }
 0x2ef   : > { %v2223_v35 = vpop.f32.mrf.mxu2  ;;  %v1887_v38 = vpop.f32.mrf.mxu0 }
 0x2f0   : > { %v2392_v36 = vpop.f32.mrf.mxu3  ;;  %v2224_v37 = vadd.f32 %v2223_v35, %v2055_v34  ;;  %v2056_v39 = vpop.f32.mrf.mxu1 }
 0x2f1   : > { %v2057_v51 = vadd.f32 %v2056_v39, %v1887_v38 }
 0x2f2   : > { %v2393_v41 = vadd.f32 %v2392_v36, %v2224_v37 }
 0x2f4   : > { %v2486_v44 = vadd.f32 %v2393_v41, %v717_v40 }
 0x2f6   : > { %2550 = vst [vmem:[#allocation2 + $0x70] sm:$0xff] %v2486_v44 }
 0x2f7   : > { %v2225_v52 = vpop.f32.mrf.mxu2  ;;  %v1890_v57 = vpop.f32.mrf.mxu0 }
 0x2f8   : > { %v2394_v53 = vpop.f32.mrf.mxu3  ;;  %v2226_v56 = vadd.f32 %v2225_v52, %v2057_v51  ;;  %v2059_v58 = vpop.f32.mrf.mxu1  ;;  %v724_v51 = vld [vmem:[#allocation2 + $0x1c8] sm:$0xff] }
 0x2f9   : > { %v2060_v0 = vadd.f32 %v2059_v58, %v1890_v57 }
 0x2fa   : > { %v2395_v62 = vadd.f32 %v2394_v53, %v2226_v56  ;;  %1929 = vmatmul.bf16.gmra.mxu0 %v3539_v54 }
 0x2fb   : > { %2098 = vmatmul.bf16.gmra.mxu1 %v3543_v55 }
 0x2fc   : > { %v2487_v63 = vadd.f32 %v2395_v62, %v718_v61  ;;  %2267 = vmatmul.bf16.gmra.mxu2 %v3547_v59 }
 0x2fd   : > { %2436 = vmatmul.bf16.gmra.mxu3 %v3551_v60  ;;  %v725_v60 = vld [vmem:[#allocation2 + $0x170] sm:$0xff] }
 0x2fe   : > { %2551 = vst [vmem:[#allocation2 + $0x90] sm:$0xff] %v2487_v63 }
 0x2ff   : > { %v2228_v1 = vpop.f32.mrf.mxu2  ;;  %v1892_v4 = vpop.f32.mrf.mxu0 }
 0x300   : > { %v2397_v2 = vpop.f32.mrf.mxu3  ;;  %v2229_v3 = vadd.f32 %v2228_v1, %v2060_v0  ;;  %v2061_v5 = vpop.f32.mrf.mxu1 }
 0x301   : > { %v2062_v9 = vadd.f32 %v2061_v5, %v1892_v4  ;;  %v726_v5 = vld [vmem:[#allocation2 + $0x178] sm:$0xff] }
 0x302   : > { %v2398_v7 = vadd.f32 %v2397_v2, %v2229_v3 }
 0x304   : > { %v2488_v8 = vadd.f32 %v2398_v7, %v719_v6 }
 0x306   : > { %2552 = vst [vmem:[#allocation2 + $0x1d8] sm:$0xff] %v2488_v8 }
 0x307   : > { %v2230_v10 = vpop.f32.mrf.mxu2  ;;  %v1895_v13 = vpop.f32.mrf.mxu0 }
 0x308   : > { %v2399_v11 = vpop.f32.mrf.mxu3  ;;  %v2231_v12 = vadd.f32 %v2230_v10, %v2062_v9  ;;  %v2064_v14 = vpop.f32.mrf.mxu1 }
 0x309   : > { %v2065_v18 = vadd.f32 %v2064_v14, %v1895_v13  ;;  %v727_v14 = vld [vmem:[#allocation2 + $0x68] sm:$0xff] }
 0x30a   : > { %v2400_v16 = vadd.f32 %v2399_v11, %v2231_v12 }
 0x30c   : > { %v2489_v17 = vadd.f32 %v2400_v16, %v720_v15 }
 0x30e   : > { %2553 = vst [vmem:[#allocation2 + $0xd0] sm:$0xff] %v2489_v17 }
 0x30f   : > { %v2233_v19 = vpop.f32.mrf.mxu2  ;;  %v1897_v22 = vpop.f32.mrf.mxu0 }
 0x310   : > { %v2402_v20 = vpop.f32.mrf.mxu3  ;;  %v2234_v21 = vadd.f32 %v2233_v19, %v2065_v18  ;;  %v2066_v23 = vpop.f32.mrf.mxu1 }
 0x311   : > { %v2067_v27 = vadd.f32 %v2066_v23, %v1897_v22  ;;  %v728_v23 = vld [vmem:[#allocation2 + $0x190] sm:$0xff] }
 0x312   : > { %v2403_v25 = vadd.f32 %v2402_v20, %v2234_v21 }
 0x314   : > { %v2490_v26 = vadd.f32 %v2403_v25, %v721_v24 }
 0x316   : > { %2554 = vst [vmem:[#allocation2 + $0xb8] sm:$0xff] %v2490_v26 }
 0x317   : > { %v2235_v28 = vpop.f32.mrf.mxu2  ;;  %v1900_v31 = vpop.f32.mrf.mxu0 }
 0x318   : > { %v2404_v29 = vpop.f32.mrf.mxu3  ;;  %v2236_v30 = vadd.f32 %v2235_v28, %v2067_v27  ;;  %v2069_v32 = vpop.f32.mrf.mxu1 }
 0x319   : > { %v2070_v36 = vadd.f32 %v2069_v32, %v1900_v31  ;;  %v729_v32 = vld [vmem:[#allocation2 + $0x198] sm:$0xff] }
 0x31a   : > { %v2405_v34 = vadd.f32 %v2404_v29, %v2236_v30 }
 0x31c   : > { %v2491_v35 = vadd.f32 %v2405_v34, %v722_v33 }
 0x31e   : > { %2555 = vst [vmem:[#allocation2 + $0x88] sm:$0xff] %v2491_v35 }
 0x31f   : > { %v2238_v37 = vpop.f32.mrf.mxu2  ;;  %v1902_v40 = vpop.f32.mrf.mxu0 }
 0x320   : > { %v2407_v38 = vpop.f32.mrf.mxu3  ;;  %v2239_v39 = vadd.f32 %v2238_v37, %v2070_v36  ;;  %v2071_v41 = vpop.f32.mrf.mxu1 }
 0x321   : > { %v2072_v45 = vadd.f32 %v2071_v41, %v1902_v40  ;;  %v730_v41 = vld [vmem:[#allocation2 + $0x38] sm:$0xff] }
 0x322   : > { %v2408_v43 = vadd.f32 %v2407_v38, %v2239_v39 }
 0x324   : > { %v2492_v44 = vadd.f32 %v2408_v43, %v723_v42 }
 0x326   : > { %2556 = vst [vmem:[#allocation2 + $0xa8] sm:$0xff] %v2492_v44 }
 0x327   : > { %v2240_v46 = vpop.f32.mrf.mxu2  ;;  %v1905_v49 = vpop.f32.mrf.mxu0 }
 0x328   : > { %v2409_v47 = vpop.f32.mrf.mxu3  ;;  %v2241_v48 = vadd.f32 %v2240_v46, %v2072_v45  ;;  %v2074_v50 = vpop.f32.mrf.mxu1 }
 0x329   : > { %v2075_v54 = vadd.f32 %v2074_v50, %v1905_v49  ;;  %v731_v50 = vld [vmem:[#allocation2 + $0xc0] sm:$0xff] }
 0x32a   : > { %v2410_v52 = vadd.f32 %v2409_v47, %v2241_v48 }
 0x32c   : > { %v2493_v53 = vadd.f32 %v2410_v52, %v724_v51 }
 0x32e   : > { %2557 = vst [vmem:[#allocation2 + $0x1c8] sm:$0xff] %v2493_v53 }
 0x32f   : > { %v2243_v55 = vpop.f32.mrf.mxu2  ;;  %v1907_v58 = vpop.f32.mrf.mxu0 }
 0x330   : > { %v2412_v56 = vpop.f32.mrf.mxu3  ;;  %v2244_v57 = vadd.f32 %v2243_v55, %v2075_v54  ;;  %v2076_v59 = vpop.f32.mrf.mxu1 }
 0x331   : > { %v2077_v63 = vadd.f32 %v2076_v59, %v1907_v58  ;;  %v732_v59 = vld [vmem:[#allocation2 + $0x1c0] sm:$0xff] }
 0x332   : > { %v2413_v61 = vadd.f32 %v2412_v56, %v2244_v57 }
 0x334   : > { %v2494_v62 = vadd.f32 %v2413_v61, %v725_v60 }
 0x336   : > { %2558 = vst [vmem:[#allocation2 + $0x170] sm:$0xff] %v2494_v62 }
 0x337   : > { %v2245_v0 = vpop.f32.mrf.mxu2  ;;  %v1910_v3 = vpop.f32.mrf.mxu0 }
 0x338   : > { %v2414_v1 = vpop.f32.mrf.mxu3  ;;  %v2246_v2 = vadd.f32 %v2245_v0, %v2077_v63  ;;  %v2079_v4 = vpop.f32.mrf.mxu1 }
 0x339   : > { %v2080_v8 = vadd.f32 %v2079_v4, %v1910_v3  ;;  %v733_v4 = vld [vmem:[#allocation2 + $0x158] sm:$0xff] }
 0x33a   : > { %v2415_v6 = vadd.f32 %v2414_v1, %v2246_v2 }
 0x33c   : > { %v2495_v7 = vadd.f32 %v2415_v6, %v726_v5 }
 0x33e   : > { %2559 = vst [vmem:[#allocation2 + $0x178] sm:$0xff] %v2495_v7 }
 0x33f   : > { %v2248_v9 = vpop.f32.mrf.mxu2  ;;  %v1912_v12 = vpop.f32.mrf.mxu0 }
 0x340   : > { %v2417_v10 = vpop.f32.mrf.mxu3  ;;  %v2249_v11 = vadd.f32 %v2248_v9, %v2080_v8  ;;  %v2081_v13 = vpop.f32.mrf.mxu1 }
 0x341   : > { %v2082_v17 = vadd.f32 %v2081_v13, %v1912_v12 }
 0x342   : > { %v2418_v15 = vadd.f32 %v2417_v10, %v2249_v11  ;;  %v734_v11 = vld [vmem:[#allocation2 + $0x10] sm:$0xff] }
 0x344   : > { %v2496_v16 = vadd.f32 %v2418_v15, %v727_v14 }
 0x346   : > { %2560 = vst [vmem:[#allocation2 + $0x68] sm:$0xff] %v2496_v16 }
 0x347   : > { %v2250_v18 = vpop.f32.mrf.mxu2  ;;  %v1915_v21 = vpop.f32.mrf.mxu0 }
 0x348   : > { %v2419_v19 = vpop.f32.mrf.mxu3  ;;  %v2251_v20 = vadd.f32 %v2250_v18, %v2082_v17  ;;  %v2084_v22 = vpop.f32.mrf.mxu1 }
 0x349   : > { %v2085_v26 = vadd.f32 %v2084_v22, %v1915_v21 }
 0x34a   : > { %v2420_v24 = vadd.f32 %v2419_v19, %v2251_v20  ;;  %v735_v20 = vld [vmem:[#allocation2 + $0x58] sm:$0xff] }
 0x34c   : > { %v2497_v25 = vadd.f32 %v2420_v24, %v728_v23 }
 0x34e   : > { %2561 = vst [vmem:[#allocation2 + $0x190] sm:$0xff] %v2497_v25 }
 0x34f   : > { %v2253_v27 = vpop.f32.mrf.mxu2  ;;  %v1917_v30 = vpop.f32.mrf.mxu0 }
 0x350   : > { %v2422_v28 = vpop.f32.mrf.mxu3  ;;  %v2254_v29 = vadd.f32 %v2253_v27, %v2085_v26  ;;  %v2086_v31 = vpop.f32.mrf.mxu1 }
 0x351   : > { %v2087_v35 = vadd.f32 %v2086_v31, %v1917_v30 }
 0x352   : > { %v2423_v33 = vadd.f32 %v2422_v28, %v2254_v29  ;;  %v736_v28 = vld [vmem:[#allocation2 + $0xa0] sm:$0xff] }
 0x354   : > { %v2498_v34 = vadd.f32 %v2423_v33, %v729_v32 }
 0x356   : > { %2562 = vst [vmem:[#allocation2 + $0x198] sm:$0xff] %v2498_v34 }
 0x357   : > { %v2255_v36 = vpop.f32.mrf.mxu2  ;;  %v1920_v39 = vpop.f32.mrf.mxu0 }
 0x358   : > { %v2424_v37 = vpop.f32.mrf.mxu3  ;;  %v2256_v38 = vadd.f32 %v2255_v36, %v2087_v35  ;;  %v2089_v40 = vpop.f32.mrf.mxu1 }
 0x359   : > { %v2090_v44 = vadd.f32 %v2089_v40, %v1920_v39 }
 0x35a   : > { %v2425_v42 = vadd.f32 %v2424_v37, %v2256_v38 }
 0x35c   : > { %v2499_v43 = vadd.f32 %v2425_v42, %v730_v41 }
 0x35e   : > { %2563 = vst [vmem:[#allocation2 + $0x38] sm:$0xff] %v2499_v43 }
 0x35f   : > { %v2258_v45 = vpop.f32.mrf.mxu2  ;;  %v1922_v48 = vpop.f32.mrf.mxu0 }
 0x360   : > { %v2427_v46 = vpop.f32.mrf.mxu3  ;;  %v2259_v47 = vadd.f32 %v2258_v45, %v2090_v44  ;;  %v2091_v49 = vpop.f32.mrf.mxu1 }
 0x361   : > { %v2092_v53 = vadd.f32 %v2091_v49, %v1922_v48 }
 0x362   : > { %v2428_v51 = vadd.f32 %v2427_v46, %v2259_v47 }
 0x364   : > { %v2500_v52 = vadd.f32 %v2428_v51, %v731_v50 }
 0x366   : > { %2564 = vst [vmem:[#allocation2 + $0xc0] sm:$0xff] %v2500_v52 }
 0x367   : > { %v2260_v54 = vpop.f32.mrf.mxu2  ;;  %v1925_v57 = vpop.f32.mrf.mxu0 }
 0x368   : > { %v2429_v55 = vpop.f32.mrf.mxu3  ;;  %v2261_v56 = vadd.f32 %v2260_v54, %v2092_v53  ;;  %v2094_v58 = vpop.f32.mrf.mxu1 }
 0x369   : > { %v2095_v62 = vadd.f32 %v2094_v58, %v1925_v57 }
 0x36a   : > { %v2430_v60 = vadd.f32 %v2429_v55, %v2261_v56 }
 0x36c   : > { %v2501_v61 = vadd.f32 %v2430_v60, %v732_v59 }
 0x36e   : > { %2565 = vst [vmem:[#allocation2 + $0x1c0] sm:$0xff] %v2501_v61 }
 0x36f   : > { %v2263_v63 = vpop.f32.mrf.mxu2  ;;  %v1927_v2 = vpop.f32.mrf.mxu0 }
 0x370   : > { %v2432_v0 = vpop.f32.mrf.mxu3  ;;  %v2264_v1 = vadd.f32 %v2263_v63, %v2095_v62  ;;  %v2096_v3 = vpop.f32.mrf.mxu1 }
 0x371   : > { %v2097_v7 = vadd.f32 %v2096_v3, %v1927_v2 }
 0x372   : > { %v2433_v5 = vadd.f32 %v2432_v0, %v2264_v1 }
 0x374   : > { %v2502_v6 = vadd.f32 %v2433_v5, %v733_v4 }
 0x376   : > { %2566 = vst [vmem:[#allocation2 + $0x158] sm:$0xff] %v2502_v6 }
 0x377   : > { %v2265_v8 = vpop.f32.mrf.mxu2  ;;  %v1930_v12 = vpop.f32.mrf.mxu0 }
 0x378   : > { %v2434_v9 = vpop.f32.mrf.mxu3  ;;  %v2266_v10 = vadd.f32 %v2265_v8, %v2097_v7  ;;  %v2099_v13 = vpop.f32.mrf.mxu1 }
 0x379   : > { %v2100_v16 = vadd.f32 %v2099_v13, %v1930_v12 }
 0x37a   : > { %v2435_v14 = vadd.f32 %v2434_v9, %v2266_v10 }
 0x37c   : > { %v2503_v15 = vadd.f32 %v2435_v14, %v734_v11 }
 0x37e   : > { %2567 = vst [vmem:[#allocation2 + $0x10] sm:$0xff] %v2503_v15 }
 0x37f   : > { %v2268_v17 = vpop.f32.mrf.mxu2  ;;  %v1932_v22 = vpop.f32.mrf.mxu0 }
 0x380   : > { %v2437_v18 = vpop.f32.mrf.mxu3  ;;  %v2269_v19 = vadd.f32 %v2268_v17, %v2100_v16  ;;  %v2101_v23 = vpop.f32.mrf.mxu1 }
 0x381   : > { %v2102_v25 = vadd.f32 %v2101_v23, %v1932_v22 }
 0x382   : > { %v2438_v21 = vadd.f32 %v2437_v18, %v2269_v19 }
 0x384   : > { %v2504_v24 = vadd.f32 %v2438_v21, %v735_v20 }
 0x386   : > { %2568 = vst [vmem:[#allocation2 + $0x58] sm:$0xff] %v2504_v24 }
 0x387   : > { %v2270_v26 = vpop.f32.mrf.mxu2 }
 0x388   : > { %v2271_v27 = vadd.f32 %v2270_v26, %v2102_v25  ;;  %v2439_v29 = vpop.f32.mrf.mxu3 }
 0x38a   : > { %v2440_v30 = vadd.f32 %v2439_v29, %v2271_v27  ;;  %2573 = sbr.rel (%p3680_p12) target bundleno = 1199 (0x4af), region = 71 }
 0x38c   : > { %v2505_v31 = vadd.f32 %v2440_v30, %v736_v28 }
 0x38e   : > { %2569 = vst [vmem:[#allocation2 + $0xa0] sm:$0xff] %v2505_v31 }
 0x38f   : > { %v2653_v32 = vld [vmem:[%s4936_s3 + $0x78] sm:$0xff]  ;;  %v2652_v33 = vld [vmem:[%s4936_s3 + $0x70] sm:$0xff]  ;;  %v2651_v34 = vld [vmem:[%s4936_s3 + $0x68] sm:$0xff] }
 0x390   : > { %3845 = vmatpush.msra.mxu2 %v2653_v32  ;;  %3846 = vmatpush.msra.mxu3 %v2653_v32  ;;  %v2650_v35 = vld [vmem:[%s4936_s3 + $0x60] sm:$0xff]  ;;  %v2649_v36 = vld [vmem:[%s4936_s3 + $0x58] sm:$0xff]  ;;  %v2648_v37 = vld [vmem:[%s4936_s3 + $0x50] sm:$0xff] }
 0x391   : > { %2658 = vmatpush.msra.mxu0 %v2653_v32  ;;  %3844 = vmatpush.msra.mxu1 %v2653_v32  ;;  %v2647_v38 = vld [vmem:[%s4936_s3 + $0x48] sm:$0xff]  ;;  %v2646_v39 = vld [vmem:[%s4936_s3 + $0x40] sm:$0xff]  ;;  %v2645_v40 = vld [vmem:[%s4936_s3 + $0x38] sm:$0xff] }
 0x392   : > { %3848 = vmatpush.msra.mxu2 %v2652_v33  ;;  %3849 = vmatpush.msra.mxu3 %v2652_v33  ;;  %v2644_v41 = vld [vmem:[%s4936_s3 + $0x30] sm:$0xff]  ;;  %v2643_v42 = vld [vmem:[%s4936_s3 + $0x28] sm:$0xff]  ;;  %v2642_v43 = vld [vmem:[%s4936_s3 + $0x20] sm:$0xff] }
 0x393   : > { %2659 = vmatpush.msra.mxu0 %v2652_v33  ;;  %3847 = vmatpush.msra.mxu1 %v2652_v33  ;;  %v2641_v44 = vld [vmem:[%s4936_s3 + $0x18] sm:$0xff]  ;;  %v2640_v45 = vld [vmem:[%s4936_s3 + $0x10] sm:$0xff]  ;;  %v2639_v46 = vld [vmem:[%s4936_s3 + $0x8] sm:$0xff] }
 0x394   : > { %3851 = vmatpush.msra.mxu2 %v2651_v34  ;;  %3852 = vmatpush.msra.mxu3 %v2651_v34  ;;  %v2638_v47 = vld [vmem:[%s4936_s3] sm:$0xff]  ;;  %v2606_v48 = vld [vmem:[#allocation2 + $0x148] sm:$0xff]  ;;  %v2622_v49 = vld [vmem:[#allocation2 + $0xb8] sm:$0xff] }
 0x395   : > { %2660 = vmatpush.msra.mxu0 %v2651_v34  ;;  %3850 = vmatpush.msra.mxu1 %v2651_v34  ;;  %v2574_v50 = vld [vmem:[#allocation2 + $0xb0] sm:$0xff]  ;;  %v2590_v51 = vld [vmem:[#allocation2 + $0xe0] sm:$0xff]  ;;  %v2623_v53 = vld [vmem:[#allocation2 + $0x88] sm:$0xff] }
 0x396   : > { %3854 = vmatpush.msra.mxu2 %v2650_v35  ;;  %3855 = vmatpush.msra.mxu3 %v2650_v35  ;;  %v2607_v52 = vld [vmem:[#allocation2 + $0x1d0] sm:$0xff]  ;;  %v2591_v55 = vld [vmem:[#allocation2 + $0x188] sm:$0xff]  ;;  %v2608_v56 = vld [vmem:[#allocation2 + $0x100] sm:$0xff] }
 0x397   : > { %2661 = vmatpush.msra.mxu0 %v2650_v35  ;;  %3853 = vmatpush.msra.mxu1 %v2650_v35  ;;  %v2575_v54 = vld [vmem:[#allocation2 + $0x1b0] sm:$0xff]  ;;  %v2624_v57 = vld [vmem:[#allocation2 + $0xa8] sm:$0xff]  ;;  %v2576_v58 = vld [vmem:[#allocation2 + $0xd8] sm:$0xff] }
 0x398   : > { %3857 = vmatpush.msra.mxu2 %v2649_v36  ;;  %3858 = vmatpush.msra.mxu3 %v2649_v36  ;;  %v2592_v59 = vld [vmem:[#allocation2 + $0x138] sm:$0xff]  ;;  %v2609_v60 = vld [vmem:[#allocation2 + $0xc8] sm:$0xff]  ;;  %v2593_v63 = vld [vmem:[#allocation2 + $0x140] sm:$0xff] }
 0x399   : > { %2662 = vmatpush.msra.mxu0 %v2649_v36  ;;  %3856 = vmatpush.msra.mxu1 %v2649_v36  ;;  %v2625_v61 = vld [vmem:[#allocation2 + $0x1c8] sm:$0xff]  ;;  %v2577_v62 = vld [vmem:[#allocation2 + $0x18] sm:$0xff]  ;;  %v2610_v0 = vld [vmem:[#allocation2 + $0x40] sm:$0xff] }
 0x39a   : > { %3860 = vmatpush.msra.mxu2 %v2648_v37  ;;  %3861 = vmatpush.msra.mxu3 %v2648_v37  ;;  %v2626_v1 = vld [vmem:[#allocation2 + $0x170] sm:$0xff]  ;;  %v2594_v3 = vld [vmem:[#allocation2 + $0x80] sm:$0xff]  ;;  %v2611_v4 = vld [vmem:[#allocation2 + $0x1f8] sm:$0xff] }
 0x39b   : > { %2663 = vmatpush.msra.mxu0 %v2648_v37  ;;  %3859 = vmatpush.msra.mxu1 %v2648_v37  ;;  %v2578_v2 = vld [vmem:[#allocation2 + $0x50] sm:$0xff]  ;;  %v2627_v5 = vld [vmem:[#allocation2 + $0x178] sm:$0xff]  ;;  %v2579_v6 = vld [vmem:[#allocation2 + $0x168] sm:$0xff] }
 0x39c   : > { %3863 = vmatpush.msra.mxu2 %v2647_v38  ;;  %3864 = vmatpush.msra.mxu3 %v2647_v38  ;;  %v2595_v7 = vld [vmem:[#allocation2 + $0x1a8] sm:$0xff]  ;;  %v2612_v8 = vld [vmem:[#allocation2 + $0x20] sm:$0xff]  ;;  %v2580_v10 = vld [vmem:[#allocation2 + $0x130] sm:$0xff] }
 0x39d   : > { %2664 = vmatpush.msra.mxu0 %v2647_v38  ;;  %3862 = vmatpush.msra.mxu1 %v2647_v38  ;;  %v2628_v9 = vld [vmem:[#allocation2 + $0x68] sm:$0xff]  ;;  %v2596_v11 = vld [vmem:[#allocation2 + $0x1b8] sm:$0xff]  ;;  %v2629_v13 = vld [vmem:[#allocation2 + $0x190] sm:$0xff] }
 0x39e   : > { %3866 = vmatpush.msra.mxu2 %v2646_v39  ;;  %3867 = vmatpush.msra.mxu3 %v2646_v39  ;;  %v2613_v12 = vld [vmem:[#allocation2 + $0x128] sm:$0xff]  ;;  %v2614_v16 = vld [vmem:[#allocation2 + $0x1a0] sm:$0xff]  ;;  %v2630_v17 = vld [vmem:[#allocation2 + $0x198] sm:$0xff] }
 0x39f   : > { %2665 = vmatpush.msra.mxu0 %v2646_v39  ;;  %3865 = vmatpush.msra.mxu1 %v2646_v39  ;;  %v2581_v14 = vld [vmem:[#allocation2 + $0x48] sm:$0xff]  ;;  %v2582_v18 = vld [vmem:[#allocation2 + $0x180] sm:$0xff]  ;;  %v2615_v20 = vld [vmem:[#allocation2 + $0x1f0] sm:$0xff] }
 0x3a0   : > { %3869 = vmatpush.msra.mxu2 %v2645_v40  ;;  %3870 = vmatpush.msra.mxu3 %v2645_v40  ;;  %v2597_v15 = vld [vmem:[#allocation2 + $0x28] sm:$0xff]  ;;  %v2631_v21 = vld [vmem:[#allocation2 + $0x38] sm:$0xff]  ;;  %v2583_v22 = vld [vmem:[#allocation2 + $0x110] sm:$0xff] }
 0x3a1   : > { %2666 = vmatpush.msra.mxu0 %v2645_v40  ;;  %3868 = vmatpush.msra.mxu1 %v2645_v40  ;;  %v2598_v19 = vld [vmem:[#allocation2 + $0x1e8] sm:$0xff]  ;;  %v2599_v23 = vld [vmem:[#allocation2 + $0xf8] sm:$0xff]  ;;  %v2632_v25 = vld [vmem:[#allocation2 + $0xc0] sm:$0xff] }
 0x3a2   : > { %3872 = vmatpush.msra.mxu2 %v2644_v41  ;;  %3873 = vmatpush.msra.mxu3 %v2644_v41  ;;  %v2616_v24 = vld [vmem:[#allocation2 + $0xe8] sm:$0xff]  ;;  %v2584_v26 = vld [vmem:[#allocation2 + $0x118] sm:$0xff]  ;;  %v2600_v27 = vld [vmem:[#allocation2 + $0x160] sm:$0xff] }
 0x3a3   : > { %2667 = vmatpush.msra.mxu0 %v2644_v41  ;;  %3871 = vmatpush.msra.mxu1 %v2644_v41  ;;  %v2617_v28 = vld [vmem:[#allocation2 + $0x78] sm:$0xff]  ;;  %v2633_v29 = vld [vmem:[#allocation2 + $0x1c0] sm:$0xff]  ;;  %v2601_v31 = vld [vmem:[#allocation2 + $0x30] sm:$0xff] }
 0x3a4   : > { %3875 = vmatpush.msra.mxu2 %v2643_v42  ;;  %3876 = vmatpush.msra.mxu3 %v2643_v42  ;;  %v2585_v30 = vld [vmem:[#allocation2 + $0x98] sm:$0xff]  ;;  %v2618_v32 = vld [vmem:[#allocation2 + $0x70] sm:$0xff]  ;;  %v2586_v34 = vld [vmem:[#allocation2 + $0x120] sm:$0xff] }
 0x3a5   : > { %2668 = vmatpush.msra.mxu0 %v2643_v42  ;;  %3874 = vmatpush.msra.mxu1 %v2643_v42  ;;  %v2634_v33 = vld [vmem:[#allocation2 + $0x158] sm:$0xff]  ;;  %v2602_v35 = vld [vmem:[#allocation2 + $0x1e0] sm:$0xff]  ;;  %v2619_v36 = vld [vmem:[#allocation2 + $0x90] sm:$0xff] }
 0x3a6   : > { %3878 = vmatpush.msra.mxu2 %v2642_v43  ;;  %3879 = vmatpush.msra.mxu3 %v2642_v43  ;;  %v2635_v37 = vld [vmem:[#allocation2 + $0x10] sm:$0xff]  ;;  %v2603_v39 = vld [vmem:[#allocation2] sm:$0xff]  ;;  %v2620_v40 = vld [vmem:[#allocation2 + $0x1d8] sm:$0xff] }
 0x3a7   : > { %2669 = vmatpush.msra.mxu0 %v2642_v43  ;;  %3877 = vmatpush.msra.mxu1 %v2642_v43  ;;  %v2587_v38 = vld [vmem:[#allocation2 + $0x150] sm:$0xff]  ;;  %v2636_v41 = vld [vmem:[#allocation2 + $0x58] sm:$0xff]  ;;  %v2588_v42 = vld [vmem:[#allocation2 + $0x108] sm:$0xff] }
 0x3a8   : > { %3881 = vmatpush.msra.mxu2 %v2641_v44  ;;  %3882 = vmatpush.msra.mxu3 %v2641_v44  ;;  %v2604_v43 = vld [vmem:[#allocation2 + $0xf0] sm:$0xff] }
 0x3a9   : > { %2670 = vmatpush.msra.mxu0 %v2641_v44  ;;  %3880 = vmatpush.msra.mxu1 %v2641_v44  ;;  %v2621_v44 = vld [vmem:[#allocation2 + $0xd0] sm:$0xff] }
 0x3aa   : > { %3884 = vmatpush.msra.mxu2 %v2640_v45  ;;  %3885 = vmatpush.msra.mxu3 %v2640_v45 }
 0x3ab   : > { %2671 = vmatpush.msra.mxu0 %v2640_v45  ;;  %3883 = vmatpush.msra.mxu1 %v2640_v45  ;;  %v2637_v45 = vld [vmem:[#allocation2 + $0xa0] sm:$0xff] }
 0x3ac   : > { %3887 = vmatpush.msra.mxu2 %v2639_v46  ;;  %3888 = vmatpush.msra.mxu3 %v2639_v46 }
 0x3ad   : > { %2672 = vmatpush.msra.mxu0 %v2639_v46  ;;  %3886 = vmatpush.msra.mxu1 %v2639_v46  ;;  %v2589_v46 = vld [vmem:[#allocation2 + $0x60] sm:$0xff] }
 0x3ae   : > { %3890 = vmatpush.msra.mxu2 %v2638_v47  ;;  %3891 = vmatpush.msra.mxu3 %v2638_v47 }
 0x3af   : > { %2770 = vmatmul.f32.vlgmr.msra.gmra.mxu2 %v2606_v48  ;;  %2818 = vmatmul.f32.vlgmr.msra.gmra.mxu3 %v2622_v49  ;;  %v4782_v48 = vld [vmem:[%s4937_s4] ss:$0 sm:$0xff] }
 0x3b0   : > { %2673 = vmatpush.msra.mxu0 %v2638_v47  ;;  %3889 = vmatpush.msra.mxu1 %v2638_v47  ;;  %v2605_v47 = vld [vmem:[#allocation2 + $0x8] sm:$0xff] }
 0x3b1   : > { %2674 = vmatmul.f32.vlgmr.msra.gmra.mxu0 %v2574_v50  ;;  %2722 = vmatmul.f32.vlgmr.msra.gmra.mxu1 %v2590_v51 }
 0x3b7   : > { %2773 = vmatmul.f32.gmra.mxu2 %v2607_v52  ;;  %2821 = vmatmul.f32.gmra.mxu3 %v2623_v53 }
 0x3b9   : > { %2677 = vmatmul.f32.gmra.mxu0 %v2575_v54  ;;  %2725 = vmatmul.f32.gmra.mxu1 %v2591_v55 }
 0x3bf   : > { %2776 = vmatmul.f32.gmra.mxu2 %v2608_v56  ;;  %2824 = vmatmul.f32.gmra.mxu3 %v2624_v57 }
 0x3c1   : > { %2680 = vmatmul.f32.gmra.mxu0 %v2576_v58  ;;  %2728 = vmatmul.f32.gmra.mxu1 %v2592_v59 }
 0x3c7   : > { %2779 = vmatmul.f32.gmra.mxu2 %v2609_v60  ;;  %2827 = vmatmul.f32.gmra.mxu3 %v2625_v61 }
 0x3c9   : > { %2683 = vmatmul.f32.gmra.mxu0 %v2577_v62  ;;  %2731 = vmatmul.f32.gmra.mxu1 %v2593_v63 }
 0x3cf   : > { %2782 = vmatmul.f32.gmra.mxu2 %v2610_v0  ;;  %2830 = vmatmul.f32.gmra.mxu3 %v2626_v1 }
 0x3d1   : > { %2686 = vmatmul.f32.gmra.mxu0 %v2578_v2  ;;  %2734 = vmatmul.f32.gmra.mxu1 %v2594_v3 }
 0x3d7   : > { %2785 = vmatmul.f32.gmra.mxu2 %v2611_v4  ;;  %2833 = vmatmul.f32.gmra.mxu3 %v2627_v5 }
 0x3d9   : > { %2689 = vmatmul.f32.gmra.mxu0 %v2579_v6  ;;  %2737 = vmatmul.f32.gmra.mxu1 %v2595_v7 }
 0x3df   : > { %2788 = vmatmul.f32.gmra.mxu2 %v2612_v8  ;;  %2836 = vmatmul.f32.gmra.mxu3 %v2628_v9 }
 0x3e1   : > { %2692 = vmatmul.f32.gmra.mxu0 %v2580_v10  ;;  %2740 = vmatmul.f32.gmra.mxu1 %v2596_v11 }
 0x3e7   : > { %2791 = vmatmul.f32.gmra.mxu2 %v2613_v12  ;;  %2839 = vmatmul.f32.gmra.mxu3 %v2629_v13 }
 0x3e9   : > { %2695 = vmatmul.f32.gmra.mxu0 %v2581_v14  ;;  %2743 = vmatmul.f32.gmra.mxu1 %v2597_v15 }
 0x3ef   : > { %2794 = vmatmul.f32.gmra.mxu2 %v2614_v16  ;;  %2842 = vmatmul.f32.gmra.mxu3 %v2630_v17 }
 0x3f1   : > { %2698 = vmatmul.f32.gmra.mxu0 %v2582_v18  ;;  %2746 = vmatmul.f32.gmra.mxu1 %v2598_v19 }
 0x3f7   : > { %2797 = vmatmul.f32.gmra.mxu2 %v2615_v20  ;;  %2845 = vmatmul.f32.gmra.mxu3 %v2631_v21 }
 0x3f9   : > { %2701 = vmatmul.f32.gmra.mxu0 %v2583_v22  ;;  %2749 = vmatmul.f32.gmra.mxu1 %v2599_v23 }
 0x3ff   : > { %2800 = vmatmul.f32.gmra.mxu2 %v2616_v24  ;;  %2848 = vmatmul.f32.gmra.mxu3 %v2632_v25 }
 0x401   : > { %2704 = vmatmul.f32.gmra.mxu0 %v2584_v26  ;;  %2752 = vmatmul.f32.gmra.mxu1 %v2600_v27 }
 0x407   : > { %2803 = vmatmul.f32.gmra.mxu2 %v2617_v28  ;;  %2851 = vmatmul.f32.gmra.mxu3 %v2633_v29 }
 0x409   : > { %2707 = vmatmul.f32.gmra.mxu0 %v2585_v30  ;;  %2755 = vmatmul.f32.gmra.mxu1 %v2601_v31 }
 0x40f   : > { %2806 = vmatmul.f32.gmra.mxu2 %v2618_v32  ;;  %2854 = vmatmul.f32.gmra.mxu3 %v2634_v33 }
 0x411   : > { %2710 = vmatmul.f32.gmra.mxu0 %v2586_v34  ;;  %2758 = vmatmul.f32.gmra.mxu1 %v2602_v35 }
 0x417   : > { %2809 = vmatmul.f32.gmra.mxu2 %v2619_v36  ;;  %2857 = vmatmul.f32.gmra.mxu3 %v2635_v37 }
 0x419   : > { %2713 = vmatmul.f32.gmra.mxu0 %v2587_v38  ;;  %2761 = vmatmul.f32.gmra.mxu1 %v2603_v39 }
 0x41f   : > { %2812 = vmatmul.f32.gmra.mxu2 %v2620_v40  ;;  %2860 = vmatmul.f32.gmra.mxu3 %v2636_v41 }
 0x421   : > { %2716 = vmatmul.f32.gmra.mxu0 %v2588_v42  ;;  %2764 = vmatmul.f32.gmra.mxu1 %v2604_v43 }
 0x427   : > { %2815 = vmatmul.f32.gmra.mxu2 %v2621_v44  ;;  %2863 = vmatmul.f32.gmra.mxu3 %v2637_v45 }
 0x429   : > { %2719 = vmatmul.f32.gmra.mxu0 %v2589_v46  ;;  %2767 = vmatmul.f32.gmra.mxu1 %v2605_v47 }
 0x42e   : > { %v2675_v49 = vpop.f32.mrf.mxu0  ;;  %v2723_v50 = vpop.f32.mrf.mxu1 }
 0x42f   : > { %v2676_v51 = vadd.f32 %v4782_v48, %v2675_v49  ;;  %v2724_v52 = vadd.f32 %v4782_v48, %v2723_v50 }
 0x431   : > { %2867 = vst [vmem:[%s4367_s11] sm:$0xff] %v2676_v51 }
 0x432   : > { %2883 = vst [vmem:[%s4367_s11 + $0x80] sm:$0xff] %v2724_v52  ;;  %v2771_v53 = vpop.f32.mrf.mxu2  ;;  %v2819_v54 = vpop.f32.mrf.mxu3 }
 0x433   : > { %v2772_v55 = vadd.f32 %v4782_v48, %v2771_v53  ;;  %v2820_v56 = vadd.f32 %v4782_v48, %v2819_v54 }
 0x435   : > { %2899 = vst [vmem:[%s4367_s11 + $0x100] sm:$0xff] %v2772_v55 }
 0x436   : > { %2915 = vst [vmem:[%s4367_s11 + $0x180] sm:$0xff] %v2820_v56  ;;  %v2678_v57 = vpop.f32.mrf.mxu0  ;;  %v2726_v58 = vpop.f32.mrf.mxu1 }
 0x437   : > { %v2679_v59 = vadd.f32 %v4782_v48, %v2678_v57  ;;  %v2727_v60 = vadd.f32 %v4782_v48, %v2726_v58 }
 0x439   : > { %2868 = vst [vmem:[%s4367_s11 + $0x8] sm:$0xff] %v2679_v59 }
 0x43a   : > { %2884 = vst [vmem:[%s4367_s11 + $0x88] sm:$0xff] %v2727_v60  ;;  %v2774_v61 = vpop.f32.mrf.mxu2  ;;  %v2822_v62 = vpop.f32.mrf.mxu3 }
 0x43b   : > { %v2775_v63 = vadd.f32 %v4782_v48, %v2774_v61  ;;  %v2823_v0 = vadd.f32 %v4782_v48, %v2822_v62 }
 0x43d   : > { %2900 = vst [vmem:[%s4367_s11 + $0x108] sm:$0xff] %v2775_v63 }
 0x43e   : > { %2916 = vst [vmem:[%s4367_s11 + $0x188] sm:$0xff] %v2823_v0  ;;  %v2681_v1 = vpop.f32.mrf.mxu0  ;;  %v2729_v2 = vpop.f32.mrf.mxu1 }
 0x43f   : > { %v2682_v3 = vadd.f32 %v4782_v48, %v2681_v1  ;;  %v2730_v4 = vadd.f32 %v4782_v48, %v2729_v2 }
 0x441   : > { %2869 = vst [vmem:[%s4367_s11 + $0x10] sm:$0xff] %v2682_v3 }
 0x442   : > { %2885 = vst [vmem:[%s4367_s11 + $0x90] sm:$0xff] %v2730_v4  ;;  %v2777_v5 = vpop.f32.mrf.mxu2  ;;  %v2825_v6 = vpop.f32.mrf.mxu3 }
 0x443   : > { %v2778_v7 = vadd.f32 %v4782_v48, %v2777_v5  ;;  %v2826_v8 = vadd.f32 %v4782_v48, %v2825_v6 }
 0x445   : > { %2901 = vst [vmem:[%s4367_s11 + $0x110] sm:$0xff] %v2778_v7 }
 0x446   : > { %2917 = vst [vmem:[%s4367_s11 + $0x190] sm:$0xff] %v2826_v8  ;;  %v2684_v9 = vpop.f32.mrf.mxu0  ;;  %v2732_v10 = vpop.f32.mrf.mxu1 }
 0x447   : > { %v2685_v11 = vadd.f32 %v4782_v48, %v2684_v9  ;;  %v2733_v12 = vadd.f32 %v4782_v48, %v2732_v10 }
 0x449   : > { %2870 = vst [vmem:[%s4367_s11 + $0x18] sm:$0xff] %v2685_v11 }
 0x44a   : > { %2886 = vst [vmem:[%s4367_s11 + $0x98] sm:$0xff] %v2733_v12  ;;  %v2780_v13 = vpop.f32.mrf.mxu2  ;;  %v2828_v14 = vpop.f32.mrf.mxu3 }
 0x44b   : > { %v2781_v15 = vadd.f32 %v4782_v48, %v2780_v13  ;;  %v2829_v16 = vadd.f32 %v4782_v48, %v2828_v14 }
 0x44d   : > { %2902 = vst [vmem:[%s4367_s11 + $0x118] sm:$0xff] %v2781_v15 }
 0x44e   : > { %2918 = vst [vmem:[%s4367_s11 + $0x198] sm:$0xff] %v2829_v16  ;;  %v2687_v17 = vpop.f32.mrf.mxu0  ;;  %v2735_v18 = vpop.f32.mrf.mxu1 }
 0x44f   : > { %v2688_v19 = vadd.f32 %v4782_v48, %v2687_v17  ;;  %v2736_v20 = vadd.f32 %v4782_v48, %v2735_v18 }
 0x451   : > { %2871 = vst [vmem:[%s4367_s11 + $0x20] sm:$0xff] %v2688_v19 }
 0x452   : > { %2887 = vst [vmem:[%s4367_s11 + $0xa0] sm:$0xff] %v2736_v20  ;;  %v2783_v21 = vpop.f32.mrf.mxu2  ;;  %v2831_v22 = vpop.f32.mrf.mxu3 }
 0x453   : > { %v2784_v23 = vadd.f32 %v4782_v48, %v2783_v21  ;;  %v2832_v24 = vadd.f32 %v4782_v48, %v2831_v22 }
 0x455   : > { %2903 = vst [vmem:[%s4367_s11 + $0x120] sm:$0xff] %v2784_v23 }
 0x456   : > { %2919 = vst [vmem:[%s4367_s11 + $0x1a0] sm:$0xff] %v2832_v24  ;;  %v2690_v25 = vpop.f32.mrf.mxu0  ;;  %v2738_v26 = vpop.f32.mrf.mxu1 }
 0x457   : > { %v2691_v27 = vadd.f32 %v4782_v48, %v2690_v25  ;;  %v2739_v28 = vadd.f32 %v4782_v48, %v2738_v26 }
 0x459   : > { %2872 = vst [vmem:[%s4367_s11 + $0x28] sm:$0xff] %v2691_v27 }
 0x45a   : > { %2888 = vst [vmem:[%s4367_s11 + $0xa8] sm:$0xff] %v2739_v28  ;;  %v2786_v29 = vpop.f32.mrf.mxu2  ;;  %v2834_v30 = vpop.f32.mrf.mxu3 }
 0x45b   : > { %v2787_v31 = vadd.f32 %v4782_v48, %v2786_v29  ;;  %v2835_v32 = vadd.f32 %v4782_v48, %v2834_v30 }
 0x45d   : > { %2904 = vst [vmem:[%s4367_s11 + $0x128] sm:$0xff] %v2787_v31 }
 0x45e   : > { %2920 = vst [vmem:[%s4367_s11 + $0x1a8] sm:$0xff] %v2835_v32  ;;  %v2693_v33 = vpop.f32.mrf.mxu0  ;;  %v2741_v34 = vpop.f32.mrf.mxu1 }
 0x45f   : > { %v2694_v35 = vadd.f32 %v4782_v48, %v2693_v33  ;;  %v2742_v36 = vadd.f32 %v4782_v48, %v2741_v34 }
 0x461   : > { %2873 = vst [vmem:[%s4367_s11 + $0x30] sm:$0xff] %v2694_v35 }
 0x462   : > { %2889 = vst [vmem:[%s4367_s11 + $0xb0] sm:$0xff] %v2742_v36  ;;  %v2789_v37 = vpop.f32.mrf.mxu2  ;;  %v2837_v38 = vpop.f32.mrf.mxu3 }
 0x463   : > { %v2790_v39 = vadd.f32 %v4782_v48, %v2789_v37  ;;  %v2838_v40 = vadd.f32 %v4782_v48, %v2837_v38 }
 0x465   : > { %2905 = vst [vmem:[%s4367_s11 + $0x130] sm:$0xff] %v2790_v39 }
 0x466   : > { %2921 = vst [vmem:[%s4367_s11 + $0x1b0] sm:$0xff] %v2838_v40  ;;  %v2696_v41 = vpop.f32.mrf.mxu0  ;;  %v2744_v42 = vpop.f32.mrf.mxu1 }
 0x467   : > { %v2697_v43 = vadd.f32 %v4782_v48, %v2696_v41  ;;  %v2745_v44 = vadd.f32 %v4782_v48, %v2744_v42 }
 0x469   : > { %2874 = vst [vmem:[%s4367_s11 + $0x38] sm:$0xff] %v2697_v43 }
 0x46a   : > { %2890 = vst [vmem:[%s4367_s11 + $0xb8] sm:$0xff] %v2745_v44  ;;  %v2792_v45 = vpop.f32.mrf.mxu2  ;;  %v2840_v46 = vpop.f32.mrf.mxu3 }
 0x46b   : > { %v2793_v47 = vadd.f32 %v4782_v48, %v2792_v45  ;;  %v2841_v49 = vadd.f32 %v4782_v48, %v2840_v46 }
 0x46d   : > { %2906 = vst [vmem:[%s4367_s11 + $0x138] sm:$0xff] %v2793_v47 }
 0x46e   : > { %2922 = vst [vmem:[%s4367_s11 + $0x1b8] sm:$0xff] %v2841_v49  ;;  %v2699_v50 = vpop.f32.mrf.mxu0  ;;  %v2747_v51 = vpop.f32.mrf.mxu1 }
 0x46f   : > { %v2700_v52 = vadd.f32 %v4782_v48, %v2699_v50  ;;  %v2748_v53 = vadd.f32 %v4782_v48, %v2747_v51 }
 0x471   : > { %2875 = vst [vmem:[%s4367_s11 + $0x40] sm:$0xff] %v2700_v52 }
 0x472   : > { %2891 = vst [vmem:[%s4367_s11 + $0xc0] sm:$0xff] %v2748_v53  ;;  %v2795_v54 = vpop.f32.mrf.mxu2  ;;  %v2843_v55 = vpop.f32.mrf.mxu3 }
 0x473   : > { %v2796_v56 = vadd.f32 %v4782_v48, %v2795_v54  ;;  %v2844_v57 = vadd.f32 %v4782_v48, %v2843_v55 }
 0x475   : > { %2907 = vst [vmem:[%s4367_s11 + $0x140] sm:$0xff] %v2796_v56 }
 0x476   : > { %2923 = vst [vmem:[%s4367_s11 + $0x1c0] sm:$0xff] %v2844_v57  ;;  %v2702_v58 = vpop.f32.mrf.mxu0  ;;  %v2750_v59 = vpop.f32.mrf.mxu1 }
 0x477   : > { %v2703_v60 = vadd.f32 %v4782_v48, %v2702_v58  ;;  %v2751_v61 = vadd.f32 %v4782_v48, %v2750_v59 }
 0x479   : > { %2876 = vst [vmem:[%s4367_s11 + $0x48] sm:$0xff] %v2703_v60 }
 0x47a   : > { %2892 = vst [vmem:[%s4367_s11 + $0xc8] sm:$0xff] %v2751_v61  ;;  %v2798_v62 = vpop.f32.mrf.mxu2  ;;  %v2846_v63 = vpop.f32.mrf.mxu3 }
 0x47b   : > { %v2799_v0 = vadd.f32 %v4782_v48, %v2798_v62  ;;  %v2847_v1 = vadd.f32 %v4782_v48, %v2846_v63 }
 0x47d   : > { %2908 = vst [vmem:[%s4367_s11 + $0x148] sm:$0xff] %v2799_v0 }
 0x47e   : > { %2924 = vst [vmem:[%s4367_s11 + $0x1c8] sm:$0xff] %v2847_v1  ;;  %v2705_v2 = vpop.f32.mrf.mxu0  ;;  %v2753_v3 = vpop.f32.mrf.mxu1 }
 0x47f   : > { %v2706_v4 = vadd.f32 %v4782_v48, %v2705_v2  ;;  %v2754_v5 = vadd.f32 %v4782_v48, %v2753_v3 }
 0x481   : > { %2877 = vst [vmem:[%s4367_s11 + $0x50] sm:$0xff] %v2706_v4 }
 0x482   : > { %2893 = vst [vmem:[%s4367_s11 + $0xd0] sm:$0xff] %v2754_v5  ;;  %v2801_v6 = vpop.f32.mrf.mxu2  ;;  %v2849_v7 = vpop.f32.mrf.mxu3 }
 0x483   : > { %v2802_v8 = vadd.f32 %v4782_v48, %v2801_v6  ;;  %v2850_v9 = vadd.f32 %v4782_v48, %v2849_v7 }
 0x485   : > { %2909 = vst [vmem:[%s4367_s11 + $0x150] sm:$0xff] %v2802_v8 }
 0x486   : > { %2925 = vst [vmem:[%s4367_s11 + $0x1d0] sm:$0xff] %v2850_v9  ;;  %v2708_v10 = vpop.f32.mrf.mxu0  ;;  %v2756_v11 = vpop.f32.mrf.mxu1 }
 0x487   : > { %v2709_v12 = vadd.f32 %v4782_v48, %v2708_v10  ;;  %v2757_v13 = vadd.f32 %v4782_v48, %v2756_v11 }
 0x489   : > { %2878 = vst [vmem:[%s4367_s11 + $0x58] sm:$0xff] %v2709_v12 }
 0x48a   : > { %2894 = vst [vmem:[%s4367_s11 + $0xd8] sm:$0xff] %v2757_v13  ;;  %v2804_v14 = vpop.f32.mrf.mxu2  ;;  %v2852_v15 = vpop.f32.mrf.mxu3 }
 0x48b   : > { %v2805_v16 = vadd.f32 %v4782_v48, %v2804_v14  ;;  %v2853_v17 = vadd.f32 %v4782_v48, %v2852_v15 }
 0x48d   : > { %2910 = vst [vmem:[%s4367_s11 + $0x158] sm:$0xff] %v2805_v16 }
 0x48e   : > { %2926 = vst [vmem:[%s4367_s11 + $0x1d8] sm:$0xff] %v2853_v17  ;;  %v2711_v18 = vpop.f32.mrf.mxu0  ;;  %v2759_v19 = vpop.f32.mrf.mxu1 }
 0x48f   : > { %v2712_v20 = vadd.f32 %v4782_v48, %v2711_v18  ;;  %v2760_v21 = vadd.f32 %v4782_v48, %v2759_v19 }
 0x491   : > { %2879 = vst [vmem:[%s4367_s11 + $0x60] sm:$0xff] %v2712_v20 }
 0x492   : > { %2895 = vst [vmem:[%s4367_s11 + $0xe0] sm:$0xff] %v2760_v21  ;;  %v2807_v22 = vpop.f32.mrf.mxu2  ;;  %v2855_v23 = vpop.f32.mrf.mxu3 }
 0x493   : > { %v2808_v24 = vadd.f32 %v4782_v48, %v2807_v22  ;;  %v2856_v25 = vadd.f32 %v4782_v48, %v2855_v23 }
 0x495   : > { %2911 = vst [vmem:[%s4367_s11 + $0x160] sm:$0xff] %v2808_v24 }
 0x496   : > { %2927 = vst [vmem:[%s4367_s11 + $0x1e0] sm:$0xff] %v2856_v25  ;;  %v2714_v26 = vpop.f32.mrf.mxu0  ;;  %v2762_v27 = vpop.f32.mrf.mxu1 }
 0x497   : > { %v2715_v28 = vadd.f32 %v4782_v48, %v2714_v26  ;;  %v2763_v29 = vadd.f32 %v4782_v48, %v2762_v27 }
 0x499   : > { %2880 = vst [vmem:[%s4367_s11 + $0x68] sm:$0xff] %v2715_v28 }
 0x49a   : > { %2896 = vst [vmem:[%s4367_s11 + $0xe8] sm:$0xff] %v2763_v29  ;;  %v2810_v30 = vpop.f32.mrf.mxu2  ;;  %v2858_v31 = vpop.f32.mrf.mxu3 }
 0x49b   : > { %v2811_v32 = vadd.f32 %v4782_v48, %v2810_v30  ;;  %v2859_v33 = vadd.f32 %v4782_v48, %v2858_v31 }
 0x49d   : > { %2912 = vst [vmem:[%s4367_s11 + $0x168] sm:$0xff] %v2811_v32 }
 0x49e   : > { %2928 = vst [vmem:[%s4367_s11 + $0x1e8] sm:$0xff] %v2859_v33  ;;  %v2717_v34 = vpop.f32.mrf.mxu0  ;;  %v2765_v35 = vpop.f32.mrf.mxu1 }
 0x49f   : > { %v2718_v36 = vadd.f32 %v4782_v48, %v2717_v34  ;;  %v2766_v37 = vadd.f32 %v4782_v48, %v2765_v35 }
 0x4a1   : > { %2881 = vst [vmem:[%s4367_s11 + $0x70] sm:$0xff] %v2718_v36 }
 0x4a2   : > { %2897 = vst [vmem:[%s4367_s11 + $0xf0] sm:$0xff] %v2766_v37  ;;  %v2813_v38 = vpop.f32.mrf.mxu2  ;;  %v2861_v39 = vpop.f32.mrf.mxu3 }
 0x4a3   : > { %v2814_v40 = vadd.f32 %v4782_v48, %v2813_v38  ;;  %v2862_v41 = vadd.f32 %v4782_v48, %v2861_v39 }
 0x4a5   : > { %2913 = vst [vmem:[%s4367_s11 + $0x170] sm:$0xff] %v2814_v40 }
 0x4a6   : > { %2929 = vst [vmem:[%s4367_s11 + $0x1f0] sm:$0xff] %v2862_v41  ;;  %v2720_v42 = vpop.f32.mrf.mxu0  ;;  %v2768_v43 = vpop.f32.mrf.mxu1 }
 0x4a7   : > { %v2721_v44 = vadd.f32 %v4782_v48, %v2720_v42  ;;  %v2769_v45 = vadd.f32 %v4782_v48, %v2768_v43 }
 0x4a9   : > { %2882 = vst [vmem:[%s4367_s11 + $0x78] sm:$0xff] %v2721_v44 }
 0x4aa   : > { %2898 = vst [vmem:[%s4367_s11 + $0xf8] sm:$0xff] %v2769_v45  ;;  %v2816_v46 = vpop.f32.mrf.mxu2  ;;  %v2864_v47 = vpop.f32.mrf.mxu3 }
 0x4ab   : > { %v2817_v49 = vadd.f32 %v4782_v48, %v2816_v46  ;;  %v2865_v50 = vadd.f32 %v4782_v48, %v2864_v47 }
 0x4ad   : > { %2914 = vst [vmem:[%s4367_s11 + $0x178] sm:$0xff] %v2817_v49 }
 0x4ae   : > { %2930 = vst [vmem:[%s4367_s11 + $0x1f8] sm:$0xff] %v2865_v50 }
 0x4af PF: > { %s15_s24 = sadd.s32 1, %s4003_s24   ;;  %s4939_s18 = smov %s3983_s19 }
 0x4b0   : > { %p12_p13 = scmp.ge.s32.totalorder %s15_s24, 6   ;;  %s4940_s19 = smov %s4086_s6 }
 0x4b1   : > { %s4941_s20 = smov %s3995_s22  ;;  %s4942_s21 = smov %s3999_s23 }
 0x4b2   : > { %s4943_s22 = smov %s4946_s25  ;;  %s4944_s23 = smov %s4950_s26 }
 0x4b3   :  { %14 = sbr.rel (!%p12_p13) target bundleno = 4 (0x4), region = 110 }

</bundles_post_ra>
